<compile_context>
chip_gen: v7x
topology: tpu7x:2x2x1
jax: 0.10.0
libtpu: 0.0.40
codegen_flags: <defaults>
</compile_context>

<pallas_src>
import jax
import jax.numpy as jnp
from jax import lax
from jax.experimental import pallas as pl
from jax.experimental.pallas import tpu as pltpu

# --- mini-BERT config (small stand-in for hidden_size=768, 12 layers) -------
H = 128           # hidden size
NUM_HEADS = 2
HEAD_DIM = H // NUM_HEADS
INTERMEDIATE = 256
NUM_LAYERS = 2
VOCAB = 100
TYPE_VOCAB = 2
MAX_LEN = 8       # max_length (sequence length)

BB = 16           # sequences per grid step (batch block)
M = BB * MAX_LEN  # MXU row dimension per step = 128

ATTN_SCALE = 1.0 / (HEAD_DIM ** 0.5)


# ------------------------------ kernel helpers -------------------------------
def _layernorm(x, g, b):
    # f32 VPU math, eps matches BERT
    mean = jnp.mean(x, axis=-1, keepdims=True)
    var = jnp.mean((x - mean) ** 2, axis=-1, keepdims=True)
    return (x - mean) * lax.rsqrt(var + 1e-12) * g + b


def _mm(x, w_bf16):
    # bf16 MXU operands, f32 accumulation
    return jnp.dot(x.astype(jnp.bfloat16), w_bf16,
                   preferred_element_type=jnp.float32)


# ------------------------------ fused kernel --------------------------------
def _encoder_kernel(emb_ref, mask_ref,
                    emb_g_ref, emb_b_ref,
                    wqkv_ref, bqkv_ref,
                    wo_ref, bo_ref,
                    ln1_g_ref, ln1_b_ref,
                    w1_ref, b1_ref,
                    w2_ref, b2_ref,
                    ln2_g_ref, ln2_b_ref,
                    pw_ref, pb_ref,
                    out_ref):
    S = MAX_LEN
    # (BB, S, H) bf16 input slab -> (M, H) f32 working set.  The whole batch
    # block lives in vregs/VMEM for the entire encoder.
    h = emb_ref[...].astype(jnp.float32).reshape(M, H)
    h = _layernorm(h, emb_g_ref[...], emb_b_ref[...])

    # HF-style additive attention mask: per key, broadcast over queries.
    # Hoisted out of the layer loop.  (BB, 1, S) f32
    bias = (1.0 - mask_ref[...]) * -10000.0

    for l in range(NUM_LAYERS):                               # static unroll
        # ---- Q/K/V as three N=128 matmuls (no (M, 3H) f32 intermediate ->
        #      keeps vreg pressure down).  ATTN_SCALE is pre-folded into the
        #      Q weights/bias, and q/k/v are cast to bf16 once here.
        h_bf = h.astype(jnp.bfloat16)
        q = (jnp.dot(h_bf, wqkv_ref[l, 0], preferred_element_type=jnp.float32)
             + bqkv_ref[l, 0]).reshape(BB, S, H).astype(jnp.bfloat16)
        k = (jnp.dot(h_bf, wqkv_ref[l, 1], preferred_element_type=jnp.float32)
             + bqkv_ref[l, 1]).reshape(BB, S, H).astype(jnp.bfloat16)
        v = (jnp.dot(h_bf, wqkv_ref[l, 2], preferred_element_type=jnp.float32)
             + bqkv_ref[l, 2]).reshape(BB, S, H).astype(jnp.bfloat16)

        # ---- multi-head attention, batched over the BB sequences.  Output
        #      projection folded in per head (ctx @ wo == sum_h ctx_h @ wo_h),
        #      so every MXU result written back is lane-dense (M, 128).
        wo_l = wo_ref[l]                                      # (H, H) bf16
        attn_out = bo_ref[l]                                  # (1, H) f32
        for hd in range(NUM_HEADS):
            sl = slice(hd * HEAD_DIM, (hd + 1) * HEAD_DIM)
            qh, kh, vh = q[:, :, sl], k[:, :, sl], v[:, :, sl]  # (BB,S,dH) bf16
            s = jnp.einsum('bqd,bkd->bqk', qh, kh,
                           preferred_element_type=jnp.float32)  # (BB, S, S)
            s = s + bias
            s = s - jnp.max(s, axis=-1, keepdims=True)
            p = jnp.exp(s)
            p = p * pl.reciprocal(jnp.sum(p, axis=-1, keepdims=True),
                                  approx=True)
            ctx = jnp.einsum('bqk,bkd->bqd', p.astype(jnp.bfloat16), vh,
                             preferred_element_type=jnp.float32)  # (BB,S,dH)
            attn_out = attn_out + jnp.dot(
                ctx.reshape(M, HEAD_DIM).astype(jnp.bfloat16), wo_l[sl, :],
                preferred_element_type=jnp.float32)               # (M, H)

        h = _layernorm(attn_out + h, ln1_g_ref[l], ln1_b_ref[l])

        # ---- feed-forward ----
        ff = _mm(h, w1_ref[l]) + b1_ref[l]                    # (M, I) f32
        # TODO(synk): HF BERT default is the exact erf GELU; tanh approximation
        # kept for guaranteed Mosaic lowering (tiny numerical divergence).
        ff = jax.nn.gelu(ff, approximate=True).astype(jnp.bfloat16)
        ff = jnp.dot(ff, w2_ref[l],
                     preferred_element_type=jnp.float32) + b2_ref[l]
        h = _layernorm(ff + h, ln2_g_ref[l], ln2_b_ref[l])

    # ---- pooler on the CLS row of each sequence: tanh(cls @ W + b) ----
    # CLS rows (0, S, 2S, ...) are extracted with a one-hot selection matmul
    # (one well-shaped MXU op; avoids a strided sublane gather).
    col = lax.broadcasted_iota(jnp.int32, (BB, M), 1)
    row = lax.broadcasted_iota(jnp.int32, (BB, M), 0)
    sel = (col == row * S).astype(jnp.bfloat16)               # (BB, M) one-hot
    cls = jnp.dot(sel, h.astype(jnp.bfloat16),
                  preferred_element_type=jnp.float32)         # (BB, H)
    pooled = jnp.tanh(_mm(cls, pw_ref[...]) + pb_ref[...])    # (BB, H)
    out_ref[...] = pooled.reshape(BB, 1, H).astype(out_ref.dtype)


# --------------------------- parameters (synthetic) --------------------------
def init_params(key):
    def nrm(k, shape, scale=0.02):
        return scale * jax.random.normal(k, shape, jnp.float32)

    ks = iter(jax.random.split(key, 8 + NUM_LAYERS * 8))
    params = {
        "word_emb": nrm(next(ks), (VOCAB, H)),
        "pos_emb": nrm(next(ks), (MAX_LEN, H)),
        "type_emb": nrm(next(ks), (TYPE_VOCAB, H)),
        "emb_ln_g": jnp.ones((H,), jnp.float32),
        "emb_ln_b": jnp.zeros((H,), jnp.float32),
        "pool_w": nrm(next(ks), (H, H)),
        "pool_b": jnp.zeros((H,), jnp.float32),
        "layers": [],
    }
    for _ in range(NUM_LAYERS):
        layer = {
            "wq": nrm(next(ks), (H, H)), "bq": jnp.zeros((H,), jnp.float32),
            "wk": nrm(next(ks), (H, H)), "bk": jnp.zeros((H,), jnp.float32),
            "wv": nrm(next(ks), (H, H)), "bv": jnp.zeros((H,), jnp.float32),
            "wo": nrm(next(ks), (H, H)), "bo": jnp.zeros((H,), jnp.float32),
            "ln1_g": jnp.ones((H,), jnp.float32), "ln1_b": jnp.zeros((H,), jnp.float32),
            "w1": nrm(next(ks), (H, INTERMEDIATE)), "b1": jnp.zeros((INTERMEDIATE,), jnp.float32),
            "w2": nrm(next(ks), (INTERMEDIATE, H)), "b2": jnp.zeros((H,), jnp.float32),
            "ln2_g": jnp.ones((H,), jnp.float32), "ln2_b": jnp.zeros((H,), jnp.float32),
        }
        params["layers"].append(layer)
    return params


def pack_params(params):
    """One-time weight packing (hoisted OUT of the jitted forward, per review):
    Q/K/V stacked per layer, ATTN_SCALE folded into the Q weights/bias, matmul
    operands pre-cast to bf16."""
    layers = params["layers"]
    bf = lambda x: x.astype(jnp.bfloat16)
    wqkv = bf(jnp.stack([jnp.stack([l["wq"] * ATTN_SCALE, l["wk"], l["wv"]])
                         for l in layers]))                               # (L,3,H,H)
    bqkv = jnp.stack([jnp.stack([(l["bq"] * ATTN_SCALE)[None, :],
                                 l["bk"][None, :], l["bv"][None, :]])
                      for l in layers])                                   # (L,3,1,H)
    return {
        "word_emb": params["word_emb"],
        "pos_emb": params["pos_emb"],
        "type_emb0": params["type_emb"][0],
        "emb_g": params["emb_ln_g"][None, :],
        "emb_b": params["emb_ln_b"][None, :],
        "wqkv": wqkv, "bqkv": bqkv,
        "wo": bf(jnp.stack([l["wo"] for l in layers])),                   # (L,H,H)
        "bo": jnp.stack([l["bo"][None, :] for l in layers]),              # (L,1,H)
        "ln1_g": jnp.stack([l["ln1_g"][None, :] for l in layers]),
        "ln1_b": jnp.stack([l["ln1_b"][None, :] for l in layers]),
        "w1": bf(jnp.stack([l["w1"] for l in layers])),                   # (L,H,I)
        "b1": jnp.stack([l["b1"][None, :] for l in layers]),
        "w2": bf(jnp.stack([l["w2"] for l in layers])),                   # (L,I,H)
        "b2": jnp.stack([l["b2"][None, :] for l in layers]),
        "ln2_g": jnp.stack([l["ln2_g"][None, :] for l in layers]),
        "ln2_b": jnp.stack([l["ln2_b"][None, :] for l in layers]),
        "pw": bf(params["pool_w"]),
        "pb": params["pool_b"][None, :],
    }


# ------------------------------ forward pass ---------------------------------
def bert_encoder_forward(packed, tokens, att_mask):
    """tokens: (B, S) int32, att_mask: (B, S) {0,1}. Returns pooled (B, H)."""
    B, S = tokens.shape
    assert S == MAX_LEN

    # Embedding gather is glue (XLA); token_type_ids = 0.  Ship bf16 to halve
    # the per-step input DMA (LayerNorm math stays f32 inside the kernel).
    emb = (jnp.take(packed["word_emb"], tokens, axis=0)
           + packed["pos_emb"][None, :S, :]
           + packed["type_emb0"][None, None, :]).astype(jnp.bfloat16)    # (B,S,H)
    mask = att_mask.astype(jnp.float32).reshape(B, 1, S)

    # Pad the batch up to a multiple of the batch block.
    Bp = ((B + BB - 1) // BB) * BB
    if Bp != B:
        emb = jnp.pad(emb, ((0, Bp - B), (0, 0), (0, 0)))
        mask = jnp.pad(mask, ((0, Bp - B), (0, 0), (0, 0)))

    def whole(a):
        # Grid-invariant, fully-resident weight block.
        # TODO(synk): pipeline_mode=pl.Buffered(1) here once VMEM budget
        # matters (real-BERT weights on v7x); irrelevant at ~0.5 MB total.
        nd = a.ndim
        return pl.BlockSpec(a.shape, lambda b, nd=nd: (0,) * nd)

    pooled = pl.pallas_call(
        _encoder_kernel,
        out_shape=jax.ShapeDtypeStruct((Bp, 1, H), jnp.float32),
        grid=(Bp // BB,),
        in_specs=[
            pl.BlockSpec((BB, S, H), lambda b: (b, 0, 0)),    # emb (batch block)
            pl.BlockSpec((BB, 1, S), lambda b: (b, 0, 0)),    # mask (batch block)
            whole(packed["emb_g"]), whole(packed["emb_b"]),
            whole(packed["wqkv"]), whole(packed["bqkv"]),
            whole(packed["wo"]), whole(packed["bo"]),
            whole(packed["ln1_g"]), whole(packed["ln1_b"]),
            whole(packed["w1"]), whole(packed["b1"]),
            whole(packed["w2"]), whole(packed["b2"]),
            whole(packed["ln2_g"]), whole(packed["ln2_b"]),
            whole(packed["pw"]), whole(packed["pb"]),
        ],
        out_specs=pl.BlockSpec((BB, 1, H), lambda b: (b, 0, 0)),
        compiler_params=pltpu.CompilerParams(
            dimension_semantics=("parallel",)),
    )(emb, mask, packed["emb_g"], packed["emb_b"],
      packed["wqkv"], packed["bqkv"], packed["wo"], packed["bo"],
      packed["ln1_g"], packed["ln1_b"], packed["w1"], packed["b1"],
      packed["w2"], packed["b2"], packed["ln2_g"], packed["ln2_b"],
      packed["pw"], packed["pb"])

    return pooled.reshape(Bp, H)[:B]


# --------------------------------- main ---------------------------------------
if __name__ == "__main__":
    key = jax.random.PRNGKey(0)
    pkey, tkey, mkey = jax.random.split(key, 3)
    params = init_params(pkey)
    packed = pack_params(params)          # one-time weight packing (not re-run per call)

    B, S = 32, MAX_LEN                    # 2 batch-blocked grid steps of 16 sequences
    tokens = jax.random.randint(tkey, (B, S), 0, VOCAB, dtype=jnp.int32)
    # variable-length sequences, like BERTEncoder.tokenize would produce
    lens = jax.random.randint(mkey, (B,), 1, S + 1)
    att_mask = (jnp.arange(S)[None, :] < lens[:, None]).astype(jnp.int32)

    fwd = jax.jit(bert_encoder_forward)
    out = jax.block_until_ready(fwd(packed, tokens, att_mask))
    assert out.shape == (B, H) and out.dtype == jnp.float32
    assert bool(jnp.all(jnp.isfinite(out)))
    print("KERNEL_OK")
</pallas_src>

<mosaic_0001>
module attributes {stable_mosaic.version = 11 : i64} {
  func.func @_encoder_kernel(%arg0: i32, %arg1: memref<16x8x128xbf16, #tpu.memory_space<vmem>>, %arg2: memref<16x1x8xf32, #tpu.memory_space<vmem>>, %arg3: memref<1x128xf32, #tpu.memory_space<vmem>>, %arg4: memref<1x128xf32, #tpu.memory_space<vmem>>, %arg5: memref<2x3x128x128xbf16, #tpu.memory_space<vmem>>, %arg6: memref<2x3x1x128xf32, #tpu.memory_space<vmem>>, %arg7: memref<2x128x128xbf16, #tpu.memory_space<vmem>>, %arg8: memref<2x1x128xf32, #tpu.memory_space<vmem>>, %arg9: memref<2x1x128xf32, #tpu.memory_space<vmem>>, %arg10: memref<2x1x128xf32, #tpu.memory_space<vmem>>, %arg11: memref<2x128x256xbf16, #tpu.memory_space<vmem>>, %arg12: memref<2x1x256xf32, #tpu.memory_space<vmem>>, %arg13: memref<2x256x128xbf16, #tpu.memory_space<vmem>>, %arg14: memref<2x1x128xf32, #tpu.memory_space<vmem>>, %arg15: memref<2x1x128xf32, #tpu.memory_space<vmem>>, %arg16: memref<2x1x128xf32, #tpu.memory_space<vmem>>, %arg17: memref<128x128xbf16, #tpu.memory_space<vmem>>, %arg18: memref<1x128xf32, #tpu.memory_space<vmem>>, %arg19: memref<16x1x128xf32, #tpu.memory_space<vmem>>) attributes {dimension_semantics = [#tpu.dimension_semantics<parallel>], iteration_bounds = array<i64: 2>, scalar_prefetch = 0 : i64, scratch_operands = 0 : i64, tpu.core_type = #tpu.core_type<tc>, window_params = [{transform_indices = @transform_0, window_bounds = array<i64: 16, 8, 128>}, {transform_indices = @transform_1, window_bounds = array<i64: 16, 1, 8>}, {pipeline_mode = #tpu.pipeline_mode<synchronous>, transform_indices = @transform_2, window_bounds = array<i64: 1, 128>}, {pipeline_mode = #tpu.pipeline_mode<synchronous>, transform_indices = @transform_3, window_bounds = array<i64: 1, 128>}, {pipeline_mode = #tpu.pipeline_mode<synchronous>, transform_indices = @transform_4, window_bounds = array<i64: 2, 3, 128, 128>}, {pipeline_mode = #tpu.pipeline_mode<synchronous>, transform_indices = @transform_5, window_bounds = array<i64: 2, 3, 1, 128>}, {pipeline_mode = #tpu.pipeline_mode<synchronous>, transform_indices = @transform_6, window_bounds = array<i64: 2, 128, 128>}, {pipeline_mode = #tpu.pipeline_mode<synchronous>, transform_indices = @transform_7, window_bounds = array<i64: 2, 1, 128>}, {pipeline_mode = #tpu.pipeline_mode<synchronous>, transform_indices = @transform_8, window_bounds = array<i64: 2, 1, 128>}, {pipeline_mode = #tpu.pipeline_mode<synchronous>, transform_indices = @transform_9, window_bounds = array<i64: 2, 1, 128>}, {pipeline_mode = #tpu.pipeline_mode<synchronous>, transform_indices = @transform_10, window_bounds = array<i64: 2, 128, 256>}, {pipeline_mode = #tpu.pipeline_mode<synchronous>, transform_indices = @transform_11, window_bounds = array<i64: 2, 1, 256>}, {pipeline_mode = #tpu.pipeline_mode<synchronous>, transform_indices = @transform_12, window_bounds = array<i64: 2, 256, 128>}, {pipeline_mode = #tpu.pipeline_mode<synchronous>, transform_indices = @transform_13, window_bounds = array<i64: 2, 1, 128>}, {pipeline_mode = #tpu.pipeline_mode<synchronous>, transform_indices = @transform_14, window_bounds = array<i64: 2, 1, 128>}, {pipeline_mode = #tpu.pipeline_mode<synchronous>, transform_indices = @transform_15, window_bounds = array<i64: 2, 1, 128>}, {pipeline_mode = #tpu.pipeline_mode<synchronous>, transform_indices = @transform_16, window_bounds = array<i64: 128, 128>}, {pipeline_mode = #tpu.pipeline_mode<synchronous>, transform_indices = @transform_17, window_bounds = array<i64: 1, 128>}, {transform_indices = @transform_18, window_bounds = array<i64: 16, 1, 128>}]} {
    %c0 = arith.constant 0 : index
    %c0_0 = arith.constant 0 : index
    %c0_1 = arith.constant 0 : index
    %0 = vector.load %arg1[%c0, %c0_0, %c0_1] : memref<16x8x128xbf16, #tpu.memory_space<vmem>>, vector<16x8x128xbf16>
    %1 = arith.extf %0 : vector<16x8x128xbf16> to vector<16x8x128xf32>
    %2 = vector.shape_cast %1 : vector<16x8x128xf32> to vector<128x128xf32>
    %c0_2 = arith.constant 0 : index
    %c0_3 = arith.constant 0 : index
    %3 = vector.load %arg3[%c0_2, %c0_3] : memref<1x128xf32, #tpu.memory_space<vmem>>, vector<1x128xf32>
    %c0_4 = arith.constant 0 : index
    %c0_5 = arith.constant 0 : index
    %4 = vector.load %arg4[%c0_4, %c0_5] : memref<1x128xf32, #tpu.memory_space<vmem>>, vector<1x128xf32>
    %cst = arith.constant dense<0.000000e+00> : vector<128xf32>
    %5 = vector.multi_reduction <add>, %2, %cst [1] : vector<128x128xf32> to vector<128xf32>
    %6 = vector.shape_cast %5 : vector<128xf32> to vector<128x1xf32>
    %cst_6 = arith.constant 1.280000e+02 : f32
    %7 = vector.broadcast %cst_6 : f32 to vector<128x1xf32>
    %8 = arith.divf %6, %7 : vector<128x1xf32>
    %9 = vector.broadcast %8 : vector<128x1xf32> to vector<128x128xf32>
    %10 = arith.subf %2, %9 : vector<128x128xf32>
    %11 = arith.mulf %10, %10 : vector<128x128xf32>
    %cst_7 = arith.constant dense<0.000000e+00> : vector<128xf32>
    %12 = vector.multi_reduction <add>, %11, %cst_7 [1] : vector<128x128xf32> to vector<128xf32>
    %13 = vector.shape_cast %12 : vector<128xf32> to vector<128x1xf32>
    %cst_8 = arith.constant 1.280000e+02 : f32
    %14 = vector.broadcast %cst_8 : f32 to vector<128x1xf32>
    %15 = arith.divf %13, %14 : vector<128x1xf32>
    %16 = vector.broadcast %8 : vector<128x1xf32> to vector<128x128xf32>
    %17 = arith.subf %2, %16 : vector<128x128xf32>
    %cst_9 = arith.constant 9.99999996E-13 : f32
    %18 = vector.broadcast %cst_9 : f32 to vector<128x1xf32>
    %19 = arith.addf %15, %18 : vector<128x1xf32>
    %20 = math.rsqrt %19 : vector<128x1xf32>
    %21 = vector.broadcast %20 : vector<128x1xf32> to vector<128x128xf32>
    %22 = arith.mulf %17, %21 : vector<128x128xf32>
    %23 = vector.broadcast %3 : vector<1x128xf32> to vector<128x128xf32>
    %24 = arith.mulf %22, %23 : vector<128x128xf32>
    %25 = vector.broadcast %4 : vector<1x128xf32> to vector<128x128xf32>
    %26 = arith.addf %24, %25 : vector<128x128xf32>
    %c0_10 = arith.constant 0 : index
    %c0_11 = arith.constant 0 : index
    %c0_12 = arith.constant 0 : index
    %27 = vector.load %arg2[%c0_10, %c0_11, %c0_12] : memref<16x1x8xf32, #tpu.memory_space<vmem>>, vector<16x1x8xf32>
    %cst_13 = arith.constant 1.000000e+00 : f32
    %28 = vector.broadcast %cst_13 : f32 to vector<16x1x8xf32>
    %29 = arith.subf %28, %27 : vector<16x1x8xf32>
    %cst_14 = arith.constant -1.000000e+04 : f32
    %30 = vector.broadcast %cst_14 : f32 to vector<16x1x8xf32>
    %31 = arith.mulf %29, %30 : vector<16x1x8xf32>
    %32 = arith.truncf %26 : vector<128x128xf32> to vector<128x128xbf16>
    %c0_15 = arith.constant 0 : index
    %c0_16 = arith.constant 0 : index
    %c0_17 = arith.constant 0 : index
    %c0_18 = arith.constant 0 : index
    %33 = vector.load %arg5[%c0_15, %c0_16, %c0_17, %c0_18] : memref<2x3x128x128xbf16, #tpu.memory_space<vmem>>, vector<1x1x128x128xbf16>
    %34 = vector.shape_cast %33 : vector<1x1x128x128xbf16> to vector<128x128xbf16>
    %cst_19 = arith.constant dense<0.000000e+00> : vector<128x128xf32>
    %35 = tpu.matmul %32, %34, %cst_19 {dimension_numbers = #tpu.dot_dimension_numbers<[1], [0], [0], [1], [0, 0, 1, 1], [], []>} : vector<128x128xbf16>, vector<128x128xbf16>, vector<128x128xf32> -> vector<128x128xf32>
    %c0_20 = arith.constant 0 : index
    %c0_21 = arith.constant 0 : index
    %c0_22 = arith.constant 0 : index
    %c0_23 = arith.constant 0 : index
    %36 = vector.load %arg6[%c0_20, %c0_21, %c0_22, %c0_23] : memref<2x3x1x128xf32, #tpu.memory_space<vmem>>, vector<1x1x1x128xf32>
    %37 = vector.shape_cast %36 : vector<1x1x1x128xf32> to vector<1x128xf32>
    %38 = vector.broadcast %37 : vector<1x128xf32> to vector<128x128xf32>
    %39 = arith.addf %35, %38 : vector<128x128xf32>
    %40 = vector.shape_cast %39 : vector<128x128xf32> to vector<16x8x128xf32>
    %41 = arith.truncf %40 : vector<16x8x128xf32> to vector<16x8x128xbf16>
    %c0_24 = arith.constant 0 : index
    %c1 = arith.constant 1 : index
    %c0_25 = arith.constant 0 : index
    %c0_26 = arith.constant 0 : index
    %42 = vector.load %arg5[%c0_24, %c1, %c0_25, %c0_26] : memref<2x3x128x128xbf16, #tpu.memory_space<vmem>>, vector<1x1x128x128xbf16>
    %43 = vector.shape_cast %42 : vector<1x1x128x128xbf16> to vector<128x128xbf16>
    %cst_27 = arith.constant dense<0.000000e+00> : vector<128x128xf32>
    %44 = tpu.matmul %32, %43, %cst_27 {dimension_numbers = #tpu.dot_dimension_numbers<[1], [0], [0], [1], [0, 0, 1, 1], [], []>} : vector<128x128xbf16>, vector<128x128xbf16>, vector<128x128xf32> -> vector<128x128xf32>
    %c0_28 = arith.constant 0 : index
    %c1_29 = arith.constant 1 : index
    %c0_30 = arith.constant 0 : index
    %c0_31 = arith.constant 0 : index
    %45 = vector.load %arg6[%c0_28, %c1_29, %c0_30, %c0_31] : memref<2x3x1x128xf32, #tpu.memory_space<vmem>>, vector<1x1x1x128xf32>
    %46 = vector.shape_cast %45 : vector<1x1x1x128xf32> to vector<1x128xf32>
    %47 = vector.broadcast %46 : vector<1x128xf32> to vector<128x128xf32>
    %48 = arith.addf %44, %47 : vector<128x128xf32>
    %49 = vector.shape_cast %48 : vector<128x128xf32> to vector<16x8x128xf32>
    %50 = arith.truncf %49 : vector<16x8x128xf32> to vector<16x8x128xbf16>
    %c0_32 = arith.constant 0 : index
    %c2 = arith.constant 2 : index
    %c0_33 = arith.constant 0 : index
    %c0_34 = arith.constant 0 : index
    %51 = vector.load %arg5[%c0_32, %c2, %c0_33, %c0_34] : memref<2x3x128x128xbf16, #tpu.memory_space<vmem>>, vector<1x1x128x128xbf16>
    %52 = vector.shape_cast %51 : vector<1x1x128x128xbf16> to vector<128x128xbf16>
    %cst_35 = arith.constant dense<0.000000e+00> : vector<128x128xf32>
    %53 = tpu.matmul %32, %52, %cst_35 {dimension_numbers = #tpu.dot_dimension_numbers<[1], [0], [0], [1], [0, 0, 1, 1], [], []>} : vector<128x128xbf16>, vector<128x128xbf16>, vector<128x128xf32> -> vector<128x128xf32>
    %c0_36 = arith.constant 0 : index
    %c2_37 = arith.constant 2 : index
    %c0_38 = arith.constant 0 : index
    %c0_39 = arith.constant 0 : index
    %54 = vector.load %arg6[%c0_36, %c2_37, %c0_38, %c0_39] : memref<2x3x1x128xf32, #tpu.memory_space<vmem>>, vector<1x1x1x128xf32>
    %55 = vector.shape_cast %54 : vector<1x1x1x128xf32> to vector<1x128xf32>
    %56 = vector.broadcast %55 : vector<1x128xf32> to vector<128x128xf32>
    %57 = arith.addf %53, %56 : vector<128x128xf32>
    %58 = vector.shape_cast %57 : vector<128x128xf32> to vector<16x8x128xf32>
    %59 = arith.truncf %58 : vector<16x8x128xf32> to vector<16x8x128xbf16>
    %c0_40 = arith.constant 0 : index
    %c0_41 = arith.constant 0 : index
    %c0_42 = arith.constant 0 : index
    %60 = vector.load %arg7[%c0_40, %c0_41, %c0_42] : memref<2x128x128xbf16, #tpu.memory_space<vmem>>, vector<1x128x128xbf16>
    %61 = vector.shape_cast %60 : vector<1x128x128xbf16> to vector<128x128xbf16>
    %c0_43 = arith.constant 0 : index
    %c0_44 = arith.constant 0 : index
    %c0_45 = arith.constant 0 : index
    %62 = vector.load %arg8[%c0_43, %c0_44, %c0_45] : memref<2x1x128xf32, #tpu.memory_space<vmem>>, vector<1x1x128xf32>
    %63 = vector.shape_cast %62 : vector<1x1x128xf32> to vector<1x128xf32>
    %64 = vector.extract_strided_slice %41 {offsets = [0, 0, 0], sizes = [16, 8, 64], strides = [1, 1, 1]} : vector<16x8x128xbf16> to vector<16x8x64xbf16>
    %65 = vector.extract_strided_slice %50 {offsets = [0, 0, 0], sizes = [16, 8, 64], strides = [1, 1, 1]} : vector<16x8x128xbf16> to vector<16x8x64xbf16>
    %66 = vector.extract_strided_slice %59 {offsets = [0, 0, 0], sizes = [16, 8, 64], strides = [1, 1, 1]} : vector<16x8x128xbf16> to vector<16x8x64xbf16>
    "tpu.trace_start"() <{level = 10 : i32, message = "bqd,bkd->bqk"}> : () -> ()
    %cst_46 = arith.constant dense<0.000000e+00> : vector<16x8x8xf32>
    %67 = tpu.matmul %64, %65, %cst_46 {dimension_numbers = #tpu.dot_dimension_numbers<[2], [2], [1], [1], [0, 0, 0, 1, 1, 1], [0], [0]>} : vector<16x8x64xbf16>, vector<16x8x64xbf16>, vector<16x8x8xf32> -> vector<16x8x8xf32>
    "tpu.trace_stop"() : () -> ()
    %68 = vector.broadcast %31 : vector<16x1x8xf32> to vector<16x8x8xf32>
    %69 = arith.addf %67, %68 : vector<16x8x8xf32>
    %cst_47 = arith.constant dense<0xFF800000> : vector<16x8xf32>
    %70 = vector.multi_reduction <maximumf>, %69, %cst_47 [2] : vector<16x8x8xf32> to vector<16x8xf32>
    %71 = vector.shape_cast %70 : vector<16x8xf32> to vector<16x8x1xf32>
    %72 = vector.broadcast %71 : vector<16x8x1xf32> to vector<16x8x8xf32>
    %73 = arith.subf %69, %72 : vector<16x8x8xf32>
    %74 = math.exp %73 : vector<16x8x8xf32>
    %cst_48 = arith.constant dense<0.000000e+00> : vector<16x8xf32>
    %75 = vector.multi_reduction <add>, %74, %cst_48 [2] : vector<16x8x8xf32> to vector<16x8xf32>
    %76 = vector.shape_cast %75 : vector<16x8xf32> to vector<16x8x1xf32>
    %77 = tpu.reciprocal %76 {approx = true} : vector<16x8x1xf32> -> vector<16x8x1xf32>
    %78 = vector.broadcast %77 : vector<16x8x1xf32> to vector<16x8x8xf32>
    %79 = arith.mulf %74, %78 : vector<16x8x8xf32>
    %80 = arith.truncf %79 : vector<16x8x8xf32> to vector<16x8x8xbf16>
    "tpu.trace_start"() <{level = 10 : i32, message = "bqk,bkd->bqd"}> : () -> ()
    %cst_49 = arith.constant dense<0.000000e+00> : vector<16x8x64xf32>
    %81 = tpu.matmul %80, %66, %cst_49 {dimension_numbers = #tpu.dot_dimension_numbers<[2], [1], [1], [2], [0, 0, 0, 1, 1, 2], [0], [0]>} : vector<16x8x8xbf16>, vector<16x8x64xbf16>, vector<16x8x64xf32> -> vector<16x8x64xf32>
    "tpu.trace_stop"() : () -> ()
    %82 = vector.shape_cast %81 : vector<16x8x64xf32> to vector<128x64xf32>
    %83 = arith.truncf %82 : vector<128x64xf32> to vector<128x64xbf16>
    %84 = vector.extract_strided_slice %61 {offsets = [0, 0], sizes = [64, 128], strides = [1, 1]} : vector<128x128xbf16> to vector<64x128xbf16>
    %cst_50 = arith.constant dense<0.000000e+00> : vector<128x128xf32>
    %85 = tpu.matmul %83, %84, %cst_50 {dimension_numbers = #tpu.dot_dimension_numbers<[1], [0], [0], [1], [0, 0, 1, 1], [], []>} : vector<128x64xbf16>, vector<64x128xbf16>, vector<128x128xf32> -> vector<128x128xf32>
    %86 = vector.broadcast %63 : vector<1x128xf32> to vector<128x128xf32>
    %87 = arith.addf %86, %85 : vector<128x128xf32>
    %88 = vector.extract_strided_slice %41 {offsets = [0, 0, 64], sizes = [16, 8, 64], strides = [1, 1, 1]} : vector<16x8x128xbf16> to vector<16x8x64xbf16>
    %89 = vector.extract_strided_slice %50 {offsets = [0, 0, 64], sizes = [16, 8, 64], strides = [1, 1, 1]} : vector<16x8x128xbf16> to vector<16x8x64xbf16>
    %90 = vector.extract_strided_slice %59 {offsets = [0, 0, 64], sizes = [16, 8, 64], strides = [1, 1, 1]} : vector<16x8x128xbf16> to vector<16x8x64xbf16>
    "tpu.trace_start"() <{level = 10 : i32, message = "bqd,bkd->bqk"}> : () -> ()
    %cst_51 = arith.constant dense<0.000000e+00> : vector<16x8x8xf32>
    %91 = tpu.matmul %88, %89, %cst_51 {dimension_numbers = #tpu.dot_dimension_numbers<[2], [2], [1], [1], [0, 0, 0, 1, 1, 1], [0], [0]>} : vector<16x8x64xbf16>, vector<16x8x64xbf16>, vector<16x8x8xf32> -> vector<16x8x8xf32>
    "tpu.trace_stop"() : () -> ()
    %92 = vector.broadcast %31 : vector<16x1x8xf32> to vector<16x8x8xf32>
    %93 = arith.addf %91, %92 : vector<16x8x8xf32>
    %cst_52 = arith.constant dense<0xFF800000> : vector<16x8xf32>
    %94 = vector.multi_reduction <maximumf>, %93, %cst_52 [2] : vector<16x8x8xf32> to vector<16x8xf32>
    %95 = vector.shape_cast %94 : vector<16x8xf32> to vector<16x8x1xf32>
    %96 = vector.broadcast %95 : vector<16x8x1xf32> to vector<16x8x8xf32>
    %97 = arith.subf %93, %96 : vector<16x8x8xf32>
    %98 = math.exp %97 : vector<16x8x8xf32>
    %cst_53 = arith.constant dense<0.000000e+00> : vector<16x8xf32>
    %99 = vector.multi_reduction <add>, %98, %cst_53 [2] : vector<16x8x8xf32> to vector<16x8xf32>
    %100 = vector.shape_cast %99 : vector<16x8xf32> to vector<16x8x1xf32>
    %101 = tpu.reciprocal %100 {approx = true} : vector<16x8x1xf32> -> vector<16x8x1xf32>
    %102 = vector.broadcast %101 : vector<16x8x1xf32> to vector<16x8x8xf32>
    %103 = arith.mulf %98, %102 : vector<16x8x8xf32>
    %104 = arith.truncf %103 : vector<16x8x8xf32> to vector<16x8x8xbf16>
    "tpu.trace_start"() <{level = 10 : i32, message = "bqk,bkd->bqd"}> : () -> ()
    %cst_54 = arith.constant dense<0.000000e+00> : vector<16x8x64xf32>
    %105 = tpu.matmul %104, %90, %cst_54 {dimension_numbers = #tpu.dot_dimension_numbers<[2], [1], [1], [2], [0, 0, 0, 1, 1, 2], [0], [0]>} : vector<16x8x8xbf16>, vector<16x8x64xbf16>, vector<16x8x64xf32> -> vector<16x8x64xf32>
    "tpu.trace_stop"() : () -> ()
    %106 = vector.shape_cast %105 : vector<16x8x64xf32> to vector<128x64xf32>
    %107 = arith.truncf %106 : vector<128x64xf32> to vector<128x64xbf16>
    %108 = vector.extract_strided_slice %61 {offsets = [64, 0], sizes = [64, 128], strides = [1, 1]} : vector<128x128xbf16> to vector<64x128xbf16>
    %cst_55 = arith.constant dense<0.000000e+00> : vector<128x128xf32>
    %109 = tpu.matmul %107, %108, %cst_55 {dimension_numbers = #tpu.dot_dimension_numbers<[1], [0], [0], [1], [0, 0, 1, 1], [], []>} : vector<128x64xbf16>, vector<64x128xbf16>, vector<128x128xf32> -> vector<128x128xf32>
    %110 = arith.addf %87, %109 : vector<128x128xf32>
    %111 = arith.addf %110, %26 : vector<128x128xf32>
    %c0_56 = arith.constant 0 : index
    %c0_57 = arith.constant 0 : index
    %c0_58 = arith.constant 0 : index
    %112 = vector.load %arg9[%c0_56, %c0_57, %c0_58] : memref<2x1x128xf32, #tpu.memory_space<vmem>>, vector<1x1x128xf32>
    %113 = vector.shape_cast %112 : vector<1x1x128xf32> to vector<1x128xf32>
    %c0_59 = arith.constant 0 : index
    %c0_60 = arith.constant 0 : index
    %c0_61 = arith.constant 0 : index
    %114 = vector.load %arg10[%c0_59, %c0_60, %c0_61] : memref<2x1x128xf32, #tpu.memory_space<vmem>>, vector<1x1x128xf32>
    %115 = vector.shape_cast %114 : vector<1x1x128xf32> to vector<1x128xf32>
    %cst_62 = arith.constant dense<0.000000e+00> : vector<128xf32>
    %116 = vector.multi_reduction <add>, %111, %cst_62 [1] : vector<128x128xf32> to vector<128xf32>
    %117 = vector.shape_cast %116 : vector<128xf32> to vector<128x1xf32>
    %cst_63 = arith.constant 1.280000e+02 : f32
    %118 = vector.broadcast %cst_63 : f32 to vector<128x1xf32>
    %119 = arith.divf %117, %118 : vector<128x1xf32>
    %120 = vector.broadcast %119 : vector<128x1xf32> to vector<128x128xf32>
    %121 = arith.subf %111, %120 : vector<128x128xf32>
    %122 = arith.mulf %121, %121 : vector<128x128xf32>
    %cst_64 = arith.constant dense<0.000000e+00> : vector<128xf32>
    %123 = vector.multi_reduction <add>, %122, %cst_64 [1] : vector<128x128xf32> to vector<128xf32>
    %124 = vector.shape_cast %123 : vector<128xf32> to vector<128x1xf32>
    %cst_65 = arith.constant 1.280000e+02 : f32
    %125 = vector.broadcast %cst_65 : f32 to vector<128x1xf32>
    %126 = arith.divf %124, %125 : vector<128x1xf32>
    %127 = vector.broadcast %119 : vector<128x1xf32> to vector<128x128xf32>
    %128 = arith.subf %111, %127 : vector<128x128xf32>
    %cst_66 = arith.constant 9.99999996E-13 : f32
    %129 = vector.broadcast %cst_66 : f32 to vector<128x1xf32>
    %130 = arith.addf %126, %129 : vector<128x1xf32>
    %131 = math.rsqrt %130 : vector<128x1xf32>
    %132 = vector.broadcast %131 : vector<128x1xf32> to vector<128x128xf32>
    %133 = arith.mulf %128, %132 : vector<128x128xf32>
    %134 = vector.broadcast %113 : vector<1x128xf32> to vector<128x128xf32>
    %135 = arith.mulf %133, %134 : vector<128x128xf32>
    %136 = vector.broadcast %115 : vector<1x128xf32> to vector<128x128xf32>
    %137 = arith.addf %135, %136 : vector<128x128xf32>
    %c0_67 = arith.constant 0 : index
    %c0_68 = arith.constant 0 : index
    %c0_69 = arith.constant 0 : index
    %138 = vector.load %arg11[%c0_67, %c0_68, %c0_69] : memref<2x128x256xbf16, #tpu.memory_space<vmem>>, vector<1x128x256xbf16>
    %139 = vector.shape_cast %138 : vector<1x128x256xbf16> to vector<128x256xbf16>
    %140 = arith.truncf %137 : vector<128x128xf32> to vector<128x128xbf16>
    %cst_70 = arith.constant dense<0.000000e+00> : vector<128x256xf32>
    %141 = tpu.matmul %140, %139, %cst_70 {dimension_numbers = #tpu.dot_dimension_numbers<[1], [0], [0], [1], [0, 0, 1, 1], [], []>} : vector<128x128xbf16>, vector<128x256xbf16>, vector<128x256xf32> -> vector<128x256xf32>
    %c0_71 = arith.constant 0 : index
    %c0_72 = arith.constant 0 : index
    %c0_73 = arith.constant 0 : index
    %142 = vector.load %arg12[%c0_71, %c0_72, %c0_73] : memref<2x1x256xf32, #tpu.memory_space<vmem>>, vector<1x1x256xf32>
    %143 = vector.shape_cast %142 : vector<1x1x256xf32> to vector<1x256xf32>
    %144 = vector.broadcast %143 : vector<1x256xf32> to vector<128x256xf32>
    %145 = arith.addf %141, %144 : vector<128x256xf32>
    %146 = arith.mulf %145, %145 : vector<128x256xf32>
    %147 = arith.mulf %145, %146 : vector<128x256xf32>
    %cst_74 = arith.constant 4.471500e-02 : f32
    %148 = vector.broadcast %cst_74 : f32 to vector<128x256xf32>
    %149 = arith.mulf %148, %147 : vector<128x256xf32>
    %150 = arith.addf %145, %149 : vector<128x256xf32>
    %cst_75 = arith.constant 0.797884583 : f32
    %151 = vector.broadcast %cst_75 : f32 to vector<128x256xf32>
    %152 = arith.mulf %151, %150 : vector<128x256xf32>
    %153 = math.tanh %152 : vector<128x256xf32>
    %cst_76 = arith.constant 1.000000e+00 : f32
    %154 = vector.broadcast %cst_76 : f32 to vector<128x256xf32>
    %155 = arith.addf %154, %153 : vector<128x256xf32>
    %cst_77 = arith.constant 5.000000e-01 : f32
    %156 = vector.broadcast %cst_77 : f32 to vector<128x256xf32>
    %157 = arith.mulf %156, %155 : vector<128x256xf32>
    %158 = arith.mulf %145, %157 : vector<128x256xf32>
    %159 = arith.truncf %158 : vector<128x256xf32> to vector<128x256xbf16>
    %c0_78 = arith.constant 0 : index
    %c0_79 = arith.constant 0 : index
    %c0_80 = arith.constant 0 : index
    %160 = vector.load %arg13[%c0_78, %c0_79, %c0_80] : memref<2x256x128xbf16, #tpu.memory_space<vmem>>, vector<1x256x128xbf16>
    %161 = vector.shape_cast %160 : vector<1x256x128xbf16> to vector<256x128xbf16>
    %cst_81 = arith.constant dense<0.000000e+00> : vector<128x128xf32>
    %162 = tpu.matmul %159, %161, %cst_81 {dimension_numbers = #tpu.dot_dimension_numbers<[1], [0], [0], [1], [0, 0, 1, 1], [], []>} : vector<128x256xbf16>, vector<256x128xbf16>, vector<128x128xf32> -> vector<128x128xf32>
    %c0_82 = arith.constant 0 : index
    %c0_83 = arith.constant 0 : index
    %c0_84 = arith.constant 0 : index
    %163 = vector.load %arg14[%c0_82, %c0_83, %c0_84] : memref<2x1x128xf32, #tpu.memory_space<vmem>>, vector<1x1x128xf32>
    %164 = vector.shape_cast %163 : vector<1x1x128xf32> to vector<1x128xf32>
    %165 = vector.broadcast %164 : vector<1x128xf32> to vector<128x128xf32>
    %166 = arith.addf %162, %165 : vector<128x128xf32>
    %167 = arith.addf %166, %137 : vector<128x128xf32>
    %c0_85 = arith.constant 0 : index
    %c0_86 = arith.constant 0 : index
    %c0_87 = arith.constant 0 : index
    %168 = vector.load %arg15[%c0_85, %c0_86, %c0_87] : memref<2x1x128xf32, #tpu.memory_space<vmem>>, vector<1x1x128xf32>
    %169 = vector.shape_cast %168 : vector<1x1x128xf32> to vector<1x128xf32>
    %c0_88 = arith.constant 0 : index
    %c0_89 = arith.constant 0 : index
    %c0_90 = arith.constant 0 : index
    %170 = vector.load %arg16[%c0_88, %c0_89, %c0_90] : memref<2x1x128xf32, #tpu.memory_space<vmem>>, vector<1x1x128xf32>
    %171 = vector.shape_cast %170 : vector<1x1x128xf32> to vector<1x128xf32>
    %cst_91 = arith.constant dense<0.000000e+00> : vector<128xf32>
    %172 = vector.multi_reduction <add>, %167, %cst_91 [1] : vector<128x128xf32> to vector<128xf32>
    %173 = vector.shape_cast %172 : vector<128xf32> to vector<128x1xf32>
    %cst_92 = arith.constant 1.280000e+02 : f32
    %174 = vector.broadcast %cst_92 : f32 to vector<128x1xf32>
    %175 = arith.divf %173, %174 : vector<128x1xf32>
    %176 = vector.broadcast %175 : vector<128x1xf32> to vector<128x128xf32>
    %177 = arith.subf %167, %176 : vector<128x128xf32>
    %178 = arith.mulf %177, %177 : vector<128x128xf32>
    %cst_93 = arith.constant dense<0.000000e+00> : vector<128xf32>
    %179 = vector.multi_reduction <add>, %178, %cst_93 [1] : vector<128x128xf32> to vector<128xf32>
    %180 = vector.shape_cast %179 : vector<128xf32> to vector<128x1xf32>
    %cst_94 = arith.constant 1.280000e+02 : f32
    %181 = vector.broadcast %cst_94 : f32 to vector<128x1xf32>
    %182 = arith.divf %180, %181 : vector<128x1xf32>
    %183 = vector.broadcast %175 : vector<128x1xf32> to vector<128x128xf32>
    %184 = arith.subf %167, %183 : vector<128x128xf32>
    %cst_95 = arith.constant 9.99999996E-13 : f32
    %185 = vector.broadcast %cst_95 : f32 to vector<128x1xf32>
    %186 = arith.addf %182, %185 : vector<128x1xf32>
    %187 = math.rsqrt %186 : vector<128x1xf32>
    %188 = vector.broadcast %187 : vector<128x1xf32> to vector<128x128xf32>
    %189 = arith.mulf %184, %188 : vector<128x128xf32>
    %190 = vector.broadcast %169 : vector<1x128xf32> to vector<128x128xf32>
    %191 = arith.mulf %189, %190 : vector<128x128xf32>
    %192 = vector.broadcast %171 : vector<1x128xf32> to vector<128x128xf32>
    %193 = arith.addf %191, %192 : vector<128x128xf32>
    %194 = arith.truncf %193 : vector<128x128xf32> to vector<128x128xbf16>
    %c1_96 = arith.constant 1 : index
    %c0_97 = arith.constant 0 : index
    %c0_98 = arith.constant 0 : index
    %c0_99 = arith.constant 0 : index
    %195 = vector.load %arg5[%c1_96, %c0_97, %c0_98, %c0_99] : memref<2x3x128x128xbf16, #tpu.memory_space<vmem>>, vector<1x1x128x128xbf16>
    %196 = vector.shape_cast %195 : vector<1x1x128x128xbf16> to vector<128x128xbf16>
    %cst_100 = arith.constant dense<0.000000e+00> : vector<128x128xf32>
    %197 = tpu.matmul %194, %196, %cst_100 {dimension_numbers = #tpu.dot_dimension_numbers<[1], [0], [0], [1], [0, 0, 1, 1], [], []>} : vector<128x128xbf16>, vector<128x128xbf16>, vector<128x128xf32> -> vector<128x128xf32>
    %c1_101 = arith.constant 1 : index
    %c0_102 = arith.constant 0 : index
    %c0_103 = arith.constant 0 : index
    %c0_104 = arith.constant 0 : index
    %198 = vector.load %arg6[%c1_101, %c0_102, %c0_103, %c0_104] : memref<2x3x1x128xf32, #tpu.memory_space<vmem>>, vector<1x1x1x128xf32>
    %199 = vector.shape_cast %198 : vector<1x1x1x128xf32> to vector<1x128xf32>
    %200 = vector.broadcast %199 : vector<1x128xf32> to vector<128x128xf32>
    %201 = arith.addf %197, %200 : vector<128x128xf32>
    %202 = vector.shape_cast %201 : vector<128x128xf32> to vector<16x8x128xf32>
    %203 = arith.truncf %202 : vector<16x8x128xf32> to vector<16x8x128xbf16>
    %c1_105 = arith.constant 1 : index
    %c1_106 = arith.constant 1 : index
    %c0_107 = arith.constant 0 : index
    %c0_108 = arith.constant 0 : index
    %204 = vector.load %arg5[%c1_105, %c1_106, %c0_107, %c0_108] : memref<2x3x128x128xbf16, #tpu.memory_space<vmem>>, vector<1x1x128x128xbf16>
    %205 = vector.shape_cast %204 : vector<1x1x128x128xbf16> to vector<128x128xbf16>
    %cst_109 = arith.constant dense<0.000000e+00> : vector<128x128xf32>
    %206 = tpu.matmul %194, %205, %cst_109 {dimension_numbers = #tpu.dot_dimension_numbers<[1], [0], [0], [1], [0, 0, 1, 1], [], []>} : vector<128x128xbf16>, vector<128x128xbf16>, vector<128x128xf32> -> vector<128x128xf32>
    %c1_110 = arith.constant 1 : index
    %c1_111 = arith.constant 1 : index
    %c0_112 = arith.constant 0 : index
    %c0_113 = arith.constant 0 : index
    %207 = vector.load %arg6[%c1_110, %c1_111, %c0_112, %c0_113] : memref<2x3x1x128xf32, #tpu.memory_space<vmem>>, vector<1x1x1x128xf32>
    %208 = vector.shape_cast %207 : vector<1x1x1x128xf32> to vector<1x128xf32>
    %209 = vector.broadcast %208 : vector<1x128xf32> to vector<128x128xf32>
    %210 = arith.addf %206, %209 : vector<128x128xf32>
    %211 = vector.shape_cast %210 : vector<128x128xf32> to vector<16x8x128xf32>
    %212 = arith.truncf %211 : vector<16x8x128xf32> to vector<16x8x128xbf16>
    %c1_114 = arith.constant 1 : index
    %c2_115 = arith.constant 2 : index
    %c0_116 = arith.constant 0 : index
    %c0_117 = arith.constant 0 : index
    %213 = vector.load %arg5[%c1_114, %c2_115, %c0_116, %c0_117] : memref<2x3x128x128xbf16, #tpu.memory_space<vmem>>, vector<1x1x128x128xbf16>
    %214 = vector.shape_cast %213 : vector<1x1x128x128xbf16> to vector<128x128xbf16>
    %cst_118 = arith.constant dense<0.000000e+00> : vector<128x128xf32>
    %215 = tpu.matmul %194, %214, %cst_118 {dimension_numbers = #tpu.dot_dimension_numbers<[1], [0], [0], [1], [0, 0, 1, 1], [], []>} : vector<128x128xbf16>, vector<128x128xbf16>, vector<128x128xf32> -> vector<128x128xf32>
    %c1_119 = arith.constant 1 : index
    %c2_120 = arith.constant 2 : index
    %c0_121 = arith.constant 0 : index
    %c0_122 = arith.constant 0 : index
    %216 = vector.load %arg6[%c1_119, %c2_120, %c0_121, %c0_122] : memref<2x3x1x128xf32, #tpu.memory_space<vmem>>, vector<1x1x1x128xf32>
    %217 = vector.shape_cast %216 : vector<1x1x1x128xf32> to vector<1x128xf32>
    %218 = vector.broadcast %217 : vector<1x128xf32> to vector<128x128xf32>
    %219 = arith.addf %215, %218 : vector<128x128xf32>
    %220 = vector.shape_cast %219 : vector<128x128xf32> to vector<16x8x128xf32>
    %221 = arith.truncf %220 : vector<16x8x128xf32> to vector<16x8x128xbf16>
    %c1_123 = arith.constant 1 : index
    %c0_124 = arith.constant 0 : index
    %c0_125 = arith.constant 0 : index
    %222 = vector.load %arg7[%c1_123, %c0_124, %c0_125] : memref<2x128x128xbf16, #tpu.memory_space<vmem>>, vector<1x128x128xbf16>
    %223 = vector.shape_cast %222 : vector<1x128x128xbf16> to vector<128x128xbf16>
    %c1_126 = arith.constant 1 : index
    %c0_127 = arith.constant 0 : index
    %c0_128 = arith.constant 0 : index
    %224 = vector.load %arg8[%c1_126, %c0_127, %c0_128] : memref<2x1x128xf32, #tpu.memory_space<vmem>>, vector<1x1x128xf32>
    %225 = vector.shape_cast %224 : vector<1x1x128xf32> to vector<1x128xf32>
    %226 = vector.extract_strided_slice %203 {offsets = [0, 0, 0], sizes = [16, 8, 64], strides = [1, 1, 1]} : vector<16x8x128xbf16> to vector<16x8x64xbf16>
    %227 = vector.extract_strided_slice %212 {offsets = [0, 0, 0], sizes = [16, 8, 64], strides = [1, 1, 1]} : vector<16x8x128xbf16> to vector<16x8x64xbf16>
    %228 = vector.extract_strided_slice %221 {offsets = [0, 0, 0], sizes = [16, 8, 64], strides = [1, 1, 1]} : vector<16x8x128xbf16> to vector<16x8x64xbf16>
    "tpu.trace_start"() <{level = 10 : i32, message = "bqd,bkd->bqk"}> : () -> ()
    %cst_129 = arith.constant dense<0.000000e+00> : vector<16x8x8xf32>
    %229 = tpu.matmul %226, %227, %cst_129 {dimension_numbers = #tpu.dot_dimension_numbers<[2], [2], [1], [1], [0, 0, 0, 1, 1, 1], [0], [0]>} : vector<16x8x64xbf16>, vector<16x8x64xbf16>, vector<16x8x8xf32> -> vector<16x8x8xf32>
    "tpu.trace_stop"() : () -> ()
    %230 = vector.broadcast %31 : vector<16x1x8xf32> to vector<16x8x8xf32>
    %231 = arith.addf %229, %230 : vector<16x8x8xf32>
    %cst_130 = arith.constant dense<0xFF800000> : vector<16x8xf32>
    %232 = vector.multi_reduction <maximumf>, %231, %cst_130 [2] : vector<16x8x8xf32> to vector<16x8xf32>
    %233 = vector.shape_cast %232 : vector<16x8xf32> to vector<16x8x1xf32>
    %234 = vector.broadcast %233 : vector<16x8x1xf32> to vector<16x8x8xf32>
    %235 = arith.subf %231, %234 : vector<16x8x8xf32>
    %236 = math.exp %235 : vector<16x8x8xf32>
    %cst_131 = arith.constant dense<0.000000e+00> : vector<16x8xf32>
    %237 = vector.multi_reduction <add>, %236, %cst_131 [2] : vector<16x8x8xf32> to vector<16x8xf32>
    %238 = vector.shape_cast %237 : vector<16x8xf32> to vector<16x8x1xf32>
    %239 = tpu.reciprocal %238 {approx = true} : vector<16x8x1xf32> -> vector<16x8x1xf32>
    %240 = vector.broadcast %239 : vector<16x8x1xf32> to vector<16x8x8xf32>
    %241 = arith.mulf %236, %240 : vector<16x8x8xf32>
    %242 = arith.truncf %241 : vector<16x8x8xf32> to vector<16x8x8xbf16>
    "tpu.trace_start"() <{level = 10 : i32, message = "bqk,bkd->bqd"}> : () -> ()
    %cst_132 = arith.constant dense<0.000000e+00> : vector<16x8x64xf32>
    %243 = tpu.matmul %242, %228, %cst_132 {dimension_numbers = #tpu.dot_dimension_numbers<[2], [1], [1], [2], [0, 0, 0, 1, 1, 2], [0], [0]>} : vector<16x8x8xbf16>, vector<16x8x64xbf16>, vector<16x8x64xf32> -> vector<16x8x64xf32>
    "tpu.trace_stop"() : () -> ()
    %244 = vector.shape_cast %243 : vector<16x8x64xf32> to vector<128x64xf32>
    %245 = arith.truncf %244 : vector<128x64xf32> to vector<128x64xbf16>
    %246 = vector.extract_strided_slice %223 {offsets = [0, 0], sizes = [64, 128], strides = [1, 1]} : vector<128x128xbf16> to vector<64x128xbf16>
    %cst_133 = arith.constant dense<0.000000e+00> : vector<128x128xf32>
    %247 = tpu.matmul %245, %246, %cst_133 {dimension_numbers = #tpu.dot_dimension_numbers<[1], [0], [0], [1], [0, 0, 1, 1], [], []>} : vector<128x64xbf16>, vector<64x128xbf16>, vector<128x128xf32> -> vector<128x128xf32>
    %248 = vector.broadcast %225 : vector<1x128xf32> to vector<128x128xf32>
    %249 = arith.addf %248, %247 : vector<128x128xf32>
    %250 = vector.extract_strided_slice %203 {offsets = [0, 0, 64], sizes = [16, 8, 64], strides = [1, 1, 1]} : vector<16x8x128xbf16> to vector<16x8x64xbf16>
    %251 = vector.extract_strided_slice %212 {offsets = [0, 0, 64], sizes = [16, 8, 64], strides = [1, 1, 1]} : vector<16x8x128xbf16> to vector<16x8x64xbf16>
    %252 = vector.extract_strided_slice %221 {offsets = [0, 0, 64], sizes = [16, 8, 64], strides = [1, 1, 1]} : vector<16x8x128xbf16> to vector<16x8x64xbf16>
    "tpu.trace_start"() <{level = 10 : i32, message = "bqd,bkd->bqk"}> : () -> ()
    %cst_134 = arith.constant dense<0.000000e+00> : vector<16x8x8xf32>
    %253 = tpu.matmul %250, %251, %cst_134 {dimension_numbers = #tpu.dot_dimension_numbers<[2], [2], [1], [1], [0, 0, 0, 1, 1, 1], [0], [0]>} : vector<16x8x64xbf16>, vector<16x8x64xbf16>, vector<16x8x8xf32> -> vector<16x8x8xf32>
    "tpu.trace_stop"() : () -> ()
    %254 = vector.broadcast %31 : vector<16x1x8xf32> to vector<16x8x8xf32>
    %255 = arith.addf %253, %254 : vector<16x8x8xf32>
    %cst_135 = arith.constant dense<0xFF800000> : vector<16x8xf32>
    %256 = vector.multi_reduction <maximumf>, %255, %cst_135 [2] : vector<16x8x8xf32> to vector<16x8xf32>
    %257 = vector.shape_cast %256 : vector<16x8xf32> to vector<16x8x1xf32>
    %258 = vector.broadcast %257 : vector<16x8x1xf32> to vector<16x8x8xf32>
    %259 = arith.subf %255, %258 : vector<16x8x8xf32>
    %260 = math.exp %259 : vector<16x8x8xf32>
    %cst_136 = arith.constant dense<0.000000e+00> : vector<16x8xf32>
    %261 = vector.multi_reduction <add>, %260, %cst_136 [2] : vector<16x8x8xf32> to vector<16x8xf32>
    %262 = vector.shape_cast %261 : vector<16x8xf32> to vector<16x8x1xf32>
    %263 = tpu.reciprocal %262 {approx = true} : vector<16x8x1xf32> -> vector<16x8x1xf32>
    %264 = vector.broadcast %263 : vector<16x8x1xf32> to vector<16x8x8xf32>
    %265 = arith.mulf %260, %264 : vector<16x8x8xf32>
    %266 = arith.truncf %265 : vector<16x8x8xf32> to vector<16x8x8xbf16>
    "tpu.trace_start"() <{level = 10 : i32, message = "bqk,bkd->bqd"}> : () -> ()
    %cst_137 = arith.constant dense<0.000000e+00> : vector<16x8x64xf32>
    %267 = tpu.matmul %266, %252, %cst_137 {dimension_numbers = #tpu.dot_dimension_numbers<[2], [1], [1], [2], [0, 0, 0, 1, 1, 2], [0], [0]>} : vector<16x8x8xbf16>, vector<16x8x64xbf16>, vector<16x8x64xf32> -> vector<16x8x64xf32>
    "tpu.trace_stop"() : () -> ()
    %268 = vector.shape_cast %267 : vector<16x8x64xf32> to vector<128x64xf32>
    %269 = arith.truncf %268 : vector<128x64xf32> to vector<128x64xbf16>
    %270 = vector.extract_strided_slice %223 {offsets = [64, 0], sizes = [64, 128], strides = [1, 1]} : vector<128x128xbf16> to vector<64x128xbf16>
    %cst_138 = arith.constant dense<0.000000e+00> : vector<128x128xf32>
    %271 = tpu.matmul %269, %270, %cst_138 {dimension_numbers = #tpu.dot_dimension_numbers<[1], [0], [0], [1], [0, 0, 1, 1], [], []>} : vector<128x64xbf16>, vector<64x128xbf16>, vector<128x128xf32> -> vector<128x128xf32>
    %272 = arith.addf %249, %271 : vector<128x128xf32>
    %273 = arith.addf %272, %193 : vector<128x128xf32>
    %c1_139 = arith.constant 1 : index
    %c0_140 = arith.constant 0 : index
    %c0_141 = arith.constant 0 : index
    %274 = vector.load %arg9[%c1_139, %c0_140, %c0_141] : memref<2x1x128xf32, #tpu.memory_space<vmem>>, vector<1x1x128xf32>
    %275 = vector.shape_cast %274 : vector<1x1x128xf32> to vector<1x128xf32>
    %c1_142 = arith.constant 1 : index
    %c0_143 = arith.constant 0 : index
    %c0_144 = arith.constant 0 : index
    %276 = vector.load %arg10[%c1_142, %c0_143, %c0_144] : memref<2x1x128xf32, #tpu.memory_space<vmem>>, vector<1x1x128xf32>
    %277 = vector.shape_cast %276 : vector<1x1x128xf32> to vector<1x128xf32>
    %cst_145 = arith.constant dense<0.000000e+00> : vector<128xf32>
    %278 = vector.multi_reduction <add>, %273, %cst_145 [1] : vector<128x128xf32> to vector<128xf32>
    %279 = vector.shape_cast %278 : vector<128xf32> to vector<128x1xf32>
    %cst_146 = arith.constant 1.280000e+02 : f32
    %280 = vector.broadcast %cst_146 : f32 to vector<128x1xf32>
    %281 = arith.divf %279, %280 : vector<128x1xf32>
    %282 = vector.broadcast %281 : vector<128x1xf32> to vector<128x128xf32>
    %283 = arith.subf %273, %282 : vector<128x128xf32>
    %284 = arith.mulf %283, %283 : vector<128x128xf32>
    %cst_147 = arith.constant dense<0.000000e+00> : vector<128xf32>
    %285 = vector.multi_reduction <add>, %284, %cst_147 [1] : vector<128x128xf32> to vector<128xf32>
    %286 = vector.shape_cast %285 : vector<128xf32> to vector<128x1xf32>
    %cst_148 = arith.constant 1.280000e+02 : f32
    %287 = vector.broadcast %cst_148 : f32 to vector<128x1xf32>
    %288 = arith.divf %286, %287 : vector<128x1xf32>
    %289 = vector.broadcast %281 : vector<128x1xf32> to vector<128x128xf32>
    %290 = arith.subf %273, %289 : vector<128x128xf32>
    %cst_149 = arith.constant 9.99999996E-13 : f32
    %291 = vector.broadcast %cst_149 : f32 to vector<128x1xf32>
    %292 = arith.addf %288, %291 : vector<128x1xf32>
    %293 = math.rsqrt %292 : vector<128x1xf32>
    %294 = vector.broadcast %293 : vector<128x1xf32> to vector<128x128xf32>
    %295 = arith.mulf %290, %294 : vector<128x128xf32>
    %296 = vector.broadcast %275 : vector<1x128xf32> to vector<128x128xf32>
    %297 = arith.mulf %295, %296 : vector<128x128xf32>
    %298 = vector.broadcast %277 : vector<1x128xf32> to vector<128x128xf32>
    %299 = arith.addf %297, %298 : vector<128x128xf32>
    %c1_150 = arith.constant 1 : index
    %c0_151 = arith.constant 0 : index
    %c0_152 = arith.constant 0 : index
    %300 = vector.load %arg11[%c1_150, %c0_151, %c0_152] : memref<2x128x256xbf16, #tpu.memory_space<vmem>>, vector<1x128x256xbf16>
    %301 = vector.shape_cast %300 : vector<1x128x256xbf16> to vector<128x256xbf16>
    %302 = arith.truncf %299 : vector<128x128xf32> to vector<128x128xbf16>
    %cst_153 = arith.constant dense<0.000000e+00> : vector<128x256xf32>
    %303 = tpu.matmul %302, %301, %cst_153 {dimension_numbers = #tpu.dot_dimension_numbers<[1], [0], [0], [1], [0, 0, 1, 1], [], []>} : vector<128x128xbf16>, vector<128x256xbf16>, vector<128x256xf32> -> vector<128x256xf32>
    %c1_154 = arith.constant 1 : index
    %c0_155 = arith.constant 0 : index
    %c0_156 = arith.constant 0 : index
    %304 = vector.load %arg12[%c1_154, %c0_155, %c0_156] : memref<2x1x256xf32, #tpu.memory_space<vmem>>, vector<1x1x256xf32>
    %305 = vector.shape_cast %304 : vector<1x1x256xf32> to vector<1x256xf32>
    %306 = vector.broadcast %305 : vector<1x256xf32> to vector<128x256xf32>
    %307 = arith.addf %303, %306 : vector<128x256xf32>
    %308 = arith.mulf %307, %307 : vector<128x256xf32>
    %309 = arith.mulf %307, %308 : vector<128x256xf32>
    %cst_157 = arith.constant 4.471500e-02 : f32
    %310 = vector.broadcast %cst_157 : f32 to vector<128x256xf32>
    %311 = arith.mulf %310, %309 : vector<128x256xf32>
    %312 = arith.addf %307, %311 : vector<128x256xf32>
    %cst_158 = arith.constant 0.797884583 : f32
    %313 = vector.broadcast %cst_158 : f32 to vector<128x256xf32>
    %314 = arith.mulf %313, %312 : vector<128x256xf32>
    %315 = math.tanh %314 : vector<128x256xf32>
    %cst_159 = arith.constant 1.000000e+00 : f32
    %316 = vector.broadcast %cst_159 : f32 to vector<128x256xf32>
    %317 = arith.addf %316, %315 : vector<128x256xf32>
    %cst_160 = arith.constant 5.000000e-01 : f32
    %318 = vector.broadcast %cst_160 : f32 to vector<128x256xf32>
    %319 = arith.mulf %318, %317 : vector<128x256xf32>
    %320 = arith.mulf %307, %319 : vector<128x256xf32>
    %321 = arith.truncf %320 : vector<128x256xf32> to vector<128x256xbf16>
    %c1_161 = arith.constant 1 : index
    %c0_162 = arith.constant 0 : index
    %c0_163 = arith.constant 0 : index
    %322 = vector.load %arg13[%c1_161, %c0_162, %c0_163] : memref<2x256x128xbf16, #tpu.memory_space<vmem>>, vector<1x256x128xbf16>
    %323 = vector.shape_cast %322 : vector<1x256x128xbf16> to vector<256x128xbf16>
    %cst_164 = arith.constant dense<0.000000e+00> : vector<128x128xf32>
    %324 = tpu.matmul %321, %323, %cst_164 {dimension_numbers = #tpu.dot_dimension_numbers<[1], [0], [0], [1], [0, 0, 1, 1], [], []>} : vector<128x256xbf16>, vector<256x128xbf16>, vector<128x128xf32> -> vector<128x128xf32>
    %c1_165 = arith.constant 1 : index
    %c0_166 = arith.constant 0 : index
    %c0_167 = arith.constant 0 : index
    %325 = vector.load %arg14[%c1_165, %c0_166, %c0_167] : memref<2x1x128xf32, #tpu.memory_space<vmem>>, vector<1x1x128xf32>
    %326 = vector.shape_cast %325 : vector<1x1x128xf32> to vector<1x128xf32>
    %327 = vector.broadcast %326 : vector<1x128xf32> to vector<128x128xf32>
    %328 = arith.addf %324, %327 : vector<128x128xf32>
    %329 = arith.addf %328, %299 : vector<128x128xf32>
    %c1_168 = arith.constant 1 : index
    %c0_169 = arith.constant 0 : index
    %c0_170 = arith.constant 0 : index
    %330 = vector.load %arg15[%c1_168, %c0_169, %c0_170] : memref<2x1x128xf32, #tpu.memory_space<vmem>>, vector<1x1x128xf32>
    %331 = vector.shape_cast %330 : vector<1x1x128xf32> to vector<1x128xf32>
    %c1_171 = arith.constant 1 : index
    %c0_172 = arith.constant 0 : index
    %c0_173 = arith.constant 0 : index
    %332 = vector.load %arg16[%c1_171, %c0_172, %c0_173] : memref<2x1x128xf32, #tpu.memory_space<vmem>>, vector<1x1x128xf32>
    %333 = vector.shape_cast %332 : vector<1x1x128xf32> to vector<1x128xf32>
    %cst_174 = arith.constant dense<0.000000e+00> : vector<128xf32>
    %334 = vector.multi_reduction <add>, %329, %cst_174 [1] : vector<128x128xf32> to vector<128xf32>
    %335 = vector.shape_cast %334 : vector<128xf32> to vector<128x1xf32>
    %cst_175 = arith.constant 1.280000e+02 : f32
    %336 = vector.broadcast %cst_175 : f32 to vector<128x1xf32>
    %337 = arith.divf %335, %336 : vector<128x1xf32>
    %338 = vector.broadcast %337 : vector<128x1xf32> to vector<128x128xf32>
    %339 = arith.subf %329, %338 : vector<128x128xf32>
    %340 = arith.mulf %339, %339 : vector<128x128xf32>
    %cst_176 = arith.constant dense<0.000000e+00> : vector<128xf32>
    %341 = vector.multi_reduction <add>, %340, %cst_176 [1] : vector<128x128xf32> to vector<128xf32>
    %342 = vector.shape_cast %341 : vector<128xf32> to vector<128x1xf32>
    %cst_177 = arith.constant 1.280000e+02 : f32
    %343 = vector.broadcast %cst_177 : f32 to vector<128x1xf32>
    %344 = arith.divf %342, %343 : vector<128x1xf32>
    %345 = vector.broadcast %337 : vector<128x1xf32> to vector<128x128xf32>
    %346 = arith.subf %329, %345 : vector<128x128xf32>
    %cst_178 = arith.constant 9.99999996E-13 : f32
    %347 = vector.broadcast %cst_178 : f32 to vector<128x1xf32>
    %348 = arith.addf %344, %347 : vector<128x1xf32>
    %349 = math.rsqrt %348 : vector<128x1xf32>
    %350 = vector.broadcast %349 : vector<128x1xf32> to vector<128x128xf32>
    %351 = arith.mulf %346, %350 : vector<128x128xf32>
    %352 = vector.broadcast %331 : vector<1x128xf32> to vector<128x128xf32>
    %353 = arith.mulf %351, %352 : vector<128x128xf32>
    %354 = vector.broadcast %333 : vector<1x128xf32> to vector<128x128xf32>
    %355 = arith.addf %353, %354 : vector<128x128xf32>
    %356 = tpu.iota {dimensions = array<i32: 1>} : vector<16x128xi32>
    %357 = tpu.iota {dimensions = array<i32: 0>} : vector<16x128xi32>
    %c8_i32 = arith.constant 8 : i32
    %358 = vector.broadcast %c8_i32 : i32 to vector<16x128xi32>
    %359 = arith.muli %357, %358 : vector<16x128xi32>
    %360 = arith.cmpi eq, %356, %359 : vector<16x128xi32>
    %361 = arith.extui %360 : vector<16x128xi1> to vector<16x128xi32>
    %362 = arith.sitofp %361 : vector<16x128xi32> to vector<16x128xf32>
    %363 = arith.truncf %362 : vector<16x128xf32> to vector<16x128xbf16>
    %364 = arith.truncf %355 : vector<128x128xf32> to vector<128x128xbf16>
    %cst_179 = arith.constant dense<0.000000e+00> : vector<16x128xf32>
    %365 = tpu.matmul %363, %364, %cst_179 {dimension_numbers = #tpu.dot_dimension_numbers<[1], [0], [0], [1], [0, 0, 1, 1], [], []>} : vector<16x128xbf16>, vector<128x128xbf16>, vector<16x128xf32> -> vector<16x128xf32>
    %c0_180 = arith.constant 0 : index
    %c0_181 = arith.constant 0 : index
    %366 = vector.load %arg17[%c0_180, %c0_181] : memref<128x128xbf16, #tpu.memory_space<vmem>>, vector<128x128xbf16>
    %367 = arith.truncf %365 : vector<16x128xf32> to vector<16x128xbf16>
    %cst_182 = arith.constant dense<0.000000e+00> : vector<16x128xf32>
    %368 = tpu.matmul %367, %366, %cst_182 {dimension_numbers = #tpu.dot_dimension_numbers<[1], [0], [0], [1], [0, 0, 1, 1], [], []>} : vector<16x128xbf16>, vector<128x128xbf16>, vector<16x128xf32> -> vector<16x128xf32>
    %c0_183 = arith.constant 0 : index
    %c0_184 = arith.constant 0 : index
    %369 = vector.load %arg18[%c0_183, %c0_184] : memref<1x128xf32, #tpu.memory_space<vmem>>, vector<1x128xf32>
    %370 = vector.broadcast %369 : vector<1x128xf32> to vector<16x128xf32>
    %371 = arith.addf %368, %370 : vector<16x128xf32>
    %372 = math.tanh %371 : vector<16x128xf32>
    %373 = vector.shape_cast %372 : vector<16x128xf32> to vector<16x1x128xf32>
    %c0_185 = arith.constant 0 : index
    %c0_186 = arith.constant 0 : index
    %c0_187 = arith.constant 0 : index
    %374 = vector.load %arg19[%c0_185, %c0_186, %c0_187] : memref<16x1x128xf32, #tpu.memory_space<vmem>>, vector<16x1x128xf32>
    tpu.vector_store %arg19[%c0_185, %c0_186, %c0_187], %373 {strides = array<i32>} : memref<16x1x128xf32, #tpu.memory_space<vmem>>, vector<16x1x128xf32>,
    return
  }
  func.func @transform_0(%arg0: i32) -> (i32, i32, i32) {
    %c0_i32 = arith.constant 0 : i32
    %c0_i32_0 = arith.constant 0 : i32
    %c0_i32_1 = arith.constant 0 : i32
    return %arg0, %c0_i32, %c0_i32_0 : i32, i32, i32
  }
  func.func @transform_1(%arg0: i32) -> (i32, i32, i32) {
    %c0_i32 = arith.constant 0 : i32
    %c0_i32_0 = arith.constant 0 : i32
    %c0_i32_1 = arith.constant 0 : i32
    return %arg0, %c0_i32, %c0_i32_0 : i32, i32, i32
  }
  func.func @transform_2(%arg0: i32) -> (i32, i32) {
    %c0_i32 = arith.constant 0 : i32
    %c0_i32_0 = arith.constant 0 : i32
    %c0_i32_1 = arith.constant 0 : i32
    return %c0_i32, %c0_i32_0 : i32, i32
  }
  func.func @transform_3(%arg0: i32) -> (i32, i32) {
    %c0_i32 = arith.constant 0 : i32
    %c0_i32_0 = arith.constant 0 : i32
    %c0_i32_1 = arith.constant 0 : i32
    return %c0_i32, %c0_i32_0 : i32, i32
  }
  func.func @transform_4(%arg0: i32) -> (i32, i32, i32, i32) {
    %c0_i32 = arith.constant 0 : i32
    %c0_i32_0 = arith.constant 0 : i32
    %c0_i32_1 = arith.constant 0 : i32
    %c0_i32_2 = arith.constant 0 : i32
    %c0_i32_3 = arith.constant 0 : i32
    return %c0_i32, %c0_i32_0, %c0_i32_1, %c0_i32_2 : i32, i32, i32, i32
  }
  func.func @transform_5(%arg0: i32) -> (i32, i32, i32, i32) {
    %c0_i32 = arith.constant 0 : i32
    %c0_i32_0 = arith.constant 0 : i32
    %c0_i32_1 = arith.constant 0 : i32
    %c0_i32_2 = arith.constant 0 : i32
    %c0_i32_3 = arith.constant 0 : i32
    return %c0_i32, %c0_i32_0, %c0_i32_1, %c0_i32_2 : i32, i32, i32, i32
  }
  func.func @transform_6(%arg0: i32) -> (i32, i32, i32) {
    %c0_i32 = arith.constant 0 : i32
    %c0_i32_0 = arith.constant 0 : i32
    %c0_i32_1 = arith.constant 0 : i32
    %c0_i32_2 = arith.constant 0 : i32
    return %c0_i32, %c0_i32_0, %c0_i32_1 : i32, i32, i32
  }
  func.func @transform_7(%arg0: i32) -> (i32, i32, i32) {
    %c0_i32 = arith.constant 0 : i32
    %c0_i32_0 = arith.constant 0 : i32
    %c0_i32_1 = arith.constant 0 : i32
    %c0_i32_2 = arith.constant 0 : i32
    return %c0_i32, %c0_i32_0, %c0_i32_1 : i32, i32, i32
  }
  func.func @transform_8(%arg0: i32) -> (i32, i32, i32) {
    %c0_i32 = arith.constant 0 : i32
    %c0_i32_0 = arith.constant 0 : i32
    %c0_i32_1 = arith.constant 0 : i32
    %c0_i32_2 = arith.constant 0 : i32
    return %c0_i32, %c0_i32_0, %c0_i32_1 : i32, i32, i32
  }
  func.func @transform_9(%arg0: i32) -> (i32, i32, i32) {
    %c0_i32 = arith.constant 0 : i32
    %c0_i32_0 = arith.constant 0 : i32
    %c0_i32_1 = arith.constant 0 : i32
    %c0_i32_2 = arith.constant 0 : i32
    return %c0_i32, %c0_i32_0, %c0_i32_1 : i32, i32, i32
  }
  func.func @transform_10(%arg0: i32) -> (i32, i32, i32) {
    %c0_i32 = arith.constant 0 : i32
    %c0_i32_0 = arith.constant 0 : i32
    %c0_i32_1 = arith.constant 0 : i32
    %c0_i32_2 = arith.constant 0 : i32
    return %c0_i32, %c0_i32_0, %c0_i32_1 : i32, i32, i32
  }
  func.func @transform_11(%arg0: i32) -> (i32, i32, i32) {
    %c0_i32 = arith.constant 0 : i32
    %c0_i32_0 = arith.constant 0 : i32
    %c0_i32_1 = arith.constant 0 : i32
    %c0_i32_2 = arith.constant 0 : i32
    return %c0_i32, %c0_i32_0, %c0_i32_1 : i32, i32, i32
  }
  func.func @transform_12(%arg0: i32) -> (i32, i32, i32) {
    %c0_i32 = arith.constant 0 : i32
    %c0_i32_0 = arith.constant 0 : i32
    %c0_i32_1 = arith.constant 0 : i32
    %c0_i32_2 = arith.constant 0 : i32
    return %c0_i32, %c0_i32_0, %c0_i32_1 : i32, i32, i32
  }
  func.func @transform_13(%arg0: i32) -> (i32, i32, i32) {
    %c0_i32 = arith.constant 0 : i32
    %c0_i32_0 = arith.constant 0 : i32
    %c0_i32_1 = arith.constant 0 : i32
    %c0_i32_2 = arith.constant 0 : i32
    return %c0_i32, %c0_i32_0, %c0_i32_1 : i32, i32, i32
  }
  func.func @transform_14(%arg0: i32) -> (i32, i32, i32) {
    %c0_i32 = arith.constant 0 : i32
    %c0_i32_0 = arith.constant 0 : i32
    %c0_i32_1 = arith.constant 0 : i32
    %c0_i32_2 = arith.constant 0 : i32
    return %c0_i32, %c0_i32_0, %c0_i32_1 : i32, i32, i32
  }
  func.func @transform_15(%arg0: i32) -> (i32, i32, i32) {
    %c0_i32 = arith.constant 0 : i32
    %c0_i32_0 = arith.constant 0 : i32
    %c0_i32_1 = arith.constant 0 : i32
    %c0_i32_2 = arith.constant 0 : i32
    return %c0_i32, %c0_i32_0, %c0_i32_1 : i32, i32, i32
  }
  func.func @transform_16(%arg0: i32) -> (i32, i32) {
    %c0_i32 = arith.constant 0 : i32
    %c0_i32_0 = arith.constant 0 : i32
    %c0_i32_1 = arith.constant 0 : i32
    return %c0_i32, %c0_i32_0 : i32, i32
  }
  func.func @transform_17(%arg0: i32) -> (i32, i32) {
    %c0_i32 = arith.constant 0 : i32
    %c0_i32_0 = arith.constant 0 : i32
    %c0_i32_1 = arith.constant 0 : i32
    return %c0_i32, %c0_i32_0 : i32, i32
  }
  func.func @transform_18(%arg0: i32) -> (i32, i32, i32) {
    %c0_i32 = arith.constant 0 : i32
    %c0_i32_0 = arith.constant 0 : i32
    %c0_i32_1 = arith.constant 0 : i32
    return %arg0, %c0_i32, %c0_i32_0 : i32, i32, i32
  }
}

</mosaic_0001>

<bundles_post_ra>
// kernel: bert_encoder_forward.1
= control target key start
LH: loop header
LB: loop body
LE: loop exit
PB: predicated region body
PF: predicated region fallthrough
CT: control target
= control target key end

     0   :  { %s20487_s0 = inlined_call_operand.vmem [shape: bf16[32,8,128], index: 0, kind: input, shape index: {}]   ;;  %s20488_s1 = inlined_call_operand.vmem [shape: f32[32,1,8], index: 1, kind: input, shape index: {}]   ;;  %s20489_s2 = inlined_call_operand.vmem [shape: f32[1,128], index: 2, kind: input, shape index: {}]   ;;  %s20490_s3 = inlined_call_operand.vmem [shape: f32[1,128], index: 3, kind: input, shape index: {}]   ;;  %s20491_s4 = inlined_call_operand.vmem [shape: bf16[2,3,128,128], index: 4, kind: input, shape index: {}]   ;;  %s20492_s5 = inlined_call_operand.vmem [shape: f32[2,3,1,128], index: 5, kind: input, shape index: {}]   ;;  %s20493_s6 = inlined_call_operand.vmem [shape: bf16[2,128,128], index: 6, kind: input, shape index: {}]   ;;  %s20494_s7 = inlined_call_operand.vmem [shape: f32[2,1,128], index: 7, kind: input, shape index: {}]   ;;  %s20495_s8 = inlined_call_operand.vmem [shape: f32[2,1,128], index: 8, kind: input, shape index: {}]   ;;  %s20496_s9 = inlined_call_operand.vmem [shape: f32[2,1,128], index: 9, kind: input, shape index: {}]   ;;  %s20497_s10 = inlined_call_operand.vmem [shape: bf16[2,128,256], index: 10, kind: input, shape index: {}]   ;;  %s20498_s11 = inlined_call_operand.vmem [shape: f32[2,1,256], index: 11, kind: input, shape index: {}]   ;;  %s20499_s12 = inlined_call_operand.vmem [shape: bf16[2,256,128], index: 12, kind: input, shape index: {}]   ;;  %s20500_s13 = inlined_call_operand.vmem [shape: f32[2,1,128], index: 13, kind: input, shape index: {}]   ;;  %s20501_s14 = inlined_call_operand.vmem [shape: f32[2,1,128], index: 14, kind: input, shape index: {}]   ;;  %s20502_s15 = inlined_call_operand.vmem [shape: f32[2,1,128], index: 15, kind: input, shape index: {}]   ;;  %s20503_s16 = inlined_call_operand.vmem [shape: bf16[128,128], index: 16, kind: input, shape index: {}]   ;;  %s20504_s17 = inlined_call_operand.vmem [shape: f32[1,128], index: 17, kind: input, shape index: {}]   ;;  %s20505_s18 = inlined_call_operand.hbm [shape: f32[32,1,128], index: 18, kind: output, shape index: {}]  }
   0x1   :  { %20604 = sst [smem:[#allocation57_spill]] %s20487_s0 }
   0x2   :  { %20605 = sst [smem:[#allocation58_spill]] %s20488_s1 }
   0x3   :  { %20606 = sst [smem:[#allocation59_spill]] %s20489_s2 }
   0x4   :  { %20607 = sst [smem:[#allocation60_spill]] %s20490_s3 }
   0x5   :  { %23 = vsyncpa [#allocation3], 0 }
   0x6   :  { %25 = vsyncpa [#allocation3 + $0x1], 0  ;;  %s15841_s27 = smov 0   ;;  %s15843_s28 = smov 0  }
   0x7   :  { %s15845_s29 = smov 0   ;;  %s15847_s30 = smov 0  }
   0x8 LB: > { %20608 = sst [smem:[#allocation5_spill]] %s15731_s29  ;;  %s15862_s0 = sadd.s32 4294967295, %s15735_s30   ;;  %s15735_s30 = sphi %s15847_s30, %s20799_s30   ;;  %s15731_s29 = sphi %s15845_s29, %s20801_s29   ;;  %s15727_s28 = sphi %s15843_s28, %s20803_s28   ;;  %s15723_s27 = sphi %s15841_s27, %s20802_s27  }
   0x9   : > { %s12682_s19 = sadd.s32 4294967294, %s15735_s30   ;;  %s15866_s1 = sadd.s32 1, %s15735_s30  }
   0xa   : > { %20609 = sst [smem:[#allocation6_spill]] %s15866_s1  ;;  %s426_s20 = sadd.s32 1, %s15731_s29 }
   0xb   : > { %s423_s21 = ssub.s32 %s15735_s30, %s15866_s1  ;;  %p436_p0 = scmp.ne.s32.totalorder %s15731_s29, %s15727_s28 }
   0xc   : > { %p424_p1 = scmp.eq.s32.totalorder %s423_s21, 0  ;;  %p437_p2 = scmp.eq.s32.totalorder %s15862_s0, 1 }
   0xd   : > { %p442_p3 = scmp.ne.s32.totalorder %s15727_s28, %s15723_s27  ;;  %p443_p4 = scmp.eq.s32.totalorder %s12682_s19, 1 }
   0xe   : > { %s15877_s22 = scalar_select %p424_p1, %s15731_s29, %s426_s20  }
   0xf   : > { %p15879_p5 = por %p437_p2, %p436_p0  ;;  %p15883_p6 = por %p443_p4, %p442_p3 }
  0x10   : > { %20610 = sst [smem:[#allocation7_spill]] %s15877_s22  ;;  %p12685_p7 = scmp.ge.s32.totalorder %s15735_s30, 1 }
  0x11   : > { %p526_p8 = scmp.lt.s32.totalorder %s15735_s30, 3 }
  0x13   : > { %p527_p9 = pnand %p12685_p7, %p526_p8 }
  0x15   : > { %530 = sbr.rel (%p527_p9) target bundleno = 7198 (0x1c1e), region = 92 }
  0x1c   : > { %s12687_s24 = sshll.u32 %s15862_s0, 4  ;;  %s20613_s20 = sld [smem:[#allocation57_spill]]  ;;  %v14973_v24 = vld [vmem:[%s20491_s4] sm:$0xff]   ;;  %vm15738_vm0 = vmmov 0   ;;  %vm1577_vm1 = vcmask 523264   ;;  %vm2510_vm2 = vcmask 1043456  }
  0x1d   : > { %p585_p10 = scmp.lt.s32.totalorder %s12687_s24, 31  ;;  %v14974_v25 = vld [vmem:[%s20491_s4 + $0x40] sm:$0xff]   ;;  %13766 = vmatprep.subr.bf16.mxu0 %v14973_v24  ;;  %s20615_s3 = sld [smem:[#allocation60_spill]]  ;;  %vm2314_vm3 = vcmask 64512  }
  0x1e   : > { %13798 = vmatprep.subr.bf16.mxu1 %v14974_v25  ;;  %13767 = vmatpush3.bf16.msra.mxu0 %v14973_v24  ;;  %v14977_v24 = vld [vmem:[%s20491_s4 + $0x10] sm:$0xff]   ;;  %s20747_s26 = smov 64   ;;  %s13180_s1 = sshll.u32 %s15862_s0, 8 }
  0x1f   : > { %s20805_s24 = smov (!%p585_p10, %s12687_s24), 31  ;;  %13799 = vmatpush3.bf16.msra.mxu1 %v14974_v25  ;;  %v14978_v25 = vld [vmem:[%s20491_s4 + $0x50] sm:$0xff]  }
  0x20   : > { %s12688_s25 = sshll.u32 %s20805_s24, 2 }
  0x22   : > { %s588_s21 = scalar_lea.vmem %s20613_s20, %s12688_s25  ;;  %s20645_s25 = sld [smem:[#allocation58_spill]] }
  0x23   : > { %v13182_v0 = vld [vmem:[%s588_s21] sm:$0xff]   ;;  %v13213_v1 = vld [vmem:[%s588_s21 + $0x8] sm:$0xff]   ;;  %v15896_v4 = vld [vmem:[%s588_s21 + $0x10] sm:$0xff]   ;;  %s15743_s20 = smov [#allocation2]  }
  0x24   : > { %v13183_v2 = vunpack.c.l.bf16 %v13182_v0  ;;  %v13187_v3 = vunpack.c.l.bf16 %v13213_v1  ;;  %v13184_v5 = vunpack.c.h.bf16 %v13182_v0  ;;  %v13188_v6 = vunpack.c.h.bf16 %v13213_v1  ;;  %v15898_v7 = vld [vmem:[%s588_s21 + $0x18] sm:$0xff]   ;;  %v15902_v10 = vld [vmem:[%s588_s21 + $0x20] sm:$0xff]   ;;  %v15906_v13 = vld [vmem:[%s588_s21 + $0x28] sm:$0xff]  }
  0x25   : > { %v13191_v8 = vunpack.c.l.bf16 %v15896_v4  ;;  %v13192_v9 = vunpack.c.h.bf16 %v15896_v4  ;;  %v13195_v11 = vunpack.c.l.bf16 %v15898_v7  ;;  %v13196_v12 = vunpack.c.h.bf16 %v15898_v7  ;;  %v15910_v16 = vld [vmem:[%s588_s21 + $0x30] sm:$0xff]   ;;  %v15918_v19 = vld [vmem:[%s588_s21 + $0x38] sm:$0xff]   ;;  %s20614_s21 = sld [smem:[#allocation59_spill]] }
  0x26   : > { %631 = vadd.xlane.f32.xlu0 %v13183_v2  ;;  %635 = vadd.xlane.f32.xlu1 %v13187_v3  ;;  %v13199_v14 = vunpack.c.l.bf16 %v15902_v10  ;;  %v13200_v15 = vunpack.c.h.bf16 %v15902_v10  ;;  %v13203_v17 = vunpack.c.l.bf16 %v15906_v13  ;;  %v13204_v18 = vunpack.c.h.bf16 %v15906_v13 }
  0x27   : > { %v13207_v20 = vunpack.c.l.bf16 %v15910_v16  ;;  %v13208_v21 = vunpack.c.h.bf16 %v15910_v16  ;;  %v13211_v22 = vunpack.c.l.bf16 %v15918_v19  ;;  %v13212_v23 = vunpack.c.h.bf16 %v15918_v19 }
  0x28   : > { %s16556_s29 = scalar_lea.vmem %s20645_s25, %s20805_s24  ;;  %s20564_s24 = smov 64  }
  0x2a   : > { %633 = vadd.xlane.f32.xlu0 %v13184_v5  ;;  %637 = vadd.xlane.f32.xlu1 %v13188_v6 }
  0x2e   : > { %639 = vadd.xlane.f32.xlu0 %v13191_v8  ;;  %641 = vadd.xlane.f32.xlu1 %v13192_v9 }
  0x32   : > { %643 = vadd.xlane.f32.xlu0 %v13195_v11  ;;  %645 = vadd.xlane.f32.xlu1 %v13196_v12 }
  0x36   : > { %647 = vadd.xlane.f32.xlu0 %v13199_v14  ;;  %649 = vadd.xlane.f32.xlu1 %v13200_v15 }
  0x3a   : > { %651 = vadd.xlane.f32.xlu0 %v13203_v17  ;;  %653 = vadd.xlane.f32.xlu1 %v13204_v18 }
  0x3e   : > { %655 = vadd.xlane.f32.xlu0 %v13207_v20  ;;  %657 = vadd.xlane.f32.xlu1 %v13208_v21 }
  0x42   : > { %659 = vadd.xlane.f32.xlu0 %v13211_v22  ;;  %661 = vadd.xlane.f32.xlu1 %v13212_v23 }
  0xb3   : > { %v632_v26 = vpop.xlane.xlu0 %631  ;;  %v636_v27 = vpop.xlane.xlu1 %635 }
  0xb4   : > { %v664_v28 = vmul.f32 0.0078125, %v632_v26  ;;  %v666_v29 = vmul.f32 0.0078125, %v636_v27 }
  0xb6   : > { %v15942_v30 = vsub.f32 %v13183_v2, %v664_v28  ;;  %v15944_v31 = vsub.f32 %v13187_v3, %v666_v29 }
  0xb7   : > { %v634_v32 = vpop.xlane.xlu0 %633  ;;  %v638_v33 = vpop.xlane.xlu1 %637 }
  0xb8   : > { %v665_v34 = vmul.f32 0.0078125, %v634_v32  ;;  %v696_v35 = vmul.f32 %v15942_v30, %v15942_v30  ;;  %v667_v36 = vmul.f32 0.0078125, %v638_v33  ;;  %v698_v37 = vmul.f32 %v15944_v31, %v15944_v31  ;;  %v14979_v33 = vld [vmem:[%s20491_s4 + $0x18] sm:$0xff]  }
  0xba   : > { %712 = vadd.xlane.f32.xlu0 %v696_v35  ;;  %v15950_v38 = vsub.f32 %v13184_v5, %v665_v34  ;;  %v15952_v39 = vsub.f32 %v13188_v6, %v667_v36  ;;  %v14975_v5 = vld [vmem:[%s20491_s4 + $0x8] sm:$0xff]   ;;  %v14980_v34 = vld [vmem:[%s20491_s4 + $0x58] sm:$0xff]  }
  0xbb   : > { %v640_v40 = vpop.xlane.xlu0 %639  ;;  %v642_v41 = vpop.xlane.xlu1 %641  ;;  %v14976_v6 = vld [vmem:[%s20491_s4 + $0x48] sm:$0xff]   ;;  %13768 = vmatprep.subr.bf16.mxu0 %v14975_v5 }
  0xbc   : > { %v668_v42 = vmul.f32 0.0078125, %v640_v40  ;;  %v697_v43 = vmul.f32 %v15950_v38, %v15950_v38  ;;  %v669_v44 = vmul.f32 0.0078125, %v642_v41  ;;  %v699_v45 = vmul.f32 %v15952_v39, %v15952_v39  ;;  %13800 = vmatprep.subr.bf16.mxu1 %v14976_v6  ;;  %13769 = vmatpush3.bf16.msra.mxu0 %v14975_v5  ;;  %v14983_v36 = vld [vmem:[%s20491_s4 + $0x28] sm:$0xff]   ;;  %v14985_v40 = vld [vmem:[%s20491_s4 + $0x30] sm:$0xff]  }
  0xbd   : > { %13801 = vmatpush3.bf16.msra.mxu1 %v14976_v6  ;;  %13770 = vmatprep.subr.bf16.mxu0 %v14977_v24  ;;  %v14986_v41 = vld [vmem:[%s20491_s4 + $0x70] sm:$0xff]  }
  0xbe   : > { %716 = vadd.xlane.f32.xlu0 %v698_v37  ;;  %714 = vadd.xlane.f32.xlu1 %v697_v43  ;;  %v15958_v46 = vsub.f32 %v13191_v8, %v668_v42  ;;  %v15960_v47 = vsub.f32 %v13192_v9, %v669_v44  ;;  %v14984_v37 = vld [vmem:[%s20491_s4 + $0x68] sm:$0xff]   ;;  %v14987_v42 = vld [vmem:[%s20491_s4 + $0x38] sm:$0xff]   ;;  %v16067_v44 = vld [vmem:[%s20491_s4 + $0x80] sm:$0xff]  }
  0xbf   : > { %v644_v48 = vpop.xlane.xlu0 %643  ;;  %v646_v49 = vpop.xlane.xlu1 %645  ;;  %13802 = vmatprep.subr.bf16.mxu1 %v14978_v25  ;;  %v14988_v43 = vld [vmem:[%s20491_s4 + $0x78] sm:$0xff]  }
  0xc0   : > { %v670_v50 = vmul.f32 0.0078125, %v644_v48  ;;  %v700_v51 = vmul.f32 %v15958_v46, %v15958_v46  ;;  %v671_v52 = vmul.f32 0.0078125, %v646_v49  ;;  %v701_v53 = vmul.f32 %v15960_v47, %v15960_v47  ;;  %13771 = vmatpush3.bf16.msra.mxu0 %v14977_v24  ;;  %v16074_v24 = vld [vmem:[%s20614_s21] ss:$0 sm:$0xff]  ;;  %s581_s21 = sand.u32 1, %s15727_s28  }
  0xc1   : > { %13803 = vmatpush3.bf16.msra.mxu1 %v14978_v25  ;;  %13772 = vmatprep.subr.bf16.mxu0 %v14979_v33  ;;  %s12686_s25 = sshll.u32 %s581_s21, 4  ;;  %s20446_s0 = scalar_lea.sflag [#allocation3], %s581_s21 }
  0xc2   : > { %718 = vadd.xlane.f32.xlu1 %v699_v45  ;;  %720 = vadd.xlane.f32.xlu0 %v700_v51  ;;  %v15966_v54 = vsub.f32 %v13195_v11, %v670_v50  ;;  %v15968_v55 = vsub.f32 %v13196_v12, %v671_v52 }
  0xc3   : > { %v648_v56 = vpop.xlane.xlu0 %647  ;;  %v650_v57 = vpop.xlane.xlu1 %649  ;;  %13804 = vmatprep.subr.bf16.mxu1 %v14980_v34 }
  0xc4   : > { %v672_v58 = vmul.f32 0.0078125, %v648_v56  ;;  %v702_v59 = vmul.f32 %v15966_v54, %v15966_v54  ;;  %v673_v60 = vmul.f32 0.0078125, %v650_v57  ;;  %v703_v61 = vmul.f32 %v15968_v55, %v15968_v55  ;;  %13773 = vmatpush3.bf16.msra.mxu0 %v14979_v33 }
  0xc5   : > { %13805 = vmatpush3.bf16.msra.mxu1 %v14980_v34 }
  0xc6   : > { %722 = vadd.xlane.f32.xlu1 %v701_v53  ;;  %724 = vadd.xlane.f32.xlu0 %v702_v59  ;;  %v15976_v62 = vsub.f32 %v13199_v14, %v672_v58  ;;  %v15980_v63 = vsub.f32 %v13200_v15, %v673_v60 }
  0xc7   : > { %v652_v0 = vpop.xlane.xlu0 %651  ;;  %v654_v1 = vpop.xlane.xlu1 %653 }
  0xc8   : > { %v674_v2 = vmul.f32 0.0078125, %v652_v0  ;;  %v704_v3 = vmul.f32 %v15976_v62, %v15976_v62  ;;  %v675_v4 = vmul.f32 0.0078125, %v654_v1  ;;  %v705_v7 = vmul.f32 %v15980_v63, %v15980_v63 }
  0xca   : > { %726 = vadd.xlane.f32.xlu1 %v703_v61  ;;  %728 = vadd.xlane.f32.xlu0 %v704_v3  ;;  %v15994_v8 = vsub.f32 %v13203_v17, %v674_v2  ;;  %v15998_v9 = vsub.f32 %v13204_v18, %v675_v4 }
  0xcb   : > { %v656_v10 = vpop.xlane.xlu0 %655  ;;  %v658_v11 = vpop.xlane.xlu1 %657 }
  0xcc   : > { %v676_v12 = vmul.f32 0.0078125, %v656_v10  ;;  %v706_v14 = vmul.f32 %v15994_v8, %v15994_v8  ;;  %v677_v15 = vmul.f32 0.0078125, %v658_v11  ;;  %v707_v17 = vmul.f32 %v15998_v9, %v15998_v9 }
  0xce   : > { %730 = vadd.xlane.f32.xlu1 %v705_v7  ;;  %732 = vadd.xlane.f32.xlu0 %v706_v14  ;;  %v16006_v13 = vsub.f32 %v13207_v20, %v676_v12  ;;  %v16010_v18 = vsub.f32 %v13208_v21, %v677_v15 }
  0xcf   : > { %v660_v26 = vpop.xlane.xlu0 %659  ;;  %v662_v27 = vpop.xlane.xlu1 %661 }
  0xd0   : > { %v678_v28 = vmul.f32 0.0078125, %v660_v26  ;;  %v708_v29 = vmul.f32 %v16006_v13, %v16006_v13  ;;  %v679_v20 = vmul.f32 0.0078125, %v662_v27  ;;  %v709_v16 = vmul.f32 %v16010_v18, %v16010_v18 }
  0xd2   : > { %734 = vadd.xlane.f32.xlu1 %v707_v17  ;;  %736 = vadd.xlane.f32.xlu0 %v708_v29  ;;  %v16024_v21 = vsub.f32 %v13211_v22, %v678_v28  ;;  %v16028_v32 = vsub.f32 %v13212_v23, %v679_v20  ;;  %v14981_v22 = vld [vmem:[%s20491_s4 + $0x20] sm:$0xff]  }
  0xd3   : > { %v14982_v23 = vld [vmem:[%s20491_s4 + $0x60] sm:$0xff]   ;;  %13774 = vmatprep.subr.bf16.mxu0 %v14981_v22 }
  0xd4   : > { %v710_v35 = vmul.f32 %v16024_v21, %v16024_v21  ;;  %v711_v19 = vmul.f32 %v16028_v32, %v16028_v32  ;;  %13806 = vmatprep.subr.bf16.mxu1 %v14982_v23  ;;  %13775 = vmatpush3.bf16.msra.mxu0 %v14981_v22 }
  0xd5   : > { %13807 = vmatpush3.bf16.msra.mxu1 %v14982_v23  ;;  %13776 = vmatprep.subr.bf16.mxu0 %v14983_v36 }
  0xd6   : > { %738 = vadd.xlane.f32.xlu1 %v709_v16  ;;  %740 = vadd.xlane.f32.xlu0 %v710_v35  ;;  %v16081_v35 = vld [vmem:[%s20615_s3] ss:$0 sm:$0xff] }
  0xd7   : > { %13808 = vmatprep.subr.bf16.mxu1 %v14984_v37 }
  0xd8   : > { %13777 = vmatpush3.bf16.msra.mxu0 %v14983_v36 }
  0xd9   : > { %13809 = vmatpush3.bf16.msra.mxu1 %v14984_v37  ;;  %13778 = vmatprep.subr.bf16.mxu0 %v14985_v40 }
  0xda   : > { %742 = vadd.xlane.f32.xlu1 %v711_v19  ;;  %13810 = vmatprep.subr.bf16.mxu1 %v14986_v41 }
  0xdc   : > { %13779 = vmatpush3.bf16.msra.mxu0 %v14985_v40 }
  0xdd   : > { %13811 = vmatpush3.bf16.msra.mxu1 %v14986_v41  ;;  %13780 = vmatprep.subr.bf16.mxu0 %v14987_v42 }
  0xde   : > { %13812 = vmatprep.subr.bf16.mxu1 %v14988_v43 }
  0xe0   : > { %13781 = vmatpush3.bf16.msra.mxu0 %v14987_v42 }
  0xe1   : > { %13813 = vmatpush3.bf16.msra.mxu1 %v14988_v43  ;;  %13830 = vmatprep.subr.bf16.mxu0 %v16067_v44 }
 0x147   : > { %v713_v45 = vpop.xlane.xlu0 %712 }
 0x148   : > { %v744_v48 = vmul.f32 0.0078125, %v713_v45 }
 0x14a   : > { %v760_v49 = vadd.f32 1e-12, %v744_v48 }
 0x14b   : > { %v715_v50 = vpop.xlane.xlu1 %714  ;;  %v717_v51 = vpop.xlane.xlu0 %716 }
 0x14c   : > { %15125 = vrsqrt.f32 %v760_v49  ;;  %v745_v52 = vmul.f32 0.0078125, %v715_v50  ;;  %v746_v53 = vmul.f32 0.0078125, %v717_v51 }
 0x14e   : > { %v761_v56 = vadd.f32 1e-12, %v745_v52  ;;  %v762_v57 = vadd.f32 1e-12, %v746_v53 }
 0x14f   : > { %v719_v58 = vpop.xlane.xlu1 %718  ;;  %v721_v59 = vpop.xlane.xlu0 %720 }
 0x150   : > { %15127 = vrsqrt.f32 %v761_v56  ;;  %v747_v60 = vmul.f32 0.0078125, %v719_v58  ;;  %v748_v61 = vmul.f32 0.0078125, %v721_v59 }
 0x151   : > { %15129 = vrsqrt.f32 %v762_v57 }
 0x152   : > { %v763_v0 = vadd.f32 1e-12, %v747_v60  ;;  %v764_v1 = vadd.f32 1e-12, %v748_v61 }
 0x153   : > { %v723_v2 = vpop.xlane.xlu1 %722  ;;  %v725_v3 = vpop.xlane.xlu0 %724 }
 0x154   : > { %15131 = vrsqrt.f32 %v763_v0  ;;  %v749_v4 = vmul.f32 0.0078125, %v723_v2  ;;  %v750_v5 = vmul.f32 0.0078125, %v725_v3 }
 0x155   : > { %15133 = vrsqrt.f32 %v764_v1 }
 0x156   : > { %v15126_v6 = vpop.eup %15125  ;;  %v765_v7 = vadd.f32 1e-12, %v749_v4  ;;  %v766_v10 = vadd.f32 1e-12, %v750_v5 }
 0x157   : > { %v727_v11 = vpop.xlane.xlu1 %726  ;;  %v729_v12 = vpop.xlane.xlu0 %728  ;;  %v792_v14 = vmul.f32 %v15126_v6, %v15942_v30  ;;  %v14990_v6 = vld [vmem:[%s20491_s4 + $0x88] sm:$0xff]  }
 0x158   : > { %15135 = vrsqrt.f32 %v765_v7  ;;  %v751_v15 = vmul.f32 0.0078125, %v727_v11  ;;  %v752_v17 = vmul.f32 0.0078125, %v729_v12 }
 0x159   : > { %15137 = vrsqrt.f32 %v766_v10  ;;  %v814_v33 = vmul.f32 %v16074_v24, %v792_v14 }
 0x15a   : > { %v15128_v25 = vpop.eup %15127  ;;  %v767_v26 = vadd.f32 1e-12, %v751_v15  ;;  %v768_v27 = vadd.f32 1e-12, %v752_v17 }
 0x15b   : > { %v15130_v28 = vpop.eup %15129  ;;  %v731_v29 = vpop.xlane.xlu1 %730  ;;  %v793_v16 = vmul.f32 %v15128_v25, %v15950_v38  ;;  %v16087_v43 = vadd.f32 %v16081_v35, %v814_v33 }
 0x15c   : > { %v733_v20 = vpop.xlane.xlu0 %732  ;;  %15139 = vrsqrt.f32 %v767_v26  ;;  %v753_v30 = vmul.f32 0.0078125, %v731_v29  ;;  %v794_v19 = vmul.f32 %v15130_v28, %v15944_v31 }
 0x15d   : > { %v754_v34 = vmul.f32 0.0078125, %v733_v20  ;;  %15141 = vrsqrt.f32 %v768_v27  ;;  %v815_v22 = vmul.f32 %v16074_v24, %v793_v16  ;;  %20616 = vst [vmem:[#allocation8_spill] sm:$0xff] %v16087_v43 }
 0x15e   : > { %v15132_v23 = vpop.eup %15131  ;;  %v769_v36 = vadd.f32 1e-12, %v753_v30  ;;  %v816_v38 = vmul.f32 %v16074_v24, %v794_v19 }
 0x15f   : > { %v770_v37 = vadd.f32 1e-12, %v754_v34  ;;  %v15134_v40 = vpop.eup %15133  ;;  %v735_v41 = vpop.xlane.xlu1 %734  ;;  %v16090_v45 = vadd.f32 %v16081_v35, %v815_v22  ;;  %v795_v48 = vmul.f32 %v15132_v23, %v15952_v39  ;;  %v14992_v23 = vld [vmem:[%s20491_s4 + $0x98] sm:$0xff]  }
 0x160   : > { %v737_v42 = vpop.xlane.xlu0 %736  ;;  %15143 = vrsqrt.f32 %v769_v36  ;;  %v755_v31 = vmul.f32 0.0078125, %v735_v41  ;;  %v796_v52 = vmul.f32 %v15134_v40, %v15958_v46  ;;  %v16100_v58 = vadd.f32 %v16081_v35, %v816_v38 }
 0x161   : > { %20617 = vst [vmem:[#allocation9_spill] sm:$0xff] %v16090_v45  ;;  %v756_v49 = vmul.f32 0.0078125, %v737_v42  ;;  %15145 = vrsqrt.f32 %v770_v37  ;;  %v16095_v50 = vpack.c.bf16 %v16090_v45, %v16087_v43  ;;  %v817_v51 = vmul.f32 %v16074_v24, %v795_v48 }
 0x162   : > { %v15136_v53 = vpop.eup %15135  ;;  %v771_v56 = vadd.f32 1e-12, %v755_v31  ;;  %20618 = vst [vmem:[#allocation10_spill] sm:$0xff] %v16100_v58  ;;  %v818_v46 = vmul.f32 %v16074_v24, %v796_v52  ;;  %v14993_v31 = vld [vmem:[%s20491_s4 + $0xa0] sm:$0xff]  }
 0x163   : > { %v772_v57 = vadd.f32 1e-12, %v756_v49  ;;  %v15138_v59 = vpop.eup %15137  ;;  %v739_v39 = vpop.xlane.xlu1 %738  ;;  %13782 = vmatprep.mubr.bf16.mxu0 %v16095_v50  ;;  %13814 = vmatprep.mubr.bf16.mxu1 %v16095_v50  ;;  %v16105_v61 = vadd.f32 %v16081_v35, %v817_v51  ;;  %v797_v0 = vmul.f32 %v15136_v53, %v15960_v47 }
 0x164   : > { %v741_v60 = vpop.xlane.xlu0 %740  ;;  %15147 = vrsqrt.f32 %v771_v56  ;;  %v757_v1 = vmul.f32 0.0078125, %v739_v39  ;;  %v798_v3 = vmul.f32 %v15138_v59, %v15966_v54  ;;  %v16119_v11 = vadd.f32 %v16081_v35, %v818_v46  ;;  %v14994_v39 = vld [vmem:[%s20491_s4 + $0xa8] sm:$0xff]  }
 0x165   : > { %20619 = vst [vmem:[#allocation11_spill] sm:$0xff] %v16105_v61  ;;  %v758_v2 = vmul.f32 0.0078125, %v741_v60  ;;  %15149 = vrsqrt.f32 %v772_v57  ;;  %v16112_v4 = vpack.c.bf16 %v16105_v61, %v16100_v58  ;;  %v819_v5 = vmul.f32 %v16074_v24, %v797_v0 }
 0x166   : > { %v15140_v7 = vpop.eup %15139  ;;  %v773_v47 = vadd.f32 1e-12, %v757_v1  ;;  %20620 = vst [vmem:[#allocation12_spill] sm:$0xff] %v16119_v11  ;;  %v820_v17 = vmul.f32 %v16074_v24, %v798_v3  ;;  %v14995_v3 = vld [vmem:[%s20491_s4 + $0xb0] sm:$0xff]  }
 0x167   : > { %v774_v10 = vadd.f32 1e-12, %v758_v2  ;;  %v15142_v12 = vpop.eup %15141  ;;  %v743_v14 = vpop.xlane.xlu1 %742  ;;  %13783 = vmatmul.mubr.bf16.vlgmr.msra.gmra.mrb[0].mxu0 %v16112_v4  ;;  %13815 = vmatmul.mubr.bf16.vlgmr.msra.gmra.mrb[0].mxu1 %v16112_v4  ;;  %v16124_v54 = vadd.f32 %v16081_v35, %v819_v5  ;;  %v799_v15 = vmul.f32 %v15140_v7, %v15968_v55  ;;  %v14991_v55 = vld [vmem:[%s20491_s4 + $0x90] sm:$0xff]  }
 0x168   : > { %15151 = vrsqrt.f32 %v773_v47  ;;  %v759_v25 = vmul.f32 0.0078125, %v743_v14  ;;  %13831 = vmatpush3.bf16.msra.mxu0 %v16067_v44  ;;  %v800_v26 = vmul.f32 %v15142_v12, %v15976_v62  ;;  %v16142_v62 = vadd.f32 %v16081_v35, %v820_v17 }
 0x169   : > { %20621 = vst [vmem:[#allocation13_spill] sm:$0xff] %v16124_v54  ;;  %15153 = vrsqrt.f32 %v774_v10  ;;  %v16132_v27 = vpack.c.bf16 %v16124_v54, %v16119_v11  ;;  %13832 = vmatprep.subr.bf16.mxu0 %v14990_v6  ;;  %v821_v28 = vmul.f32 %v16074_v24, %v799_v15  ;;  %v856_v11 = vld [vmem:[%s16556_s29 + $0x4] sm:$0x1] }
 0x16a   : > { %v15144_v29 = vpop.eup %15143  ;;  %v775_v20 = vadd.f32 1e-12, %v759_v25  ;;  %v822_v16 = vmul.f32 %v16074_v24, %v800_v26  ;;  %20622 = vst [vmem:[#allocation14_spill] sm:$0xff] %v16142_v62 }
 0x16b   : > { %v15146_v33 = vpop.eup %15145  ;;  %13786 = vmatprep.mubr.bf16.mxu0 %v16132_v27  ;;  %13818 = vmatprep.mubr.bf16.mxu1 %v16132_v27  ;;  %v16145_v44 = vadd.f32 %v16081_v35, %v821_v28  ;;  %v801_v30 = vmul.f32 %v15144_v29, %v15980_v63  ;;  %v16233_v28 = vld [vmem:[%s20492_s5] ss:$0 sm:$0xff] }
 0x16c   : > { %15155 = vrsqrt.f32 %v775_v20  ;;  %13833 = vmatpush3.bf16.msra.mxu0 %v14990_v6  ;;  %v802_v34 = vmul.f32 %v15146_v33, %v15994_v8  ;;  %v16156_v37 = vadd.f32 %v16081_v35, %v822_v16 }
 0x16d   : > { %20623 = vst [vmem:[#allocation15_spill] sm:$0xff] %v16145_v44  ;;  %v903_v19 = vpack.c.bf16 %v16145_v44, %v16142_v62  ;;  %13834 = vmatprep.subr.bf16.mxu0 %v14991_v55  ;;  %v823_v22 = vmul.f32 %v16074_v24, %v801_v30 }
 0x16e   : > { %v15148_v36 = vpop.eup %15147  ;;  %20624 = vst [vmem:[#allocation16_spill] sm:$0xff] %v16156_v37  ;;  %v824_v40 = vmul.f32 %v16074_v24, %v802_v34 }
 0x16f   : > { %v15150_v38 = vpop.eup %15149  ;;  %13787 = vmatmul.mubr.bf16.gmra.mrb[4].mxu0 %v903_v19  ;;  %13819 = vmatmul.mubr.bf16.gmra.mrb[4].mxu1 %v903_v19  ;;  %v16159_v63 = vadd.f32 %v16081_v35, %v823_v22  ;;  %v803_v8 = vmul.f32 %v15148_v36, %v15998_v9 }
 0x170   : > { %13835 = vmatpush3.bf16.msra.mxu0 %v14991_v55  ;;  %v804_v41 = vmul.f32 %v15150_v38, %v16006_v13  ;;  %v16172_v9 = vadd.f32 %v16081_v35, %v824_v40 }
 0x171   : > { %20625 = vst [vmem:[#allocation17_spill] sm:$0xff] %v16159_v63  ;;  %v904_v42 = vpack.c.bf16 %v16159_v63, %v16156_v37  ;;  %13836 = vmatprep.subr.bf16.mxu0 %v14992_v23  ;;  %v825_v48 = vmul.f32 %v16074_v24, %v803_v8 }
 0x172   : > { %v15152_v49 = vpop.eup %15151  ;;  %v826_v51 = vmul.f32 %v16074_v24, %v804_v41  ;;  %20626 = vst [vmem:[#allocation18_spill] sm:$0xff] %v16172_v9 }
 0x173   : > { %v15154_v52 = vpop.eup %15153  ;;  %13790 = vmatprep.mubr.bf16.mxu0 %v904_v42  ;;  %13822 = vmatprep.mubr.bf16.mxu1 %v904_v42  ;;  %v16175_v13 = vadd.f32 %v16081_v35, %v825_v48  ;;  %v805_v53 = vmul.f32 %v15152_v49, %v16010_v18 }
 0x174   : > { %13837 = vmatpush3.bf16.msra.mxu0 %v14992_v23  ;;  %v806_v56 = vmul.f32 %v15154_v52, %v16024_v21  ;;  %v16186_v0 = vadd.f32 %v16081_v35, %v826_v51 }
 0x175   : > { %20627 = vst [vmem:[#allocation19_spill] sm:$0xff] %v16175_v13  ;;  %v905_v57 = vpack.c.bf16 %v16175_v13, %v16172_v9  ;;  %13838 = vmatprep.subr.bf16.mxu0 %v14993_v31  ;;  %v827_v59 = vmul.f32 %v16074_v24, %v805_v53 }
 0x176   : > { %v15156_v60 = vpop.eup %15155  ;;  %20628 = vst [vmem:[#allocation20_spill] sm:$0xff] %v16186_v0  ;;  %v828_v46 = vmul.f32 %v16074_v24, %v806_v56 }
 0x177   : > { %13791 = vmatmul.mubr.bf16.gmra.mrb[8].mxu0 %v905_v57  ;;  %13823 = vmatmul.mubr.bf16.gmra.mrb[8].mxu1 %v905_v57  ;;  %v16189_v18 = vadd.f32 %v16081_v35, %v827_v59  ;;  %v807_v21 = vmul.f32 %v15156_v60, %v16028_v32 }
 0x178   : > { %13839 = vmatpush3.bf16.msra.mxu0 %v14993_v31  ;;  %v16200_v5 = vadd.f32 %v16081_v35, %v828_v46 }
 0x179   : > { %20629 = vst [vmem:[#allocation21_spill] sm:$0xff] %v16189_v18  ;;  %v906_v1 = vpack.c.bf16 %v16189_v18, %v16186_v0  ;;  %13840 = vmatprep.subr.bf16.mxu0 %v14994_v39  ;;  %v829_v2 = vmul.f32 %v16074_v24, %v807_v21  ;;  %v14996_v24 = vld [vmem:[%s20491_s4 + $0xb8] sm:$0xff]  }
 0x17a   : > { %20630 = vst [vmem:[#allocation22_spill] sm:$0xff] %v16200_v5 }
 0x17b   : > { %13794 = vmatprep.mubr.bf16.mxu0 %v906_v1  ;;  %13826 = vmatprep.mubr.bf16.mxu1 %v906_v1  ;;  %v16203_v32 = vadd.f32 %v16081_v35, %v829_v2  ;;  %v20519_v35 = vmov 0.0  }
 0x17c   : > { %13841 = vmatpush3.bf16.msra.mxu0 %v14994_v39  ;;  %13868 = vmatprep.subr.bf16.mxu1 %v20519_v35 }
 0x17d   : > { %20631 = vst [vmem:[#allocation23_spill] sm:$0xff] %v16203_v32  ;;  %v907_v6 = vpack.c.bf16 %v16203_v32, %v16200_v5  ;;  %13842 = vmatprep.subr.bf16.mxu0 %v14995_v3 }
 0x17f   : > { %13795 = vmatmul.mubr.bf16.gmra.mrb[12].mxu0 %v907_v6  ;;  %13827 = vmatmul.mubr.bf16.gmra.mrb[12].mxu1 %v907_v6 }
 0x180   : > { %13843 = vmatpush3.bf16.msra.mxu0 %v14995_v3  ;;  %13846 = vmatprep.mubr.bf16.mxu0 %v16095_v50  ;;  %v16222_v50 = vld [vmem:[%s20492_s5 + $0x1] ss:$0 sm:$0xff] }
 0x181   : > { %13844 = vmatprep.subr.bf16.mxu0 %v14996_v24  ;;  %13870 = vmatprep.mubr.msk.bf16.mxu1 %vm15738_vm0, %v20519_v35 }
 0x184   : > { %13845 = vmatpush3.bf16.msra.mxu0 %v14996_v24 }
 0x185   : > { %13862 = vmatprep.subr.bf16.mxu0 %v20519_v35 }
 0x187   : > { %13847 = vmatmul.mubr.bf16.vlgmr.msra.gmra.mrb[16].mxu0 %v16112_v4 }
 0x188   : > { %13850 = vmatprep.mubr.bf16.mxu0 %v16132_v27 }
 0x18f   : > { %13851 = vmatmul.mubr.bf16.gmra.mrb[20].mxu0 %v903_v19 }
 0x190   : > { %13854 = vmatprep.mubr.bf16.mxu0 %v904_v42 }
 0x197   : > { %13855 = vmatmul.mubr.bf16.gmra.mrb[24].mxu0 %v905_v57 }
 0x198   : > { %13858 = vmatprep.mubr.bf16.mxu0 %v906_v1 }
 0x19f   : > { %13859 = vmatmul.mubr.bf16.gmra.mrb[28].mxu0 %v907_v6 }
 0x1a0   : > { %13864 = vmatprep.mubr.msk.bf16.mxu0 %vm15738_vm0, %v20519_v35 }
 0x23a   : > { %v13784_v4 = vpop.f32.mrb[0].mxu0  ;;  %v13816_v7 = vpop.f32.mrb[0].mxu1 }
 0x23b   : > { %v1013_v47 = vpop.f32.mrb[1].mxu0  ;;  %v1199_v10 = vpop.f32.mrb[1].mxu1  ;;  %v1208_v20 = vadd.f32 %v13816_v7, %v16222_v50  ;;  %v1022_v46 = vadd.f32 %v13784_v4, %v16233_v28 }
 0x23c   : > { %v1200_v12 = vadd.f32 %v16222_v50, %v1199_v10  ;;  %v16225_v14 = vpop.f32.mrb[2].mxu0  ;;  %v13817_v15 = vpop.f32.mrb[2].mxu1  ;;  %v1014_v16 = vadd.f32 %v16233_v28, %v1013_v47 }
 0x23d   : > { %v1016_v17 = vpop.f32.mrb[3].mxu0  ;;  %v1202_v25 = vpop.f32.mrb[3].mxu1  ;;  %v16253_v42 = vpack.c.bf16 %v1208_v20, %v1208_v20  ;;  %v1211_v53 = vadd.f32 %v13817_v15, %v16222_v50  ;;  %v16295_v10 = vpack.c.bf16 %v1022_v46, %v1022_v46 }
 0x23e   : > { %v16227_v26 = vpack.c.bf16 %v1200_v12, %v1200_v12  ;;  %v1203_v27 = vadd.f32 %v16222_v50, %v1202_v25  ;;  %v1017_v23 = vadd.f32 %v16233_v28, %v1016_v17  ;;  %v16255_v48 = vpack.c.bf16 %v1014_v16, %v1014_v16 }
 0x23f   : > { %v1674_v39 = vsel %vm1577_vm1, %v16253_v42, 0  ;;  %v16291_v7 = vpack.c.bf16 %v1211_v53, %v1211_v53 }
 0x240   : > { %v16235_v55 = vpack.c.bf16 %v1203_v27, %v1203_v27  ;;  %v1582_v29 = vsel %vm1577_vm1, %v16227_v26, 0  ;;  %v16259_v49 = vpack.c.bf16 %v1017_v23, %v1017_v23 }
 0x241   : > { %13863 = vmatpush3.bf16.xpose.msra.mxu0 %v1582_v29  ;;  %v1720_v29 = vsel %vm1577_vm1, %v16291_v7, 0 }
 0x242   : > { %v13788_v33 = vpop.f32.mrb[4].mxu0  ;;  %v13820_v30 = vpop.f32.mrb[4].mxu1  ;;  %v1628_v34 = vsel %vm1577_vm1, %v16235_v55, 0  ;;  %13886 = vmatprep.subr.bf16.mxu0 %v20519_v35 }
 0x243   : > { %v1029_v19 = vpop.f32.mrb[5].mxu0  ;;  %v1215_v22 = vpop.f32.mrb[5].mxu1  ;;  %13869 = vmatpush3.bf16.xpose.msra.mxu1 %v1628_v34  ;;  %v1224_v51 = vadd.f32 %v13820_v30, %v16222_v50  ;;  %v1038_v15 = vadd.f32 %v13788_v33, %v16233_v28  ;;  %v1025_v33 = vadd.f32 %v16225_v14, %v16233_v28 }
 0x244   : > { %v1216_v36 = vadd.f32 %v16222_v50, %v1215_v22  ;;  %v16246_v38 = vpop.f32.mrb[6].mxu0  ;;  %v16248_v8 = vpop.f32.mrb[6].mxu1  ;;  %13874 = vmatprep.subr.bf16.mxu1 %v20519_v35  ;;  %v1030_v56 = vadd.f32 %v16233_v28, %v1029_v19 }
 0x245   : > { %v16251_v40 = vpop.f32.mrb[7].mxu0  ;;  %v1218_v41 = vpop.f32.mrb[7].mxu1  ;;  %v16280_v1 = vpack.c.bf16 %v1224_v51, %v1224_v51  ;;  %v16334_v51 = vpack.c.bf16 %v1038_v15, %v1038_v15  ;;  %v16338_v14 = vpack.c.bf16 %v1025_v33, %v1025_v33 }
 0x246   : > { %v16257_v31 = vpack.c.bf16 %v1216_v36, %v1216_v36  ;;  %v16293_v47 = vpack.c.bf16 %v1030_v56, %v1030_v56  ;;  %v1219_v17 = vadd.f32 %v16222_v50, %v1218_v41 }
 0x247   : > { %v1858_v12 = vsel %vm1577_vm1, %v16280_v1, 0 }
 0x248   : > { %13865 = vmatmul.mubr.msk.bf16.vlgmr.msra.gmra.mrb[32].mxu0 %vm1577_vm1, %v16255_v48  ;;  %v1766_v52 = vsel %vm1577_vm1, %v16257_v31, 0 }
 0x249   : > { %13887 = vmatpush3.bf16.xpose.msra.mxu0 %v1766_v52  ;;  %13888 = vmatprep.mubr.msk.bf16.mxu0 %vm15738_vm0, %v20519_v35  ;;  %v16336_v52 = vpack.c.bf16 %v1219_v17, %v1219_v17 }
 0x24a   : > { %v16270_v57 = vpop.f32.mrb[8].mxu0  ;;  %v13824_v59 = vpop.f32.mrb[8].mxu1  ;;  %13871 = vmatmul.mubr.msk.bf16.vlgmr.msra.gmra.mrb[16].mxu1 %vm1577_vm1, %v16259_v49  ;;  %13898 = vmatprep.subr.bf16.mxu0 %v20519_v35 }
 0x24b   : > { %v1045_v60 = vpop.f32.mrb[9].mxu0  ;;  %v1231_v21 = vpop.f32.mrb[9].mxu1  ;;  %13875 = vmatpush3.bf16.xpose.msra.mxu1 %v1674_v39  ;;  %13876 = vmatprep.mubr.msk.bf16.mxu1 %vm15738_vm0, %v20519_v35  ;;  %v1240_v53 = vadd.f32 %v13824_v59, %v16222_v50  ;;  %v16348_v39 = vld [vmem:[%s20492_s5 + $0x2] ss:$0 sm:$0xff] }
 0x24c   : > { %v16282_v2 = vpop.f32.mrb[10].mxu0  ;;  %v16284_v3 = vpop.f32.mrb[10].mxu1  ;;  %13880 = vmatprep.subr.bf16.mxu1 %v20519_v35  ;;  %v1232_v4 = vadd.f32 %v16222_v50, %v1231_v21  ;;  %v1227_v21 = vadd.f32 %v16248_v8, %v16222_v50  ;;  %v1046_v59 = vadd.f32 %v16233_v28, %v1045_v60  ;;  %v1033_v8 = vadd.f32 %v16233_v28, %v16251_v40 }
 0x24d   : > { %v16287_v6 = vpop.f32.mrb[11].mxu0  ;;  %v16289_v24 = vpop.f32.mrb[11].mxu1  ;;  %v16369_v60 = vpack.c.bf16 %v1240_v53, %v1240_v53  ;;  %v1054_v53 = vadd.f32 %v16270_v57, %v16233_v28  ;;  %v1041_v57 = vadd.f32 %v16246_v38, %v16233_v28 }
 0x24e   : > { %v16321_v30 = vpack.c.bf16 %v1232_v4, %v1232_v4  ;;  %v1812_v4 = vsel %vm1577_vm1, %v16336_v52, 0 }
 0x24f   : > { %v2042_v40 = vsel %vm1577_vm1, %v16369_v60, 0  ;;  %v16415_v5 = vpack.c.bf16 %v1054_v53, %v1054_v53  ;;  %v16422_v38 = vpack.c.bf16 %v1041_v57, %v1041_v57  ;;  %v1243_v53 = vadd.f32 %v16284_v3, %v16222_v50 }
 0x250   : > { %13889 = vmatmul.mubr.msk.bf16.vlgmr.msra.gmra.mrb[36].mxu0 %vm1577_vm1, %v16293_v47  ;;  %v1950_v56 = vsel %vm1577_vm1, %v16321_v30, 0  ;;  %v1049_v3 = vadd.f32 %v16233_v28, %v16287_v6 }
 0x251   : > { %13899 = vmatpush3.bf16.xpose.msra.mxu0 %v1858_v12  ;;  %13900 = vmatprep.mubr.msk.bf16.mxu0 %vm15738_vm0, %v20519_v35  ;;  %v16457_v9 = vpack.c.bf16 %v1243_v53, %v1243_v53 }
 0x252   : > { %v16306_v25 = vpop.f32.mrb[12].mxu0  ;;  %v16308_v27 = vpop.f32.mrb[12].mxu1  ;;  %13877 = vmatmul.mubr.msk.bf16.vlgmr.msra.gmra.mrb[20].mxu1 %vm1577_vm1, %v16295_v10  ;;  %13910 = vmatprep.subr.bf16.mxu0 %v20519_v35  ;;  %v16464_v6 = vpack.c.bf16 %v1049_v3, %v1049_v3 }
 0x253   : > { %v16315_v20 = vpop.f32.mrb[13].mxu0  ;;  %v1247_v16 = vpop.f32.mrb[13].mxu1  ;;  %13881 = vmatpush3.bf16.xpose.msra.mxu1 %v1720_v29  ;;  %13882 = vmatprep.mubr.msk.bf16.mxu1 %vm15738_vm0, %v20519_v35  ;;  %v1070_v53 = vadd.f32 %v16306_v25, %v16233_v28 }
 0x254   : > { %v13797_v34 = vpop.f32.mrb[14].mxu0  ;;  %v13829_v19 = vpop.f32.mrb[14].mxu1  ;;  %13892 = vmatprep.subr.bf16.mxu1 %v20519_v35 }
 0x255   : > { %v16325_v22 = vadd.f32 %v13797_v34, %v16233_v28  ;;  %v16328_v23 = vadd.f32 %v13829_v19, %v16222_v50  ;;  %v16330_v36 = vpop.f32.mrb[15].mxu0  ;;  %v16332_v41 = vpop.f32.mrb[15].mxu1  ;;  %v16377_v34 = vpack.c.bf16 %v1227_v21, %v1227_v21  ;;  %v16379_v19 = vpack.c.bf16 %v1046_v59, %v1046_v59 }
 0x256   : > { %v1235_v21 = vadd.f32 %v16222_v50, %v16289_v24 }
 0x258   : > { %13901 = vmatmul.mubr.msk.bf16.vlgmr.msra.gmra.mrb[40].mxu0 %vm1577_vm1, %v16334_v51 }
 0x259   : > { %13911 = vmatpush3.bf16.xpose.msra.mxu0 %v1950_v56  ;;  %13912 = vmatprep.mubr.msk.bf16.mxu0 %vm15738_vm0, %v20519_v35  ;;  %v16381_v56 = vpack.c.bf16 %v1033_v8, %v1033_v8 }
 0x25a   : > { %v13848_v46 = vpop.f32.mrb[16].mxu0  ;;  %13883 = vmatmul.mubr.msk.bf16.vlgmr.msra.gmra.mrb[24].mxu1 %vm1577_vm1, %v16338_v14  ;;  %13922 = vmatprep.subr.bf16.mxu0 %v20519_v35 }
 0x25b   : > { %v16361_v12 = vadd.f32 %v13848_v46, %v16348_v39  ;;  %v16363_v15 = vpop.f32.mrb[17].mxu0  ;;  %13893 = vmatpush3.bf16.xpose.msra.mxu1 %v1812_v4  ;;  %13894 = vmatprep.mubr.msk.bf16.mxu1 %vm15738_vm0, %v20519_v35  ;;  %v1248_v46 = vadd.f32 %v16222_v50, %v1247_v16  ;;  %v1904_v16 = vsel %vm1577_vm1, %v16377_v34, 0 }
 0x25c   : > { %v13849_v17 = vpop.f32.mrb[18].mxu0  ;;  %13904 = vmatprep.subr.bf16.mxu1 %v20519_v35 }
 0x25d   : > { %v16373_v29 = vadd.f32 %v13849_v17, %v16348_v39  ;;  %v16375_v33 = vpop.f32.mrb[19].mxu0  ;;  %v16406_v24 = vpack.c.bf16 %v1248_v46, %v1248_v46  ;;  %v1256_v46 = vadd.f32 %v16308_v27, %v16222_v50 }
 0x25f   : > { %20632 = vst [vmem:[#allocation24_spill] sm:$0xff] %v16373_v29 }
 0x260   : > { %13913 = vmatmul.mubr.msk.bf16.vlgmr.msra.gmra.mrb[44].mxu0 %vm1577_vm1, %v16379_v19 }
 0x261   : > { %13923 = vmatpush3.bf16.xpose.msra.mxu0 %v2042_v40  ;;  %13924 = vmatprep.mubr.msk.bf16.mxu0 %vm15738_vm0, %v20519_v35 }
 0x262   : > { %v13852_v59 = vpop.f32.mrb[20].mxu0  ;;  %13895 = vmatmul.mubr.msk.bf16.vlgmr.msra.gmra.mrb[28].mxu1 %vm1577_vm1, %v16381_v56  ;;  %13934 = vmatprep.subr.bf16.mxu0 %v20519_v35 }
 0x263   : > { %v16400_v4 = vadd.f32 %v13852_v59, %v16348_v39  ;;  %v1401_v8 = vpop.f32.mrb[21].mxu0  ;;  %13905 = vmatpush3.bf16.xpose.msra.mxu1 %v1904_v16  ;;  %13906 = vmatprep.mubr.msk.bf16.mxu1 %vm15738_vm0, %v20519_v35  ;;  %v16417_v16 = vpack.c.bf16 %v1235_v21, %v1235_v21  ;;  %v1062_v21 = vadd.f32 %v16233_v28, %v16315_v20 }
 0x264   : > { %v16409_v17 = vadd.f32 %v16348_v39, %v1401_v8  ;;  %v13853_v40 = vpop.f32.mrb[22].mxu0  ;;  %13916 = vmatprep.subr.bf16.mxu1 %v20519_v35  ;;  %v2134_v8 = vsel %vm1577_vm1, %v16406_v24, 0  ;;  %v16448_v20 = vpack.c.bf16 %v1256_v46, %v1256_v46  ;;  %v1386_v46 = vadd.f32 %v16348_v39, %v16363_v15 }
 0x265   : > { %v16413_v32 = vadd.f32 %v13853_v40, %v16348_v39  ;;  %v1404_v59 = vpop.f32.mrb[23].mxu0  ;;  %v1996_v27 = vsel %vm1577_vm1, %v16417_v16, 0  ;;  %v2088_v15 = vsel %vm1577_vm1, %v16457_v9, 0 }
 0x266   : > { %v16420_v18 = vadd.f32 %v16348_v39, %v1404_v59  ;;  %v16490_v25 = vpack.c.bf16 %v1386_v46, %v1386_v46 }
 0x267   : > { %20633 = vst [vmem:[#allocation25_spill] sm:$0xff] %v16413_v32 }
 0x268   : > { %20634 = vst [vmem:[#allocation26_spill] sm:$0xff] %v16420_v18  ;;  %13925 = vmatmul.mubr.msk.bf16.vlgmr.msra.gmra.mrb[48].mxu0 %vm1577_vm1, %v16415_v5  ;;  %v2512_v46 = vsel %vm2510_vm2, %v16490_v25, 0 }
 0x269   : > { %13935 = vmatpush3.bf16.xpose.msra.mxu0 %v2134_v8  ;;  %13936 = vmatprep.mubr.msk.bf16.mxu0 %vm15738_vm0, %v20519_v35 }
 0x26a   : > { %v13856_v57 = vpop.f32.mrb[24].mxu0  ;;  %13907 = vmatmul.mubr.msk.bf16.vlgmr.msra.gmra.mrb[32].mxu1 %vm1577_vm1, %v16422_v38  ;;  %13946 = vmatprep.subr.bf16.mxu0 %v20519_v35 }
 0x26b   : > { %v16442_v40 = vadd.f32 %v13856_v57, %v16348_v39  ;;  %v1417_v59 = vpop.f32.mrb[25].mxu0  ;;  %13917 = vmatpush3.bf16.xpose.msra.mxu1 %v1996_v27  ;;  %13918 = vmatprep.mubr.msk.bf16.mxu1 %vm15738_vm0, %v20519_v35  ;;  %v16459_v27 = vpack.c.bf16 %v1062_v21, %v1062_v21  ;;  %v1251_v21 = vadd.f32 %v16222_v50, %v16332_v41 }
 0x26c   : > { %v16451_v8 = vadd.f32 %v16348_v39, %v1417_v59  ;;  %v13857_v0 = vpop.f32.mrb[26].mxu0  ;;  %13928 = vmatprep.subr.bf16.mxu1 %v20519_v35  ;;  %v1057_v50 = vadd.f32 %v16282_v2, %v16233_v28 }
 0x26d   : > { %20635 = vst [vmem:[#allocation27_spill] sm:$0xff] %v16442_v40  ;;  %v16455_v13 = vadd.f32 %v13857_v0, %v16348_v39  ;;  %v1420_v57 = vpop.f32.mrb[27].mxu0  ;;  %v2226_v0 = vsel %vm1577_vm1, %v16448_v20, 0  ;;  %v16501_v44 = vpack.c.bf16 %v1251_v21, %v1251_v21  ;;  %v1065_v21 = vadd.f32 %v16233_v28, %v16330_v36  ;;  %v859_v40 = vld [vmem:[%s16556_s29 + $0x7] sm:$0x1] }
 0x26e   : > { %20636 = vst [vmem:[#allocation28_spill] sm:$0xff] %v16451_v8  ;;  %v16462_v63 = vadd.f32 %v16348_v39, %v1420_v57  ;;  %v16506_v2 = vpack.c.bf16 %v1057_v50, %v1057_v50 }
 0x26f   : > { %20637 = vst [vmem:[#allocation29_spill] sm:$0xff] %v16455_v13  ;;  %v16528_v50 = vpack.c.bf16 %v1065_v21, %v1065_v21 }
 0x270   : > { %20638 = vst [vmem:[#allocation30_spill] sm:$0xff] %v16462_v63  ;;  %13937 = vmatmul.mubr.msk.bf16.vlgmr.msra.gmra.mrb[52].mxu0 %vm1577_vm1, %v16459_v27  ;;  %v857_v63 = vld [vmem:[%s16556_s29 + $0x5] sm:$0x1] }
 0x271   : > { %13947 = vmatpush3.bf16.xpose.msra.mxu0 %v2226_v0  ;;  %13948 = vmatprep.mubr.msk.bf16.mxu0 %vm15738_vm0, %v20519_v35 }
 0x272   : > { %v13860_v59 = vpop.f32.mrb[28].mxu0  ;;  %13919 = vmatmul.mubr.msk.bf16.vlgmr.msra.gmra.mrb[36].mxu1 %vm1577_vm1, %v16464_v6  ;;  %13958 = vmatprep.subr.bf16.mxu0 %v20519_v35 }
 0x273   : > { %v16484_v3 = vadd.f32 %v13860_v59, %v16348_v39  ;;  %v1433_v57 = vpop.f32.mrb[29].mxu0  ;;  %13929 = vmatpush3.bf16.xpose.msra.mxu1 %v2088_v15  ;;  %13930 = vmatprep.mubr.msk.bf16.mxu1 %vm15738_vm0, %v20519_v35  ;;  %v16499_v15 = vpack.c.bf16 %v1070_v53, %v1070_v53  ;;  %v2180_v53 = vsel %vm1577_vm1, %v16501_v44, 0 }
 0x274   : > { %v16493_v41 = vadd.f32 %v16348_v39, %v1433_v57  ;;  %v13861_v0 = vpop.f32.mrb[30].mxu0  ;;  %13940 = vmatprep.subr.bf16.mxu1 %v20519_v35  ;;  %v16526_v57 = vpack.c.bf16 %v16328_v23, %v16328_v23  ;;  %v16543_v23 = vpack.c.bf16 %v16325_v22, %v16325_v22  ;;  %v20525_v22 = vlaneseq }
 0x275   : > { %20639 = vst [vmem:[#allocation31_spill] sm:$0xff] %v16484_v3  ;;  %v16497_v37 = vadd.f32 %v13861_v0, %v16348_v39  ;;  %v1436_v59 = vpop.f32.mrb[31].mxu0  ;;  %v1389_v0 = vadd.f32 %v16348_v39, %v16375_v33  ;;  %v853_v33 = vld [vmem:[%s16556_s29 + $0x1] sm:$0x1] }
 0x276   : > { %20640 = vst [vmem:[#allocation32_spill] sm:$0xff] %v16493_v41  ;;  %v16504_v62 = vadd.f32 %v16348_v39, %v1436_v59  ;;  %v2272_v59 = vsel %vm1577_vm1, %v16526_v57, 0  ;;  %20644 = vst [vmem:[#allocation36_spill] sm:$0xff] %v16543_v23  ;;  %v852_v39 = vld [vmem:[%s16556_s29] sm:$0x1]  ;;  %v869_v21 = vsub.f32 1.0, %v853_v33 }
 0x277   : > { %20641 = vst [vmem:[#allocation33_spill] sm:$0xff] %v16497_v37  ;;  %v16539_v28 = vpack.c.bf16 %v1389_v0, %v1389_v0 }
 0x278   : > { %20642 = vst [vmem:[#allocation34_spill] sm:$0xff] %v16504_v62  ;;  %13949 = vmatmul.mubr.msk.bf16.vlgmr.msra.gmra.mrb[56].mxu0 %vm1577_vm1, %v16499_v15 }
 0x279   : > { %13959 = vmatpush3.bf16.msra.mxu0 %v2512_v46  ;;  %13960 = vmatprep.mubr.msk.bf16.mxu0 %vm15738_vm0, %v20519_v35  ;;  %20643 = vst [vmem:[#allocation35_spill] sm:$0xff] %v16539_v28  ;;  %v2558_v36 = vsel %vm2510_vm2, %v16539_v28, 0  ;;  %v868_v46 = vsub.f32 1.0, %v852_v39 }
 0x27a   : > { %13931 = vmatmul.mubr.msk.bf16.vlgmr.msra.gmra.mrb[40].mxu1 %vm1577_vm1, %v16506_v2  ;;  %13970 = vmatprep.subr.bf16.mxu0 %v20519_v35 }
 0x27b   : > { %13941 = vmatpush3.bf16.xpose.msra.mxu1 %v2180_v53  ;;  %13942 = vmatprep.mubr.msk.bf16.mxu1 %vm15738_vm0, %v20519_v35  ;;  %v16561_v53 = vshrl.u32 %v20525_v22, 7  ;;  %v884_v0 = vmul.f32 -10000.0, %v868_v46  ;;  %v872_v46 = vsub.f32 1.0, %v856_v11 }
 0x27c   : > { %13952 = vmatprep.subr.bf16.mxu1 %v20519_v35 }
 0x27d   : > { %20646 = vst [vmem:[#allocation37_spill] sm:$0xff] %v16561_v53 }
 0x282   : > { %13943 = vmatmul.mubr.msk.bf16.vlgmr.msra.gmra.mrb[44].mxu1 %vm1577_vm1, %v16528_v50 }
 0x283   : > { %13953 = vmatpush3.bf16.xpose.msra.mxu1 %v2272_v59  ;;  %13954 = vmatprep.mubr.msk.bf16.mxu1 %vm15738_vm0, %v20519_v35  ;;  %v16564_v59 = vsub.s32 0, %v16561_v53 }
 0x284   : > { %13964 = vmatprep.subr.bf16.mxu1 %v20519_v35 }
 0x285   : > { %20647 = vst [vmem:[#allocation38_spill] sm:$0xff] %v16564_v59  ;;  %v16568_v54 = vrot.slane %v884_v0, %v16564_v59 }
 0x287   : > { %20648 = vst [vmem:[#allocation39_spill] sm:$0xff] %v16568_v54 }
 0x28a   : > { %13955 = vmatmul.mubr.msk.bf16.vlgmr.msra.gmra.mrb[48].mxu1 %vm1577_vm1, %v16543_v23 }
 0x28b   : > { %13965 = vmatpush3.bf16.msra.mxu1 %v2558_v36  ;;  %13966 = vmatprep.mubr.msk.bf16.mxu1 %vm15738_vm0, %v20519_v35  ;;  %v885_v36 = vmul.f32 -10000.0, %v869_v21  ;;  %v858_v21 = vld [vmem:[%s16556_s29 + $0x6] sm:$0x1] }
 0x28c   : > { %13976 = vmatprep.subr.bf16.mxu1 %v20519_v35  ;;  %v854_v35 = vld [vmem:[%s16556_s29 + $0x2] sm:$0x1] }
 0x28d   : > { %v16572_v61 = vrot.slane %v885_v36, %v16564_v59  ;;  %v870_v58 = vsub.f32 1.0, %v854_v35 }
 0x28f   : > { %20649 = vst [vmem:[#allocation40_spill] sm:$0xff] %v16572_v61  ;;  %v886_v35 = vmul.f32 -10000.0, %v870_v58 }
 0x31b   : > { %v1618_v39 = vpop.f32.mrb[32].mxu0 }
 0x31c   : > { %v13866_v22 = vpop.f32.mrb[33].mxu0  ;;  %v16575_v33 = vadd.f32 %v1618_v39, %v16568_v54  ;;  %v874_v39 = vsub.f32 1.0, %v858_v21 }
 0x31d   : > { %v1621_v53 = vpop.f32.mrb[34].mxu0  ;;  %v1664_v45 = vpop.f32.mrb[16].mxu1  ;;  %v855_v22 = vld [vmem:[%s16556_s29 + $0x3] sm:$0x1] }
 0x31e   : > { %v13867_v43 = vpop.f32.mrb[35].mxu0  ;;  %v13872_v37 = vpop.f32.mrb[17].mxu1  ;;  %v2315_v0 = vsel %vm2314_vm3, %v16575_v33, -inf  ;;  %v16581_v36 = vadd.f32 %v1664_v45, %v16572_v61  ;;  %v888_v53 = vmul.f32 -10000.0, %v872_v46 }
 0x31f   : > { %v1667_v62 = vpop.f32.mrb[18].mxu1  ;;  %2316 = vmax.xlane.f32.xlu0 %v2315_v0  ;;  %v16587_v43 = vrot.slane %v886_v35, %v16564_v59  ;;  %v871_v37 = vsub.f32 1.0, %v855_v22 }
 0x320   : > { %v13873_v3 = vpop.f32.mrb[19].mxu1  ;;  %v2318_v11 = vsel %vm2314_vm3, %v16581_v36, -inf  ;;  %v16590_v58 = vrot.slane %v888_v53, %v16564_v59  ;;  %v890_v62 = vmul.f32 -10000.0, %v874_v39 }
 0x321   : > { %2319 = vmax.xlane.f32.xlu1 %v2318_v11  ;;  %20650 = vst [vmem:[#allocation41_spill] sm:$0xff] %v16587_v43  ;;  %v860_v3 = vld [vmem:[%s16556_s29 + $0x8] sm:$0x1]  ;;  %v887_v21 = vmul.f32 -10000.0, %v871_v37 }
 0x322   : > { %20651 = vst [vmem:[#allocation42_spill] sm:$0xff] %v16590_v58  ;;  %v16603_v39 = vrot.slane %v890_v62, %v16564_v59 }
 0x323   : > { %v1802_v54 = vpop.f32.mrb[36].mxu0 }
 0x324   : > { %v13890_v45 = vpop.f32.mrb[37].mxu0  ;;  %v16600_v53 = vadd.f32 %v1802_v54, %v16590_v58  ;;  %20652 = vst [vmem:[#allocation43_spill] sm:$0xff] %v16603_v39  ;;  %v862_v58 = vld [vmem:[%s16556_s29 + $0xa] sm:$0x1] }
 0x325   : > { %v1710_v0 = vpop.f32.mrb[20].mxu1  ;;  %v1805_v61 = vpop.f32.mrb[38].mxu0 }
 0x326   : > { %v13878_v41 = vpop.f32.mrb[21].mxu1  ;;  %v13891_v13 = vpop.f32.mrb[39].mxu0  ;;  %v16594_v46 = vadd.f32 %v1710_v0, %v16587_v43  ;;  %v876_v61 = vsub.f32 1.0, %v860_v3  ;;  %v2327_v0 = vsel %vm2314_vm3, %v16600_v53, -inf }
 0x327   : > { %v1713_v11 = vpop.f32.mrb[22].mxu1  ;;  %v16606_v13 = vrot.slane %v887_v21, %v16564_v59  ;;  %v873_v41 = vsub.f32 1.0, %v857_v63 }
 0x328   : > { %v13879_v35 = vpop.f32.mrb[23].mxu1  ;;  %v2321_v22 = vsel %vm2314_vm3, %v16594_v46, -inf  ;;  %v892_v54 = vmul.f32 -10000.0, %v876_v61 }
 0x329   : > { %2322 = vmax.xlane.f32.xlu0 %v2321_v22  ;;  %20653 = vst [vmem:[#allocation44_spill] sm:$0xff] %v16606_v13  ;;  %v889_v43 = vmul.f32 -10000.0, %v873_v41  ;;  %v875_v41 = vsub.f32 1.0, %v859_v40  ;;  %v861_v40 = vld [vmem:[%s16556_s29 + $0x9] sm:$0x1] }
 0x32b   : > { %v1894_v37 = vpop.f32.mrb[40].mxu0 }
 0x32c   : > { %v13902_v45 = vpop.f32.mrb[41].mxu0  ;;  %v16611_v11 = vadd.f32 %v1894_v37, %v16603_v39  ;;  %v16623_v37 = vrot.slane %v892_v54, %v16564_v59 }
 0x32d   : > { %v1756_v35 = vpop.f32.mrb[24].mxu1  ;;  %2328 = vmax.xlane.f32.xlu0 %v2327_v0  ;;  %v1897_v62 = vpop.f32.mrb[42].mxu0  ;;  %v878_v0 = vsub.f32 1.0, %v862_v58 }
 0x32e   : > { %v13884_v3 = vpop.f32.mrb[25].mxu1  ;;  %v13903_v22 = vpop.f32.mrb[43].mxu0  ;;  %v16615_v21 = vadd.f32 %v1756_v35, %v16606_v13  ;;  %v2333_v61 = vsel %vm2314_vm3, %v16611_v11, -inf  ;;  %20654 = vst [vmem:[#allocation45_spill] sm:$0xff] %v16623_v37  ;;  %v16626_v35 = vrot.slane %v889_v43, %v16564_v59  ;;  %v864_v13 = vld [vmem:[%s16556_s29 + $0xc] sm:$0x1] }
 0x32f   : > { %v1759_v63 = vpop.f32.mrb[26].mxu1  ;;  %v891_v43 = vmul.f32 -10000.0, %v875_v41 }
 0x330   : > { %v13885_v45 = vpop.f32.mrb[27].mxu1  ;;  %v2324_v8 = vsel %vm2314_vm3, %v16615_v21, -inf  ;;  %20655 = vst [vmem:[#allocation46_spill] sm:$0xff] %v16626_v35  ;;  %v894_v63 = vmul.f32 -10000.0, %v878_v0 }
 0x331   : > { %2325 = vmax.xlane.f32.xlu1 %v2324_v8  ;;  %2334 = vmax.xlane.f32.xlu0 %v2333_v61 }
 0x333   : > { %v1986_v62 = vpop.f32.mrb[44].mxu0 }
 0x334   : > { %v13914_v3 = vpop.f32.mrb[45].mxu0  ;;  %v16629_v22 = vadd.f32 %v1986_v62, %v16623_v37  ;;  %v16644_v62 = vrot.slane %v891_v43, %v16564_v59  ;;  %v866_v37 = vld [vmem:[%s16556_s29 + $0xe] sm:$0x1] }
 0x335   : > { %v1848_v45 = vpop.f32.mrb[28].mxu1  ;;  %v1989_v39 = vpop.f32.mrb[46].mxu0 }
 0x336   : > { %v13896_v32 = vpop.f32.mrb[29].mxu1  ;;  %v13915_v54 = vpop.f32.mrb[47].mxu0  ;;  %v2339_v8 = vsel %vm2314_vm3, %v16629_v22, -inf  ;;  %v16635_v58 = vadd.f32 %v1848_v45, %v16626_v35  ;;  %v16641_v39 = vrot.slane %v894_v63, %v16564_v59  ;;  %20657 = vst [vmem:[#allocation48_spill] sm:$0xff] %v16644_v62  ;;  %v877_v45 = vsub.f32 1.0, %v861_v40 }
 0x337   : > { %v1851_v61 = vpop.f32.mrb[30].mxu1  ;;  %2340 = vmax.xlane.f32.xlu0 %v2339_v8  ;;  %v880_v32 = vsub.f32 1.0, %v864_v13  ;;  %v863_v40 = vld [vmem:[%s16556_s29 + $0xb] sm:$0x1] }
 0x338   : > { %v13897_v3 = vpop.f32.mrb[31].mxu1  ;;  %v2330_v0 = vsel %vm2314_vm3, %v16635_v58, -inf  ;;  %20656 = vst [vmem:[#allocation47_spill] sm:$0xff] %v16641_v39  ;;  %v893_v43 = vmul.f32 -10000.0, %v877_v45 }
 0x339   : > { %2331 = vmax.xlane.f32.xlu1 %v2330_v0  ;;  %v896_v8 = vmul.f32 -10000.0, %v880_v32 }
 0x33b   : > { %v2078_v54 = vpop.f32.mrb[48].mxu0  ;;  %v16659_v32 = vrot.slane %v896_v8, %v16564_v59 }
 0x33c   : > { %v13926_v41 = vpop.f32.mrb[49].mxu0  ;;  %v16647_v61 = vadd.f32 %v2078_v54, %v16641_v39 }
 0x33d   : > { %v1940_v3 = vpop.f32.mrb[32].mxu1  ;;  %v2081_v35 = vpop.f32.mrb[50].mxu0  ;;  %20658 = vst [vmem:[#allocation49_spill] sm:$0xff] %v16659_v32 }
 0x33e   : > { %v13908_v18 = vpop.f32.mrb[33].mxu1  ;;  %v13927_v29 = vpop.f32.mrb[51].mxu0  ;;  %v2345_v13 = vsel %vm2314_vm3, %v16647_v61, -inf  ;;  %v16653_v63 = vadd.f32 %v1940_v3, %v16644_v62  ;;  %v882_v35 = vsub.f32 1.0, %v866_v37 }
 0x33f   : > { %v1943_v0 = vpop.f32.mrb[34].mxu1  ;;  %2346 = vmax.xlane.f32.xlu0 %v2345_v13  ;;  %v16662_v18 = vrot.slane %v893_v43, %v16564_v59  ;;  %v879_v29 = vsub.f32 1.0, %v863_v40  ;;  %v865_v40 = vld [vmem:[%s16556_s29 + $0xd] sm:$0x1] }
 0x340   : > { %v13909_v41 = vpop.f32.mrb[35].mxu1  ;;  %v2336_v54 = vsel %vm2314_vm3, %v16653_v63, -inf  ;;  %v898_v13 = vmul.f32 -10000.0, %v882_v35 }
 0x341   : > { %2337 = vmax.xlane.f32.xlu1 %v2336_v54  ;;  %20659 = vst [vmem:[#allocation50_spill] sm:$0xff] %v16662_v18  ;;  %v895_v54 = vmul.f32 -10000.0, %v879_v29 }
 0x342   : > { %v16676_v35 = vrot.slane %v898_v13, %v16564_v59 }
 0x343   : > { %v2170_v3 = vpop.f32.mrb[52].mxu0 }
 0x344   : > { %v13938_v62 = vpop.f32.mrb[53].mxu0  ;;  %v16665_v45 = vadd.f32 %v2170_v3, %v16659_v32  ;;  %20660 = vst [vmem:[#allocation51_spill] sm:$0xff] %v16676_v35 }
 0x345   : > { %v2032_v0 = vpop.f32.mrb[36].mxu1  ;;  %v2173_v41 = vpop.f32.mrb[54].mxu0 }
 0x346   : > { %v13920_v39 = vpop.f32.mrb[37].mxu1  ;;  %v13939_v28 = vpop.f32.mrb[55].mxu0  ;;  %v2351_v8 = vsel %vm2314_vm3, %v16665_v45, -inf  ;;  %v16670_v37 = vadd.f32 %v2032_v0, %v16662_v18 }
 0x347   : > { %v2035_v43 = vpop.f32.mrb[38].mxu1  ;;  %2352 = vmax.xlane.f32.xlu0 %v2351_v8  ;;  %v16679_v28 = vrot.slane %v895_v54, %v16564_v59  ;;  %v881_v39 = vsub.f32 1.0, %v865_v40  ;;  %v867_v54 = vld [vmem:[%s16556_s29 + $0xf] sm:$0x1]  ;;  %s20417_s29 = scalar_lea.vmem [#allocation2], %s12686_s25  ;;  %s15677_s25 = sshll.u32 %s15743_s20, 4  ;;  %s15678_s25 = int_to_ptr.vmem [resolvable:$false] %s15677_s25 }
 0x348   : > { %v13921_v23 = vpop.f32.mrb[39].mxu1  ;;  %v2342_v62 = vsel %vm2314_vm3, %v16670_v37, -inf  ;;  %s12611_s22 = sshll.u32 %s20417_s29, 4  ;;  %s20439_s22 = int_to_ptr.vmem [resolvable:$true] %s12611_s22 }
 0x349   : > { %2343 = vmax.xlane.f32.xlu1 %v2342_v62  ;;  %20661 = vst [vmem:[#allocation52_spill] sm:$0xff] %v16679_v28  ;;  %v897_v62 = vmul.f32 -10000.0, %v881_v39  ;;  %s15673_s19 = scalar_lea.vmem %s20439_s22, 256  ;;  %p15680_p0 = scmp.lt.s32.totalorder %s20439_s22, %s15678_s25 }
 0x34a   : > { %p15674_p11 = scmp.ne.s32.totalorder %s20439_s22, %s15673_s19 }
 0x34b   : > { %v2262_v3 = vpop.f32.mrb[56].mxu0 }
 0x34c   : > { %v13950_v0 = vpop.f32.mrb[57].mxu0  ;;  %v16682_v29 = vadd.f32 %v2262_v3, %v16676_v35  ;;  %v16693_v3 = vrot.slane %v897_v62, %v16564_v59  ;;  %p15675_p12 = pnand %p15674_p11, %p15879_p5 }
 0x34d   : > { %v2124_v41 = vpop.f32.mrb[40].mxu1  ;;  %v2265_v8 = vpop.f32.mrb[58].mxu0 }
 0x34e   : > { %v13932_v23 = vpop.f32.mrb[41].mxu1  ;;  %v13951_v43 = vpop.f32.mrb[59].mxu0  ;;  %v2357_v18 = vsel %vm2314_vm3, %v16682_v29, -inf  ;;  %v16687_v13 = vadd.f32 %v2124_v41, %v16679_v28  ;;  %20662 = vst [vmem:[#allocation53_spill] sm:$0xff] %v16693_v3  ;;  %v883_v8 = vsub.f32 1.0, %v867_v54  ;;  %p15676_p13 = pneg %p15675_p12 }
 0x34f   : > { %v2127_v32 = vpop.f32.mrb[42].mxu1  ;;  %2358 = vmax.xlane.f32.xlu0 %v2357_v18 }
 0x350   : > { %v13933_v40 = vpop.f32.mrb[43].mxu1  ;;  %v2348_v0 = vsel %vm2314_vm3, %v16687_v13, -inf  ;;  %v899_v41 = vmul.f32 -10000.0, %v883_v8 }
 0x351   : > { %2349 = vmax.xlane.f32.xlu1 %v2348_v0 }
 0x352   : > { %v16701_v18 = vrot.slane %v899_v41, %v16564_v59 }
 0x354   : > { %20663 = vst [vmem:[#allocation54_spill] sm:$0xff] %v16701_v18 }
 0x355   : > { %v2216_v23 = vpop.f32.mrb[44].mxu1 }
 0x356   : > { %v13944_v43 = vpop.f32.mrb[45].mxu1  ;;  %v16696_v35 = vadd.f32 %v2216_v23, %v16693_v3 }
 0x357   : > { %v2219_v28 = vpop.f32.mrb[46].mxu1 }
 0x358   : > { %v13945_v39 = vpop.f32.mrb[47].mxu1  ;;  %v2354_v32 = vsel %vm2314_vm3, %v16696_v35, -inf }
 0x359   : > { %2355 = vmax.xlane.f32.xlu1 %v2354_v32 }
 0x35d   : > { %v2308_v40 = vpop.f32.mrb[48].mxu1 }
 0x35e   : > { %v13956_v0 = vpop.f32.mrb[49].mxu1  ;;  %v16704_v62 = vadd.f32 %v2308_v40, %v16701_v18 }
 0x35f   : > { %v2311_v54 = vpop.f32.mrb[50].mxu1 }
 0x360   : > { %v13957_v43 = vpop.f32.mrb[51].mxu1  ;;  %v2360_v23 = vsel %vm2314_vm3, %v16704_v62, -inf }
 0x361   : > { %2361 = vmax.xlane.f32.xlu1 %v2360_v23 }
 0x3ac   : > { %v2317_v28 = vpop.xlane.xlu0 %2316 }
 0x3ad   : > { %v2363_v8 = vsub.f32 %v16575_v33, %v2317_v28 }
 0x3ae   : > { %v2320_v39 = vpop.xlane.xlu1 %2319 }
 0x3af   : > { %v2379_v3 = vmul.f32 1.442695, %v2363_v8  ;;  %v2364_v32 = vsub.f32 %v16581_v36, %v2320_v39 }
 0x3b1   : > { %15157 = vpow2.f32 %v2379_v3  ;;  %v2381_v41 = vmul.f32 1.442695, %v2364_v32 }
 0x3b3   : > { %15159 = vpow2.f32 %v2381_v41 }
 0x3b6   : > { %v2323_v0 = vpop.xlane.xlu0 %2322 }
 0x3b7   : > { %v2365_v40 = vsub.f32 %v16594_v46, %v2323_v0 }
 0x3b9   : > { %v2383_v59 = vmul.f32 1.442695, %v2365_v40 }
 0x3ba   : > { %v2329_v54 = vpop.xlane.xlu0 %2328 }
 0x3bb   : > { %v16711_v43 = vpop.eup %15157  ;;  %15161 = vpow2.f32 %v2383_v59  ;;  %v2367_v23 = vsub.f32 %v16600_v53, %v2329_v54 }
 0x3bc   : > { %v2411_v33 = vsel %vm2314_vm3, %v16711_v43, 0.0 }
 0x3bd   : > { %v16716_v28 = vpop.eup %15159  ;;  %v2387_v8 = vmul.f32 1.442695, %v2367_v23  ;;  %2412 = vadd.xlane.f32.xlu0 %v2411_v33 }
 0x3be   : > { %v2326_v36 = vpop.xlane.xlu1 %2325  ;;  %v2335_v3 = vpop.xlane.xlu0 %2334  ;;  %v2414_v39 = vsel %vm2314_vm3, %v16716_v28, 0.0 }
 0x3bf   : > { %15163 = vpow2.f32 %v2387_v8  ;;  %v2366_v46 = vsub.f32 %v16615_v21, %v2326_v36  ;;  %v2369_v32 = vsub.f32 %v16611_v11, %v2335_v3  ;;  %2415 = vadd.xlane.f32.xlu1 %v2414_v39 }
 0x3c1   : > { %v2385_v59 = vmul.f32 1.442695, %v2366_v46  ;;  %v2391_v53 = vmul.f32 1.442695, %v2369_v32 }
 0x3c3   : > { %15165 = vpow2.f32 %v2385_v59 }
 0x3c4   : > { %15167 = vpow2.f32 %v2391_v53  ;;  %v2341_v41 = vpop.xlane.xlu0 %2340 }
 0x3c5   : > { %v16722_v0 = vpop.eup %15161  ;;  %v2371_v40 = vsub.f32 %v16629_v22, %v2341_v41 }
 0x3c6   : > { %v2332_v54 = vpop.xlane.xlu1 %2331  ;;  %v2417_v23 = vsel %vm2314_vm3, %v16722_v0, 0.0 }
 0x3c7   : > { %v2395_v33 = vmul.f32 1.442695, %v2371_v40  ;;  %v2368_v8 = vsub.f32 %v16635_v58, %v2332_v54  ;;  %2418 = vadd.xlane.f32.xlu0 %v2417_v23 }
 0x3c9   : > { %v16728_v21 = vpop.eup %15163  ;;  %15169 = vpow2.f32 %v2395_v33  ;;  %v2389_v11 = vmul.f32 1.442695, %v2368_v8 }
 0x3ca   : > { %v2423_v36 = vsel %vm2314_vm3, %v16728_v21, 0.0 }
 0x3cb   : > { %15171 = vpow2.f32 %v2389_v11  ;;  %2424 = vadd.xlane.f32.xlu0 %v2423_v36 }
 0x3cc   : > { %v2347_v3 = vpop.xlane.xlu0 %2346 }
 0x3cd   : > { %v16732_v39 = vpop.eup %15165  ;;  %v2373_v22 = vsub.f32 %v16647_v61, %v2347_v3 }
 0x3ce   : > { %v16735_v46 = vpop.eup %15167  ;;  %v2338_v32 = vpop.xlane.xlu1 %2337  ;;  %v2420_v58 = vsel %vm2314_vm3, %v16732_v39, 0.0 }
 0x3cf   : > { %v2399_v59 = vmul.f32 1.442695, %v2373_v22  ;;  %v2370_v53 = vsub.f32 %v16653_v63, %v2338_v32  ;;  %2421 = vadd.xlane.f32.xlu1 %v2420_v58  ;;  %v2429_v41 = vsel %vm2314_vm3, %v16735_v46, 0.0 }
 0x3d0   : > { %2430 = vadd.xlane.f32.xlu0 %v2429_v41 }
 0x3d1   : > { %15173 = vpow2.f32 %v2399_v59  ;;  %v2393_v40 = vmul.f32 1.442695, %v2370_v53 }
 0x3d3   : > { %v16742_v54 = vpop.eup %15169  ;;  %15175 = vpow2.f32 %v2393_v40 }
 0x3d4   : > { %v2353_v61 = vpop.xlane.xlu0 %2352  ;;  %v2435_v23 = vsel %vm2314_vm3, %v16742_v54, 0.0 }
 0x3d5   : > { %v16746_v33 = vpop.eup %15171  ;;  %v2375_v8 = vsub.f32 %v16665_v45, %v2353_v61  ;;  %2436 = vadd.xlane.f32.xlu0 %v2435_v23 }
 0x3d6   : > { %v2344_v63 = vpop.xlane.xlu1 %2343  ;;  %v2426_v11 = vsel %vm2314_vm3, %v16746_v33, 0.0 }
 0x3d7   : > { %v2403_v36 = vmul.f32 1.442695, %v2375_v8  ;;  %v2372_v3 = vsub.f32 %v16670_v37, %v2344_v63  ;;  %2427 = vadd.xlane.f32.xlu1 %v2426_v11 }
 0x3d9   : > { %15177 = vpow2.f32 %v2403_v36  ;;  %v2397_v22 = vmul.f32 1.442695, %v2372_v3 }
 0x3db   : > { %v16752_v32 = vpop.eup %15173  ;;  %15179 = vpow2.f32 %v2397_v22 }
 0x3dc   : > { %v2359_v58 = vpop.xlane.xlu0 %2358  ;;  %v2441_v59 = vsel %vm2314_vm3, %v16752_v32, 0.0 }
 0x3dd   : > { %v16756_v53 = vpop.eup %15175  ;;  %v2377_v45 = vsub.f32 %v16682_v29, %v2359_v58  ;;  %2442 = vadd.xlane.f32.xlu0 %v2441_v59 }
 0x3de   : > { %v2350_v41 = vpop.xlane.xlu1 %2349  ;;  %v2432_v40 = vsel %vm2314_vm3, %v16756_v53, 0.0 }
 0x3df   : > { %v2407_v37 = vmul.f32 1.442695, %v2377_v45  ;;  %v2374_v61 = vsub.f32 %v16687_v13, %v2350_v41  ;;  %2433 = vadd.xlane.f32.xlu1 %v2432_v40 }
 0x3e1   : > { %15181 = vpow2.f32 %v2407_v37  ;;  %v2401_v23 = vmul.f32 1.442695, %v2374_v61 }
 0x3e3   : > { %v16762_v8 = vpop.eup %15177  ;;  %15183 = vpow2.f32 %v2401_v23 }
 0x3e4   : > { %v2447_v63 = vsel %vm2314_vm3, %v16762_v8, 0.0 }
 0x3e5   : > { %v16766_v11 = vpop.eup %15179  ;;  %2448 = vadd.xlane.f32.xlu0 %v2447_v63 }
 0x3e6   : > { %v2356_v29 = vpop.xlane.xlu1 %2355  ;;  %v2438_v36 = vsel %vm2314_vm3, %v16766_v11, 0.0 }
 0x3e7   : > { %v2376_v3 = vsub.f32 %v16696_v35, %v2356_v29  ;;  %2439 = vadd.xlane.f32.xlu1 %v2438_v36 }
 0x3e9   : > { %v2405_v13 = vmul.f32 1.442695, %v2376_v3 }
 0x3eb   : > { %v16771_v22 = vpop.eup %15181  ;;  %15185 = vpow2.f32 %v2405_v13 }
 0x3ec   : > { %v2453_v58 = vsel %vm2314_vm3, %v16771_v22, 0.0 }
 0x3ed   : > { %v16775_v59 = vpop.eup %15183  ;;  %2454 = vadd.xlane.f32.xlu0 %v2453_v58  ;;  %v20670_v58 = vld [vmem:[#allocation28_spill] sm:$0xff] }
 0x3ee   : > { %v2362_v45 = vpop.xlane.xlu1 %2361  ;;  %v2444_v41 = vsel %vm2314_vm3, %v16775_v59, 0.0 }
 0x3ef   : > { %v2378_v40 = vsub.f32 %v16704_v62, %v2362_v45  ;;  %2445 = vadd.xlane.f32.xlu1 %v2444_v41  ;;  %v16907_v45 = vpack.c.bf16 %v20670_v58, %v20670_v58 }
 0x3f1   : > { %v2409_v37 = vmul.f32 1.442695, %v2378_v40 }
 0x3f3   : > { %15187 = vpow2.f32 %v2409_v37 }
 0x3f5   : > { %v16780_v35 = vpop.eup %15185 }
 0x3f6   : > { %v2450_v61 = vsel %vm2314_vm3, %v16780_v35, 0.0 }
 0x3f7   : > { %2451 = vadd.xlane.f32.xlu1 %v2450_v61 }
 0x3fd   : > { %v16784_v23 = vpop.eup %15187 }
 0x3fe   : > { %v2456_v63 = vsel %vm2314_vm3, %v16784_v23, 0.0 }
 0x3ff   : > { %2457 = vadd.xlane.f32.xlu1 %v2456_v63 }
 0x403   : > { %3423 = vrot.lane.b32.xlu0 %v16227_v26, %s20564_s24  ;;  %v1452_v26 = vpack.c.bf16 %v16409_v17, %v16409_v17 }
 0x407   : > { %3527 = vrot.lane.b32.xlu0 %v16253_v42, %s20564_s24 }
 0x40b   : > { %3579 = vrot.lane.b32.xlu0 %v16291_v7, %s20564_s24 }
 0x40f   : > { %3631 = vrot.lane.b32.xlu0 %v16257_v31, %s20564_s24 }
 0x410   : > { %3420 = vrot.lane.b32.xlu1 %v16255_v48, %s20564_s24  ;;  %v20665_v48 = vld [vmem:[#allocation35_spill] sm:$0xff] }
 0x413   : > { %3628 = vrot.lane.b32.xlu0 %v16293_v47, %s20564_s24 }
 0x414   : > { %3475 = vrot.lane.b32.xlu1 %v16235_v55, %s20564_s24 }
 0x417   : > { %3735 = vrot.lane.b32.xlu0 %v16280_v1, %s20564_s24  ;;  %v20666_v1 = vld [vmem:[#allocation24_spill] sm:$0xff] }
 0x418   : > { %3472 = vrot.lane.b32.xlu1 %v16259_v49, %s20564_s24  ;;  %v1451_v7 = vpack.c.bf16 %v20666_v1, %v20666_v1 }
 0x41b   : > { %3732 = vrot.lane.b32.xlu0 %v16334_v51, %s20564_s24 }
 0x41c   : > { %3524 = vrot.lane.b32.xlu1 %v16295_v10, %s20564_s24 }
 0x41f   : > { %3839 = vrot.lane.b32.xlu0 %v16321_v30, %s20564_s24 }
 0x420   : > { %3576 = vrot.lane.b32.xlu1 %v16338_v14, %s20564_s24  ;;  %v20667_v14 = vld [vmem:[#allocation26_spill] sm:$0xff] }
 0x423   : > { %3836 = vrot.lane.b32.xlu0 %v16379_v19, %s20564_s24  ;;  %v20668_v19 = vmov 0.0  }
 0x424   : > { %3683 = vrot.lane.b32.xlu1 %v16336_v52, %s20564_s24 }
 0x427   : > { %3943 = vrot.lane.b32.xlu0 %v16369_v60, %s20564_s24 }
 0x428   : > { %3680 = vrot.lane.b32.xlu1 %v16381_v56, %s20564_s24  ;;  %v2650_v56 = vsel %vm2510_vm2, %v1451_v7, 0 }
 0x42b   : > { %3940 = vrot.lane.b32.xlu0 %v16415_v5, %s20564_s24  ;;  %v1450_v5 = vpack.c.bf16 %v16361_v12, %v16361_v12  ;;  %v1453_v12 = vpack.c.bf16 %v20667_v14, %v20667_v14 }
 0x42c   : > { %3787 = vrot.lane.b32.xlu1 %v16377_v34, %s20564_s24 }
 0x42d   : > { %v2604_v60 = vsel %vm2510_vm2, %v1450_v5, 0  ;;  %v2742_v29 = vsel %vm2510_vm2, %v1453_v12, 0 }
 0x42f   : > { %4047 = vrot.lane.b32.xlu0 %v16406_v24, %s20564_s24  ;;  %v20669_v24 = vld [vmem:[#allocation25_spill] sm:$0xff] }
 0x430   : > { %3784 = vrot.lane.b32.xlu1 %v16422_v38, %s20564_s24  ;;  %v1455_v17 = vpack.c.bf16 %v20669_v24, %v20669_v24 }
 0x432   : > { %v2834_v63 = vsel %vm2510_vm2, %v1455_v17, 0 }
 0x433   : > { %4044 = vrot.lane.b32.xlu0 %v16459_v27, %s20564_s24 }
 0x434   : > { %3891 = vrot.lane.b32.xlu1 %v16417_v16, %s20564_s24 }
 0x437   : > { %4151 = vrot.lane.b32.xlu0 %v16448_v20, %s20564_s24 }
 0x438   : > { %3888 = vrot.lane.b32.xlu1 %v16464_v6, %s20564_s24 }
 0x43b   : > { %4148 = vrot.lane.b32.xlu0 %v16499_v15, %s20564_s24  ;;  %v2696_v15 = vsel %vm2510_vm2, %v1452_v26, 0 }
 0x43c   : > { %3995 = vrot.lane.b32.xlu1 %v16457_v9, %s20564_s24  ;;  %v1454_v9 = vpack.c.bf16 %v16400_v4, %v16400_v4 }
 0x43e   : > { %v2788_v3 = vsel %vm2510_vm2, %v1454_v9, 0 }
 0x43f   : > { %4444 = vrot.lane.b32.xlu0 %v16490_v25, %s20564_s24 }
 0x440   : > { %3992 = vrot.lane.b32.xlu1 %v16506_v2, %s20564_s24 }
 0x443   : > { %4542 = vrot.lane.b32.xlu0 %v1450_v5, %s20564_s24  ;;  %v2880_v5 = vsel %vm2510_vm2, %v16907_v45, 0 }
 0x444   : > { %4099 = vrot.lane.b32.xlu1 %v16501_v44, %s20564_s24  ;;  %v20664_v44 = vld [vmem:[#allocation36_spill] sm:$0xff] }
 0x447   : > { %4640 = vrot.lane.b32.xlu0 %v1452_v26, %s20564_s24 }
 0x448   : > { %4096 = vrot.lane.b32.xlu1 %v16528_v50, %s20564_s24 }
 0x44a   : > { %v2413_v55 = vpop.xlane.xlu0 %2412 }
 0x44b   : > { %15189 = vrcp.f32 %v2413_v55  ;;  %4738 = vrot.lane.b32.xlu0 %v1454_v9, %s20564_s24  ;;  %v20671_v55 = vld [vmem:[#allocation27_spill] sm:$0xff] }
 0x44c   : > { %4203 = vrot.lane.b32.xlu1 %v16526_v57, %s20564_s24  ;;  %v2416_v42 = vpop.xlane.xlu1 %2415 }
 0x44d   : > { %15191 = vrcp.f32 %v2416_v42  ;;  %v16924_v42 = vpack.c.bf16 %v20671_v55, %v20671_v55 }
 0x450   : > { %4200 = vrot.lane.b32.xlu1 %v20664_v44, %s20564_s24  ;;  %v20672_v44 = vld [vmem:[#allocation30_spill] sm:$0xff] }
 0x454   : > { %4493 = vrot.lane.b32.xlu1 %v20665_v48, %s20564_s24  ;;  %v2419_v31 = vpop.xlane.xlu0 %2418  ;;  %v16928_v48 = vpack.c.bf16 %v20672_v44, %v20672_v44  ;;  %v14998_v44 = vld [vmem:[%s20493_s6 + $0x8] sm:$0xff]  }
 0x455   : > { %v15190_v49 = vpop.eup %15189  ;;  %15193 = vrcp.f32 %v2419_v31 }
 0x456   : > { %v2475_v47 = vmul.f32 %v15190_v49, %v16711_v43 }
 0x457   : > { %v15192_v10 = vpop.eup %15191 }
 0x458   : > { %4591 = vrot.lane.b32.xlu1 %v1451_v7, %s20564_s24  ;;  %v2425_v30 = vpop.xlane.xlu0 %2424  ;;  %v2491_v51 = vpack.c.bf16 %v2475_v47, %v2475_v47  ;;  %v2476_v52 = vmul.f32 %v15192_v10, %v16716_v28  ;;  %v2972_v10 = vsel %vm2510_vm2, %v16924_v42, 0 }
 0x459   : > { %15195 = vrcp.f32 %v2425_v30 }
 0x45a   : > { %13961 = vmatmul.mubr.msk.bf16.vlgmr.msra.gmra.mrb[60].mxu0 %vm2314_vm3, %v2491_v51  ;;  %v2492_v34 = vpack.c.bf16 %v2476_v52, %v2476_v52  ;;  %v20673_v52 = vld [vmem:[#allocation29_spill] sm:$0xff] }
 0x45b   : > { %13971 = vmatpush3.bf16.msra.mxu0 %v2604_v60  ;;  %13972 = vmatprep.mubr.msk.bf16.mxu0 %vm15738_vm0, %v20668_v19  ;;  %v16946_v14 = vpack.c.bf16 %v20673_v52, %v20673_v52 }
 0x45c   : > { %4689 = vrot.lane.b32.xlu1 %v1453_v12, %s20564_s24  ;;  %13967 = vmatmul.mubr.msk.bf16.vlgmr.msra.gmra.mrb[52].mxu1 %vm2314_vm3, %v2492_v34  ;;  %v2422_v4 = vpop.xlane.xlu1 %2421  ;;  %v20674_v12 = vld [vmem:[#allocation32_spill] sm:$0xff] }
 0x45d   : > { %13977 = vmatpush3.bf16.msra.mxu1 %v2650_v56  ;;  %15197 = vrcp.f32 %v2422_v4  ;;  %13982 = vmatprep.subr.bf16.mxu0 %v20668_v19  ;;  %v2431_v16 = vpop.xlane.xlu0 %2430  ;;  %v16950_v60 = vpack.c.bf16 %v20674_v12, %v20674_v12 }
 0x45e   : > { %13978 = vmatprep.mubr.msk.bf16.mxu1 %vm15738_vm0, %v20668_v19  ;;  %13988 = vmatprep.subr.bf16.mxu1 %v20668_v19  ;;  %15199 = vrcp.f32 %v2431_v16 }
 0x45f   : > { %v15194_v38 = vpop.eup %15193  ;;  %v3064_v16 = vsel %vm2510_vm2, %v16950_v60, 0 }
 0x460   : > { %4787 = vrot.lane.b32.xlu1 %v1455_v17, %s20564_s24  ;;  %v2477_v20 = vmul.f32 %v15194_v38, %v16722_v0 }
 0x462   : > { %v2493_v27 = vpack.c.bf16 %v2477_v20, %v2477_v20  ;;  %v2437_v2 = vpop.xlane.xlu0 %2436  ;;  %v20675_v20 = vld [vmem:[#allocation31_spill] sm:$0xff] }
 0x463   : > { %v15196_v6 = vpop.eup %15195 }
 0x464   : > { %v2428_v25 = vpop.xlane.xlu1 %2427  ;;  %13973 = vmatmul.mubr.msk.bf16.vlgmr.msra.gmra.mrb[64].mxu0 %vm2314_vm3, %v2493_v27  ;;  %v2479_v57 = vmul.f32 %v15196_v6, %v16728_v21  ;;  %v16968_v27 = vpack.c.bf16 %v20675_v20, %v20675_v20  ;;  %v20676_v6 = vld [vmem:[#allocation34_spill] sm:$0xff] }
 0x465   : > { %15201 = vrcp.f32 %v2428_v25  ;;  %13983 = vmatpush3.bf16.msra.mxu0 %v2696_v15  ;;  %13984 = vmatprep.mubr.msk.bf16.mxu0 %vm15738_vm0, %v20668_v19  ;;  %v16972_v25 = vpack.c.bf16 %v20676_v6, %v20676_v6 }
 0x466   : > { %13994 = vmatprep.subr.bf16.mxu0 %v20668_v19  ;;  %15203 = vrcp.f32 %v2437_v2  ;;  %v2495_v28 = vpack.c.bf16 %v2479_v57, %v2479_v57 }
 0x467   : > { %v15198_v50 = vpop.eup %15197 }
 0x468   : > { %v2478_v62 = vmul.f32 %v15198_v50, %v16732_v39  ;;  %v15200_v0 = vpop.eup %15199 }
 0x469   : > { %v2481_v39 = vmul.f32 %v15200_v0, %v16735_v46 }
 0x46a   : > { %v2494_v43 = vpack.c.bf16 %v2478_v62, %v2478_v62  ;;  %v2443_v21 = vpop.xlane.xlu0 %2442  ;;  %v3110_v62 = vsel %vm2510_vm2, %v16972_v25, 0 }
 0x46b   : > { %v2497_v37 = vpack.c.bf16 %v2481_v39, %v2481_v39 }
 0x46c   : > { %13979 = vmatmul.mubr.msk.bf16.vlgmr.msra.gmra.mrb[56].mxu1 %vm2314_vm3, %v2494_v43  ;;  %v2434_v36 = vpop.xlane.xlu1 %2433  ;;  %13985 = vmatmul.mubr.msk.bf16.vlgmr.msra.gmra.mrb[68].mxu0 %vm2314_vm3, %v2495_v28  ;;  %v3156_v28 = vsel %vm2510_vm2, %v16968_v27, 0 }
 0x46d   : > { %13989 = vmatpush3.bf16.msra.mxu1 %v2742_v29  ;;  %15205 = vrcp.f32 %v2434_v36  ;;  %13995 = vmatpush3.bf16.msra.mxu0 %v2788_v3  ;;  %v20677_v29 = vld [vmem:[#allocation33_spill] sm:$0xff] }
 0x46e   : > { %13990 = vmatprep.mubr.msk.bf16.mxu1 %vm15738_vm0, %v20668_v19  ;;  %13996 = vmatprep.mubr.msk.bf16.mxu0 %vm15738_vm0, %v20668_v19  ;;  %15207 = vrcp.f32 %v2443_v21  ;;  %v16992_v36 = vpack.c.bf16 %v20677_v29, %v20677_v29 }
 0x46f   : > { %v15202_v13 = vpop.eup %15201  ;;  %14000 = vmatprep.subr.bf16.mxu1 %v20668_v19  ;;  %14006 = vmatprep.subr.bf16.mxu0 %v20668_v19 }
 0x470   : > { %v2480_v41 = vmul.f32 %v15202_v13, %v16746_v33  ;;  %v15204_v61 = vpop.eup %15203  ;;  %v3202_v58 = vsel %vm2510_vm2, %v16992_v36, 0 }
 0x471   : > { %v2483_v33 = vmul.f32 %v15204_v61, %v16742_v54  ;;  %v2926_v54 = vsel %vm2510_vm2, %v16928_v48, 0 }
 0x472   : > { %v2496_v40 = vpack.c.bf16 %v2480_v41, %v2480_v41  ;;  %v2449_v26 = vpop.xlane.xlu0 %2448 }
 0x473   : > { %v2499_v1 = vpack.c.bf16 %v2483_v33, %v2483_v33 }
 0x474   : > { %13991 = vmatmul.mubr.msk.bf16.vlgmr.msra.gmra.mrb[60].mxu1 %vm2314_vm3, %v2496_v40  ;;  %v2440_v46 = vpop.xlane.xlu1 %2439  ;;  %13997 = vmatmul.mubr.msk.bf16.vlgmr.msra.gmra.mrb[72].mxu0 %vm2314_vm3, %v2497_v37 }
 0x475   : > { %14001 = vmatpush3.bf16.msra.mxu1 %v2834_v63  ;;  %15209 = vrcp.f32 %v2440_v46  ;;  %14007 = vmatpush3.bf16.msra.mxu0 %v2880_v5 }
 0x476   : > { %14002 = vmatprep.mubr.msk.bf16.mxu1 %vm15738_vm0, %v20668_v19  ;;  %14008 = vmatprep.mubr.msk.bf16.mxu0 %vm15738_vm0, %v20668_v19  ;;  %15211 = vrcp.f32 %v2449_v26 }
 0x477   : > { %v15206_v9 = vpop.eup %15205  ;;  %14012 = vmatprep.subr.bf16.mxu1 %v20668_v19  ;;  %14018 = vmatprep.subr.bf16.mxu0 %v20668_v19 }
 0x478   : > { %v2482_v31 = vmul.f32 %v15206_v9, %v16756_v53  ;;  %v15208_v7 = vpop.eup %15207 }
 0x479   : > { %v2485_v53 = vmul.f32 %v15208_v7, %v16752_v32  ;;  %v3018_v32 = vsel %vm2510_vm2, %v16946_v14, 0 }
 0x47a   : > { %v2498_v49 = vpack.c.bf16 %v2482_v31, %v2482_v31  ;;  %v2455_v30 = vpop.xlane.xlu0 %2454  ;;  %v14999_v31 = vld [vmem:[%s20493_s6 + $0x10] sm:$0xff]  }
 0x47b   : > { %v2501_v4 = vpack.c.bf16 %v2485_v53, %v2485_v53 }
 0x47c   : > { %14003 = vmatmul.mubr.msk.bf16.vlgmr.msra.gmra.mrb[64].mxu1 %vm2314_vm3, %v2498_v49  ;;  %v2446_v47 = vpop.xlane.xlu1 %2445  ;;  %14009 = vmatmul.mubr.msk.bf16.vlgmr.msra.gmra.mrb[76].mxu0 %vm2314_vm3, %v2499_v1 }
 0x47d   : > { %14013 = vmatpush3.bf16.msra.mxu1 %v2926_v54  ;;  %15213 = vrcp.f32 %v2446_v47  ;;  %14019 = vmatpush3.bf16.msra.mxu0 %v2972_v10  ;;  %v15000_v54 = vld [vmem:[%s20493_s6 + $0x18] sm:$0xff]  }
 0x47e   : > { %14014 = vmatprep.mubr.msk.bf16.mxu1 %vm15738_vm0, %v20668_v19  ;;  %14020 = vmatprep.mubr.msk.bf16.mxu0 %vm15738_vm0, %v20668_v19  ;;  %15215 = vrcp.f32 %v2455_v30  ;;  %v3424_v3 = vpop.permute.xlu0 %3423 }
 0x47f   : > { %v15210_v51 = vpop.eup %15209  ;;  %14024 = vmatprep.subr.bf16.mxu1 %v20668_v19  ;;  %14030 = vmatprep.subr.bf16.mxu0 %v20668_v19  ;;  %v3429_v63 = vsel %vm1577_vm1, %v3424_v3, 0 }
 0x480   : > { %v2484_v34 = vmul.f32 %v15210_v51, %v16766_v11  ;;  %v15212_v24 = vpop.eup %15211 }
 0x481   : > { %v2487_v11 = vmul.f32 %v15212_v24, %v16762_v8  ;;  %v14997_v8 = vld [vmem:[%s20493_s6] sm:$0xff]  }
 0x482   : > { %v2500_v56 = vpack.c.bf16 %v2484_v34, %v2484_v34 }
 0x483   : > { %v2503_v57 = vpack.c.bf16 %v2487_v11, %v2487_v11 }
 0x484   : > { %14015 = vmatmul.mubr.msk.bf16.vlgmr.msra.gmra.mrb[68].mxu1 %vm2314_vm3, %v2500_v56  ;;  %v2452_v17 = vpop.xlane.xlu1 %2451  ;;  %14021 = vmatmul.mubr.msk.bf16.vlgmr.msra.gmra.mrb[80].mxu0 %vm2314_vm3, %v2501_v4 }
 0x485   : > { %14025 = vmatpush3.bf16.msra.mxu1 %v3018_v32  ;;  %15217 = vrcp.f32 %v2452_v17  ;;  %14031 = vmatpush3.bf16.msra.mxu0 %v3064_v16 }
 0x486   : > { %14026 = vmatprep.mubr.msk.bf16.mxu1 %vm15738_vm0, %v20668_v19  ;;  %14032 = vmatprep.mubr.msk.bf16.mxu0 %vm15738_vm0, %v20668_v19 }
 0x487   : > { %v15214_v38 = vpop.eup %15213  ;;  %14036 = vmatprep.subr.bf16.mxu1 %v20668_v19  ;;  %14042 = vmatprep.subr.bf16.mxu0 %v20668_v19 }
 0x488   : > { %v2486_v15 = vmul.f32 %v15214_v38, %v16775_v59  ;;  %v15216_v50 = vpop.eup %15215 }
 0x489   : > { %v2489_v59 = vmul.f32 %v15216_v50, %v16771_v22  ;;  %v3528_v22 = vpop.permute.xlu0 %3527 }
 0x48a   : > { %v2502_v2 = vpack.c.bf16 %v2486_v15, %v2486_v15  ;;  %v3533_v9 = vsel %vm1577_vm1, %v3528_v22, 0 }
 0x48b   : > { %v2505_v13 = vpack.c.bf16 %v2489_v59, %v2489_v59 }
 0x48c   : > { %14027 = vmatmul.mubr.msk.bf16.vlgmr.msra.gmra.mrb[72].mxu1 %vm2314_vm3, %v2502_v2  ;;  %v2458_v43 = vpop.xlane.xlu1 %2457  ;;  %14033 = vmatmul.mubr.msk.bf16.vlgmr.msra.gmra.mrb[84].mxu0 %vm2314_vm3, %v2503_v57 }
 0x48d   : > { %14037 = vmatpush3.bf16.msra.mxu1 %v3110_v62  ;;  %15219 = vrcp.f32 %v2458_v43  ;;  %14043 = vmatpush3.bf16.msra.mxu0 %v3156_v28  ;;  %v3580_v37 = vpop.permute.xlu0 %3579 }
 0x48e   : > { %14038 = vmatprep.mubr.msk.bf16.mxu1 %vm15738_vm0, %v20668_v19  ;;  %14044 = vmatprep.mubr.msk.bf16.mxu0 %vm15738_vm0, %v20668_v19  ;;  %v3585_v7 = vsel %vm1577_vm1, %v3580_v37, 0 }
 0x48f   : > { %v15218_v0 = vpop.eup %15217  ;;  %14048 = vmatprep.subr.bf16.mxu1 %v20668_v19  ;;  %14054 = vmatprep.subr.bf16.mxu0 %v14997_v8 }
 0x490   : > { %v2488_v21 = vmul.f32 %v15218_v0, %v16780_v35  ;;  %v3421_v61 = vpop.permute.xlu1 %3420 }
 0x491   : > { %v3632_v46 = vpop.permute.xlu0 %3631 }
 0x492   : > { %v2504_v39 = vpack.c.bf16 %v2488_v21, %v2488_v21  ;;  %v3637_v30 = vsel %vm1577_vm1, %v3632_v46, 0 }
 0x494   : > { %14039 = vmatmul.mubr.msk.bf16.vlgmr.msra.gmra.mrb[76].mxu1 %vm2314_vm3, %v2504_v39  ;;  %14045 = vmatmul.mubr.msk.bf16.vlgmr.msra.gmra.mrb[88].mxu0 %vm2314_vm3, %v2505_v13  ;;  %v3476_v5 = vpop.permute.xlu1 %3475 }
 0x495   : > { %14049 = vmatpush3.bf16.msra.mxu1 %v3202_v58  ;;  %14050 = vmatprep.mubr.msk.bf16.mxu1 %vm15738_vm0, %v20668_v19  ;;  %v3481_v26 = vsel %vm1577_vm1, %v3476_v5, 0 }
 0x496   : > { %14078 = vmatprep.subr.bf16.mxu1 %v20668_v19  ;;  %14055 = vmatpush3.bf16.msra.mxu0 %v14997_v8 }
 0x497   : > { %v15220_v41 = vpop.eup %15219  ;;  %14056 = vmatprep.subr.bf16.mxu0 %v14998_v44 }
 0x498   : > { %v2490_v35 = vmul.f32 %v15220_v41, %v16784_v23  ;;  %v3629_v23 = vpop.permute.xlu0 %3628  ;;  %v3473_v33 = vpop.permute.xlu1 %3472 }
 0x49a   : > { %v2506_v40 = vpack.c.bf16 %v2490_v35, %v2490_v35  ;;  %14057 = vmatpush3.bf16.msra.mxu0 %v14998_v44 }
 0x49b   : > { %14058 = vmatprep.subr.bf16.mxu0 %v14999_v31 }
 0x49c   : > { %14051 = vmatmul.mubr.msk.bf16.vlgmr.msra.gmra.mrb[80].mxu1 %vm2314_vm3, %v2506_v40  ;;  %v3736_v55 = vpop.permute.xlu0 %3735  ;;  %v3525_v1 = vpop.permute.xlu1 %3524 }
 0x49d   : > { %14080 = vmatprep.mubr.msk.bf16.mxu1 %vm15738_vm0, %v20668_v19  ;;  %v3741_v51 = vsel %vm1577_vm1, %v3736_v55, 0 }
 0x49e   : > { %14079 = vmatpush3.bf16.xpose.msra.mxu1 %v3429_v63  ;;  %14059 = vmatpush3.bf16.msra.mxu0 %v14999_v31 }
 0x49f   : > { %14084 = vmatprep.subr.bf16.mxu1 %v20668_v19  ;;  %14060 = vmatprep.subr.bf16.mxu0 %v15000_v54 }
 0x4a0   : > { %v3733_v49 = vpop.permute.xlu0 %3732  ;;  %v3577_v10 = vpop.permute.xlu1 %3576 }
 0x4a2   : > { %14061 = vmatpush3.bf16.msra.mxu0 %v15000_v54 }
 0x4a3   : > { %14108 = vmatprep.subr.bf16.mxu0 %v20668_v19 }
 0x4a4   : > { %v3840_v47 = vpop.permute.xlu0 %3839  ;;  %v3684_v21 = vpop.permute.xlu1 %3683 }
 0x4a5   : > { %14081 = vmatmul.mubr.msk.bf16.vlgmr.msra.gmra.mrb[84].mxu1 %vm1577_vm1, %v3421_v61  ;;  %v3845_v34 = vsel %vm1577_vm1, %v3840_v47, 0  ;;  %v3689_v37 = vsel %vm1577_vm1, %v3684_v21, 0 }
 0x4a6   : > { %14085 = vmatpush3.bf16.xpose.msra.mxu1 %v3481_v26  ;;  %14086 = vmatprep.mubr.msk.bf16.mxu1 %vm15738_vm0, %v20668_v19 }
 0x4a7   : > { %14090 = vmatprep.subr.bf16.mxu1 %v20668_v19 }
 0x4a8   : > { %v3837_v53 = vpop.permute.xlu0 %3836 }
 0x4ac   : > { %v3944_v52 = vpop.permute.xlu0 %3943 }
 0x4ad   : > { %14087 = vmatmul.mubr.msk.bf16.vlgmr.msra.gmra.mrb[88].mxu1 %vm1577_vm1, %v3473_v33  ;;  %v3949_v4 = vsel %vm1577_vm1, %v3944_v52, 0  ;;  %v3681_v52 = vpop.permute.xlu1 %3680 }
 0x4ae   : > { %14091 = vmatpush3.bf16.xpose.msra.mxu1 %v3533_v9  ;;  %14092 = vmatprep.mubr.msk.bf16.mxu1 %vm15738_vm0, %v20668_v19 }
 0x4af   : > { %14096 = vmatprep.subr.bf16.mxu1 %v20668_v19 }
 0x4b0   : > { %v3941_v12 = vpop.permute.xlu0 %3940 }
 0x4b4   : > { %v4048_v56 = vpop.permute.xlu0 %4047 }
 0x4b5   : > { %14093 = vmatmul.mubr.msk.bf16.vlgmr.msra.gmra.mrb[92].mxu1 %vm1577_vm1, %v3525_v1  ;;  %v4053_v32 = vsel %vm1577_vm1, %v4048_v56, 0 }
 0x4b6   : > { %14097 = vmatpush3.bf16.xpose.msra.mxu1 %v3585_v7  ;;  %14098 = vmatprep.mubr.msk.bf16.mxu1 %vm15738_vm0, %v20668_v19 }
 0x4b7   : > { %14102 = vmatprep.subr.bf16.mxu1 %v20668_v19 }
 0x4b8   : > { %v4045_v24 = vpop.permute.xlu0 %4044 }
 0x4bc   : > { %v4152_v17 = vpop.permute.xlu0 %4151 }
 0x4bd   : > { %14099 = vmatmul.mubr.msk.bf16.vlgmr.msra.gmra.mrb[96].mxu1 %vm1577_vm1, %v3577_v10  ;;  %v4157_v11 = vsel %vm1577_vm1, %v4152_v17, 0 }
 0x4be   : > { %14103 = vmatpush3.bf16.xpose.msra.mxu1 %v3637_v30  ;;  %14104 = vmatprep.mubr.msk.bf16.mxu1 %vm15738_vm0, %v20668_v19 }
 0x4bf   : > { %14114 = vmatprep.subr.bf16.mxu1 %v20668_v19 }
 0x4c0   : > { %v4149_v16 = vpop.permute.xlu0 %4148 }
 0x4c4   : > { %v4445_v38 = vpop.permute.xlu0 %4444 }
 0x4c5   : > { %14105 = vmatmul.mubr.msk.bf16.vlgmr.msra.gmra.mrb[100].mxu1 %vm1577_vm1, %v3629_v23  ;;  %v4450_v20 = vsel %vm2510_vm2, %v4445_v38, 0  ;;  %v3788_v38 = vpop.permute.xlu1 %3787 }
 0x4c6   : > { %14115 = vmatpush3.bf16.xpose.msra.mxu1 %v3741_v51  ;;  %14116 = vmatprep.mubr.msk.bf16.mxu1 %vm15738_vm0, %v20668_v19 }
 0x4c7   : > { %14126 = vmatprep.subr.bf16.mxu1 %v20668_v19 }
 0x4cd   : > { %14117 = vmatmul.mubr.msk.bf16.vlgmr.msra.gmra.mrb[104].mxu1 %vm1577_vm1, %v3733_v49 }
 0x4ce   : > { %14127 = vmatpush3.bf16.xpose.msra.mxu1 %v3845_v34  ;;  %14128 = vmatprep.mubr.msk.bf16.mxu1 %vm15738_vm0, %v20668_v19 }
 0x4cf   : > { %14138 = vmatprep.subr.bf16.mxu1 %v20668_v19 }
 0x4d5   : > { %14129 = vmatmul.mubr.msk.bf16.vlgmr.msra.gmra.mrb[108].mxu1 %vm1577_vm1, %v3837_v53 }
 0x4d6   : > { %14139 = vmatpush3.bf16.xpose.msra.mxu1 %v3949_v4  ;;  %14140 = vmatprep.mubr.msk.bf16.mxu1 %vm15738_vm0, %v20668_v19 }
 0x4d7   : > { %14150 = vmatprep.subr.bf16.mxu1 %v20668_v19 }
 0x4dd   : > { %14141 = vmatmul.mubr.msk.bf16.vlgmr.msra.gmra.mrb[112].mxu1 %vm1577_vm1, %v3941_v12 }
 0x4de   : > { %14151 = vmatpush3.bf16.xpose.msra.mxu1 %v4053_v32  ;;  %14152 = vmatprep.mubr.msk.bf16.mxu1 %vm15738_vm0, %v20668_v19 }
 0x4df   : > { %14162 = vmatprep.subr.bf16.mxu1 %v20668_v19 }
 0x4e5   : > { %14153 = vmatmul.mubr.msk.bf16.vlgmr.msra.gmra.mrb[116].mxu1 %vm1577_vm1, %v4045_v24 }
 0x4e6   : > { %14163 = vmatpush3.bf16.xpose.msra.mxu1 %v4157_v11  ;;  %14164 = vmatprep.mubr.msk.bf16.mxu1 %vm15738_vm0, %v20668_v19 }
 0x4e7   : > { %14174 = vmatprep.subr.bf16.mxu1 %v20668_v19 }
 0x4ed   : > { %14165 = vmatmul.mubr.msk.bf16.vlgmr.msra.gmra.mrb[120].mxu1 %vm1577_vm1, %v4149_v16 }
 0x4ee   : > { %14175 = vmatpush3.bf16.msra.mxu1 %v4450_v20  ;;  %14176 = vmatprep.mubr.msk.bf16.mxu1 %vm15738_vm0, %v20668_v19 }
 0x4ef   : > { %14186 = vmatprep.subr.bf16.mxu1 %v20668_v19 }
 0x52d   : > { %v2548_v6 = vpop.f32.mrb[60].mxu0 }
 0x52e   : > { %v13962_v15 = vpop.f32.mrb[61].mxu0 }
 0x52f   : > { %v2551_v2 = vpop.f32.mrb[62].mxu0  ;;  %v2594_v57 = vpop.f32.mrb[52].mxu1 }
 0x530   : > { %v3244_v50 = vpack.c.bf16 %v2594_v57, %v2548_v6  ;;  %v13963_v8 = vpop.f32.mrb[63].mxu0  ;;  %v13968_v62 = vpop.f32.mrb[53].mxu1 }
 0x531   : > { %v2597_v43 = vpop.f32.mrb[54].mxu1 }
 0x532   : > { %v13969_v28 = vpop.f32.mrb[55].mxu1  ;;  %14062 = vmatprep.mubr.msk.bf16.mxu0 %vm1577_vm1, %v3244_v50 }
 0x533   : > { %v3785_v28 = vpop.permute.xlu1 %3784 }
 0x537   : > { %v2640_v59 = vpop.f32.mrb[64].mxu0 }
 0x538   : > { %v13974_v0 = vpop.f32.mrb[65].mxu0 }
 0x539   : > { %v2643_v29 = vpop.f32.mrb[66].mxu0 }
 0x53a   : > { %v13975_v3 = vpop.f32.mrb[67].mxu0 }
 0x53f   : > { %v2686_v39 = vpop.f32.mrb[56].mxu1  ;;  %v2732_v13 = vpop.f32.mrb[68].mxu0 }
 0x540   : > { %v3245_v58 = vpack.c.bf16 %v2686_v39, %v2640_v59  ;;  %v13980_v22 = vpop.f32.mrb[57].mxu1  ;;  %v13986_v41 = vpop.f32.mrb[69].mxu0 }
 0x541   : > { %v2689_v35 = vpop.f32.mrb[58].mxu1  ;;  %v2735_v40 = vpop.f32.mrb[70].mxu0 }
 0x542   : > { %v13981_v61 = vpop.f32.mrb[59].mxu1  ;;  %v13987_v63 = vpop.f32.mrb[71].mxu0  ;;  %14063 = vmatmul.mubr.msk.bf16.vlgmr.msra.gmra.mrb[92].mxu0 %vm1577_vm1, %v3245_v58 }
 0x543   : > { %14109 = vmatpush3.bf16.xpose.msra.mxu0 %v3689_v37  ;;  %v3892_v41 = vpop.permute.xlu1 %3891 }
 0x544   : > { %14120 = vmatprep.subr.bf16.mxu0 %v20668_v19 }
 0x547   : > { %v2778_v46 = vpop.f32.mrb[60].mxu1  ;;  %v2824_v5 = vpop.f32.mrb[72].mxu0 }
 0x548   : > { %v3246_v26 = vpack.c.bf16 %v2778_v46, %v2732_v13  ;;  %v13992_v23 = vpop.f32.mrb[61].mxu1  ;;  %v13998_v33 = vpop.f32.mrb[73].mxu0 }
 0x549   : > { %v2781_v9 = vpop.f32.mrb[62].mxu1  ;;  %v2827_v55 = vpop.f32.mrb[74].mxu0 }
 0x54a   : > { %v13993_v44 = vpop.f32.mrb[63].mxu1  ;;  %v13999_v31 = vpop.f32.mrb[75].mxu0  ;;  %14066 = vmatprep.mubr.msk.bf16.mxu0 %vm1577_vm1, %v3246_v26  ;;  %v20678_v26 = vld [vmem:[#allocation39_spill] sm:$0xff]  ;;  %v3793_v9 = vsel %vm1577_vm1, %v3788_v38, 0 }
 0x54b   : > { %v3889_v46 = vpop.permute.xlu1 %3888 }
 0x54f   : > { %v2870_v49 = vpop.f32.mrb[64].mxu1  ;;  %v2916_v1 = vpop.f32.mrb[76].mxu0 }
 0x550   : > { %v3247_v7 = vpack.c.bf16 %v2870_v49, %v2824_v5  ;;  %v14004_v54 = vpop.f32.mrb[65].mxu1  ;;  %v14010_v47 = vpop.f32.mrb[77].mxu0 }
 0x551   : > { %v2873_v10 = vpop.f32.mrb[66].mxu1  ;;  %v2919_v30 = vpop.f32.mrb[78].mxu0  ;;  %v20679_v54 = vld [vmem:[#allocation40_spill] sm:$0xff] }
 0x552   : > { %v14005_v53 = vpop.f32.mrb[67].mxu1  ;;  %v14011_v51 = vpop.f32.mrb[79].mxu0  ;;  %14067 = vmatmul.mubr.msk.bf16.gmra.mrb[96].mxu0 %vm1577_vm1, %v3247_v7  ;;  %v3897_v30 = vsel %vm1577_vm1, %v3892_v41, 0  ;;  %v20683_v41 = vld [vmem:[#allocation43_spill] sm:$0xff] }
 0x553   : > { %v3996_v44 = vpop.permute.xlu1 %3995 }
 0x557   : > { %v2962_v12 = vpop.f32.mrb[68].mxu1  ;;  %v3008_v34 = vpop.f32.mrb[80].mxu0 }
 0x558   : > { %v3248_v56 = vpack.c.bf16 %v2962_v12, %v2916_v1  ;;  %v14016_v4 = vpop.f32.mrb[69].mxu1  ;;  %v14022_v24 = vpop.f32.mrb[81].mxu0 }
 0x559   : > { %v2965_v32 = vpop.f32.mrb[70].mxu1  ;;  %v3011_v17 = vpop.f32.mrb[82].mxu0 }
 0x55a   : > { %v14017_v16 = vpop.f32.mrb[71].mxu1  ;;  %v14023_v11 = vpop.f32.mrb[83].mxu0  ;;  %14070 = vmatprep.mubr.msk.bf16.mxu0 %vm1577_vm1, %v3248_v56  ;;  %v20680_v56 = vld [vmem:[#allocation41_spill] sm:$0xff]  ;;  %v4001_v32 = vsel %vm1577_vm1, %v3996_v44, 0 }
 0x55b   : > { %v3993_v7 = vpop.permute.xlu1 %3992 }
 0x55f   : > { %v3054_v20 = vpop.f32.mrb[72].mxu1  ;;  %v3100_v6 = vpop.f32.mrb[84].mxu0 }
 0x560   : > { %v3249_v15 = vpack.c.bf16 %v3054_v20, %v3008_v34  ;;  %v14028_v2 = vpop.f32.mrb[73].mxu1  ;;  %v14034_v57 = vpop.f32.mrb[85].mxu0 }
 0x561   : > { %v3057_v50 = vpop.f32.mrb[74].mxu1  ;;  %v3103_v8 = vpop.f32.mrb[86].mxu0 }
 0x562   : > { %v14029_v62 = vpop.f32.mrb[75].mxu1  ;;  %v14035_v43 = vpop.f32.mrb[87].mxu0  ;;  %14071 = vmatmul.mubr.msk.bf16.gmra.mrb[100].mxu0 %vm1577_vm1, %v3249_v15 }
 0x563   : > { %v4100_v12 = vpop.permute.xlu1 %4099 }
 0x564   : > { %v4105_v57 = vsel %vm1577_vm1, %v4100_v12, 0 }
 0x567   : > { %v3146_v59 = vpop.f32.mrb[76].mxu1  ;;  %v3192_v0 = vpop.f32.mrb[88].mxu0 }
 0x568   : > { %v3250_v29 = vpack.c.bf16 %v3146_v59, %v3100_v6  ;;  %v14040_v3 = vpop.f32.mrb[77].mxu1  ;;  %v14046_v21 = vpop.f32.mrb[89].mxu0  ;;  %v20681_v6 = vld [vmem:[#allocation44_spill] sm:$0xff] }
 0x569   : > { %v3149_v39 = vpop.f32.mrb[78].mxu1  ;;  %v3195_v13 = vpop.f32.mrb[90].mxu0 }
 0x56a   : > { %v14041_v58 = vpop.f32.mrb[79].mxu1  ;;  %v14047_v22 = vpop.f32.mrb[91].mxu0  ;;  %14074 = vmatprep.mubr.msk.bf16.mxu0 %vm1577_vm1, %v3250_v29 }
 0x56b   : > { %v4097_v38 = vpop.permute.xlu1 %4096 }
 0x56f   : > { %v3238_v35 = vpop.f32.mrb[80].mxu1  ;;  %v4204_v8 = vpop.permute.xlu1 %4203 }
 0x570   : > { %v3251_v40 = vpack.c.bf16 %v3238_v35, %v3192_v0  ;;  %v14052_v37 = vpop.f32.mrb[81].mxu1  ;;  %v20682_v0 = vld [vmem:[#allocation42_spill] sm:$0xff]  ;;  %v4209_v21 = vsel %vm1577_vm1, %v4204_v8, 0 }
 0x571   : > { %v3241_v61 = vpop.f32.mrb[82].mxu1 }
 0x572   : > { %v14053_v63 = vpop.f32.mrb[83].mxu1  ;;  %14075 = vmatmul.mubr.msk.bf16.gmra.mrb[104].mxu0 %vm1577_vm1, %v3251_v40 }
 0x573   : > { %14110 = vmatprep.mubr.msk.bf16.mxu0 %vm15738_vm0, %v20668_v19  ;;  %v4201_v59 = vpop.permute.xlu1 %4200 }
 0x578   : > { %v3465_v5 = vpop.f32.mrb[84].mxu1 }
 0x579   : > { %v17081_v23 = vadd.f32 %v3465_v5, %v20678_v26  ;;  %v14082_v33 = vpop.f32.mrb[85].mxu1 }
 0x57a   : > { %v3468_v55 = vpop.f32.mrb[86].mxu1  ;;  %14111 = vmatmul.mubr.msk.bf16.vlgmr.msra.gmra.mrb[108].mxu0 %vm1577_vm1, %v3681_v52  ;;  %v20684_v33 = vld [vmem:[#allocation45_spill] sm:$0xff] }
 0x57b   : > { %v14083_v31 = vpop.f32.mrb[87].mxu1  ;;  %14121 = vmatpush3.bf16.xpose.msra.mxu0 %v3793_v9  ;;  %v4251_v49 = vsel %vm2314_vm3, %v17081_v23, -inf  ;;  %14122 = vmatprep.mubr.msk.bf16.mxu0 %vm15738_vm0, %v20668_v19 }
 0x57c   : > { %4252 = vmax.xlane.f32.xlu0 %v4251_v49  ;;  %14132 = vmatprep.subr.bf16.mxu0 %v20668_v19 }
 0x580   : > { %v3517_v1 = vpop.f32.mrb[88].mxu1 }
 0x581   : > { %v17091_v47 = vadd.f32 %v3517_v1, %v20679_v54  ;;  %v14088_v10 = vpop.f32.mrb[89].mxu1 }
 0x582   : > { %v3520_v53 = vpop.f32.mrb[90].mxu1  ;;  %14123 = vmatmul.mubr.msk.bf16.vlgmr.msra.gmra.mrb[112].mxu0 %vm1577_vm1, %v3785_v28 }
 0x583   : > { %v14089_v51 = vpop.f32.mrb[91].mxu1  ;;  %14133 = vmatpush3.bf16.xpose.msra.mxu0 %v3897_v30  ;;  %v4254_v52 = vsel %vm2314_vm3, %v17091_v47, -inf  ;;  %14134 = vmatprep.mubr.msk.bf16.mxu0 %vm15738_vm0, %v20668_v19 }
 0x584   : > { %4255 = vmax.xlane.f32.xlu1 %v4254_v52  ;;  %14144 = vmatprep.subr.bf16.mxu0 %v20668_v19 }
 0x588   : > { %v3569_v34 = vpop.f32.mrb[92].mxu1 }
 0x589   : > { %v17101_v4 = vadd.f32 %v3569_v34, %v20680_v56  ;;  %v14094_v24 = vpop.f32.mrb[93].mxu1  ;;  %v20686_v34 = vld [vmem:[#allocation49_spill] sm:$0xff] }
 0x58a   : > { %v3572_v17 = vpop.f32.mrb[94].mxu1  ;;  %14135 = vmatmul.mubr.msk.bf16.vlgmr.msra.gmra.mrb[116].mxu0 %vm1577_vm1, %v3889_v46 }
 0x58b   : > { %v14095_v16 = vpop.f32.mrb[95].mxu1  ;;  %14145 = vmatpush3.bf16.xpose.msra.mxu0 %v4001_v32  ;;  %v4257_v11 = vsel %vm2314_vm3, %v17101_v4, -inf  ;;  %14146 = vmatprep.mubr.msk.bf16.mxu0 %vm15738_vm0, %v20668_v19 }
 0x58c   : > { %4258 = vmax.xlane.f32.xlu0 %v4257_v11  ;;  %14156 = vmatprep.subr.bf16.mxu0 %v20668_v19 }
 0x590   : > { %v3621_v20 = vpop.f32.mrb[96].mxu1 }
 0x591   : > { %v17111_v15 = vadd.f32 %v3621_v20, %v20681_v6  ;;  %v14100_v2 = vpop.f32.mrb[97].mxu1  ;;  %v20687_v20 = vld [vmem:[#allocation51_spill] sm:$0xff] }
 0x592   : > { %v3624_v50 = vpop.f32.mrb[98].mxu1  ;;  %14147 = vmatmul.mubr.msk.bf16.vlgmr.msra.gmra.mrb[120].mxu0 %vm1577_vm1, %v3993_v7  ;;  %v20685_v7 = vld [vmem:[#allocation47_spill] sm:$0xff] }
 0x593   : > { %v14101_v62 = vpop.f32.mrb[99].mxu1  ;;  %14157 = vmatpush3.bf16.xpose.msra.mxu0 %v4105_v57  ;;  %v4260_v43 = vsel %vm2314_vm3, %v17111_v15, -inf  ;;  %14158 = vmatprep.mubr.msk.bf16.mxu0 %vm15738_vm0, %v20668_v19 }
 0x594   : > { %4261 = vmax.xlane.f32.xlu0 %v4260_v43  ;;  %14168 = vmatprep.subr.bf16.mxu0 %v20668_v19  ;;  %v17164_v43 = vpop.permute.xlu0 %4542 }
 0x595   : > { %4885 = vrot.lane.b32.xlu1 %v16928_v48, %s20564_s24  ;;  %v4494_v48 = vpop.permute.xlu1 %4493 }
 0x596   : > { %v4499_v37 = vsel %vm2510_vm2, %v4494_v48, 0 }
 0x598   : > { %v3673_v28 = vpop.f32.mrb[100].mxu1 }
 0x599   : > { %v17123_v29 = vadd.f32 %v3673_v28, %v20682_v0  ;;  %v14106_v3 = vpop.f32.mrb[101].mxu1  ;;  %v17166_v28 = vpop.permute.xlu0 %4640 }
 0x59a   : > { %v3676_v39 = vpop.f32.mrb[102].mxu1  ;;  %14159 = vmatmul.mubr.msk.bf16.vlgmr.msra.gmra.mrb[124].mxu0 %vm1577_vm1, %v4097_v38 }
 0x59b   : > { %v14107_v13 = vpop.f32.mrb[103].mxu1  ;;  %14169 = vmatpush3.bf16.xpose.msra.mxu0 %v4209_v21  ;;  %v4263_v58 = vsel %vm2314_vm3, %v17123_v29, -inf  ;;  %14170 = vmatprep.mubr.msk.bf16.mxu0 %vm15738_vm0, %v20668_v19 }
 0x59c   : > { %4264 = vmax.xlane.f32.xlu0 %v4263_v58  ;;  %14180 = vmatprep.subr.bf16.mxu0 %v20668_v19 }
 0x59d   : > { %v17170_v3 = vpop.permute.xlu0 %4738 }
 0x5a0   : > { %v3777_v22 = vpop.f32.mrb[104].mxu1 }
 0x5a1   : > { %v17133_v35 = vadd.f32 %v3777_v22, %v20683_v41  ;;  %v14118_v40 = vpop.f32.mrb[105].mxu1 }
 0x5a2   : > { %v3780_v61 = vpop.f32.mrb[106].mxu1  ;;  %14171 = vmatmul.mubr.msk.bf16.vlgmr.msra.gmra.mrb[128].mxu0 %vm1577_vm1, %v4201_v59  ;;  %v17168_v59 = vpop.permute.xlu1 %4591 }
 0x5a3   : > { %v14119_v63 = vpop.f32.mrb[107].mxu1  ;;  %14181 = vmatpush3.bf16.msra.mxu0 %v4499_v37  ;;  %v4269_v46 = vsel %vm2314_vm3, %v17133_v35, -inf  ;;  %14182 = vmatprep.mubr.msk.bf16.mxu0 %vm15738_vm0, %v20668_v19 }
 0x5a4   : > { %4270 = vmax.xlane.f32.xlu0 %v4269_v46  ;;  %14192 = vmatprep.subr.bf16.mxu0 %v20668_v19 }
 0x5a6   : > { %v17172_v21 = vpop.permute.xlu1 %4689 }
 0x5a8   : > { %v3881_v5 = vpop.f32.mrb[108].mxu1 }
 0x5a9   : > { %v17143_v9 = vadd.f32 %v3881_v5, %v20684_v33  ;;  %v14130_v55 = vpop.f32.mrb[109].mxu1 }
 0x5aa   : > { %v3884_v44 = vpop.f32.mrb[110].mxu1  ;;  %v17175_v48 = vpop.permute.xlu1 %4787 }
 0x5ab   : > { %v14131_v31 = vpop.f32.mrb[111].mxu1  ;;  %v4275_v49 = vsel %vm2314_vm3, %v17143_v9, -inf }
 0x5ac   : > { %4276 = vmax.xlane.f32.xlu0 %v4275_v49 }
 0x5b0   : > { %v3985_v1 = vpop.f32.mrb[112].mxu1 }
 0x5b1   : > { %v17148_v10 = vadd.f32 %v3985_v1, %v20685_v7  ;;  %v14142_v30 = vpop.f32.mrb[113].mxu1 }
 0x5b2   : > { %v3988_v53 = vpop.f32.mrb[114].mxu1 }
 0x5b3   : > { %v14143_v51 = vpop.f32.mrb[115].mxu1  ;;  %v4281_v52 = vsel %vm2314_vm3, %v17148_v10, -inf }
 0x5b4   : > { %4282 = vmax.xlane.f32.xlu0 %v4281_v52 }
 0x5b8   : > { %v4089_v12 = vpop.f32.mrb[116].mxu1 }
 0x5b9   : > { %v17153_v24 = vadd.f32 %v4089_v12, %v20686_v34  ;;  %v14154_v32 = vpop.f32.mrb[117].mxu1 }
 0x5ba   : > { %v4092_v17 = vpop.f32.mrb[118].mxu1 }
 0x5bb   : > { %v14155_v16 = vpop.f32.mrb[119].mxu1  ;;  %v4287_v11 = vsel %vm2314_vm3, %v17153_v24, -inf }
 0x5bc   : > { %4288 = vmax.xlane.f32.xlu0 %v4287_v11 }
 0x5c0   : > { %v4193_v38 = vpop.f32.mrb[120].mxu1 }
 0x5c1   : > { %v17158_v2 = vadd.f32 %v4193_v38, %v20687_v20  ;;  %v14166_v57 = vpop.f32.mrb[121].mxu1 }
 0x5c2   : > { %v4196_v50 = vpop.f32.mrb[122].mxu1 }
 0x5c3   : > { %v14167_v8 = vpop.f32.mrb[123].mxu1  ;;  %v4293_v62 = vsel %vm2314_vm3, %v17158_v2, -inf }
 0x5c4   : > { %4294 = vmax.xlane.f32.xlu0 %v4293_v62 }
 0x5da   : > { %4836 = vrot.lane.b32.xlu0 %v16907_v45, %s20564_s24 }
 0x609   : > { %v4253_v39 = vpop.xlane.xlu0 %4252 }
 0x60a   : > { %v4299_v13 = vsub.f32 %v17081_v23, %v4253_v39 }
 0x60c   : > { %v4315_v58 = vmul.f32 1.442695, %v4299_v13 }
 0x60e   : > { %15221 = vpow2.f32 %v4315_v58 }
 0x611   : > { %v4256_v22 = vpop.xlane.xlu1 %4255 }
 0x612   : > { %v4300_v45 = vsub.f32 %v17091_v47, %v4256_v22 }
 0x614   : > { %v4317_v40 = vmul.f32 1.442695, %v4300_v45 }
 0x616   : > { %15223 = vpow2.f32 %v4317_v40  ;;  %v20688_v40 = vld [vmem:[#allocation46_spill] sm:$0xff] }
 0x618   : > { %v17178_v37 = vpop.eup %15221 }
 0x619   : > { %v4259_v61 = vpop.xlane.xlu0 %4258  ;;  %v4347_v63 = vsel %vm2314_vm3, %v17178_v37, 0.0 }
 0x61a   : > { %v4301_v46 = vsub.f32 %v17101_v4, %v4259_v61  ;;  %4348 = vadd.xlane.f32.xlu0 %v4347_v63 }
 0x61c   : > { %v4319_v5 = vmul.f32 1.442695, %v4301_v46 }
 0x61e   : > { %15225 = vpow2.f32 %v4319_v5 }
 0x620   : > { %v17183_v23 = vpop.eup %15223 }
 0x621   : > { %v4262_v55 = vpop.xlane.xlu0 %4261  ;;  %v4350_v44 = vsel %vm2314_vm3, %v17183_v23, 0.0 }
 0x622   : > { %v4302_v47 = vsub.f32 %v17111_v15, %v4262_v55  ;;  %4351 = vadd.xlane.f32.xlu1 %v4350_v44 }
 0x624   : > { %v4321_v31 = vmul.f32 1.442695, %v4302_v47 }
 0x626   : > { %15227 = vpow2.f32 %v4321_v31 }
 0x628   : > { %v17188_v49 = vpop.eup %15225 }
 0x629   : > { %v4265_v1 = vpop.xlane.xlu0 %4264  ;;  %v4353_v4 = vsel %vm2314_vm3, %v17188_v49, 0.0 }
 0x62a   : > { %v4303_v30 = vsub.f32 %v17123_v29, %v4265_v1  ;;  %4354 = vadd.xlane.f32.xlu0 %v4353_v4  ;;  %v20689_v4 = vld [vmem:[#allocation48_spill] sm:$0xff] }
 0x62c   : > { %v4323_v53 = vmul.f32 1.442695, %v4303_v30 }
 0x62e   : > { %15229 = vpow2.f32 %v4323_v53 }
 0x630   : > { %v17193_v51 = vpop.eup %15227 }
 0x631   : > { %v4271_v52 = vpop.xlane.xlu0 %4270  ;;  %v4356_v15 = vsel %vm2314_vm3, %v17193_v51, 0.0 }
 0x632   : > { %v4305_v12 = vsub.f32 %v17133_v35, %v4271_v52  ;;  %4357 = vadd.xlane.f32.xlu1 %v4356_v15 }
 0x634   : > { %v4327_v32 = vmul.f32 1.442695, %v4305_v12 }
 0x636   : > { %15231 = vpow2.f32 %v4327_v32 }
 0x638   : > { %v17198_v17 = vpop.eup %15229 }
 0x639   : > { %v4277_v16 = vpop.xlane.xlu0 %4276  ;;  %v4359_v29 = vsel %vm2314_vm3, %v17198_v17, 0.0 }
 0x63a   : > { %v4307_v11 = vsub.f32 %v17143_v9, %v4277_v16  ;;  %4360 = vadd.xlane.f32.xlu0 %v4359_v29  ;;  %v20690_v29 = vld [vmem:[#allocation50_spill] sm:$0xff] }
 0x63c   : > { %v4331_v38 = vmul.f32 1.442695, %v4307_v11 }
 0x63e   : > { %15233 = vpow2.f32 %v4331_v38 }
 0x640   : > { %v17203_v57 = vpop.eup %15231 }
 0x641   : > { %v4283_v50 = vpop.xlane.xlu0 %4282  ;;  %v4365_v35 = vsel %vm2314_vm3, %v17203_v57, 0.0 }
 0x642   : > { %v4309_v8 = vsub.f32 %v17148_v10, %v4283_v50  ;;  %4366 = vadd.xlane.f32.xlu1 %v4365_v35 }
 0x644   : > { %v4335_v62 = vmul.f32 1.442695, %v4309_v8 }
 0x646   : > { %15235 = vpow2.f32 %v4335_v62 }
 0x648   : > { %v17208_v39 = vpop.eup %15233 }
 0x649   : > { %v4289_v13 = vpop.xlane.xlu0 %4288  ;;  %v4371_v9 = vsel %vm2314_vm3, %v17208_v39, 0.0 }
 0x64a   : > { %v4311_v58 = vsub.f32 %v17153_v24, %v4289_v13  ;;  %4372 = vadd.xlane.f32.xlu1 %v4371_v9 }
 0x64c   : > { %v4339_v22 = vmul.f32 1.442695, %v4311_v58  ;;  %v20691_v58 = vld [vmem:[#allocation52_spill] sm:$0xff] }
 0x64d   : > { %v3725_v45 = vpop.f32.mrb[108].mxu0 }
 0x64e   : > { %v17214_v61 = vadd.f32 %v3725_v45, %v20688_v40  ;;  %v14112_v63 = vpop.f32.mrb[109].mxu0  ;;  %15237 = vpow2.f32 %v4339_v22 }
 0x64f   : > { %v3728_v10 = vpop.f32.mrb[110].mxu0 }
 0x650   : > { %v17216_v46 = vpop.eup %15235  ;;  %v14113_v5 = vpop.f32.mrb[111].mxu0  ;;  %v4266_v55 = vsel %vm2314_vm3, %v17214_v61, -inf }
 0x651   : > { %v4295_v44 = vpop.xlane.xlu0 %4294  ;;  %v4377_v47 = vsel %vm2314_vm3, %v17216_v46, 0.0  ;;  %4267 = vmax.xlane.f32.xlu1 %v4266_v55 }
 0x652   : > { %v4313_v24 = vsub.f32 %v17158_v2, %v4295_v44  ;;  %4378 = vadd.xlane.f32.xlu0 %v4377_v47  ;;  %v20692_v44 = vld [vmem:[#allocation53_spill] sm:$0xff] }
 0x654   : > { %v4343_v31 = vmul.f32 1.442695, %v4313_v24 }
 0x655   : > { %v3829_v1 = vpop.f32.mrb[112].mxu0 }
 0x656   : > { %v17224_v30 = vadd.f32 %v3829_v1, %v20689_v4  ;;  %v14124_v53 = vpop.f32.mrb[113].mxu0  ;;  %15239 = vpow2.f32 %v4343_v31 }
 0x657   : > { %v3832_v52 = vpop.f32.mrb[114].mxu0 }
 0x658   : > { %v14125_v15 = vpop.f32.mrb[115].mxu0  ;;  %v4272_v12 = vsel %vm2314_vm3, %v17224_v30, -inf  ;;  %v17228_v32 = vpop.eup %15237 }
 0x659   : > { %4273 = vmax.xlane.f32.xlu1 %v4272_v12  ;;  %v4383_v16 = vsel %vm2314_vm3, %v17228_v32, 0.0 }
 0x65d   : > { %4384 = vadd.xlane.f32.xlu1 %v4383_v16  ;;  %v3933_v2 = vpop.f32.mrb[116].mxu0 }
 0x65e   : > { %v17233_v11 = vadd.f32 %v3933_v2, %v20690_v29  ;;  %v14136_v38 = vpop.f32.mrb[117].mxu0 }
 0x65f   : > { %v3936_v50 = vpop.f32.mrb[118].mxu0 }
 0x660   : > { %v14137_v35 = vpop.f32.mrb[119].mxu0  ;;  %v4278_v8 = vsel %vm2314_vm3, %v17233_v11, -inf  ;;  %v17237_v62 = vpop.eup %15239 }
 0x661   : > { %4279 = vmax.xlane.f32.xlu1 %v4278_v8  ;;  %v4389_v13 = vsel %vm2314_vm3, %v17237_v62, 0.0  ;;  %v4837_v50 = vpop.permute.xlu0 %4836  ;;  %v17258_v8 = vpop.permute.xlu1 %4885 }
 0x665   : > { %4390 = vadd.xlane.f32.xlu1 %v4389_v13  ;;  %v4037_v9 = vpop.f32.mrb[120].mxu0 }
 0x666   : > { %v17242_v22 = vadd.f32 %v4037_v9, %v20691_v58  ;;  %v14148_v45 = vpop.f32.mrb[121].mxu0 }
 0x667   : > { %v4040_v63 = vpop.f32.mrb[122].mxu0 }
 0x668   : > { %v14149_v10 = vpop.f32.mrb[123].mxu0  ;;  %v4284_v5 = vsel %vm2314_vm3, %v17242_v22, -inf }
 0x669   : > { %4285 = vmax.xlane.f32.xlu1 %v4284_v5  ;;  %v4548_v10 = vsel %vm2510_vm2, %v17164_v43, 0 }
 0x66d   : > { %v4141_v55 = vpop.f32.mrb[124].mxu0 }
 0x66e   : > { %v17247_v47 = vadd.f32 %v4141_v55, %v20692_v44  ;;  %v14160_v24 = vpop.f32.mrb[125].mxu0 }
 0x66f   : > { %v4144_v31 = vpop.f32.mrb[126].mxu0 }
 0x670   : > { %v14161_v1 = vpop.f32.mrb[127].mxu0  ;;  %v4290_v53 = vsel %vm2314_vm3, %v17247_v47, -inf }
 0x671   : > { %4291 = vmax.xlane.f32.xlu1 %v4290_v53 }
 0x675   : > { %v4245_v52 = vpop.f32.mrb[128].mxu0 }
 0x676   : > { %v17252_v15 = vadd.f32 %v4245_v52, %v16701_v18  ;;  %v14172_v12 = vpop.f32.mrb[129].mxu0 }
 0x677   : > { %v4248_v16 = vpop.f32.mrb[130].mxu0 }
 0x678   : > { %v14173_v2 = vpop.f32.mrb[131].mxu0  ;;  %v4296_v38 = vsel %vm2314_vm3, %v17252_v15, -inf }
 0x679   : > { %4297 = vmax.xlane.f32.xlu1 %v4296_v38 }
 0x68a   : > { %4934 = vrot.lane.b32.xlu1 %v16924_v42, %s20564_s24 }
 0x6a7   : > { %v4349_v35 = vpop.xlane.xlu0 %4348 }
 0x6a8   : > { %15241 = vrcp.f32 %v4349_v35 }
 0x6af   : > { %v4352_v13 = vpop.xlane.xlu1 %4351 }
 0x6b0   : > { %15243 = vrcp.f32 %v4352_v13 }
 0x6b2   : > { %v15242_v9 = vpop.eup %15241 }
 0x6b3   : > { %v4411_v45 = vmul.f32 %v15242_v9, %v17178_v37  ;;  %v4597_v37 = vsel %vm2510_vm2, %v17168_v59, 0 }
 0x6b5   : > { %v4427_v63 = vpack.c.bf16 %v4411_v45, %v4411_v45 }
 0x6b7   : > { %14177 = vmatmul.mubr.msk.bf16.vlgmr.msra.gmra.mrb[124].mxu1 %vm2314_vm3, %v4427_v63  ;;  %v4355_v5 = vpop.xlane.xlu0 %4354 }
 0x6b8   : > { %14187 = vmatpush3.bf16.msra.mxu1 %v4548_v10  ;;  %15245 = vrcp.f32 %v4355_v5  ;;  %14188 = vmatprep.mubr.msk.bf16.mxu1 %vm15738_vm0, %v20668_v19 }
 0x6b9   : > { %14198 = vmatprep.subr.bf16.mxu1 %v20668_v19 }
 0x6ba   : > { %v15244_v42 = vpop.eup %15243 }
 0x6bb   : > { %v4412_v55 = vmul.f32 %v15244_v42, %v17183_v23  ;;  %v4646_v23 = vsel %vm2510_vm2, %v17166_v28, 0 }
 0x6bd   : > { %v4428_v24 = vpack.c.bf16 %v4412_v55, %v4412_v55 }
 0x6bf   : > { %v4358_v31 = vpop.xlane.xlu1 %4357  ;;  %14183 = vmatmul.mubr.msk.bf16.vlgmr.msra.gmra.mrb[132].mxu0 %vm2314_vm3, %v4428_v24 }
 0x6c0   : > { %15247 = vrcp.f32 %v4358_v31  ;;  %14193 = vmatpush3.bf16.msra.mxu0 %v4597_v37  ;;  %14194 = vmatprep.mubr.msk.bf16.mxu0 %vm15738_vm0, %v20668_v19 }
 0x6c1   : > { %14204 = vmatprep.subr.bf16.mxu0 %v20668_v19 }
 0x6c2   : > { %v15246_v43 = vpop.eup %15245 }
 0x6c3   : > { %v4413_v1 = vmul.f32 %v15246_v43, %v17188_v49  ;;  %v4695_v49 = vsel %vm2510_vm2, %v17172_v21, 0 }
 0x6c5   : > { %v4429_v53 = vpack.c.bf16 %v4413_v1, %v4413_v1 }
 0x6c7   : > { %14189 = vmatmul.mubr.msk.bf16.vlgmr.msra.gmra.mrb[128].mxu1 %vm2314_vm3, %v4429_v53  ;;  %v4361_v59 = vpop.xlane.xlu0 %4360 }
 0x6c8   : > { %14199 = vmatpush3.bf16.msra.mxu1 %v4646_v23  ;;  %15249 = vrcp.f32 %v4361_v59  ;;  %14200 = vmatprep.mubr.msk.bf16.mxu1 %vm15738_vm0, %v20668_v19 }
 0x6c9   : > { %14210 = vmatprep.subr.bf16.mxu1 %v20668_v19 }
 0x6ca   : > { %v15248_v52 = vpop.eup %15247 }
 0x6cb   : > { %v4414_v12 = vmul.f32 %v15248_v52, %v17193_v51  ;;  %v4744_v51 = vsel %vm2510_vm2, %v17170_v3, 0 }
 0x6cd   : > { %v4430_v16 = vpack.c.bf16 %v4414_v12, %v4414_v12 }
 0x6cf   : > { %v4367_v2 = vpop.xlane.xlu1 %4366  ;;  %14195 = vmatmul.mubr.msk.bf16.vlgmr.msra.gmra.mrb[136].mxu0 %vm2314_vm3, %v4430_v16 }
 0x6d0   : > { %15251 = vrcp.f32 %v4367_v2  ;;  %14205 = vmatpush3.bf16.msra.mxu0 %v4695_v49  ;;  %14206 = vmatprep.mubr.msk.bf16.mxu0 %vm15738_vm0, %v20668_v19 }
 0x6d1   : > { %14216 = vmatprep.subr.bf16.mxu0 %v20668_v19 }
 0x6d2   : > { %v15250_v28 = vpop.eup %15249 }
 0x6d3   : > { %v4415_v38 = vmul.f32 %v15250_v28, %v17198_v17  ;;  %v4842_v17 = vsel %vm2510_vm2, %v4837_v50, 0 }
 0x6d5   : > { %v4431_v35 = vpack.c.bf16 %v4415_v38, %v4415_v38 }
 0x6d7   : > { %v4373_v13 = vpop.xlane.xlu1 %4372  ;;  %14201 = vmatmul.mubr.msk.bf16.vlgmr.msra.gmra.mrb[132].mxu1 %vm2314_vm3, %v4431_v35 }
 0x6d8   : > { %15253 = vrcp.f32 %v4373_v13  ;;  %14211 = vmatpush3.bf16.msra.mxu1 %v4744_v51  ;;  %14212 = vmatprep.mubr.msk.bf16.mxu1 %vm15738_vm0, %v20668_v19 }
 0x6d9   : > { %14222 = vmatprep.subr.bf16.mxu1 %v20668_v19 }
 0x6da   : > { %v15252_v21 = vpop.eup %15251 }
 0x6db   : > { %v4417_v9 = vmul.f32 %v15252_v21, %v17203_v57 }
 0x6dd   : > { %v4433_v45 = vpack.c.bf16 %v4417_v9, %v4417_v9 }
 0x6de   : > { %v4268_v63 = vpop.xlane.xlu1 %4267 }
 0x6df   : > { %14213 = vmatmul.mubr.msk.bf16.vlgmr.msra.gmra.mrb[136].mxu1 %vm2314_vm3, %v4433_v45  ;;  %v4304_v3 = vsub.f32 %v17214_v61, %v4268_v63  ;;  %v4379_v59 = vpop.xlane.xlu0 %4378 }
 0x6e0   : > { %14223 = vmatpush3.bf16.msra.mxu1 %v4842_v17  ;;  %14224 = vmatprep.mubr.msk.bf16.mxu1 %vm15738_vm0, %v20668_v19 }
 0x6e1   : > { %v4325_v10 = vmul.f32 1.442695, %v4304_v3  ;;  %14234 = vmatprep.subr.bf16.mxu1 %v20668_v19 }
 0x6e2   : > { %v15254_v5 = vpop.eup %15253 }
 0x6e3   : > { %15255 = vpow2.f32 %v4325_v10  ;;  %v4419_v42 = vmul.f32 %v15254_v5, %v17208_v39 }
 0x6e5   : > { %v4435_v57 = vpack.c.bf16 %v4419_v42, %v4419_v42 }
 0x6e6   : > { %v4274_v55 = vpop.xlane.xlu1 %4273 }
 0x6e7   : > { %14225 = vmatmul.mubr.msk.bf16.vlgmr.msra.gmra.mrb[140].mxu1 %vm2314_vm3, %v4435_v57  ;;  %v4306_v50 = vsub.f32 %v17224_v30, %v4274_v55 }
 0x6e8   : > { %14236 = vmatprep.mubr.msk.bf16.mxu1 %vm15738_vm0, %v20668_v19 }
 0x6e9   : > { %v4329_v61 = vmul.f32 1.442695, %v4306_v50 }
 0x6ea   : > { %v4385_v24 = vpop.xlane.xlu1 %4384 }
 0x6eb   : > { %15257 = vpow2.f32 %v4329_v61  ;;  %v4793_v61 = vsel %vm2510_vm2, %v17175_v48, 0 }
 0x6ed   : > { %v15256_v37 = vpop.eup %15255 }
 0x6ee   : > { %v4280_v31 = vpop.xlane.xlu1 %4279  ;;  %v4362_v43 = vsel %vm2314_vm3, %v15256_v37, 0.0 }
 0x6ef   : > { %v4308_v1 = vsub.f32 %v17233_v11, %v4280_v31  ;;  %4363 = vadd.xlane.f32.xlu1 %v4362_v43 }
 0x6f1   : > { %v4333_v39 = vmul.f32 1.442695, %v4308_v1 }
 0x6f2   : > { %v17313_v23 = vpop.xlane.xlu1 %4390 }
 0x6f3   : > { %15259 = vpow2.f32 %v4333_v39 }
 0x6f4   : > { %15261 = vrcp.f32 %v4379_v59 }
 0x6f5   : > { %v17309_v53 = vpop.eup %15257 }
 0x6f6   : > { %v4368_v30 = vsel %vm2314_vm3, %v17309_v53, 0.0  ;;  %v4286_v12 = vpop.xlane.xlu1 %4285 }
 0x6f7   : > { %4369 = vadd.xlane.f32.xlu0 %v4368_v30  ;;  %v4310_v13 = vsub.f32 %v17242_v22, %v4286_v12 }
 0x6fd   : > { %v17315_v52 = vpop.eup %15259 }
 0x6fe   : > { %v4374_v16 = vsel %vm2314_vm3, %v17315_v52, 0.0  ;;  %v4292_v11 = vpop.xlane.xlu1 %4291  ;;  %v15262_v49 = vpop.eup %15261 }
 0x6ff   : > { %4375 = vadd.xlane.f32.xlu0 %v4374_v16  ;;  %v4421_v28 = vmul.f32 %v15262_v49, %v17216_v46  ;;  %v4312_v46 = vsub.f32 %v17247_v47, %v4292_v11  ;;  %v4891_v11 = vsel %vm2510_vm2, %v17258_v8, 0 }
 0x700   : > { %4983 = vrot.lane.b32.xlu1 %v16946_v14, %s20564_s24  ;;  %v4337_v14 = vmul.f32 1.442695, %v4310_v13 }
 0x701   : > { %v4437_v51 = vpack.c.bf16 %v4421_v28, %v4421_v28  ;;  %v4341_v9 = vmul.f32 1.442695, %v4312_v46 }
 0x702   : > { %15263 = vpow2.f32 %v4337_v14 }
 0x703   : > { %15265 = vpow2.f32 %v4341_v9 }
 0x706   : > { %v4298_v2 = vpop.xlane.xlu1 %4297 }
 0x707   : > { %v4314_v45 = vsub.f32 %v17252_v15, %v4298_v2 }
 0x709   : > { %v4345_v63 = vmul.f32 1.442695, %v4314_v45 }
 0x70a   : > { %v4935_v38 = vpop.permute.xlu1 %4934 }
 0x70b   : > { %v4940_v35 = vsel %vm2510_vm2, %v4935_v38, 0  ;;  %15267 = vpow2.f32 %v4345_v63 }
 0x70c   : > { %14235 = vmatpush3.bf16.msra.mxu1 %v4940_v35  ;;  %v17331_v21 = vpop.eup %15263 }
 0x70d   : > { %14246 = vmatprep.subr.bf16.mxu1 %v20668_v19  ;;  %v4380_v22 = vsel %vm2314_vm3, %v17331_v21, 0.0  ;;  %v17336_v17 = vpop.eup %15265 }
 0x70f   : > { %14237 = vmatmul.mubr.msk.bf16.vlgmr.msra.gmra.mrb[144].mxu1 %vm2314_vm3, %v4437_v51 }
 0x710   : > { %14248 = vmatprep.mubr.msk.bf16.mxu1 %vm15738_vm0, %v20668_v19 }
 0x715   : > { %5032 = vrot.lane.b32.xlu0 %v16950_v60, %s20564_s24  ;;  %v4386_v60 = vsel %vm2314_vm3, %v17336_v17, 0.0  ;;  %v17340_v3 = vpop.eup %15267 }
 0x716   : > { %v4392_v47 = vsel %vm2314_vm3, %v17340_v3, 0.0 }
 0x724   : > { %4381 = vadd.xlane.f32.xlu1 %v4380_v22 }
 0x734   : > { %4387 = vadd.xlane.f32.xlu0 %v4386_v60 }
 0x735   : > { %5081 = vrot.lane.b32.xlu1 %v16972_v25, %s20564_s24 }
 0x738   : > { %4393 = vadd.xlane.f32.xlu0 %v4392_v47 }
 0x739   : > { %5179 = vrot.lane.b32.xlu1 %v16992_v36, %s20564_s24 }
 0x74e   : > { %5130 = vrot.lane.b32.xlu0 %v16968_v27, %s20564_s24 }
 0x77c   : > { %v4364_v15 = vpop.xlane.xlu1 %4363 }
 0x77d   : > { %15269 = vrcp.f32 %v4364_v15 }
 0x77e   : > { %15271 = vrcp.f32 %v4385_v24 }
 0x780   : > { %v4984_v28 = vpop.permute.xlu1 %4983 }
 0x781   : > { %v4989_v51 = vsel %vm2510_vm2, %v4984_v28, 0  ;;  %v15001_v28 = vld [vmem:[%s20493_s6 + $0x20] sm:$0xff]  }
 0x784   : > { %v4370_v10 = vpop.xlane.xlu0 %4369 }
 0x785   : > { %15273 = vrcp.f32 %v4370_v10 }
 0x787   : > { %v15270_v5 = vpop.eup %15269 }
 0x788   : > { %v4416_v42 = vmul.f32 %v15270_v5, %v15256_v37  ;;  %v15272_v50 = vpop.eup %15271 }
 0x789   : > { %v4423_v37 = vmul.f32 %v15272_v50, %v17228_v32 }
 0x78a   : > { %v17350_v57 = vpop.f32.mrb[124].mxu1  ;;  %v4432_v25 = vpack.c.bf16 %v4416_v42, %v4416_v42 }
 0x78b   : > { %v14178_v55 = vpop.f32.mrb[125].mxu1  ;;  %v4439_v16 = vpack.c.bf16 %v4423_v37, %v4423_v37 }
 0x78c   : > { %v4489_v31 = vpop.f32.mrb[126].mxu1  ;;  %v4376_v36 = vpop.xlane.xlu0 %4375  ;;  %14207 = vmatmul.mubr.msk.bf16.vlgmr.msra.gmra.mrb[140].mxu0 %vm2314_vm3, %v4432_v25 }
 0x78d   : > { %v14179_v27 = vpop.f32.mrb[127].mxu1  ;;  %15275 = vrcp.f32 %v4376_v36  ;;  %14217 = vmatpush3.bf16.msra.mxu0 %v4793_v61  ;;  %14218 = vmatprep.mubr.msk.bf16.mxu0 %vm15738_vm0, %v20668_v19 }
 0x78e   : > { %14228 = vmatprep.subr.bf16.mxu0 %v20668_v19 }
 0x78f   : > { %v15274_v24 = vpop.eup %15273 }
 0x790   : > { %v5033_v43 = vpop.permute.xlu0 %5032  ;;  %v4418_v1 = vmul.f32 %v15274_v24, %v17309_v53 }
 0x791   : > { %v5038_v48 = vsel %vm2510_vm2, %v5033_v43, 0 }
 0x792   : > { %v17361_v39 = vpop.f32.mrb[132].mxu0  ;;  %14247 = vmatpush3.bf16.msra.mxu1 %v5038_v48  ;;  %v4434_v30 = vpack.c.bf16 %v4418_v1, %v4418_v1 }
 0x793   : > { %v5227_v59 = vpack.c.bf16 %v17361_v39, %v17350_v57  ;;  %v14184_v12 = vpop.f32.mrb[133].mxu0  ;;  %14258 = vmatprep.subr.bf16.mxu1 %v20668_v19 }
 0x794   : > { %v4538_v32 = vpop.f32.mrb[134].mxu0  ;;  %14219 = vmatmul.mubr.msk.bf16.vlgmr.msra.gmra.mrb[144].mxu0 %vm2314_vm3, %v4434_v30 }
 0x795   : > { %v14185_v53 = vpop.f32.mrb[135].mxu0  ;;  %14229 = vmatpush3.bf16.msra.mxu0 %v4891_v11  ;;  %14249 = vmatmul.mubr.msk.bf16.vlgmr.msra.gmra.mrb[148].mxu1 %vm2314_vm3, %v4439_v16 }
 0x796   : > { %14230 = vmatprep.mubr.msk.bf16.mxu0 %vm15738_vm0, %v20668_v19  ;;  %14240 = vmatprep.subr.bf16.mxu0 %v20668_v19 }
 0x797   : > { %v15276_v49 = vpop.eup %15275  ;;  %14260 = vmatprep.mubr.msk.bf16.mxu1 %vm15738_vm0, %v20668_v19 }
 0x798   : > { %v4420_v2 = vmul.f32 %v15276_v49, %v17315_v52 }
 0x79a   : > { %v17376_v8 = vpop.f32.mrb[128].mxu1  ;;  %v4436_v38 = vpack.c.bf16 %v4420_v2, %v4420_v2 }
 0x79b   : > { %v14190_v35 = vpop.f32.mrb[129].mxu1 }
 0x79c   : > { %v4587_v13 = vpop.f32.mrb[130].mxu1  ;;  %14231 = vmatmul.mubr.msk.bf16.vlgmr.msra.gmra.mrb[148].mxu0 %vm2314_vm3, %v4436_v38 }
 0x79d   : > { %v14191_v14 = vpop.f32.mrb[131].mxu1  ;;  %14241 = vmatpush3.bf16.msra.mxu0 %v4989_v51  ;;  %14242 = vmatprep.mubr.msk.bf16.mxu0 %vm15738_vm0, %v20668_v19  ;;  %v15002_v51 = vld [vmem:[%s20493_s6 + $0x28] sm:$0xff]   ;;  %v15003_v13 = vld [vmem:[%s20493_s6 + $0x30] sm:$0xff]  }
 0x79e   : > { %14252 = vmatprep.subr.bf16.mxu0 %v20668_v19 }
 0x7a2   : > { %v17383_v46 = vpop.f32.mrb[136].mxu0 }
 0x7a3   : > { %v5228_v52 = vpack.c.bf16 %v17383_v46, %v17376_v8  ;;  %v14196_v9 = vpop.f32.mrb[137].mxu0 }
 0x7a4   : > { %v4636_v45 = vpop.f32.mrb[138].mxu0 }
 0x7a5   : > { %v14197_v22 = vpop.f32.mrb[139].mxu0 }
 0x7aa   : > { %v17387_v63 = vpop.f32.mrb[132].mxu1 }
 0x7ab   : > { %v14202_v60 = vpop.f32.mrb[133].mxu1 }
 0x7ac   : > { %v4685_v47 = vpop.f32.mrb[134].mxu1 }
 0x7ad   : > { %v14203_v15 = vpop.f32.mrb[135].mxu1 }
 0x7b1   : > { %v4382_v10 = vpop.xlane.xlu1 %4381 }
 0x7b2   : > { %v17389_v5 = vpop.f32.mrb[136].mxu1  ;;  %15277 = vrcp.f32 %v4382_v10 }
 0x7b3   : > { %v14214_v42 = vpop.f32.mrb[137].mxu1  ;;  %15279 = vrcp.f32 %v17313_v23 }
 0x7b4   : > { %v4783_v25 = vpop.f32.mrb[138].mxu1 }
 0x7b5   : > { %v14215_v55 = vpop.f32.mrb[139].mxu1  ;;  %v5082_v37 = vpop.permute.xlu1 %5081 }
 0x7b6   : > { %v5087_v1 = vsel %vm2510_vm2, %v5082_v37, 0 }
 0x7b9   : > { %v5180_v49 = vpop.permute.xlu1 %5179 }
 0x7ba   : > { %v17391_v50 = vpop.f32.mrb[140].mxu1  ;;  %v5185_v35 = vsel %vm2510_vm2, %v5180_v49, 0 }
 0x7bb   : > { %v14226_v61 = vpop.f32.mrb[141].mxu1 }
 0x7bc   : > { %v15278_v31 = vpop.eup %15277  ;;  %v4881_v36 = vpop.f32.mrb[142].mxu1 }
 0x7bd   : > { %v14227_v27 = vpop.f32.mrb[143].mxu1  ;;  %v4422_v24 = vmul.f32 %v15278_v31, %v17331_v21  ;;  %v15280_v23 = vpop.eup %15279 }
 0x7be   : > { %v4425_v12 = vmul.f32 %v15280_v23, %v17237_v62 }
 0x7bf   : > { %v4438_v43 = vpack.c.bf16 %v4422_v24, %v4422_v24 }
 0x7c0   : > { %v4441_v32 = vpack.c.bf16 %v4425_v12, %v4425_v12 }
 0x7c1   : > { %v4388_v48 = vpop.xlane.xlu0 %4387  ;;  %14243 = vmatmul.mubr.msk.bf16.vlgmr.msra.gmra.mrb[152].mxu0 %vm2314_vm3, %v4438_v43 }
 0x7c2   : > { %15281 = vrcp.f32 %v4388_v48  ;;  %14253 = vmatpush3.bf16.msra.mxu0 %v5087_v1  ;;  %14254 = vmatprep.mubr.msk.bf16.mxu0 %vm15738_vm0, %v20668_v19 }
 0x7c3   : > { %14264 = vmatprep.subr.bf16.mxu0 %v20668_v19 }
 0x7c5   : > { %v4394_v30 = vpop.xlane.xlu0 %4393 }
 0x7c6   : > { %15283 = vrcp.f32 %v4394_v30 }
 0x7c9   : > { %v5131_v21 = vpop.permute.xlu0 %5130 }
 0x7ca   : > { %v5136_v16 = vsel %vm2510_vm2, %v5131_v21, 0 }
 0x7cb   : > { %14259 = vmatpush3.bf16.msra.mxu1 %v5136_v16 }
 0x7cc   : > { %v15282_v11 = vpop.eup %15281 }
 0x7cd   : > { %v4424_v53 = vmul.f32 %v15282_v11, %v17336_v17 }
 0x7ce   : > { %14261 = vmatmul.mubr.msk.bf16.vlgmr.msra.gmra.mrb[152].mxu1 %vm2314_vm3, %v4441_v32 }
 0x7cf   : > { %v4440_v2 = vpack.c.bf16 %v4424_v53, %v4424_v53 }
 0x7d0   : > { %v15284_v38 = vpop.eup %15283 }
 0x7d1   : > { %14255 = vmatmul.mubr.msk.bf16.vlgmr.msra.gmra.mrb[156].mxu0 %vm2314_vm3, %v4440_v2  ;;  %v4426_v62 = vmul.f32 %v15284_v38, %v17340_v3  ;;  %v15004_v3 = vld [vmem:[%s20493_s6 + $0x38] sm:$0xff]  }
 0x7d2   : > { %14265 = vmatpush3.bf16.msra.mxu0 %v5185_v35  ;;  %14266 = vmatprep.mubr.msk.bf16.mxu0 %vm15738_vm0, %v20668_v19 }
 0x7d3   : > { %14270 = vmatprep.subr.bf16.mxu0 %v15001_v28  ;;  %v4442_v17 = vpack.c.bf16 %v4426_v62, %v4426_v62  ;;  %v12797_v62 = vld [vmem:[%s20494_s7] ss:$0 sm:$0xff] }
 0x7d9   : > { %14267 = vmatmul.mubr.msk.bf16.vlgmr.msra.gmra.mrb[160].mxu0 %vm2314_vm3, %v4442_v17 }
 0x7da   : > { %14271 = vmatpush3.bf16.msra.mxu0 %v15001_v28  ;;  %14278 = vmatprep.mubr.msk.bf16.mxu0 %vm1577_vm1, %v5227_v59 }
 0x7db   : > { %14272 = vmatprep.subr.bf16.mxu0 %v15002_v51 }
 0x7de   : > { %14273 = vmatpush3.bf16.msra.mxu0 %v15002_v51 }
 0x7df   : > { %14274 = vmatprep.subr.bf16.mxu0 %v15003_v13 }
 0x7e2   : > { %14275 = vmatpush3.bf16.msra.mxu0 %v15003_v13  ;;  %v4976_v14 = vpop.f32.mrb[144].mxu1 }
 0x7e3   : > { %v14238_v9 = vpop.f32.mrb[145].mxu1  ;;  %14276 = vmatprep.subr.bf16.mxu0 %v15004_v3 }
 0x7e4   : > { %v4979_v45 = vpop.f32.mrb[146].mxu1 }
 0x7e5   : > { %v14239_v22 = vpop.f32.mrb[147].mxu1  ;;  %v20693_v45 = vld [vmem:[#allocation8_spill] sm:$0xff] }
 0x7e6   : > { %14277 = vmatpush3.bf16.msra.mxu0 %v15004_v3 }
 0x7e9   : > { %14279 = vmatmul.mubr.msk.bf16.vlgmr.msra.gmra.mrb[92].mxu0 %vm1577_vm1, %v5228_v52 }
 0x85f   : > { %v4731_v57 = vpop.f32.mrb[140].mxu0 }
 0x860   : > { %v5229_v39 = vpack.c.bf16 %v4731_v57, %v17387_v63  ;;  %v14208_v59 = vpop.f32.mrb[141].mxu0 }
 0x861   : > { %v4734_v60 = vpop.f32.mrb[142].mxu0 }
 0x862   : > { %v14209_v47 = vpop.f32.mrb[143].mxu0  ;;  %14282 = vmatprep.mubr.msk.bf16.mxu0 %vm1577_vm1, %v5229_v39  ;;  %v20694_v39 = vld [vmem:[#allocation9_spill] sm:$0xff]  ;;  %v20695_v60 = vld [vmem:[#allocation10_spill] sm:$0xff] }
 0x867   : > { %v4829_v15 = vpop.f32.mrb[144].mxu0 }
 0x868   : > { %v5230_v10 = vpack.c.bf16 %v4829_v15, %v17389_v5  ;;  %v14220_v42 = vpop.f32.mrb[145].mxu0  ;;  %v5074_v25 = vpop.f32.mrb[148].mxu1 }
 0x869   : > { %v4832_v55 = vpop.f32.mrb[146].mxu0  ;;  %v14250_v61 = vpop.f32.mrb[149].mxu1 }
 0x86a   : > { %v14221_v31 = vpop.f32.mrb[147].mxu0  ;;  %v5077_v36 = vpop.f32.mrb[150].mxu1  ;;  %14283 = vmatmul.mubr.msk.bf16.gmra.mrb[96].mxu0 %vm1577_vm1, %v5230_v10  ;;  %v20696_v10 = vld [vmem:[#allocation11_spill] sm:$0xff] }
 0x86b   : > { %v14251_v8 = vpop.f32.mrb[151].mxu1 }
 0x86f   : > { %v4927_v46 = vpop.f32.mrb[148].mxu0 }
 0x870   : > { %v5231_v52 = vpack.c.bf16 %v4927_v46, %v17391_v50  ;;  %v14232_v63 = vpop.f32.mrb[149].mxu0  ;;  %v20697_v46 = vld [vmem:[#allocation12_spill] sm:$0xff] }
 0x871   : > { %v4930_v27 = vpop.f32.mrb[150].mxu0 }
 0x872   : > { %v14233_v24 = vpop.f32.mrb[151].mxu0  ;;  %14286 = vmatprep.mubr.msk.bf16.mxu0 %vm1577_vm1, %v5231_v52 }
 0x873   : > { %v20698_v24 = vld [vmem:[#allocation13_spill] sm:$0xff] }
 0x894   : > { %v5025_v37 = vpop.f32.mrb[152].mxu0 }
 0x895   : > { %v5232_v43 = vpack.c.bf16 %v5025_v37, %v4976_v14  ;;  %v14244_v5 = vpop.f32.mrb[153].mxu0 }
 0x896   : > { %v5028_v1 = vpop.f32.mrb[154].mxu0 }
 0x897   : > { %v14245_v48 = vpop.f32.mrb[155].mxu0  ;;  %14287 = vmatmul.mubr.msk.bf16.gmra.mrb[100].mxu0 %vm1577_vm1, %v5232_v43  ;;  %v20699_v43 = vld [vmem:[#allocation14_spill] sm:$0xff]  ;;  %v20700_v1 = vld [vmem:[#allocation15_spill] sm:$0xff] }
 0x8a1   : > { %v5172_v23 = vpop.f32.mrb[152].mxu1 }
 0x8a2   : > { %v14262_v30 = vpop.f32.mrb[153].mxu1 }
 0x8a3   : > { %v5175_v12 = vpop.f32.mrb[154].mxu1 }
 0x8a4   : > { %v5123_v21 = vpop.f32.mrb[156].mxu0  ;;  %v14263_v16 = vpop.f32.mrb[155].mxu1 }
 0x8a5   : > { %v5233_v11 = vpack.c.bf16 %v5123_v21, %v5074_v25  ;;  %v14256_v32 = vpop.f32.mrb[157].mxu0 }
 0x8a6   : > { %v5126_v50 = vpop.f32.mrb[158].mxu0  ;;  %v20701_v32 = vld [vmem:[#allocation16_spill] sm:$0xff] }
 0x8a7   : > { %v14257_v53 = vpop.f32.mrb[159].mxu0  ;;  %14290 = vmatprep.mubr.msk.bf16.mxu0 %vm1577_vm1, %v5233_v11 }
 0x8ac   : > { %v5221_v49 = vpop.f32.mrb[160].mxu0 }
 0x8ad   : > { %v5234_v2 = vpack.c.bf16 %v5221_v49, %v5172_v23  ;;  %v14268_v28 = vpop.f32.mrb[161].mxu0 }
 0x8ae   : > { %v5224_v38 = vpop.f32.mrb[162].mxu0 }
 0x8af   : > { %v14269_v35 = vpop.f32.mrb[163].mxu0  ;;  %14291 = vmatmul.mubr.msk.bf16.gmra.mrb[104].mxu0 %vm1577_vm1, %v5234_v2  ;;  %v20702_v2 = vld [vmem:[#allocation17_spill] sm:$0xff]  ;;  %v20703_v38 = vld [vmem:[#allocation18_spill] sm:$0xff] }
 0x8bc   : > { %v14280_v17 = vpop.f32.mrb[92].mxu0 }
 0x8bd   : > { %v5317_v51 = vpop.f32.mrb[93].mxu0  ;;  %v14862_v9 = vadd.f32 %v14280_v17, %v12797_v62  ;;  %v20704_v17 = vld [vmem:[#allocation19_spill] sm:$0xff] }
 0x8be   : > { %v14863_v13 = vadd.f32 %v12797_v62, %v5317_v51  ;;  %v14281_v3 = vpop.f32.mrb[94].mxu0 }
 0x8bf   : > { %v5320_v14 = vpop.f32.mrb[95].mxu0  ;;  %v17445_v47 = vadd.f32 %v14862_v9, %v20695_v60  ;;  %v14864_v15 = vadd.f32 %v14281_v3, %v12797_v62 }
 0x8c0   : > { %v5396_v22 = vadd.f32 %v14863_v13, %v20693_v45  ;;  %v14865_v57 = vadd.f32 %v12797_v62, %v5320_v14 }
 0x8c1   : > { %v5399_v42 = vadd.f32 %v14864_v15, %v20696_v10 }
 0x8c2   : > { %v5397_v59 = vadd.f32 %v14865_v57, %v20694_v39  ;;  %5414 = vadd.xlane.f32.xlu0 %v5396_v22 }
 0x8c4   : > { %5416 = vadd.xlane.f32.xlu1 %v5397_v59 }
 0x8c6   : > { %5418 = vadd.xlane.f32.xlu0 %v17445_v47 }
 0x8ca   : > { %5420 = vadd.xlane.f32.xlu0 %v5399_v42 }
 0x93d   : > { %v14284_v25 = vpop.f32.mrb[96].mxu0 }
 0x93e   : > { %v5333_v55 = vpop.f32.mrb[97].mxu0  ;;  %v14866_v8 = vadd.f32 %v14284_v25, %v12797_v62  ;;  %v20705_v25 = vld [vmem:[#allocation20_spill] sm:$0xff] }
 0x93f   : > { %v14867_v61 = vadd.f32 %v12797_v62, %v5333_v55  ;;  %v14285_v31 = vpop.f32.mrb[98].mxu0 }
 0x940   : > { %v5336_v36 = vpop.f32.mrb[99].mxu0  ;;  %v14868_v27 = vadd.f32 %v14285_v31, %v12797_v62  ;;  %v17457_v5 = vadd.f32 %v14866_v8, %v20699_v43  ;;  %v20706_v8 = vld [vmem:[#allocation21_spill] sm:$0xff]  ;;  %v20707_v43 = vld [vmem:[#allocation22_spill] sm:$0xff] }
 0x941   : > { %v17450_v52 = vadd.f32 %v14867_v61, %v20697_v46  ;;  %v14869_v63 = vadd.f32 %v12797_v62, %v5336_v36 }
 0x942   : > { %v17461_v48 = vadd.f32 %v14868_v27, %v20700_v1 }
 0x943   : > { %v17453_v37 = vadd.f32 %v14869_v63, %v20698_v24  ;;  %5422 = vadd.xlane.f32.xlu0 %v17450_v52 }
 0x945   : > { %5424 = vadd.xlane.f32.xlu1 %v17453_v37 }
 0x947   : > { %5426 = vadd.xlane.f32.xlu0 %v17457_v5 }
 0x949   : > { %5428 = vadd.xlane.f32.xlu1 %v17461_v48 }
 0x94f   : > { %v5415_v13 = vpop.xlane.xlu0 %5414 }
 0x950   : > { %v5446_v15 = vmul.f32 0.0078125, %v5415_v13  ;;  %v15014_v13 = vld [vmem:[%s20497_s10 + $0x30] ss:$8 sps:$4 sm:$0xff]  }
 0x951   : > { %v5417_v39 = vpop.xlane.xlu1 %5416 }
 0x952   : > { %v5447_v31 = vmul.f32 0.0078125, %v5417_v39  ;;  %v17488_v27 = vsub.f32 %v5396_v22, %v5446_v15  ;;  %v20567_v39 = vmov 0   ;;  %v15028_v15 = vld [vmem:[%s20497_s10 + $0x74] ss:$8 sps:$4 sm:$0xff]  }
 0x953   : > { %v5419_v14 = vpop.xlane.xlu0 %5418  ;;  %5782 = vmatprep.mubr.bf16.mxu1 %v20567_v39 }
 0x954   : > { %v5448_v24 = vmul.f32 0.0078125, %v5419_v14  ;;  %v5478_v22 = vmul.f32 %v17488_v27, %v17488_v27  ;;  %v15017_v14 = vld [vmem:[%s20497_s10 + $0x40] ss:$8 sps:$4 sm:$0xff]  }
 0x957   : > { %v5421_v63 = vpop.xlane.xlu0 %5420 }
 0x96a   : > { %v14288_v23 = vpop.f32.mrb[100].mxu0 }
 0x96b   : > { %v5349_v30 = vpop.f32.mrb[101].mxu0  ;;  %v14870_v11 = vadd.f32 %v14288_v23, %v12797_v62  ;;  %v17494_v23 = vsub.f32 %v5397_v59, %v5447_v31 }
 0x96c   : > { %v14871_v12 = vadd.f32 %v12797_v62, %v5349_v30  ;;  %v14289_v21 = vpop.f32.mrb[102].mxu0  ;;  %v5449_v30 = vmul.f32 0.0078125, %v5421_v63 }
 0x96d   : > { %v5352_v16 = vpop.f32.mrb[103].mxu0  ;;  %v14872_v49 = vadd.f32 %v14289_v21, %v12797_v62  ;;  %v17473_v35 = vadd.f32 %v14870_v11, %v20703_v38  ;;  %v5479_v59 = vmul.f32 %v17494_v23, %v17494_v23  ;;  %v15011_v38 = vld [vmem:[%s20497_s10 + $0x20] ss:$8 sps:$4 sm:$0xff]  }
 0x96e   : > { %v17466_v50 = vadd.f32 %v14871_v12, %v20701_v32  ;;  %v14873_v53 = vadd.f32 %v12797_v62, %v5352_v16  ;;  %v20708_v12 = vld [vmem:[#allocation23_spill] sm:$0xff]  ;;  %v17506_v16 = vsub.f32 %v5399_v42, %v5449_v30  ;;  %v15007_v32 = vld [vmem:[%s20497_s10 + $0x4] ss:$8 sps:$4 sm:$0xff]   ;;  %v15005_v42 = vld [vmem:[%s20497_s10] ss:$8 sps:$4 sm:$0xff]  }
 0x96f   : > { %v17477_v51 = vadd.f32 %v14872_v49, %v20704_v17  ;;  %5750 = vmatprep.subr.bf16.mxu1 %v15007_v32  ;;  %v15008_v49 = vld [vmem:[%s20497_s10 + $0x10] ss:$8 sps:$4 sm:$0xff]   ;;  %v15016_v17 = vld [vmem:[%s20497_s10 + $0x34] ss:$8 sps:$4 sm:$0xff]  }
 0x970   : > { %v17469_v28 = vadd.f32 %v14873_v53, %v20702_v2  ;;  %5430 = vadd.xlane.f32.xlu0 %v17466_v50  ;;  %5751 = vmatpush1.bf16.msra.mxu1 %v15005_v42  ;;  %v15010_v53 = vld [vmem:[%s20497_s10 + $0x14] ss:$8 sps:$4 sm:$0xff]   ;;  %v15013_v2 = vld [vmem:[%s20497_s10 + $0x24] ss:$8 sps:$4 sm:$0xff]  }
 0x971   : > { %5752 = vmatprep.subr.bf16.mxu1 %v15010_v53 }
 0x972   : > { %5432 = vadd.xlane.f32.xlu1 %v17469_v28 }
 0x974   : > { %5434 = vadd.xlane.f32.xlu0 %v17473_v35  ;;  %5753 = vmatpush1.bf16.msra.mxu1 %v15008_v49 }
 0x975   : > { %5754 = vmatprep.subr.bf16.mxu1 %v15013_v2 }
 0x976   : > { %5436 = vadd.xlane.f32.xlu1 %v17477_v51 }
 0x978   : > { %5755 = vmatpush1.bf16.msra.mxu1 %v15011_v38 }
 0x979   : > { %5756 = vmatprep.subr.bf16.mxu1 %v15016_v17 }
 0x97c   : > { %5757 = vmatpush1.bf16.msra.mxu1 %v15014_v13 }
 0x982   : > { %v14292_v3 = vpop.f32.mrb[104].mxu0 }
 0x983   : > { %v5365_v9 = vpop.f32.mrb[105].mxu0  ;;  %v14874_v10 = vadd.f32 %v14292_v3, %v12797_v62  ;;  %v15019_v3 = vld [vmem:[%s20497_s10 + $0x44] ss:$8 sps:$4 sm:$0xff]  }
 0x984   : > { %v14875_v45 = vadd.f32 %v12797_v62, %v5365_v9  ;;  %v14293_v57 = vpop.f32.mrb[106].mxu0  ;;  %v15022_v9 = vld [vmem:[%s20497_s10 + $0x54] ss:$8 sps:$4 sm:$0xff]   ;;  %5758 = vmatprep.subr.bf16.mxu1 %v15019_v3 }
 0x985   : > { %v5368_v60 = vpop.f32.mrb[107].mxu0  ;;  %v14876_v36 = vadd.f32 %v14293_v57, %v12797_v62  ;;  %v17491_v1 = vadd.f32 %v14874_v10, %v20707_v43  ;;  %5759 = vmatpush1.bf16.msra.mxu1 %v15017_v14  ;;  %v15025_v57 = vld [vmem:[%s20497_s10 + $0x64] ss:$8 sps:$4 sm:$0xff]   ;;  %v15026_v10 = vld [vmem:[%s20497_s10 + $0x70] ss:$8 sps:$4 sm:$0xff]  }
 0x986   : > { %v17482_v55 = vadd.f32 %v14875_v45, %v20705_v25  ;;  %v14877_v61 = vadd.f32 %v12797_v62, %v5368_v60  ;;  %v17501_v62 = vsub.f32 %v17445_v47, %v5448_v24  ;;  %v5481_v47 = vmul.f32 %v17506_v16, %v17506_v16  ;;  %v15020_v45 = vld [vmem:[%s20497_s10 + $0x50] ss:$8 sps:$4 sm:$0xff]   ;;  %5760 = vmatprep.subr.bf16.mxu1 %v15022_v9  ;;  %v15023_v60 = vld [vmem:[%s20497_s10 + $0x60] ss:$8 sps:$4 sm:$0xff]  }
 0x987   : > { %v17497_v21 = vadd.f32 %v14876_v36, %v20708_v12 }
 0x988   : > { %v17485_v46 = vadd.f32 %v14877_v61, %v20706_v8  ;;  %5438 = vadd.xlane.f32.xlu0 %v17482_v55  ;;  %v5480_v11 = vmul.f32 %v17501_v62, %v17501_v62 }
 0x989   : > { %5761 = vmatpush1.bf16.msra.mxu1 %v15020_v45 }
 0x98a   : > { %5440 = vadd.xlane.f32.xlu1 %v17485_v46  ;;  %5762 = vmatprep.subr.bf16.mxu1 %v15025_v57 }
 0x98c   : > { %5442 = vadd.xlane.f32.xlu0 %v17491_v1 }
 0x98d   : > { %5763 = vmatpush1.bf16.msra.mxu1 %v15023_v60 }
 0x98e   : > { %5444 = vadd.xlane.f32.xlu1 %v17497_v21  ;;  %5764 = vmatprep.subr.bf16.mxu1 %v15028_v15 }
 0x990   : > { %5494 = vadd.xlane.f32.xlu0 %v5478_v22 }
 0x991   : > { %5765 = vmatpush1.bf16.msra.mxu1 %v15026_v10 }
 0x992   : > { %5496 = vadd.xlane.f32.xlu1 %v5479_v59 }
 0x994   : > { %5498 = vadd.xlane.f32.xlu0 %v5480_v11 }
 0x996   : > { %5500 = vadd.xlane.f32.xlu1 %v5481_v47 }
 0x9d0   : > { %v5423_v25 = vpop.xlane.xlu0 %5422 }
 0x9d1   : > { %v5450_v61 = vmul.f32 0.0078125, %v5423_v25 }
 0x9d2   : > { %v5425_v31 = vpop.xlane.xlu1 %5424 }
 0x9d3   : > { %v17564_v36 = vsub.f32 %v17450_v52, %v5450_v61  ;;  %v5451_v8 = vmul.f32 0.0078125, %v5425_v31 }
 0x9d4   : > { %v5427_v63 = vpop.xlane.xlu0 %5426 }
 0x9d5   : > { %v17567_v24 = vsub.f32 %v17453_v37, %v5451_v8  ;;  %v5452_v43 = vmul.f32 0.0078125, %v5427_v63  ;;  %v5482_v30 = vmul.f32 %v17564_v36, %v17564_v36 }
 0x9d6   : > { %v5429_v12 = vpop.xlane.xlu1 %5428 }
 0x9d7   : > { %v17572_v22 = vsub.f32 %v17457_v5, %v5452_v43  ;;  %v5453_v59 = vmul.f32 0.0078125, %v5429_v12  ;;  %5502 = vadd.xlane.f32.xlu0 %v5482_v30  ;;  %v5483_v11 = vmul.f32 %v17567_v24, %v17567_v24 }
 0x9d9   : > { %v17577_v52 = vsub.f32 %v17461_v48, %v5453_v59  ;;  %5504 = vadd.xlane.f32.xlu1 %v5483_v11  ;;  %v5484_v37 = vmul.f32 %v17572_v22, %v17572_v22 }
 0x9db   : > { %5506 = vadd.xlane.f32.xlu0 %v5484_v37  ;;  %v5485_v47 = vmul.f32 %v17577_v52, %v17577_v52 }
 0x9dd   : > { %5508 = vadd.xlane.f32.xlu1 %v5485_v47 }
 0x9fd   : > { %v5431_v32 = vpop.xlane.xlu0 %5430 }
 0x9fe   : > { %v5454_v5 = vmul.f32 0.0078125, %v5431_v32 }
 0x9ff   : > { %v5433_v42 = vpop.xlane.xlu1 %5432 }
 0xa00   : > { %v17584_v53 = vsub.f32 %v17466_v50, %v5454_v5  ;;  %v5455_v49 = vmul.f32 0.0078125, %v5433_v42 }
 0xa01   : > { %v5435_v2 = vpop.xlane.xlu0 %5434 }
 0xa02   : > { %v17587_v48 = vsub.f32 %v17469_v28, %v5455_v49  ;;  %v5456_v38 = vmul.f32 0.0078125, %v5435_v2  ;;  %v5486_v17 = vmul.f32 %v17584_v53, %v17584_v53 }
 0xa03   : > { %v5437_v13 = vpop.xlane.xlu1 %5436 }
 0xa04   : > { %v17592_v3 = vsub.f32 %v17473_v35, %v5456_v38  ;;  %v5457_v14 = vmul.f32 0.0078125, %v5437_v13  ;;  %5510 = vadd.xlane.f32.xlu0 %v5486_v17  ;;  %v5487_v9 = vmul.f32 %v17587_v48, %v17587_v48  ;;  %v17626_v13 = vld [vmem:[%s20495_s8] ss:$0 sm:$0xff] }
 0xa06   : > { %v17597_v50 = vsub.f32 %v17477_v51, %v5457_v14  ;;  %5512 = vadd.xlane.f32.xlu1 %v5487_v9  ;;  %v5488_v28 = vmul.f32 %v17592_v3, %v17592_v3 }
 0xa08   : > { %5514 = vadd.xlane.f32.xlu0 %v5488_v28  ;;  %v5489_v45 = vmul.f32 %v17597_v50, %v17597_v50 }
 0xa0a   : > { %5516 = vadd.xlane.f32.xlu1 %v5489_v45 }
 0xa15   : > { %v5439_v57 = vpop.xlane.xlu0 %5438 }
 0xa16   : > { %v5458_v35 = vmul.f32 0.0078125, %v5439_v57 }
 0xa17   : > { %v5441_v60 = vpop.xlane.xlu1 %5440 }
 0xa18   : > { %v17604_v15 = vsub.f32 %v17482_v55, %v5458_v35  ;;  %v5459_v10 = vmul.f32 0.0078125, %v5441_v60  ;;  %v17634_v35 = vld [vmem:[%s20496_s9] ss:$0 sm:$0xff] }
 0xa19   : > { %v5443_v25 = vpop.xlane.xlu0 %5442 }
 0xa1a   : > { %v17607_v51 = vsub.f32 %v17485_v46, %v5459_v10  ;;  %v5460_v61 = vmul.f32 0.0078125, %v5443_v25  ;;  %v5490_v31 = vmul.f32 %v17604_v15, %v17604_v15 }
 0xa1b   : > { %v5445_v8 = vpop.xlane.xlu1 %5444 }
 0xa1c   : > { %v17612_v63 = vsub.f32 %v17491_v1, %v5460_v61  ;;  %v5461_v43 = vmul.f32 0.0078125, %v5445_v8  ;;  %5518 = vadd.xlane.f32.xlu0 %v5490_v31  ;;  %v5491_v30 = vmul.f32 %v17607_v51, %v17607_v51 }
 0xa1d   : > { %v5495_v55 = vpop.xlane.xlu0 %5494 }
 0xa1e   : > { %v17617_v12 = vsub.f32 %v17497_v21, %v5461_v43  ;;  %v5526_v59 = vmul.f32 0.0078125, %v5495_v55  ;;  %5520 = vadd.xlane.f32.xlu1 %v5491_v30  ;;  %v5492_v46 = vmul.f32 %v17612_v63, %v17612_v63 }
 0xa1f   : > { %v5497_v11 = vpop.xlane.xlu1 %5496 }
 0xa20   : > { %v5542_v37 = vadd.f32 1e-12, %v5526_v59  ;;  %v5527_v47 = vmul.f32 0.0078125, %v5497_v11  ;;  %5522 = vadd.xlane.f32.xlu0 %v5492_v46  ;;  %v5493_v1 = vmul.f32 %v17617_v12, %v17617_v12 }
 0xa21   : > { %v5499_v32 = vpop.xlane.xlu0 %5498 }
 0xa22   : > { %15285 = vrsqrt.f32 %v5542_v37  ;;  %v5543_v5 = vadd.f32 1e-12, %v5527_v47  ;;  %v5528_v42 = vmul.f32 0.0078125, %v5499_v32  ;;  %5524 = vadd.xlane.f32.xlu1 %v5493_v1 }
 0xa23   : > { %v5501_v49 = vpop.xlane.xlu1 %5500 }
 0xa24   : > { %15287 = vrsqrt.f32 %v5543_v5  ;;  %v5544_v21 = vadd.f32 1e-12, %v5528_v42  ;;  %v5529_v2 = vmul.f32 0.0078125, %v5501_v49 }
 0xa26   : > { %15289 = vrsqrt.f32 %v5544_v21  ;;  %v5545_v38 = vadd.f32 1e-12, %v5529_v2 }
 0xa28   : > { %15291 = vrsqrt.f32 %v5545_v38 }
 0xa2c   : > { %v15286_v17 = vpop.eup %15285 }
 0xa2d   : > { %v5574_v14 = vmul.f32 %v15286_v17, %v17488_v27 }
 0xa2e   : > { %v15288_v9 = vpop.eup %15287 }
 0xa2f   : > { %v5575_v28 = vmul.f32 %v15288_v9, %v17494_v23  ;;  %v5596_v45 = vmul.f32 %v17626_v13, %v5574_v14 }
 0xa30   : > { %v15290_v57 = vpop.eup %15289 }
 0xa31   : > { %v5597_v60 = vmul.f32 %v17626_v13, %v5575_v28  ;;  %v17638_v25 = vadd.f32 %v17634_v35, %v5596_v45  ;;  %v5576_v27 = vmul.f32 %v15290_v57, %v17501_v62 }
 0xa32   : > { %v15292_v10 = vpop.eup %15291 }
 0xa33   : > { %v17641_v61 = vadd.f32 %v17634_v35, %v5597_v60  ;;  %v5577_v23 = vmul.f32 %v15292_v10, %v17506_v16  ;;  %v5598_v43 = vmul.f32 %v17626_v13, %v5576_v27 }
 0xa35   : > { %v5650_v31 = vpack.c.bf16 %v17641_v61, %v17638_v25  ;;  %v5599_v8 = vmul.f32 %v17626_v13, %v5577_v23  ;;  %v17654_v55 = vadd.f32 %v17634_v35, %v5598_v43 }
 0xa37   : > { %5783 = vmatmul.mubr.bf16.vlgmr.msra.gmra.mrb[156].mxu1 %v5650_v31  ;;  %v17651_v30 = vadd.f32 %v17634_v35, %v5599_v8 }
 0xa38   : > { %5792 = vmatprep.mubr.bf16.mxu1 %v20567_v39 }
 0xa39   : > { %v5651_v62 = vpack.c.bf16 %v17651_v30, %v17654_v55 }
 0xa3f   : > { %5793 = vmatmul.mubr.bf16.gmra.mrb[160].mxu1 %v5651_v62  ;;  %v15030_v62 = vld [vmem:[%s20499_s12] sm:$0xff]  }
 0xa40   : > { %5802 = vmatprep.mubr.bf16.mxu1 %v20567_v39 }
 0xa64   : > { %v5503_v16 = vpop.xlane.xlu0 %5502 }
 0xa65   : > { %v5530_v59 = vmul.f32 0.0078125, %v5503_v16 }
 0xa66   : > { %v5505_v46 = vpop.xlane.xlu1 %5504 }
 0xa67   : > { %v5546_v11 = vadd.f32 1e-12, %v5530_v59  ;;  %v5531_v37 = vmul.f32 0.0078125, %v5505_v46  ;;  %v15031_v46 = vld [vmem:[%s20499_s12 + $0x48] sm:$0xff]  }
 0xa68   : > { %v5507_v47 = vpop.xlane.xlu0 %5506 }
 0xa69   : > { %15293 = vrsqrt.f32 %v5546_v11  ;;  %v5547_v1 = vadd.f32 1e-12, %v5531_v37  ;;  %v5532_v32 = vmul.f32 0.0078125, %v5507_v47  ;;  %v15032_v37 = vld [vmem:[%s20499_s12 + $0x8] sm:$0xff]  }
 0xa6a   : > { %v5509_v5 = vpop.xlane.xlu1 %5508 }
 0xa6b   : > { %15295 = vrsqrt.f32 %v5547_v1  ;;  %v5548_v42 = vadd.f32 1e-12, %v5532_v32  ;;  %v5533_v49 = vmul.f32 0.0078125, %v5509_v5 }
 0xa6d   : > { %15297 = vrsqrt.f32 %v5548_v42  ;;  %v5549_v21 = vadd.f32 1e-12, %v5533_v49  ;;  %v15033_v49 = vld [vmem:[%s20499_s12 + $0x50] sm:$0xff]  }
 0xa6f   : > { %15299 = vrsqrt.f32 %v5549_v21 }
 0xa73   : > { %v15294_v2 = vpop.eup %15293 }
 0xa74   : > { %v5578_v38 = vmul.f32 %v15294_v2, %v17564_v36  ;;  %v15034_v2 = vld [vmem:[%s20499_s12 + $0x10] sm:$0xff]  }
 0xa75   : > { %v15296_v17 = vpop.eup %15295 }
 0xa76   : > { %v5579_v14 = vmul.f32 %v15296_v17, %v17567_v24  ;;  %v5600_v9 = vmul.f32 %v17626_v13, %v5578_v38 }
 0xa77   : > { %v15298_v28 = vpop.eup %15297 }
 0xa78   : > { %v5601_v45 = vmul.f32 %v17626_v13, %v5579_v14  ;;  %v17664_v60 = vadd.f32 %v17634_v35, %v5600_v9  ;;  %v5580_v27 = vmul.f32 %v15298_v28, %v17572_v22  ;;  %v15035_v9 = vld [vmem:[%s20499_s12 + $0x58] sm:$0xff]  }
 0xa79   : > { %v15300_v57 = vpop.eup %15299  ;;  %v15036_v28 = vld [vmem:[%s20499_s12 + $0x18] sm:$0xff]  }
 0xa7a   : > { %v17667_v10 = vadd.f32 %v17634_v35, %v5601_v45  ;;  %v5581_v23 = vmul.f32 %v15300_v57, %v17577_v52  ;;  %v5602_v31 = vmul.f32 %v17626_v13, %v5580_v27  ;;  %v15029_v52 = vld [vmem:[%s20499_s12 + $0x40] sm:$0xff]  }
 0xa7b   : > { %13420 = vmatprep.subr.bf16.mxu0 %v15029_v52  ;;  %v15037_v45 = vld [vmem:[%s20499_s12 + $0x60] sm:$0xff]   ;;  %v15040_v52 = vld [vmem:[%s20499_s12 + $0x28] sm:$0xff]  }
 0xa7c   : > { %v5652_v36 = vpack.c.bf16 %v17667_v10, %v17664_v60  ;;  %v5603_v24 = vmul.f32 %v17626_v13, %v5581_v23  ;;  %v17680_v43 = vadd.f32 %v17634_v35, %v5602_v31  ;;  %13421 = vmatpush3.bf16.msra.mxu0 %v15030_v62  ;;  %v15038_v57 = vld [vmem:[%s20499_s12 + $0x20] sm:$0xff]  }
 0xa7d   : > { %13422 = vmatprep.subr.bf16.mxu0 %v15031_v46 }
 0xa7e   : > { %5803 = vmatmul.mubr.bf16.gmra.mrb[164].mxu1 %v5652_v36  ;;  %v17677_v8 = vadd.f32 %v17634_v35, %v5603_v24  ;;  %v15039_v24 = vld [vmem:[%s20499_s12 + $0x68] sm:$0xff]  }
 0xa7f   : > { %5812 = vmatprep.mubr.bf16.mxu1 %v20567_v39 }
 0xa80   : > { %v5653_v22 = vpack.c.bf16 %v17677_v8, %v17680_v43  ;;  %13423 = vmatpush3.bf16.msra.mxu0 %v15032_v37 }
 0xa81   : > { %13424 = vmatprep.subr.bf16.mxu0 %v15033_v49  ;;  %v15043_v49 = vld [vmem:[%s20499_s12 + $0x78] sm:$0xff]  }
 0xa84   : > { %13425 = vmatpush3.bf16.msra.mxu0 %v15034_v2 }
 0xa85   : > { %13426 = vmatprep.subr.bf16.mxu0 %v15035_v9 }
 0xa86   : > { %5813 = vmatmul.mubr.bf16.gmra.mrb[168].mxu1 %v5653_v22 }
 0xa87   : > { %5822 = vmatprep.mubr.bf16.mxu1 %v20567_v39 }
 0xa88   : > { %13427 = vmatpush3.bf16.msra.mxu0 %v15036_v28 }
 0xa89   : > { %13428 = vmatprep.subr.bf16.mxu0 %v15037_v45 }
 0xa8c   : > { %13429 = vmatpush3.bf16.msra.mxu0 %v15038_v57 }
 0xa8d   : > { %13430 = vmatprep.subr.bf16.mxu0 %v15039_v24 }
 0xa90   : > { %13431 = vmatpush3.bf16.msra.mxu0 %v15040_v52 }
 0xa91   : > { %v5511_v16 = vpop.xlane.xlu0 %5510 }
 0xa92   : > { %v5534_v59 = vmul.f32 0.0078125, %v5511_v16 }
 0xa93   : > { %v5513_v11 = vpop.xlane.xlu1 %5512 }
 0xa94   : > { %v5550_v47 = vadd.f32 1e-12, %v5534_v59  ;;  %v5535_v1 = vmul.f32 0.0078125, %v5513_v11  ;;  %v15041_v59 = vld [vmem:[%s20499_s12 + $0x70] sm:$0xff]  }
 0xa95   : > { %v5515_v32 = vpop.xlane.xlu0 %5514  ;;  %13432 = vmatprep.subr.bf16.mxu0 %v15041_v59 }
 0xa96   : > { %15301 = vrsqrt.f32 %v5550_v47  ;;  %v5551_v5 = vadd.f32 1e-12, %v5535_v1  ;;  %v5536_v42 = vmul.f32 0.0078125, %v5515_v32  ;;  %v15042_v47 = vld [vmem:[%s20499_s12 + $0x30] sm:$0xff]  }
 0xa97   : > { %v5517_v21 = vpop.xlane.xlu1 %5516  ;;  %13433 = vmatpush3.bf16.msra.mxu0 %v15042_v47 }
 0xa98   : > { %15303 = vrsqrt.f32 %v5551_v5  ;;  %v5552_v38 = vadd.f32 1e-12, %v5536_v42  ;;  %v5537_v17 = vmul.f32 0.0078125, %v5517_v21  ;;  %13434 = vmatprep.subr.bf16.mxu0 %v15043_v49 }
 0xa9a   : > { %15305 = vrsqrt.f32 %v5552_v38  ;;  %v5553_v14 = vadd.f32 1e-12, %v5537_v17 }
 0xa9c   : > { %15307 = vrsqrt.f32 %v5553_v14 }
 0xaa0   : > { %v15302_v27 = vpop.eup %15301 }
 0xaa1   : > { %v5582_v23 = vmul.f32 %v15302_v27, %v17584_v53 }
 0xaa2   : > { %v15304_v36 = vpop.eup %15303 }
 0xaa3   : > { %v5583_v31 = vmul.f32 %v15304_v36, %v17587_v48  ;;  %v5604_v22 = vmul.f32 %v17626_v13, %v5582_v23 }
 0xaa4   : > { %v15306_v62 = vpop.eup %15305 }
 0xaa5   : > { %v5605_v16 = vmul.f32 %v17626_v13, %v5583_v31  ;;  %v17729_v46 = vadd.f32 %v17634_v35, %v5604_v22  ;;  %v5584_v11 = vmul.f32 %v15306_v62, %v17592_v3  ;;  %v15044_v3 = vld [vmem:[%s20499_s12 + $0x38] sm:$0xff]  }
 0xaa6   : > { %v15308_v53 = vpop.eup %15307  ;;  %13435 = vmatpush3.bf16.msra.mxu0 %v15044_v3  ;;  %v20709_v3 = vld [vmem:[#allocation37_spill] sm:$0xff] }
 0xaa7   : > { %v17732_v48 = vadd.f32 %v17634_v35, %v5605_v16  ;;  %v5585_v37 = vmul.f32 %v15308_v53, %v17597_v50  ;;  %v5606_v21 = vmul.f32 %v17626_v13, %v5584_v11 }
 0xaa9   : > { %v5519_v1 = vpop.xlane.xlu0 %5518  ;;  %v5654_v32 = vpack.c.bf16 %v17732_v48, %v17729_v46  ;;  %v5607_v5 = vmul.f32 %v17626_v13, %v5585_v37  ;;  %v17754_v57 = vadd.f32 %v17634_v35, %v5606_v21  ;;  %v20710_v21 = vld [vmem:[#allocation38_spill] sm:$0xff] }
 0xaaa   : > { %v5538_v42 = vmul.f32 0.0078125, %v5519_v1 }
 0xaab   : > { %5823 = vmatmul.mubr.bf16.gmra.mrb[172].mxu1 %v5654_v32  ;;  %v5521_v50 = vpop.xlane.xlu1 %5520  ;;  %v17751_v14 = vadd.f32 %v17634_v35, %v5607_v5 }
 0xaac   : > { %v5554_v2 = vadd.f32 1e-12, %v5538_v42  ;;  %v5539_v38 = vmul.f32 0.0078125, %v5521_v50  ;;  %5832 = vmatprep.mubr.bf16.mxu1 %v20567_v39  ;;  %v20566_v50 = vsub.s32 1, %v20709_v3 }
 0xaad   : > { %v5523_v17 = vpop.xlane.xlu0 %5522  ;;  %v5655_v36 = vpack.c.bf16 %v17751_v14, %v17754_v57 }
 0xaae   : > { %15309 = vrsqrt.f32 %v5554_v2  ;;  %v5555_v9 = vadd.f32 1e-12, %v5539_v38  ;;  %v5540_v28 = vmul.f32 0.0078125, %v5523_v17 }
 0xaaf   : > { %v5525_v45 = vpop.xlane.xlu1 %5524 }
 0xab0   : > { %15311 = vrsqrt.f32 %v5555_v9  ;;  %v5556_v27 = vadd.f32 1e-12, %v5540_v28  ;;  %v5541_v23 = vmul.f32 0.0078125, %v5525_v45 }
 0xab2   : > { %15313 = vrsqrt.f32 %v5556_v27  ;;  %v5557_v24 = vadd.f32 1e-12, %v5541_v23 }
 0xab3   : > { %5833 = vmatmul.mubr.bf16.gmra.mrb[176].mxu1 %v5655_v36 }
 0xab4   : > { %15315 = vrsqrt.f32 %v5557_v24  ;;  %5842 = vmatprep.mubr.bf16.mxu1 %v20567_v39 }
 0xab8   : > { %v15310_v31 = vpop.eup %15309 }
 0xab9   : > { %v5586_v22 = vmul.f32 %v15310_v31, %v17604_v15 }
 0xaba   : > { %v15312_v52 = vpop.eup %15311 }
 0xabb   : > { %v5587_v62 = vmul.f32 %v15312_v52, %v17607_v51  ;;  %v5608_v16 = vmul.f32 %v17626_v13, %v5586_v22 }
 0xabc   : > { %v15314_v53 = vpop.eup %15313 }
 0xabd   : > { %v5609_v59 = vmul.f32 %v17626_v13, %v5587_v62  ;;  %v17764_v37 = vadd.f32 %v17634_v35, %v5608_v16  ;;  %v5588_v1 = vmul.f32 %v15314_v53, %v17612_v63 }
 0xabe   : > { %v15316_v11 = vpop.eup %15315 }
 0xabf   : > { %v17767_v47 = vadd.f32 %v17634_v35, %v5609_v59  ;;  %v5589_v32 = vmul.f32 %v15316_v11, %v17617_v12  ;;  %v5610_v5 = vmul.f32 %v17626_v13, %v5588_v1  ;;  %v5658_v12 = vld [vmem:[%s20498_s11] sm:$0x3] }
 0xac0   : > { %v17793_v2 = vrot.slane %v5658_v12, %v20566_v50 }
 0xac1   : > { %v5656_v15 = vpack.c.bf16 %v17767_v47, %v17764_v37  ;;  %v5611_v51 = vmul.f32 %v17626_v13, %v5589_v32  ;;  %v17780_v49 = vadd.f32 %v17634_v35, %v5610_v5  ;;  %v17789_v13 = vrot.slane %v5658_v12, %v20710_v21 }
 0xac3   : > { %5843 = vmatmul.mubr.bf16.gmra.mrb[180].mxu1 %v5656_v15  ;;  %v17777_v42 = vadd.f32 %v17634_v35, %v5611_v51 }
 0xac4   : > { %5852 = vmatprep.mubr.bf16.mxu1 %v20567_v39 }
 0xac5   : > { %v5657_v63 = vpack.c.bf16 %v17777_v42, %v17780_v49 }
 0xacb   : > { %5853 = vmatmul.mubr.bf16.gmra.mrb[184].mxu1 %v5657_v63 }
 0xb0a   : > { %v5784_v38 = vpop.f32.mrb[156].mxu1 }
 0xb0b   : > { %v17796_v35 = vadd.f32 %v5784_v38, %v17789_v13  ;;  %v5786_v17 = vpop.f32.mrb[157].mxu1 }
 0xb0c   : > { %v17799_v9 = vadd.f32 %v5786_v17, %v17793_v2  ;;  %v5788_v28 = vpop.f32.mrb[158].mxu1 }
 0xb0d   : > { %v5863_v45 = vmul.f32 %v17796_v35, %v17796_v35  ;;  %v17804_v27 = vadd.f32 %v5788_v28, %v17789_v13  ;;  %v5790_v23 = vpop.f32.mrb[159].mxu1 }
 0xb0e   : > { %v5864_v36 = vmul.f32 %v17799_v9, %v17799_v9  ;;  %v17809_v24 = vadd.f32 %v5790_v23, %v17793_v2 }
 0xb0f   : > { %v5895_v31 = vmul.f32 %v5863_v45, %v17796_v35  ;;  %v5865_v22 = vmul.f32 %v17804_v27, %v17804_v27 }
 0xb10   : > { %v5896_v52 = vmul.f32 %v5864_v36, %v17799_v9  ;;  %v5866_v62 = vmul.f32 %v17809_v24, %v17809_v24 }
 0xb11   : > { %v5927_v16 = vmul.f32 0.044715, %v5895_v31  ;;  %v5897_v53 = vmul.f32 %v5865_v22, %v17804_v27 }
 0xb12   : > { %v5928_v59 = vmul.f32 0.044715, %v5896_v52  ;;  %v5898_v11 = vmul.f32 %v5866_v62, %v17809_v24  ;;  %v5794_v1 = vpop.f32.mrb[160].mxu1 }
 0xb13   : > { %v5959_v32 = vadd.f32 %v5927_v16, %v17796_v35  ;;  %v5929_v15 = vmul.f32 0.044715, %v5897_v53  ;;  %v17821_v51 = vadd.f32 %v5794_v1, %v17789_v13  ;;  %v5796_v5 = vpop.f32.mrb[161].mxu1 }
 0xb14   : > { %v5960_v63 = vadd.f32 %v5928_v59, %v17799_v9  ;;  %v5930_v12 = vmul.f32 0.044715, %v5898_v11  ;;  %v17825_v38 = vadd.f32 %v5796_v5, %v17793_v2  ;;  %v5798_v17 = vpop.f32.mrb[162].mxu1 }
 0xb15   : > { %v5991_v28 = vmul.f32 0.7978846, %v5959_v32  ;;  %v5961_v45 = vadd.f32 %v5929_v15, %v17804_v27  ;;  %v5867_v23 = vmul.f32 %v17821_v51, %v17821_v51  ;;  %v17831_v36 = vadd.f32 %v5798_v17, %v17789_v13  ;;  %v5800_v31 = vpop.f32.mrb[163].mxu1 }
 0xb16   : > { %v5992_v22 = vmul.f32 0.7978846, %v5960_v63  ;;  %v5962_v52 = vadd.f32 %v5930_v12, %v17809_v24  ;;  %v5868_v62 = vmul.f32 %v17825_v38, %v17825_v38  ;;  %v17837_v16 = vadd.f32 %v5800_v31, %v17793_v2 }
 0xb17   : > { %15317 = vtanh.f32 %v5991_v28  ;;  %v5993_v53 = vmul.f32 0.7978846, %v5961_v45  ;;  %v5899_v59 = vmul.f32 %v5867_v23, %v17821_v51  ;;  %v5869_v11 = vmul.f32 %v17831_v36, %v17831_v36 }
 0xb18   : > { %15319 = vtanh.f32 %v5992_v22  ;;  %v5994_v1 = vmul.f32 0.7978846, %v5962_v52  ;;  %v5900_v32 = vmul.f32 %v5868_v62, %v17825_v38  ;;  %v5870_v15 = vmul.f32 %v17837_v16, %v17837_v16 }
 0xb19   : > { %15321 = vtanh.f32 %v5993_v53  ;;  %v5931_v5 = vmul.f32 0.044715, %v5899_v59  ;;  %v5901_v63 = vmul.f32 %v5869_v11, %v17831_v36 }
 0xb1a   : > { %15323 = vtanh.f32 %v5994_v1  ;;  %v5932_v12 = vmul.f32 0.044715, %v5900_v32  ;;  %v5902_v17 = vmul.f32 %v5870_v15, %v17837_v16 }
 0xb1b   : > { %v5963_v28 = vadd.f32 %v5931_v5, %v17821_v51  ;;  %v5933_v45 = vmul.f32 0.044715, %v5901_v63 }
 0xb1c   : > { %v5964_v23 = vadd.f32 %v5932_v12, %v17825_v38  ;;  %v5934_v31 = vmul.f32 0.044715, %v5902_v17 }
 0xb1d   : > { %v5995_v22 = vmul.f32 0.7978846, %v5963_v28  ;;  %v5965_v52 = vadd.f32 %v5933_v45, %v17831_v36 }
 0xb1e   : > { %v5996_v62 = vmul.f32 0.7978846, %v5964_v23  ;;  %v5966_v50 = vadd.f32 %v5934_v31, %v17837_v16 }
 0xb1f   : > { %15325 = vtanh.f32 %v5995_v22  ;;  %v5997_v53 = vmul.f32 0.7978846, %v5965_v52 }
 0xb20   : > { %15327 = vtanh.f32 %v5996_v62  ;;  %v5998_v59 = vmul.f32 0.7978846, %v5966_v50 }
 0xb21   : > { %v15318_v11 = vpop.eup %15317  ;;  %15329 = vtanh.f32 %v5997_v53 }
 0xb22   : > { %v15320_v1 = vpop.eup %15319  ;;  %v6055_v32 = vadd.f32 1.0, %v15318_v11  ;;  %15331 = vtanh.f32 %v5998_v59 }
 0xb23   : > { %v15322_v15 = vpop.eup %15321  ;;  %v6056_v5 = vadd.f32 1.0, %v15320_v1 }
 0xb24   : > { %v15324_v63 = vpop.eup %15323  ;;  %v6087_v12 = vmul.f32 0.5, %v6055_v32  ;;  %v6057_v17 = vadd.f32 1.0, %v15322_v15 }
 0xb25   : > { %v6058_v28 = vadd.f32 1.0, %v15324_v63  ;;  %v6088_v39 = vmul.f32 0.5, %v6056_v5 }
 0xb26   : > { %v6089_v45 = vmul.f32 0.5, %v6057_v17  ;;  %v6119_v31 = vmul.f32 %v6087_v12, %v17796_v35 }
 0xb27   : > { %v6090_v23 = vmul.f32 0.5, %v6058_v28  ;;  %v6120_v50 = vmul.f32 %v6088_v39, %v17799_v9 }
 0xb28   : > { %v6121_v22 = vmul.f32 %v6089_v45, %v17804_v27 }
 0xb29   : > { %v15326_v52 = vpop.eup %15325  ;;  %v6122_v62 = vmul.f32 %v6090_v23, %v17809_v24 }
 0xb2a   : > { %v15328_v53 = vpop.eup %15327  ;;  %v6151_v59 = vpack.c.bf16 %v6121_v22, %v6119_v31  ;;  %v6059_v11 = vadd.f32 1.0, %v15326_v52 }
 0xb2b   : > { %v15330_v1 = vpop.eup %15329  ;;  %v6152_v3 = vpack.c.bf16 %v6122_v62, %v6120_v50  ;;  %v6060_v32 = vadd.f32 1.0, %v15328_v53 }
 0xb2c   : > { %v15332_v15 = vpop.eup %15331  ;;  %v6061_v63 = vadd.f32 1.0, %v15330_v1  ;;  %v6091_v5 = vmul.f32 0.5, %v6059_v11 }
 0xb2d   : > { %6334 = vmatprep.mubr.bf16.mxu0 %v6152_v3  ;;  %v6062_v17 = vadd.f32 1.0, %v15332_v15  ;;  %v6092_v28 = vmul.f32 0.5, %v6060_v32 }
 0xb2e   : > { %6335 = vmatmul.mubr.bf16.vlgmr.msra.gmra.mrb[164].mxu0 %v6151_v59  ;;  %v6093_v35 = vmul.f32 0.5, %v6061_v63  ;;  %v6123_v12 = vmul.f32 %v6091_v5, %v17821_v51 }
 0xb2f   : > { %v6094_v27 = vmul.f32 0.5, %v6062_v17  ;;  %v6124_v9 = vmul.f32 %v6092_v28, %v17825_v38 }
 0xb30   : > { %v6125_v39 = vmul.f32 %v6093_v35, %v17831_v36 }
 0xb31   : > { %v6126_v24 = vmul.f32 %v6094_v27, %v17837_v16 }
 0xb32   : > { %v6153_v45 = vpack.c.bf16 %v6125_v39, %v6123_v12 }
 0xb33   : > { %v6154_v23 = vpack.c.bf16 %v6126_v24, %v6124_v9 }
 0xb35   : > { %6342 = vmatprep.mubr.bf16.mxu0 %v6154_v23 }
 0xb36   : > { %6343 = vmatmul.mubr.bf16.gmra.mrb[168].mxu0 %v6153_v45 }
 0xb51   : > { %v5804_v31 = vpop.f32.mrb[164].mxu1 }
 0xb52   : > { %v17860_v3 = vadd.f32 %v5804_v31, %v17789_v13  ;;  %v5806_v22 = vpop.f32.mrb[165].mxu1 }
 0xb53   : > { %v17863_v52 = vadd.f32 %v5806_v22, %v17793_v2  ;;  %v5808_v50 = vpop.f32.mrb[166].mxu1 }
 0xb54   : > { %v5871_v51 = vmul.f32 %v17860_v3, %v17860_v3  ;;  %v17868_v38 = vadd.f32 %v5808_v50, %v17789_v13  ;;  %v5810_v36 = vpop.f32.mrb[167].mxu1 }
 0xb55   : > { %v5872_v16 = vmul.f32 %v17863_v52, %v17863_v52  ;;  %v17873_v62 = vadd.f32 %v5810_v36, %v17793_v2 }
 0xb56   : > { %v5903_v53 = vmul.f32 %v5871_v51, %v17860_v3  ;;  %v5873_v59 = vmul.f32 %v17868_v38, %v17868_v38 }
 0xb57   : > { %v5904_v11 = vmul.f32 %v5872_v16, %v17863_v52  ;;  %v5874_v1 = vmul.f32 %v17873_v62, %v17873_v62 }
 0xb58   : > { %v5935_v32 = vmul.f32 0.044715, %v5903_v53  ;;  %v5905_v15 = vmul.f32 %v5873_v59, %v17868_v38 }
 0xb59   : > { %v5936_v63 = vmul.f32 0.044715, %v5904_v11  ;;  %v5906_v5 = vmul.f32 %v5874_v1, %v17873_v62  ;;  %v5814_v17 = vpop.f32.mrb[168].mxu1 }
 0xb5a   : > { %v5967_v28 = vadd.f32 %v5935_v32, %v17860_v3  ;;  %v5937_v35 = vmul.f32 0.044715, %v5905_v15  ;;  %v17885_v27 = vadd.f32 %v5814_v17, %v17789_v13  ;;  %v5816_v12 = vpop.f32.mrb[169].mxu1 }
 0xb5b   : > { %v5968_v39 = vadd.f32 %v5936_v63, %v17863_v52  ;;  %v5938_v9 = vmul.f32 0.044715, %v5906_v5  ;;  %v17889_v24 = vadd.f32 %v5816_v12, %v17793_v2  ;;  %v5818_v45 = vpop.f32.mrb[170].mxu1 }
 0xb5c   : > { %v5999_v23 = vmul.f32 0.7978846, %v5967_v28  ;;  %v5969_v31 = vadd.f32 %v5937_v35, %v17868_v38  ;;  %v5875_v22 = vmul.f32 %v17885_v27, %v17885_v27  ;;  %v17895_v50 = vadd.f32 %v5818_v45, %v17789_v13  ;;  %v5820_v51 = vpop.f32.mrb[171].mxu1 }
 0xb5d   : > { %v6000_v36 = vmul.f32 0.7978846, %v5968_v39  ;;  %v5970_v16 = vadd.f32 %v5938_v9, %v17873_v62  ;;  %v5876_v53 = vmul.f32 %v17889_v24, %v17889_v24  ;;  %v17901_v59 = vadd.f32 %v5820_v51, %v17793_v2 }
 0xb5e   : > { %15333 = vtanh.f32 %v5999_v23  ;;  %v6001_v11 = vmul.f32 0.7978846, %v5969_v31  ;;  %v5907_v1 = vmul.f32 %v5875_v22, %v17885_v27  ;;  %v5877_v32 = vmul.f32 %v17895_v50, %v17895_v50 }
 0xb5f   : > { %15335 = vtanh.f32 %v6000_v36  ;;  %v6002_v15 = vmul.f32 0.7978846, %v5970_v16  ;;  %v5908_v63 = vmul.f32 %v5876_v53, %v17889_v24  ;;  %v5878_v5 = vmul.f32 %v17901_v59, %v17901_v59 }
 0xb60   : > { %15337 = vtanh.f32 %v6001_v11  ;;  %v5939_v17 = vmul.f32 0.044715, %v5907_v1  ;;  %v5909_v28 = vmul.f32 %v5877_v32, %v17895_v50 }
 0xb61   : > { %15339 = vtanh.f32 %v6002_v15  ;;  %v5940_v35 = vmul.f32 0.044715, %v5908_v63  ;;  %v5910_v12 = vmul.f32 %v5878_v5, %v17901_v59 }
 0xb62   : > { %v5971_v39 = vadd.f32 %v5939_v17, %v17885_v27  ;;  %v5941_v9 = vmul.f32 0.044715, %v5909_v28 }
 0xb63   : > { %v5972_v45 = vadd.f32 %v5940_v35, %v17889_v24  ;;  %v5942_v23 = vmul.f32 0.044715, %v5910_v12 }
 0xb64   : > { %v6003_v31 = vmul.f32 0.7978846, %v5971_v39  ;;  %v5973_v22 = vadd.f32 %v5941_v9, %v17895_v50 }
 0xb65   : > { %v6004_v51 = vmul.f32 0.7978846, %v5972_v45  ;;  %v5974_v36 = vadd.f32 %v5942_v23, %v17901_v59 }
 0xb66   : > { %15341 = vtanh.f32 %v6003_v31  ;;  %v6005_v16 = vmul.f32 0.7978846, %v5973_v22 }
 0xb67   : > { %15343 = vtanh.f32 %v6004_v51  ;;  %v6006_v53 = vmul.f32 0.7978846, %v5974_v36 }
 0xb68   : > { %v15334_v11 = vpop.eup %15333  ;;  %15345 = vtanh.f32 %v6005_v16 }
 0xb69   : > { %v15336_v1 = vpop.eup %15335  ;;  %15347 = vtanh.f32 %v6006_v53  ;;  %v6063_v32 = vadd.f32 1.0, %v15334_v11 }
 0xb6a   : > { %v15338_v15 = vpop.eup %15337  ;;  %v6064_v63 = vadd.f32 1.0, %v15336_v1 }
 0xb6b   : > { %v15340_v5 = vpop.eup %15339  ;;  %v6065_v17 = vadd.f32 1.0, %v15338_v15  ;;  %v6095_v28 = vmul.f32 0.5, %v6063_v32 }
 0xb6c   : > { %v6066_v35 = vadd.f32 1.0, %v15340_v5  ;;  %v6096_v12 = vmul.f32 0.5, %v6064_v63 }
 0xb6d   : > { %v6097_v39 = vmul.f32 0.5, %v6065_v17  ;;  %v6127_v45 = vmul.f32 %v6095_v28, %v17860_v3 }
 0xb6e   : > { %v6098_v9 = vmul.f32 0.5, %v6066_v35  ;;  %v6128_v22 = vmul.f32 %v6096_v12, %v17863_v52 }
 0xb6f   : > { %v6129_v23 = vmul.f32 %v6097_v39, %v17868_v38 }
 0xb70   : > { %v15342_v31 = vpop.eup %15341  ;;  %v6130_v51 = vmul.f32 %v6098_v9, %v17873_v62 }
 0xb71   : > { %v15344_v36 = vpop.eup %15343  ;;  %v6155_v16 = vpack.c.bf16 %v6129_v23, %v6127_v45  ;;  %v6067_v53 = vadd.f32 1.0, %v15342_v31 }
 0xb72   : > { %v15346_v11 = vpop.eup %15345  ;;  %v6156_v1 = vpack.c.bf16 %v6130_v51, %v6128_v22  ;;  %v6068_v15 = vadd.f32 1.0, %v15344_v36 }
 0xb73   : > { %v15348_v32 = vpop.eup %15347  ;;  %v6069_v5 = vadd.f32 1.0, %v15346_v11  ;;  %v6099_v63 = vmul.f32 0.5, %v6067_v53 }
 0xb74   : > { %6350 = vmatprep.mubr.bf16.mxu0 %v6156_v1  ;;  %v6070_v17 = vadd.f32 1.0, %v15348_v32  ;;  %v6100_v35 = vmul.f32 0.5, %v6068_v15 }
 0xb75   : > { %6351 = vmatmul.mubr.bf16.gmra.mrb[172].mxu0 %v6155_v16  ;;  %v6101_v3 = vmul.f32 0.5, %v6069_v5  ;;  %v6131_v28 = vmul.f32 %v6099_v63, %v17885_v27 }
 0xb76   : > { %v6102_v38 = vmul.f32 0.5, %v6070_v17  ;;  %v6132_v62 = vmul.f32 %v6100_v35, %v17889_v24 }
 0xb77   : > { %v6133_v52 = vmul.f32 %v6101_v3, %v17895_v50 }
 0xb78   : > { %v6134_v12 = vmul.f32 %v6102_v38, %v17901_v59 }
 0xb79   : > { %v6157_v39 = vpack.c.bf16 %v6133_v52, %v6131_v28 }
 0xb7a   : > { %v6158_v9 = vpack.c.bf16 %v6134_v12, %v6132_v62 }
 0xb7c   : > { %6358 = vmatprep.mubr.bf16.mxu0 %v6158_v9 }
 0xb7d   : > { %6359 = vmatmul.mubr.bf16.gmra.mrb[176].mxu0 %v6157_v39 }
 0xb7e   : > { %v5824_v45 = vpop.f32.mrb[172].mxu1 }
 0xb7f   : > { %v17924_v23 = vadd.f32 %v5824_v45, %v17789_v13  ;;  %v5826_v31 = vpop.f32.mrb[173].mxu1 }
 0xb80   : > { %v17927_v22 = vadd.f32 %v5826_v31, %v17793_v2  ;;  %v5828_v51 = vpop.f32.mrb[174].mxu1 }
 0xb81   : > { %v5879_v27 = vmul.f32 %v17924_v23, %v17924_v23  ;;  %v17932_v24 = vadd.f32 %v5828_v51, %v17789_v13  ;;  %v5830_v50 = vpop.f32.mrb[175].mxu1 }
 0xb82   : > { %v5880_v59 = vmul.f32 %v17927_v22, %v17927_v22  ;;  %v17937_v36 = vadd.f32 %v5830_v50, %v17793_v2 }
 0xb83   : > { %v5911_v16 = vmul.f32 %v5879_v27, %v17924_v23  ;;  %v5881_v53 = vmul.f32 %v17932_v24, %v17932_v24 }
 0xb84   : > { %v5912_v11 = vmul.f32 %v5880_v59, %v17927_v22  ;;  %v5882_v1 = vmul.f32 %v17937_v36, %v17937_v36 }
 0xb85   : > { %v5943_v15 = vmul.f32 0.044715, %v5911_v16  ;;  %v5913_v32 = vmul.f32 %v5881_v53, %v17932_v24 }
 0xb86   : > { %v5944_v5 = vmul.f32 0.044715, %v5912_v11  ;;  %v5914_v63 = vmul.f32 %v5882_v1, %v17937_v36  ;;  %v5834_v17 = vpop.f32.mrb[176].mxu1 }
 0xb87   : > { %v5975_v35 = vadd.f32 %v5943_v15, %v17924_v23  ;;  %v5945_v3 = vmul.f32 0.044715, %v5913_v32  ;;  %v17949_v38 = vadd.f32 %v5834_v17, %v17789_v13  ;;  %v5836_v28 = vpop.f32.mrb[177].mxu1 }
 0xb88   : > { %v5976_v52 = vadd.f32 %v5944_v5, %v17927_v22  ;;  %v5946_v62 = vmul.f32 0.044715, %v5914_v63  ;;  %v17953_v12 = vadd.f32 %v5836_v28, %v17793_v2  ;;  %v5838_v39 = vpop.f32.mrb[178].mxu1 }
 0xb89   : > { %v6007_v9 = vmul.f32 0.7978846, %v5975_v35  ;;  %v5977_v45 = vadd.f32 %v5945_v3, %v17932_v24  ;;  %v5883_v31 = vmul.f32 %v17949_v38, %v17949_v38  ;;  %v17959_v51 = vadd.f32 %v5838_v39, %v17789_v13  ;;  %v5840_v27 = vpop.f32.mrb[179].mxu1 }
 0xb8a   : > { %v6008_v50 = vmul.f32 0.7978846, %v5976_v52  ;;  %v5978_v59 = vadd.f32 %v5946_v62, %v17937_v36  ;;  %v5884_v16 = vmul.f32 %v17953_v12, %v17953_v12  ;;  %v17965_v53 = vadd.f32 %v5840_v27, %v17793_v2 }
 0xb8b   : > { %15349 = vtanh.f32 %v6007_v9  ;;  %v6009_v11 = vmul.f32 0.7978846, %v5977_v45  ;;  %v5915_v1 = vmul.f32 %v5883_v31, %v17949_v38  ;;  %v5885_v15 = vmul.f32 %v17959_v51, %v17959_v51 }
 0xb8c   : > { %15351 = vtanh.f32 %v6008_v50  ;;  %v6010_v32 = vmul.f32 0.7978846, %v5978_v59  ;;  %v5916_v5 = vmul.f32 %v5884_v16, %v17953_v12  ;;  %v5886_v63 = vmul.f32 %v17965_v53, %v17965_v53 }
 0xb8d   : > { %15353 = vtanh.f32 %v6009_v11  ;;  %v5947_v17 = vmul.f32 0.044715, %v5915_v1  ;;  %v5917_v35 = vmul.f32 %v5885_v15, %v17959_v51 }
 0xb8e   : > { %15355 = vtanh.f32 %v6010_v32  ;;  %v5948_v3 = vmul.f32 0.044715, %v5916_v5  ;;  %v5918_v28 = vmul.f32 %v5886_v63, %v17965_v53 }
 0xb8f   : > { %v5979_v52 = vadd.f32 %v5947_v17, %v17949_v38  ;;  %v5949_v62 = vmul.f32 0.044715, %v5917_v35 }
 0xb90   : > { %v5980_v39 = vadd.f32 %v5948_v3, %v17953_v12  ;;  %v5950_v9 = vmul.f32 0.044715, %v5918_v28 }
 0xb91   : > { %v6011_v45 = vmul.f32 0.7978846, %v5979_v52  ;;  %v5981_v27 = vadd.f32 %v5949_v62, %v17959_v51 }
 0xb92   : > { %v6012_v31 = vmul.f32 0.7978846, %v5980_v39  ;;  %v5982_v50 = vadd.f32 %v5950_v9, %v17965_v53 }
 0xb93   : > { %15357 = vtanh.f32 %v6011_v45  ;;  %v6013_v1 = vmul.f32 0.7978846, %v5981_v27 }
 0xb94   : > { %15359 = vtanh.f32 %v6012_v31  ;;  %v6014_v59 = vmul.f32 0.7978846, %v5982_v50 }
 0xb95   : > { %v15350_v16 = vpop.eup %15349 }
 0xb96   : > { %v15352_v11 = vpop.eup %15351  ;;  %v5844_v15 = vpop.f32.mrb[180].mxu1  ;;  %v6071_v32 = vadd.f32 1.0, %v15350_v16  ;;  %15361 = vtanh.f32 %v6014_v59 }
 0xb97   : > { %v15354_v5 = vpop.eup %15353  ;;  %v17980_v63 = vadd.f32 %v5844_v15, %v17789_v13  ;;  %v5846_v17 = vpop.f32.mrb[181].mxu1  ;;  %v6072_v35 = vadd.f32 1.0, %v15352_v11  ;;  %15363 = vtanh.f32 %v6013_v1 }
 0xb98   : > { %v15356_v3 = vpop.eup %15355  ;;  %v17983_v28 = vadd.f32 %v5846_v17, %v17793_v2  ;;  %v5848_v52 = vpop.f32.mrb[182].mxu1  ;;  %v6073_v62 = vadd.f32 1.0, %v15354_v5  ;;  %v6103_v39 = vmul.f32 0.5, %v6071_v32 }
 0xb99   : > { %v5887_v9 = vmul.f32 %v17980_v63, %v17980_v63  ;;  %v17988_v45 = vadd.f32 %v5848_v52, %v17789_v13  ;;  %v5850_v31 = vpop.f32.mrb[183].mxu1  ;;  %v6074_v27 = vadd.f32 1.0, %v15356_v3  ;;  %v6104_v50 = vmul.f32 0.5, %v6072_v35 }
 0xb9a   : > { %v5888_v16 = vmul.f32 %v17983_v28, %v17983_v28  ;;  %v17993_v59 = vadd.f32 %v5850_v31, %v17793_v2  ;;  %v6105_v11 = vmul.f32 0.5, %v6073_v62  ;;  %v6135_v1 = vmul.f32 %v6103_v39, %v17924_v23 }
 0xb9b   : > { %v5919_v15 = vmul.f32 %v5887_v9, %v17980_v63  ;;  %v5889_v32 = vmul.f32 %v17988_v45, %v17988_v45  ;;  %v6106_v5 = vmul.f32 0.5, %v6074_v27  ;;  %v6136_v62 = vmul.f32 %v6104_v50, %v17927_v22 }
 0xb9c   : > { %v5920_v17 = vmul.f32 %v5888_v16, %v17983_v28  ;;  %v5890_v3 = vmul.f32 %v17993_v59, %v17993_v59  ;;  %v6137_v35 = vmul.f32 %v6105_v11, %v17932_v24 }
 0xb9d   : > { %v15358_v52 = vpop.eup %15357  ;;  %v5951_v21 = vmul.f32 0.044715, %v5919_v15  ;;  %v5921_v31 = vmul.f32 %v5889_v32, %v17988_v45  ;;  %v6138_v9 = vmul.f32 %v6106_v5, %v17937_v36 }
 0xb9e   : > { %v15360_v18 = vpop.eup %15359  ;;  %v5952_v20 = vmul.f32 0.044715, %v5920_v17  ;;  %v5922_v27 = vmul.f32 %v5890_v3, %v17993_v59  ;;  %v5854_v16 = vpop.f32.mrb[184].mxu1  ;;  %v6159_v44 = vpack.c.bf16 %v6137_v35, %v6135_v1  ;;  %v6075_v34 = vadd.f32 1.0, %v15358_v52 }
 0xb9f   : > { %v5983_v58 = vadd.f32 %v5951_v21, %v17980_v63  ;;  %v5953_v23 = vmul.f32 0.044715, %v5921_v31  ;;  %v18009_v24 = vadd.f32 %v5854_v16, %v17789_v13  ;;  %v5856_v39 = vpop.f32.mrb[185].mxu1  ;;  %v6160_v11 = vpack.c.bf16 %v6138_v9, %v6136_v62 }
 0xba0   : > { %v5984_v15 = vadd.f32 %v5952_v20, %v17983_v28  ;;  %v5954_v22 = vmul.f32 0.044715, %v5922_v27  ;;  %v18013_v36 = vadd.f32 %v5856_v39, %v17793_v2  ;;  %v5858_v50 = vpop.f32.mrb[186].mxu1  ;;  %v6076_v32 = vadd.f32 1.0, %v15360_v18  ;;  %v15362_v35 = vpop.eup %15361 }
 0xba1   : > { %v6015_v5 = vmul.f32 0.7978846, %v5983_v58  ;;  %v5985_v17 = vadd.f32 %v5953_v23, %v17988_v45  ;;  %v5891_v21 = vmul.f32 %v18009_v24, %v18009_v24  ;;  %v18019_v3 = vadd.f32 %v5858_v50, %v17789_v13  ;;  %v5860_v1 = vpop.f32.mrb[187].mxu1  ;;  %6366 = vmatprep.mubr.bf16.mxu0 %v6160_v11  ;;  %v15364_v9 = vpop.eup %15363 }
 0xba2   : > { %v6016_v52 = vmul.f32 0.7978846, %v5984_v15  ;;  %v5986_v20 = vadd.f32 %v5954_v22, %v17993_v59  ;;  %v5892_v31 = vmul.f32 %v18013_v36, %v18013_v36  ;;  %v18025_v18 = vadd.f32 %v5860_v1, %v17793_v2  ;;  %6367 = vmatmul.mubr.bf16.gmra.mrb[180].mxu0 %v6159_v44 }
 0xba3   : > { %15365 = vtanh.f32 %v6015_v5  ;;  %v6017_v58 = vmul.f32 0.7978846, %v5985_v17  ;;  %v5923_v62 = vmul.f32 %v5891_v21, %v18009_v24  ;;  %v5893_v13 = vmul.f32 %v18019_v3, %v18019_v3 }
 0xba4   : > { %15367 = vtanh.f32 %v6016_v52  ;;  %v6018_v27 = vmul.f32 0.7978846, %v5986_v20  ;;  %v5924_v16 = vmul.f32 %v5892_v31, %v18013_v36  ;;  %v5894_v23 = vmul.f32 %v18025_v18, %v18025_v18 }
 0xba5   : > { %15369 = vtanh.f32 %v6017_v58  ;;  %v5955_v39 = vmul.f32 0.044715, %v5923_v62  ;;  %v5925_v2 = vmul.f32 %v5893_v13, %v18019_v3  ;;  %v6078_v44 = vadd.f32 1.0, %v15362_v35 }
 0xba6   : > { %15371 = vtanh.f32 %v6018_v27  ;;  %v5956_v11 = vmul.f32 0.044715, %v5924_v16  ;;  %v5926_v15 = vmul.f32 %v5894_v23, %v18025_v18  ;;  %v6108_v22 = vmul.f32 0.5, %v6076_v32 }
 0xba7   : > { %v5987_v50 = vadd.f32 %v5955_v39, %v18009_v24  ;;  %v5957_v5 = vmul.f32 0.044715, %v5925_v2  ;;  %v6110_v17 = vmul.f32 0.5, %v6078_v44  ;;  %v6077_v21 = vadd.f32 1.0, %v15364_v9 }
 0xba8   : > { %v5988_v1 = vadd.f32 %v5956_v11, %v18013_v36  ;;  %v5958_v52 = vmul.f32 0.044715, %v5926_v15  ;;  %v6140_v20 = vmul.f32 %v6108_v22, %v17953_v12  ;;  %v6107_v31 = vmul.f32 0.5, %v6075_v34 }
 0xba9   : > { %v6019_v58 = vmul.f32 0.7978846, %v5987_v50  ;;  %v5989_v62 = vadd.f32 %v5957_v5, %v18019_v3  ;;  %v6142_v35 = vmul.f32 %v6110_v17, %v17965_v53  ;;  %v6109_v13 = vmul.f32 0.5, %v6077_v21 }
 0xbaa   : > { %v6020_v27 = vmul.f32 0.7978846, %v5988_v1  ;;  %v5990_v32 = vadd.f32 %v5958_v52, %v18025_v18  ;;  %v6139_v16 = vmul.f32 %v6107_v31, %v17949_v38 }
 0xbab   : > { %15373 = vtanh.f32 %v6019_v58  ;;  %v6021_v23 = vmul.f32 0.7978846, %v5989_v62  ;;  %v6162_v9 = vpack.c.bf16 %v6142_v35, %v6140_v20  ;;  %v6141_v39 = vmul.f32 %v6109_v13, %v17959_v51 }
 0xbac   : > { %15375 = vtanh.f32 %v6020_v27  ;;  %v6022_v2 = vmul.f32 0.7978846, %v5990_v32 }
 0xbad   : > { %v15366_v12 = vpop.eup %15365  ;;  %15377 = vtanh.f32 %v6021_v23  ;;  %6374 = vmatprep.mubr.bf16.mxu0 %v6162_v9  ;;  %v6161_v34 = vpack.c.bf16 %v6141_v39, %v6139_v16 }
 0xbae   : > { %v15368_v44 = vpop.eup %15367  ;;  %15379 = vtanh.f32 %v6022_v2  ;;  %v6079_v53 = vadd.f32 1.0, %v15366_v12 }
 0xbaf   : > { %v15370_v11 = vpop.eup %15369  ;;  %6375 = vmatmul.mubr.bf16.gmra.mrb[184].mxu0 %v6161_v34  ;;  %v6080_v15 = vadd.f32 1.0, %v15368_v44 }
 0xbb0   : > { %v15372_v22 = vpop.eup %15371  ;;  %v6081_v50 = vadd.f32 1.0, %v15370_v11  ;;  %v6111_v38 = vmul.f32 0.5, %v6079_v53 }
 0xbb1   : > { %v6082_v5 = vadd.f32 1.0, %v15372_v22  ;;  %v6112_v17 = vmul.f32 0.5, %v6080_v15  ;;  %v18054_v22 = vld [vmem:[%s20500_s13] ss:$0 sm:$0xff] }
 0xbb2   : > { %v6113_v21 = vmul.f32 0.5, %v6081_v50  ;;  %v6143_v51 = vmul.f32 %v6111_v38, %v17980_v63 }
 0xbb3   : > { %v6114_v1 = vmul.f32 0.5, %v6082_v5  ;;  %v6144_v31 = vmul.f32 %v6112_v17, %v17983_v28 }
 0xbb4   : > { %v6145_v52 = vmul.f32 %v6113_v21, %v17988_v45 }
 0xbb5   : > { %v15374_v20 = vpop.eup %15373  ;;  %v6146_v58 = vmul.f32 %v6114_v1, %v17993_v59 }
 0xbb6   : > { %v15376_v62 = vpop.eup %15375  ;;  %v6163_v35 = vpack.c.bf16 %v6145_v52, %v6143_v51  ;;  %v6083_v13 = vadd.f32 1.0, %v15374_v20 }
 0xbb7   : > { %v15378_v27 = vpop.eup %15377  ;;  %v6164_v32 = vpack.c.bf16 %v6146_v58, %v6144_v31  ;;  %v6084_v16 = vadd.f32 1.0, %v15376_v62 }
 0xbb8   : > { %v15380_v23 = vpop.eup %15379  ;;  %v6085_v9 = vadd.f32 1.0, %v15378_v27  ;;  %v6115_v39 = vmul.f32 0.5, %v6083_v13 }
 0xbb9   : > { %6382 = vmatprep.mubr.bf16.mxu0 %v6164_v32  ;;  %v6086_v2 = vadd.f32 1.0, %v15380_v23  ;;  %v6116_v12 = vmul.f32 0.5, %v6084_v16 }
 0xbba   : > { %6383 = vmatmul.mubr.bf16.gmra.mrb[188].mxu0 %v6163_v35  ;;  %v6117_v63 = vmul.f32 0.5, %v6085_v9  ;;  %v6147_v34 = vmul.f32 %v6115_v39, %v18009_v24 }
 0xbbb   : > { %v6118_v45 = vmul.f32 0.5, %v6086_v2  ;;  %v6148_v59 = vmul.f32 %v6116_v12, %v18013_v36 }
 0xbbc   : > { %v6149_v28 = vmul.f32 %v6117_v63, %v18019_v3 }
 0xbbd   : > { %v6150_v44 = vmul.f32 %v6118_v45, %v18025_v18 }
 0xbbe   : > { %v6165_v53 = vpack.c.bf16 %v6149_v28, %v6147_v34 }
 0xbbf   : > { %v6166_v11 = vpack.c.bf16 %v6150_v44, %v6148_v59 }
 0xbc1   : > { %6390 = vmatprep.mubr.bf16.mxu0 %v6166_v11 }
 0xbc2   : > { %6391 = vmatmul.mubr.bf16.gmra.mrb[192].mxu0 %v6165_v53 }
 0xc01   : > { %v13436_v15 = vpop.f32.mrb[164].mxu0 }
 0xc02   : > { %v13437_v50 = vpop.f32.mrb[165].mxu0 }
 0xc03   : > { %v13438_v38 = vadd.f32 %v13437_v50, %v13436_v15  ;;  %v13439_v5 = vpop.f32.mrb[166].mxu0 }
 0xc04   : > { %v13440_v24 = vpop.f32.mrb[167].mxu0 }
 0xc05   : > { %v6337_v3 = vadd.f32 %v13438_v38, %v18054_v22  ;;  %v13441_v17 = vadd.f32 %v13440_v24, %v13439_v5 }
 0xc07   : > { %v6340_v36 = vadd.f32 %v13441_v17, %v18054_v22  ;;  %v18059_v18 = vadd.f32 %v6337_v3, %v17638_v25 }
 0xc09   : > { %6417 = vadd.xlane.f32.xlu0 %v18059_v18  ;;  %v13442_v21 = vpop.f32.mrb[168].mxu0  ;;  %v18063_v1 = vadd.f32 %v6340_v36, %v17641_v61 }
 0xc0a   : > { %v13443_v51 = vpop.f32.mrb[169].mxu0 }
 0xc0b   : > { %v13444_v52 = vadd.f32 %v13443_v51, %v13442_v21  ;;  %6419 = vadd.xlane.f32.xlu1 %v18063_v1  ;;  %v13445_v20 = vpop.f32.mrb[170].mxu0 }
 0xc0c   : > { %v13446_v31 = vpop.f32.mrb[171].mxu0 }
 0xc0d   : > { %v6345_v58 = vadd.f32 %v13444_v52, %v18054_v22  ;;  %v13447_v62 = vadd.f32 %v13446_v31, %v13445_v20 }
 0xc0f   : > { %v6348_v35 = vadd.f32 %v13447_v62, %v18054_v22  ;;  %v18069_v25 = vadd.f32 %v6345_v58, %v17654_v55 }
 0xc11   : > { %6421 = vadd.xlane.f32.xlu0 %v18069_v25  ;;  %v18073_v13 = vadd.f32 %v6348_v35, %v17651_v30 }
 0xc13   : > { %6423 = vadd.xlane.f32.xlu1 %v18073_v13 }
 0xc48   : > { %v13448_v61 = vpop.f32.mrb[172].mxu0 }
 0xc49   : > { %v13449_v27 = vpop.f32.mrb[173].mxu0 }
 0xc4a   : > { %v13450_v32 = vadd.f32 %v13449_v27, %v13448_v61  ;;  %v13451_v16 = vpop.f32.mrb[174].mxu0 }
 0xc4b   : > { %v13452_v23 = vpop.f32.mrb[175].mxu0 }
 0xc4c   : > { %v6353_v9 = vadd.f32 %v13450_v32, %v18054_v22  ;;  %v13453_v39 = vadd.f32 %v13452_v23, %v13451_v16 }
 0xc4e   : > { %v6356_v2 = vadd.f32 %v13453_v39, %v18054_v22  ;;  %v18079_v55 = vadd.f32 %v6353_v9, %v17664_v60 }
 0xc50   : > { %6425 = vadd.xlane.f32.xlu0 %v18079_v55  ;;  %v13454_v12 = vpop.f32.mrb[176].mxu0  ;;  %v18083_v30 = vadd.f32 %v6356_v2, %v17667_v10 }
 0xc51   : > { %v13455_v63 = vpop.f32.mrb[177].mxu0 }
 0xc52   : > { %v13456_v45 = vadd.f32 %v13455_v63, %v13454_v12  ;;  %6427 = vadd.xlane.f32.xlu1 %v18083_v30  ;;  %v13457_v34 = vpop.f32.mrb[178].mxu0 }
 0xc53   : > { %v13458_v28 = vpop.f32.mrb[179].mxu0 }
 0xc54   : > { %v6361_v59 = vadd.f32 %v13456_v45, %v18054_v22  ;;  %v13459_v44 = vadd.f32 %v13458_v28, %v13457_v34 }
 0xc56   : > { %v6364_v53 = vadd.f32 %v13459_v44, %v18054_v22  ;;  %v18089_v60 = vadd.f32 %v6361_v59, %v17680_v43 }
 0xc58   : > { %6429 = vadd.xlane.f32.xlu0 %v18089_v60  ;;  %v18093_v11 = vadd.f32 %v6364_v53, %v17677_v8 }
 0xc5a   : > { %6431 = vadd.xlane.f32.xlu1 %v18093_v11 }
 0xc75   : > { %v13460_v10 = vpop.f32.mrb[180].mxu0 }
 0xc76   : > { %v13461_v15 = vpop.f32.mrb[181].mxu0 }
 0xc77   : > { %v13462_v50 = vadd.f32 %v13461_v15, %v13460_v10  ;;  %v13463_v38 = vpop.f32.mrb[182].mxu0 }
 0xc78   : > { %v13464_v5 = vpop.f32.mrb[183].mxu0 }
 0xc79   : > { %v6369_v24 = vadd.f32 %v13462_v50, %v18054_v22  ;;  %v13465_v3 = vadd.f32 %v13464_v5, %v13463_v38 }
 0xc7b   : > { %v6372_v17 = vadd.f32 %v13465_v3, %v18054_v22  ;;  %v18099_v43 = vadd.f32 %v6369_v24, %v17729_v46 }
 0xc7d   : > { %6433 = vadd.xlane.f32.xlu0 %v18099_v43  ;;  %v18103_v8 = vadd.f32 %v6372_v17, %v17732_v48 }
 0xc7f   : > { %6435 = vadd.xlane.f32.xlu1 %v18103_v8 }
 0xc82   : > { %v13466_v36 = vpop.f32.mrb[184].mxu0 }
 0xc83   : > { %v13467_v21 = vpop.f32.mrb[185].mxu0 }
 0xc84   : > { %v13468_v51 = vadd.f32 %v13467_v21, %v13466_v36  ;;  %v13469_v52 = vpop.f32.mrb[186].mxu0 }
 0xc85   : > { %v13470_v20 = vpop.f32.mrb[187].mxu0 }
 0xc86   : > { %v6377_v31 = vadd.f32 %v13468_v51, %v18054_v22  ;;  %v13471_v58 = vadd.f32 %v13470_v20, %v13469_v52  ;;  %v15046_v51 = vld [vmem:[%s20491_s4 + $0x100] sm:$0xff]   ;;  %v15048_v52 = vld [vmem:[%s20491_s4 + $0x108] sm:$0xff]   ;;  %v15049_v20 = vld [vmem:[%s20491_s4 + $0xd0] sm:$0xff]  }
 0xc87   : > { %14326 = vmatprep.subr.bf16.mxu0 %v15046_v51 }
 0xc88   : > { %v6380_v62 = vadd.f32 %v13471_v58, %v18054_v22  ;;  %v18109_v46 = vadd.f32 %v6377_v31, %v17754_v57  ;;  %14327 = vmatpush3.bf16.msra.mxu0 %v15046_v51  ;;  %v15050_v31 = vld [vmem:[%s20491_s4 + $0x110] sm:$0xff]   ;;  %v15051_v58 = vld [vmem:[%s20491_s4 + $0xd8] sm:$0xff]  }
 0xc89   : > { %14328 = vmatprep.subr.bf16.mxu0 %v15048_v52 }
 0xc8a   : > { %6437 = vadd.xlane.f32.xlu0 %v18109_v46  ;;  %v18113_v48 = vadd.f32 %v6380_v62, %v17751_v14  ;;  %v15052_v62 = vld [vmem:[%s20491_s4 + $0x118] sm:$0xff]  }
 0xc8c   : > { %6439 = vadd.xlane.f32.xlu1 %v18113_v48  ;;  %14329 = vmatpush3.bf16.msra.mxu0 %v15048_v52 }
 0xc8d   : > { %v13472_v35 = vpop.f32.mrb[188].mxu0  ;;  %14330 = vmatprep.subr.bf16.mxu0 %v15050_v31 }
 0xc8e   : > { %v13473_v61 = vpop.f32.mrb[189].mxu0 }
 0xc8f   : > { %v13474_v27 = vadd.f32 %v13473_v61, %v13472_v35  ;;  %v13475_v32 = vpop.f32.mrb[190].mxu0  ;;  %v15053_v35 = vld [vmem:[%s20491_s4 + $0xe0] sm:$0xff]  }
 0xc90   : > { %v13476_v16 = vpop.f32.mrb[191].mxu0  ;;  %14331 = vmatpush3.bf16.msra.mxu0 %v15050_v31  ;;  %v15054_v61 = vld [vmem:[%s20491_s4 + $0x120] sm:$0xff]  }
 0xc91   : > { %v6385_v23 = vadd.f32 %v13474_v27, %v18054_v22  ;;  %v13477_v9 = vadd.f32 %v13476_v16, %v13475_v32  ;;  %14332 = vmatprep.subr.bf16.mxu0 %v15052_v62  ;;  %v15055_v27 = vld [vmem:[%s20491_s4 + $0xe8] sm:$0xff]   ;;  %v15057_v16 = vld [vmem:[%s20491_s4 + $0xf0] sm:$0xff]  }
 0xc92   : > { %v15056_v32 = vld [vmem:[%s20491_s4 + $0x128] sm:$0xff]  }
 0xc93   : > { %v6388_v39 = vadd.f32 %v13477_v9, %v18054_v22  ;;  %v18119_v57 = vadd.f32 %v6385_v23, %v17764_v37  ;;  %v15058_v23 = vld [vmem:[%s20491_s4 + $0x130] sm:$0xff]   ;;  %v15059_v9 = vld [vmem:[%s20491_s4 + $0xf8] sm:$0xff]  }
 0xc94   : > { %14333 = vmatpush3.bf16.msra.mxu0 %v15052_v62 }
 0xc95   : > { %6441 = vadd.xlane.f32.xlu0 %v18119_v57  ;;  %v13478_v2 = vpop.f32.mrb[192].mxu0  ;;  %v18123_v14 = vadd.f32 %v6388_v39, %v17767_v47  ;;  %14334 = vmatprep.subr.bf16.mxu0 %v15054_v61  ;;  %v15060_v39 = vld [vmem:[%s20491_s4 + $0x138] sm:$0xff]  }
 0xc96   : > { %v6418_v12 = vpop.xlane.xlu0 %6417  ;;  %v13479_v63 = vpop.f32.mrb[193].mxu0 }
 0xc97   : > { %v6449_v45 = vmul.f32 0.0078125, %v6418_v12  ;;  %v13480_v34 = vadd.f32 %v13479_v63, %v13478_v2  ;;  %6443 = vadd.xlane.f32.xlu1 %v18123_v14  ;;  %v13481_v28 = vpop.f32.mrb[194].mxu0 }
 0xc98   : > { %v13482_v59 = vpop.f32.mrb[195].mxu0  ;;  %v6420_v44 = vpop.xlane.xlu1 %6419  ;;  %14335 = vmatpush3.bf16.msra.mxu0 %v15054_v61 }
 0xc99   : > { %v6393_v53 = vadd.f32 %v13480_v34, %v18054_v22  ;;  %v13483_v10 = vadd.f32 %v13482_v59, %v13481_v28  ;;  %v6450_v37 = vmul.f32 0.0078125, %v6420_v44  ;;  %v18128_v15 = vsub.f32 %v18059_v18, %v6449_v45  ;;  %14336 = vmatprep.subr.bf16.mxu0 %v15056_v32 }
 0xc9b   : > { %v6396_v50 = vadd.f32 %v13483_v10, %v18054_v22  ;;  %v18132_v47 = vadd.f32 %v6393_v53, %v17780_v49  ;;  %v18135_v38 = vsub.f32 %v18063_v1, %v6450_v37  ;;  %v6481_v18 = vmul.f32 %v18128_v15, %v18128_v15 }
 0xc9c   : > { %14337 = vmatpush3.bf16.msra.mxu0 %v15056_v32 }
 0xc9d   : > { %6445 = vadd.xlane.f32.xlu0 %v18132_v47  ;;  %v18139_v5 = vadd.f32 %v6396_v50, %v17777_v42  ;;  %v6482_v1 = vmul.f32 %v18135_v38, %v18135_v38  ;;  %14338 = vmatprep.subr.bf16.mxu0 %v15058_v23 }
 0xc9e   : > { %v6422_v24 = vpop.xlane.xlu0 %6421 }
 0xc9f   : > { %v6451_v3 = vmul.f32 0.0078125, %v6422_v24  ;;  %6447 = vadd.xlane.f32.xlu1 %v18139_v5 }
 0xca0   : > { %v6424_v17 = vpop.xlane.xlu1 %6423  ;;  %14339 = vmatpush3.bf16.msra.mxu0 %v15058_v23 }
 0xca1   : > { %v18145_v22 = vsub.f32 %v18069_v25, %v6451_v3  ;;  %v6452_v49 = vmul.f32 0.0078125, %v6424_v17  ;;  %6497 = vadd.xlane.f32.xlu0 %v6481_v18  ;;  %v15045_v25 = vld [vmem:[%s20491_s4 + $0xc0] sm:$0xff]   ;;  %14340 = vmatprep.subr.bf16.mxu0 %v15060_v39 }
 0xca2   : > { %14294 = vmatprep.subr.bf16.mxu1 %v15045_v25 }
 0xca3   : > { %v18150_v36 = vsub.f32 %v18073_v13, %v6452_v49  ;;  %6499 = vadd.xlane.f32.xlu1 %v6482_v1  ;;  %v6483_v42 = vmul.f32 %v18145_v22, %v18145_v22  ;;  %14295 = vmatpush3.bf16.msra.mxu1 %v15045_v25  ;;  %v15047_v13 = vld [vmem:[%s20491_s4 + $0xc8] sm:$0xff]  }
 0xca4   : > { %14296 = vmatprep.subr.bf16.mxu1 %v15047_v13  ;;  %14341 = vmatpush3.bf16.msra.mxu0 %v15060_v39 }
 0xca5   : > { %6501 = vadd.xlane.f32.xlu0 %v6483_v42  ;;  %v6484_v21 = vmul.f32 %v18150_v36, %v18150_v36  ;;  %14390 = vmatprep.subr.bf16.mxu0 %v20668_v19 }
 0xca7   : > { %6503 = vadd.xlane.f32.xlu1 %v6484_v21  ;;  %14297 = vmatpush3.bf16.msra.mxu1 %v15047_v13 }
 0xca8   : > { %14298 = vmatprep.subr.bf16.mxu1 %v15049_v20 }
 0xcab   : > { %14299 = vmatpush3.bf16.msra.mxu1 %v15049_v20 }
 0xcac   : > { %14300 = vmatprep.subr.bf16.mxu1 %v15051_v58 }
 0xcaf   : > { %14301 = vmatpush3.bf16.msra.mxu1 %v15051_v58 }
 0xcb0   : > { %14302 = vmatprep.subr.bf16.mxu1 %v15053_v35 }
 0xcb3   : > { %14303 = vmatpush3.bf16.msra.mxu1 %v15053_v35 }
 0xcb4   : > { %14304 = vmatprep.subr.bf16.mxu1 %v15055_v27 }
 0xcb7   : > { %14305 = vmatpush3.bf16.msra.mxu1 %v15055_v27 }
 0xcb8   : > { %14306 = vmatprep.subr.bf16.mxu1 %v15057_v16 }
 0xcbb   : > { %14307 = vmatpush3.bf16.msra.mxu1 %v15057_v16 }
 0xcbc   : > { %14308 = vmatprep.subr.bf16.mxu1 %v15059_v9 }
 0xcbf   : > { %14309 = vmatpush3.bf16.msra.mxu1 %v15059_v9 }
 0xcdd   : > { %v6426_v2 = vpop.xlane.xlu0 %6425 }
 0xcde   : > { %v6453_v12 = vmul.f32 0.0078125, %v6426_v2 }
 0xcdf   : > { %v6428_v63 = vpop.xlane.xlu1 %6427 }
 0xce0   : > { %v18206_v45 = vsub.f32 %v18079_v55, %v6453_v12  ;;  %v6454_v34 = vmul.f32 0.0078125, %v6428_v63 }
 0xce2   : > { %v18209_v28 = vsub.f32 %v18083_v30, %v6454_v34  ;;  %v6485_v59 = vmul.f32 %v18206_v45, %v18206_v45 }
 0xce4   : > { %6505 = vadd.xlane.f32.xlu0 %v6485_v59  ;;  %v6486_v44 = vmul.f32 %v18209_v28, %v18209_v28 }
 0xce5   : > { %v6430_v53 = vpop.xlane.xlu0 %6429 }
 0xce6   : > { %v6455_v10 = vmul.f32 0.0078125, %v6430_v53  ;;  %6507 = vadd.xlane.f32.xlu1 %v6486_v44 }
 0xce7   : > { %v6432_v37 = vpop.xlane.xlu1 %6431 }
 0xce8   : > { %v18216_v50 = vsub.f32 %v18089_v60, %v6455_v10  ;;  %v6456_v55 = vmul.f32 0.0078125, %v6432_v37 }
 0xcea   : > { %v18219_v24 = vsub.f32 %v18093_v11, %v6456_v55  ;;  %v6487_v30 = vmul.f32 %v18216_v50, %v18216_v50 }
 0xcec   : > { %6509 = vadd.xlane.f32.xlu0 %v6487_v30  ;;  %v6488_v3 = vmul.f32 %v18219_v24, %v18219_v24 }
 0xcee   : > { %6511 = vadd.xlane.f32.xlu1 %v6488_v3 }
 0xd0a   : > { %v6434_v18 = vpop.xlane.xlu0 %6433 }
 0xd0b   : > { %v6457_v17 = vmul.f32 0.0078125, %v6434_v18 }
 0xd0c   : > { %v6436_v49 = vpop.xlane.xlu1 %6435 }
 0xd0d   : > { %v18226_v1 = vsub.f32 %v18099_v43, %v6457_v17  ;;  %v6458_v60 = vmul.f32 0.0078125, %v6436_v49  ;;  %v18268_v17 = vld [vmem:[%s20501_s14] ss:$0 sm:$0xff] }
 0xd0f   : > { %v18229_v42 = vsub.f32 %v18103_v8, %v6458_v60  ;;  %v6489_v11 = vmul.f32 %v18226_v1, %v18226_v1 }
 0xd11   : > { %6513 = vadd.xlane.f32.xlu0 %v6489_v11  ;;  %v6490_v21 = vmul.f32 %v18229_v42, %v18229_v42 }
 0xd13   : > { %6515 = vadd.xlane.f32.xlu1 %v6490_v21 }
 0xd17   : > { %v6438_v25 = vpop.xlane.xlu0 %6437 }
 0xd18   : > { %v6459_v51 = vmul.f32 0.0078125, %v6438_v25 }
 0xd19   : > { %v6440_v13 = vpop.xlane.xlu1 %6439 }
 0xd1a   : > { %v18236_v52 = vsub.f32 %v18109_v46, %v6459_v51  ;;  %v6460_v43 = vmul.f32 0.0078125, %v6440_v13  ;;  %v18276_v51 = vld [vmem:[%s20502_s15] ss:$0 sm:$0xff] }
 0xd1c   : > { %v18239_v20 = vsub.f32 %v18113_v48, %v6460_v43  ;;  %v6491_v8 = vmul.f32 %v18236_v52, %v18236_v52 }
 0xd1e   : > { %6517 = vadd.xlane.f32.xlu0 %v6491_v8  ;;  %v6492_v31 = vmul.f32 %v18239_v20, %v18239_v20 }
 0xd20   : > { %6519 = vadd.xlane.f32.xlu1 %v6492_v31 }
 0xd22   : > { %v6442_v58 = vpop.xlane.xlu0 %6441 }
 0xd23   : > { %v6461_v62 = vmul.f32 0.0078125, %v6442_v58 }
 0xd24   : > { %v6444_v35 = vpop.xlane.xlu1 %6443 }
 0xd25   : > { %v18246_v61 = vsub.f32 %v18119_v57, %v6461_v62  ;;  %v6462_v46 = vmul.f32 0.0078125, %v6444_v35  ;;  %v15061_v62 = vld [vmem:[%s20491_s4 + $0x140] sm:$0xff]  }
 0xd26   : > { %14358 = vmatprep.subr.bf16.mxu1 %v15061_v62 }
 0xd27   : > { %v18249_v27 = vsub.f32 %v18123_v14, %v6462_v46  ;;  %v6493_v48 = vmul.f32 %v18246_v61, %v18246_v61 }
 0xd29   : > { %6521 = vadd.xlane.f32.xlu0 %v6493_v48  ;;  %v6494_v32 = vmul.f32 %v18249_v27, %v18249_v27 }
 0xd2a   : > { %v6446_v16 = vpop.xlane.xlu0 %6445 }
 0xd2b   : > { %v6463_v23 = vmul.f32 0.0078125, %v6446_v16  ;;  %6523 = vadd.xlane.f32.xlu1 %v6494_v32  ;;  %v15062_v32 = vld [vmem:[%s20491_s4 + $0x148] sm:$0xff]   ;;  %v15063_v16 = vld [vmem:[%s20491_s4 + $0x150] sm:$0xff]  }
 0xd2c   : > { %v6448_v9 = vpop.xlane.xlu1 %6447 }
 0xd2d   : > { %v18256_v39 = vsub.f32 %v18132_v47, %v6463_v23  ;;  %v6464_v57 = vmul.f32 0.0078125, %v6448_v9  ;;  %v15064_v23 = vld [vmem:[%s20491_s4 + $0x158] sm:$0xff]   ;;  %v15065_v9 = vld [vmem:[%s20491_s4 + $0x160] sm:$0xff]  }
 0xd2e   : > { %v6498_v2 = vpop.xlane.xlu0 %6497 }
 0xd2f   : > { %v18259_v12 = vsub.f32 %v18139_v5, %v6464_v57  ;;  %v6529_v14 = vmul.f32 0.0078125, %v6498_v2  ;;  %v6495_v63 = vmul.f32 %v18256_v39, %v18256_v39  ;;  %v15066_v57 = vld [vmem:[%s20491_s4 + $0x168] sm:$0xff]   ;;  %v15067_v2 = vld [vmem:[%s20491_s4 + $0x170] sm:$0xff]  }
 0xd30   : > { %v6500_v34 = vpop.xlane.xlu1 %6499 }
 0xd31   : > { %v6545_v59 = vadd.f32 1e-12, %v6529_v14  ;;  %v6530_v44 = vmul.f32 0.0078125, %v6500_v34  ;;  %6525 = vadd.xlane.f32.xlu0 %v6495_v63  ;;  %v6496_v53 = vmul.f32 %v18259_v12, %v18259_v12  ;;  %v15068_v14 = vld [vmem:[%s20491_s4 + $0x178] sm:$0xff]  }
 0xd32   : > { %v6502_v10 = vpop.xlane.xlu0 %6501 }
 0xd33   : > { %15381 = vrsqrt.f32 %v6545_v59  ;;  %v6546_v47 = vadd.f32 1e-12, %v6530_v44  ;;  %v6531_v37 = vmul.f32 0.0078125, %v6502_v10  ;;  %6527 = vadd.xlane.f32.xlu1 %v6496_v53 }
 0xd34   : > { %v6504_v55 = vpop.xlane.xlu1 %6503 }
 0xd35   : > { %15383 = vrsqrt.f32 %v6546_v47  ;;  %v6547_v5 = vadd.f32 1e-12, %v6531_v37  ;;  %v6532_v30 = vmul.f32 0.0078125, %v6504_v55 }
 0xd37   : > { %15385 = vrsqrt.f32 %v6547_v5  ;;  %v6548_v3 = vadd.f32 1e-12, %v6532_v30 }
 0xd39   : > { %15387 = vrsqrt.f32 %v6548_v3 }
 0xd3d   : > { %v15382_v18 = vpop.eup %15381 }
 0xd3e   : > { %v6577_v49 = vmul.f32 %v15382_v18, %v18128_v15 }
 0xd3f   : > { %v15384_v60 = vpop.eup %15383 }
 0xd40   : > { %v6578_v11 = vmul.f32 %v15384_v60, %v18135_v38  ;;  %v6599_v21 = vmul.f32 %v18268_v17, %v6577_v49 }
 0xd41   : > { %v15386_v25 = vpop.eup %15385 }
 0xd42   : > { %v6579_v13 = vmul.f32 %v15386_v25, %v18145_v22  ;;  %v6600_v43 = vmul.f32 %v18268_v17, %v6578_v11  ;;  %v18283_v58 = vadd.f32 %v18276_v51, %v6599_v21 }
 0xd43   : > { %v15388_v8 = vpop.eup %15387 }
 0xd44   : > { %v6601_v31 = vmul.f32 %v18268_v17, %v6579_v13  ;;  %v6580_v15 = vmul.f32 %v15388_v8, %v18150_v36  ;;  %20711 = vst [vmem:[#allocation36_spill] sm:$0xff] %v18283_v58  ;;  %v18286_v38 = vadd.f32 %v18276_v51, %v6600_v43 }
 0xd46   : > { %20712 = vst [vmem:[#allocation35_spill] sm:$0xff] %v18286_v38  ;;  %v6602_v35 = vmul.f32 %v18268_v17, %v6580_v15  ;;  %v18294_v22 = vpack.c.bf16 %v18286_v38, %v18283_v58  ;;  %v18299_v36 = vadd.f32 %v18276_v51, %v6601_v31 }
 0xd48   : > { %14310 = vmatprep.mubr.bf16.mxu1 %v18294_v22  ;;  %14342 = vmatprep.mubr.bf16.mxu0 %v18294_v22  ;;  %20713 = vst [vmem:[#allocation24_spill] sm:$0xff] %v18299_v36  ;;  %v18302_v46 = vadd.f32 %v18276_v51, %v6602_v35 }
 0xd4a   : > { %20714 = vst [vmem:[#allocation26_spill] sm:$0xff] %v18302_v46  ;;  %v18306_v48 = vpack.c.bf16 %v18302_v46, %v18299_v36 }
 0xd4c   : > { %14311 = vmatmul.mubr.bf16.vlgmr.msra.gmra.mrb[188].mxu1 %v18306_v48  ;;  %14343 = vmatmul.mubr.bf16.vlgmr.msra.gmra.mrb[196].mxu0 %v18306_v48 }
 0xd4d   : > { %14359 = vmatpush3.bf16.msra.mxu1 %v15061_v62 }
 0xd4e   : > { %14360 = vmatprep.subr.bf16.mxu1 %v15062_v32 }
 0xd51   : > { %14361 = vmatpush3.bf16.msra.mxu1 %v15062_v32 }
 0xd52   : > { %14362 = vmatprep.subr.bf16.mxu1 %v15063_v16 }
 0xd55   : > { %14363 = vmatpush3.bf16.msra.mxu1 %v15063_v16 }
 0xd56   : > { %14364 = vmatprep.subr.bf16.mxu1 %v15064_v23 }
 0xd59   : > { %14365 = vmatpush3.bf16.msra.mxu1 %v15064_v23 }
 0xd5a   : > { %14366 = vmatprep.subr.bf16.mxu1 %v15065_v9 }
 0xd5d   : > { %14367 = vmatpush3.bf16.msra.mxu1 %v15065_v9 }
 0xd5e   : > { %14368 = vmatprep.subr.bf16.mxu1 %v15066_v57 }
 0xd61   : > { %14369 = vmatpush3.bf16.msra.mxu1 %v15066_v57 }
 0xd62   : > { %14370 = vmatprep.subr.bf16.mxu1 %v15067_v2 }
 0xd65   : > { %14371 = vmatpush3.bf16.msra.mxu1 %v15067_v2 }
 0xd66   : > { %14372 = vmatprep.subr.bf16.mxu1 %v15068_v14 }
 0xd69   : > { %14373 = vmatpush3.bf16.msra.mxu1 %v15068_v14 }
 0xd6a   : > { %14402 = vmatprep.subr.bf16.mxu1 %v20668_v19 }
 0xd71   : > { %v6506_v63 = vpop.xlane.xlu0 %6505 }
 0xd72   : > { %v6533_v34 = vmul.f32 0.0078125, %v6506_v63 }
 0xd73   : > { %v6508_v59 = vpop.xlane.xlu1 %6507 }
 0xd74   : > { %v6549_v44 = vadd.f32 1e-12, %v6533_v34  ;;  %v6534_v53 = vmul.f32 0.0078125, %v6508_v59 }
 0xd76   : > { %15389 = vrsqrt.f32 %v6549_v44  ;;  %v6550_v10 = vadd.f32 1e-12, %v6534_v53 }
 0xd78   : > { %15391 = vrsqrt.f32 %v6550_v10 }
 0xd79   : > { %v6510_v47 = vpop.xlane.xlu0 %6509 }
 0xd7a   : > { %v6535_v37 = vmul.f32 0.0078125, %v6510_v47 }
 0xd7b   : > { %v6512_v55 = vpop.xlane.xlu1 %6511 }
 0xd7c   : > { %v6551_v5 = vadd.f32 1e-12, %v6535_v37  ;;  %v6536_v30 = vmul.f32 0.0078125, %v6512_v55 }
 0xd7e   : > { %15393 = vrsqrt.f32 %v6551_v5  ;;  %v6552_v3 = vadd.f32 1e-12, %v6536_v30 }
 0xd80   : > { %v15390_v18 = vpop.eup %15389  ;;  %15395 = vrsqrt.f32 %v6552_v3 }
 0xd81   : > { %v6581_v49 = vmul.f32 %v15390_v18, %v18206_v45 }
 0xd82   : > { %v15392_v60 = vpop.eup %15391 }
 0xd83   : > { %v6582_v11 = vmul.f32 %v15392_v60, %v18209_v28  ;;  %v6603_v21 = vmul.f32 %v18268_v17, %v6581_v49 }
 0xd85   : > { %v6604_v25 = vmul.f32 %v18268_v17, %v6582_v11  ;;  %v18337_v13 = vadd.f32 %v18276_v51, %v6603_v21 }
 0xd87   : > { %20715 = vst [vmem:[#allocation25_spill] sm:$0xff] %v18337_v13  ;;  %v18340_v43 = vadd.f32 %v18276_v51, %v6604_v25 }
 0xd88   : > { %v15394_v8 = vpop.eup %15393 }
 0xd89   : > { %20716 = vst [vmem:[#allocation28_spill] sm:$0xff] %v18340_v43  ;;  %v18344_v31 = vpack.c.bf16 %v18340_v43, %v18337_v13  ;;  %v6583_v45 = vmul.f32 %v15394_v8, %v18216_v50 }
 0xd8a   : > { %v15396_v15 = vpop.eup %15395 }
 0xd8b   : > { %14314 = vmatprep.mubr.bf16.mxu1 %v18344_v31  ;;  %14346 = vmatprep.mubr.bf16.mxu0 %v18344_v31  ;;  %v6584_v28 = vmul.f32 %v15396_v15, %v18219_v24  ;;  %v6605_v62 = vmul.f32 %v18268_v17, %v6583_v45 }
 0xd8d   : > { %v6606_v35 = vmul.f32 %v18268_v17, %v6584_v28  ;;  %v18353_v32 = vadd.f32 %v18276_v51, %v6605_v62 }
 0xd8f   : > { %20717 = vst [vmem:[#allocation27_spill] sm:$0xff] %v18353_v32  ;;  %v18356_v16 = vadd.f32 %v18276_v51, %v6606_v35 }
 0xd91   : > { %20718 = vst [vmem:[#allocation30_spill] sm:$0xff] %v18356_v16  ;;  %v18360_v50 = vpack.c.bf16 %v18356_v16, %v18353_v32 }
 0xd93   : > { %14315 = vmatmul.mubr.bf16.gmra.mrb[192].mxu1 %v18360_v50  ;;  %14347 = vmatmul.mubr.bf16.gmra.mrb[200].mxu0 %v18360_v50 }
 0xd9e   : > { %v6514_v23 = vpop.xlane.xlu0 %6513 }
 0xd9f   : > { %v6537_v24 = vmul.f32 0.0078125, %v6514_v23 }
 0xda0   : > { %v6516_v9 = vpop.xlane.xlu1 %6515 }
 0xda1   : > { %v6553_v57 = vadd.f32 1e-12, %v6537_v24  ;;  %v6538_v2 = vmul.f32 0.0078125, %v6516_v9 }
 0xda3   : > { %15397 = vrsqrt.f32 %v6553_v57  ;;  %v6554_v14 = vadd.f32 1e-12, %v6538_v2 }
 0xda5   : > { %15399 = vrsqrt.f32 %v6554_v14 }
 0xdab   : > { %v6518_v63 = vpop.xlane.xlu0 %6517 }
 0xdac   : > { %v6539_v34 = vmul.f32 0.0078125, %v6518_v63 }
 0xdad   : > { %v15398_v59 = vpop.eup %15397  ;;  %v6520_v44 = vpop.xlane.xlu1 %6519 }
 0xdae   : > { %v6555_v53 = vadd.f32 1e-12, %v6539_v34  ;;  %v6540_v10 = vmul.f32 0.0078125, %v6520_v44  ;;  %v6585_v47 = vmul.f32 %v15398_v59, %v18226_v1 }
 0xdaf   : > { %v15400_v37 = vpop.eup %15399 }
 0xdb0   : > { %15401 = vrsqrt.f32 %v6555_v53  ;;  %v6556_v55 = vadd.f32 1e-12, %v6540_v10  ;;  %v6586_v5 = vmul.f32 %v15400_v37, %v18229_v42  ;;  %v6607_v30 = vmul.f32 %v18268_v17, %v6585_v47 }
 0xdb2   : > { %15403 = vrsqrt.f32 %v6556_v55  ;;  %v6608_v3 = vmul.f32 %v18268_v17, %v6586_v5  ;;  %v18369_v18 = vadd.f32 %v18276_v51, %v6607_v30 }
 0xdb4   : > { %20719 = vst [vmem:[#allocation29_spill] sm:$0xff] %v18369_v18  ;;  %v18372_v49 = vadd.f32 %v18276_v51, %v6608_v3 }
 0xdb6   : > { %20720 = vst [vmem:[#allocation32_spill] sm:$0xff] %v18372_v49  ;;  %v6522_v60 = vpop.xlane.xlu0 %6521  ;;  %v6641_v1 = vpack.c.bf16 %v18372_v49, %v18369_v18 }
 0xdb7   : > { %v6541_v11 = vmul.f32 0.0078125, %v6522_v60 }
 0xdb8   : > { %14318 = vmatprep.mubr.bf16.mxu1 %v6641_v1  ;;  %14350 = vmatprep.mubr.bf16.mxu0 %v6641_v1  ;;  %v6524_v21 = vpop.xlane.xlu1 %6523 }
 0xdb9   : > { %v6557_v42 = vadd.f32 1e-12, %v6541_v11  ;;  %v6542_v25 = vmul.f32 0.0078125, %v6524_v21 }
 0xdba   : > { %v15402_v8 = vpop.eup %15401 }
 0xdbb   : > { %15405 = vrsqrt.f32 %v6557_v42  ;;  %v6558_v45 = vadd.f32 1e-12, %v6542_v25  ;;  %v6587_v15 = vmul.f32 %v15402_v8, %v18236_v52 }
 0xdbc   : > { %v15404_v28 = vpop.eup %15403 }
 0xdbd   : > { %15407 = vrsqrt.f32 %v6558_v45  ;;  %v6588_v62 = vmul.f32 %v15404_v28, %v18239_v20  ;;  %v6609_v35 = vmul.f32 %v18268_v17, %v6587_v15 }
 0xdbe   : > { %v6526_v23 = vpop.xlane.xlu0 %6525 }
 0xdbf   : > { %v6543_v24 = vmul.f32 0.0078125, %v6526_v23  ;;  %v6610_v9 = vmul.f32 %v18268_v17, %v6588_v62  ;;  %v18381_v14 = vadd.f32 %v18276_v51, %v6609_v35  ;;  %v18432_v62 = vld [vmem:[%s20492_s5 + $0x3] ss:$0 sm:$0xff] }
 0xdc0   : > { %v6528_v57 = vpop.xlane.xlu1 %6527 }
 0xdc1   : > { %v6559_v2 = vadd.f32 1e-12, %v6543_v24  ;;  %20721 = vst [vmem:[#allocation31_spill] sm:$0xff] %v18381_v14  ;;  %v18384_v63 = vadd.f32 %v18276_v51, %v6610_v9  ;;  %v6544_v34 = vmul.f32 0.0078125, %v6528_v57 }
 0xdc3   : > { %20722 = vst [vmem:[#allocation34_spill] sm:$0xff] %v18384_v63  ;;  %15409 = vrsqrt.f32 %v6559_v2  ;;  %v6642_v52 = vpack.c.bf16 %v18384_v63, %v18381_v14  ;;  %v6560_v20 = vadd.f32 1e-12, %v6544_v34 }
 0xdc5   : > { %v15406_v59 = vpop.eup %15405  ;;  %14319 = vmatmul.mubr.bf16.gmra.mrb[196].mxu1 %v6642_v52  ;;  %14351 = vmatmul.mubr.bf16.gmra.mrb[204].mxu0 %v6642_v52  ;;  %15411 = vrsqrt.f32 %v6560_v20 }
 0xdc6   : > { %v6589_v44 = vmul.f32 %v15406_v59, %v18246_v61 }
 0xdc7   : > { %v15408_v53 = vpop.eup %15407 }
 0xdc8   : > { %v6590_v10 = vmul.f32 %v15408_v53, %v18249_v27  ;;  %v6611_v47 = vmul.f32 %v18268_v17, %v6589_v44 }
 0xdca   : > { %v6612_v37 = vmul.f32 %v18268_v17, %v6590_v10  ;;  %v18393_v55 = vadd.f32 %v18276_v51, %v6611_v47 }
 0xdcc   : > { %20723 = vst [vmem:[#allocation33_spill] sm:$0xff] %v18393_v55  ;;  %v18396_v5 = vadd.f32 %v18276_v51, %v6612_v37 }
 0xdcd   : > { %v15410_v30 = vpop.eup %15409 }
 0xdce   : > { %20724 = vst [vmem:[#allocation8_spill] sm:$0xff] %v18396_v5  ;;  %v6643_v3 = vpack.c.bf16 %v18396_v5, %v18393_v55  ;;  %v6591_v60 = vmul.f32 %v15410_v30, %v18256_v39  ;;  %v18423_v39 = vld [vmem:[%s20492_s5 + $0x4] ss:$0 sm:$0xff] }
 0xdcf   : > { %v15412_v61 = vpop.eup %15411 }
 0xdd0   : > { %14322 = vmatprep.mubr.bf16.mxu1 %v6643_v3  ;;  %14354 = vmatprep.mubr.bf16.mxu0 %v6643_v3  ;;  %v6592_v27 = vmul.f32 %v15412_v61, %v18259_v12  ;;  %v6613_v11 = vmul.f32 %v18268_v17, %v6591_v60 }
 0xdd2   : > { %v6614_v21 = vmul.f32 %v18268_v17, %v6592_v27  ;;  %v18405_v42 = vadd.f32 %v18276_v51, %v6613_v11 }
 0xdd4   : > { %20725 = vst [vmem:[#allocation9_spill] sm:$0xff] %v18405_v42  ;;  %v18408_v25 = vadd.f32 %v18276_v51, %v6614_v21 }
 0xdd6   : > { %20726 = vst [vmem:[#allocation10_spill] sm:$0xff] %v18408_v25  ;;  %v6644_v8 = vpack.c.bf16 %v18408_v25, %v18405_v42 }
 0xdd8   : > { %14323 = vmatmul.mubr.bf16.gmra.mrb[200].mxu1 %v6644_v8  ;;  %14355 = vmatmul.mubr.bf16.gmra.mrb[208].mxu0 %v6644_v8 }
 0xdd9   : > { %14374 = vmatprep.mubr.bf16.mxu1 %v18294_v22  ;;  %14392 = vmatprep.mubr.msk.bf16.mxu0 %vm15738_vm0, %v20668_v19 }
 0xde0   : > { %14375 = vmatmul.mubr.bf16.vlgmr.msra.gmra.mrb[204].mxu1 %v18306_v48 }
 0xde1   : > { %14378 = vmatprep.mubr.bf16.mxu1 %v18344_v31 }
 0xde8   : > { %14379 = vmatmul.mubr.bf16.gmra.mrb[208].mxu1 %v18360_v50 }
 0xde9   : > { %14382 = vmatprep.mubr.bf16.mxu1 %v6641_v1 }
 0xdf0   : > { %14383 = vmatmul.mubr.bf16.gmra.mrb[212].mxu1 %v6642_v52 }
 0xdf1   : > { %14386 = vmatprep.mubr.bf16.mxu1 %v6643_v3 }
 0xdf8   : > { %14387 = vmatmul.mubr.bf16.gmra.mrb[216].mxu1 %v6644_v8 }
 0xdf9   : > { %14404 = vmatprep.mubr.msk.bf16.mxu1 %vm15738_vm0, %v20668_v19 }
 0xe1f   : > { %v14312_v12 = vpop.f32.mrb[188].mxu1  ;;  %v14344_v17 = vpop.f32.mrb[196].mxu0 }
 0xe20   : > { %v6947_v51 = vadd.f32 %v14344_v17, %v18423_v39  ;;  %v6752_v22 = vpop.f32.mrb[189].mxu1  ;;  %v6938_v48 = vpop.f32.mrb[197].mxu0  ;;  %v6761_v57 = vadd.f32 %v14312_v12, %v18432_v62 }
 0xe21   : > { %v6939_v31 = vadd.f32 %v18423_v39, %v6938_v48  ;;  %v14313_v50 = vpop.f32.mrb[190].mxu1  ;;  %v14345_v1 = vpop.f32.mrb[198].mxu0  ;;  %v6753_v2 = vadd.f32 %v18432_v62, %v6752_v22 }
 0xe22   : > { %v18427_v45 = vpack.c.bf16 %v6947_v51, %v6947_v51  ;;  %v6755_v15 = vpop.f32.mrb[191].mxu1  ;;  %v6941_v28 = vpop.f32.mrb[199].mxu0  ;;  %v18447_v52 = vpack.c.bf16 %v6761_v57, %v6761_v57  ;;  %v6950_v59 = vadd.f32 %v14345_v1, %v18423_v39  ;;  %v6764_v30 = vadd.f32 %v14313_v50, %v18432_v62 }
 0xe23   : > { %v18434_v35 = vpack.c.bf16 %v6939_v31, %v6939_v31  ;;  %v6942_v9 = vadd.f32 %v18423_v39, %v6941_v28  ;;  %v18449_v20 = vpack.c.bf16 %v6753_v2, %v6753_v2  ;;  %v6756_v53 = vadd.f32 %v18432_v62, %v6755_v15 }
 0xe24   : > { %v7318_v23 = vsel %vm1577_vm1, %v18427_v45, 0  ;;  %v18464_v10 = vpack.c.bf16 %v6950_v59, %v6950_v59  ;;  %v18476_v3 = vpack.c.bf16 %v6764_v30, %v6764_v30 }
 0xe25   : > { %v7226_v24 = vsel %vm1577_vm1, %v18434_v35, 0  ;;  %14403 = vmatpush3.bf16.xpose.msra.mxu1 %v7318_v23  ;;  %v18445_v34 = vpack.c.bf16 %v6942_v9, %v6942_v9  ;;  %v18466_v47 = vpack.c.bf16 %v6756_v53, %v6756_v53 }
 0xe26   : > { %14391 = vmatpush3.bf16.xpose.msra.mxu0 %v7226_v24  ;;  %14414 = vmatprep.subr.bf16.mxu1 %v20668_v19  ;;  %v7364_v37 = vsel %vm1577_vm1, %v18464_v10, 0 }
 0xe27   : > { %14396 = vmatprep.subr.bf16.mxu0 %v20668_v19  ;;  %v7272_v44 = vsel %vm1577_vm1, %v18445_v34, 0 }
 0xe2c   : > { %14405 = vmatmul.mubr.msk.bf16.vlgmr.msra.gmra.mrb[220].mxu1 %vm1577_vm1, %v18447_v52 }
 0xe2d   : > { %14393 = vmatmul.mubr.msk.bf16.vlgmr.msra.gmra.mrb[212].mxu0 %vm1577_vm1, %v18449_v20  ;;  %14416 = vmatprep.mubr.msk.bf16.mxu1 %vm15738_vm0, %v20668_v19 }
 0xe2e   : > { %14397 = vmatpush3.bf16.xpose.msra.mxu0 %v7272_v44  ;;  %14398 = vmatprep.mubr.msk.bf16.mxu0 %vm15738_vm0, %v20668_v19 }
 0xe2f   : > { %14408 = vmatprep.subr.bf16.mxu0 %v20668_v19 }
 0xe35   : > { %14399 = vmatmul.mubr.msk.bf16.vlgmr.msra.gmra.mrb[216].mxu0 %vm1577_vm1, %v18466_v47 }
 0xe36   : > { %14409 = vmatpush3.bf16.xpose.msra.mxu0 %v7364_v37  ;;  %14410 = vmatprep.mubr.msk.bf16.mxu0 %vm15738_vm0, %v20668_v19 }
 0xe37   : > { %14420 = vmatprep.subr.bf16.mxu0 %v20668_v19 }
 0xe3d   : > { %14411 = vmatmul.mubr.msk.bf16.vlgmr.msra.gmra.mrb[220].mxu0 %vm1577_vm1, %v18476_v3 }
 0xe3e   : > { %14422 = vmatprep.mubr.msk.bf16.mxu0 %vm15738_vm0, %v20668_v19 }
 0xe66   : > { %v14316_v60 = vpop.f32.mrb[192].mxu1  ;;  %v14348_v61 = vpop.f32.mrb[200].mxu0 }
 0xe67   : > { %v6768_v27 = vpop.f32.mrb[193].mxu1  ;;  %v6954_v11 = vpop.f32.mrb[201].mxu0  ;;  %v6963_v31 = vadd.f32 %v14348_v61, %v18423_v39  ;;  %v6777_v53 = vadd.f32 %v14316_v60, %v18432_v62 }
 0xe68   : > { %v6955_v21 = vadd.f32 %v18423_v39, %v6954_v11  ;;  %v14317_v8 = vpop.f32.mrb[194].mxu1  ;;  %v14349_v12 = vpop.f32.mrb[202].mxu0  ;;  %v6769_v15 = vadd.f32 %v18432_v62, %v6768_v27 }
 0xe69   : > { %v6771_v17 = vpop.f32.mrb[195].mxu1  ;;  %v6957_v51 = vpop.f32.mrb[203].mxu0  ;;  %v6966_v28 = vadd.f32 %v14349_v12, %v18423_v39  ;;  %v18496_v24 = vpack.c.bf16 %v6963_v31, %v6963_v31  ;;  %v6780_v30 = vadd.f32 %v14317_v8, %v18432_v62  ;;  %v18522_v61 = vpack.c.bf16 %v6777_v53, %v6777_v53 }
 0xe6a   : > { %v18483_v22 = vpack.c.bf16 %v6955_v21, %v6955_v21  ;;  %v6958_v48 = vadd.f32 %v18423_v39, %v6957_v51  ;;  %v6772_v9 = vadd.f32 %v18432_v62, %v6771_v17  ;;  %v18500_v57 = vpack.c.bf16 %v6769_v15, %v6769_v15 }
 0xe6b   : > { %v18502_v2 = vpack.c.bf16 %v6966_v28, %v6966_v28  ;;  %v7502_v59 = vsel %vm1577_vm1, %v18496_v24, 0  ;;  %v18524_v27 = vpack.c.bf16 %v6780_v30, %v6780_v30 }
 0xe6c   : > { %v7410_v50 = vsel %vm1577_vm1, %v18483_v22, 0  ;;  %v18489_v1 = vpack.c.bf16 %v6958_v48, %v6958_v48  ;;  %v18506_v44 = vpack.c.bf16 %v6772_v9, %v6772_v9 }
 0xe6d   : > { %14415 = vmatpush3.bf16.xpose.msra.mxu1 %v7410_v50  ;;  %v7548_v37 = vsel %vm1577_vm1, %v18502_v2, 0 }
 0xe6e   : > { %v7456_v23 = vsel %vm1577_vm1, %v18489_v1, 0  ;;  %14426 = vmatprep.subr.bf16.mxu1 %v20668_v19 }
 0xe6f   : > { %14421 = vmatpush3.bf16.xpose.msra.mxu0 %v7456_v23 }
 0xe70   : > { %14432 = vmatprep.subr.bf16.mxu0 %v20668_v19 }
 0xe74   : > { %14417 = vmatmul.mubr.msk.bf16.vlgmr.msra.gmra.mrb[224].mxu1 %vm1577_vm1, %v18500_v57 }
 0xe75   : > { %14427 = vmatpush3.bf16.xpose.msra.mxu1 %v7502_v59  ;;  %14428 = vmatprep.mubr.msk.bf16.mxu1 %vm15738_vm0, %v20668_v19 }
 0xe76   : > { %14423 = vmatmul.mubr.msk.bf16.vlgmr.msra.gmra.mrb[224].mxu0 %vm1577_vm1, %v18506_v44  ;;  %14438 = vmatprep.subr.bf16.mxu1 %v20668_v19 }
 0xe77   : > { %14433 = vmatpush3.bf16.xpose.msra.mxu0 %v7548_v37  ;;  %14434 = vmatprep.mubr.msk.bf16.mxu0 %vm15738_vm0, %v20668_v19 }
 0xe78   : > { %14444 = vmatprep.subr.bf16.mxu0 %v20668_v19 }
 0xe7c   : > { %14429 = vmatmul.mubr.msk.bf16.vlgmr.msra.gmra.mrb[228].mxu1 %vm1577_vm1, %v18522_v61 }
 0xe7d   : > { %14440 = vmatprep.mubr.msk.bf16.mxu1 %vm15738_vm0, %v20668_v19 }
 0xe7e   : > { %14435 = vmatmul.mubr.msk.bf16.vlgmr.msra.gmra.mrb[228].mxu0 %vm1577_vm1, %v18524_v27 }
 0xe7f   : > { %14446 = vmatprep.mubr.msk.bf16.mxu0 %vm15738_vm0, %v20668_v19 }
 0xe98   : > { %v14320_v60 = vpop.f32.mrb[196].mxu1  ;;  %v14352_v11 = vpop.f32.mrb[204].mxu0 }
 0xe99   : > { %v6784_v21 = vpop.f32.mrb[197].mxu1  ;;  %v6970_v8 = vpop.f32.mrb[205].mxu0  ;;  %v6979_v28 = vadd.f32 %v14352_v11, %v18423_v39 }
 0xe9a   : > { %v6971_v12 = vadd.f32 %v18423_v39, %v6970_v8  ;;  %v14321_v17 = vpop.f32.mrb[198].mxu1  ;;  %v14353_v51 = vpop.f32.mrb[206].mxu0  ;;  %v6785_v59 = vadd.f32 %v18432_v62, %v6784_v21 }
 0xe9b   : > { %v6787_v48 = vpop.f32.mrb[199].mxu1  ;;  %v6973_v31 = vpop.f32.mrb[207].mxu0  ;;  %v6982_v53 = vadd.f32 %v14353_v51, %v18423_v39  ;;  %v18548_v30 = vpack.c.bf16 %v6979_v28, %v6979_v28 }
 0xe9c   : > { %v18535_v50 = vpack.c.bf16 %v6971_v12, %v6971_v12  ;;  %v6974_v15 = vadd.f32 %v18423_v39, %v6973_v31  ;;  %v6788_v11 = vadd.f32 %v18432_v62, %v6787_v48  ;;  %v18552_v8 = vpack.c.bf16 %v6785_v59, %v6785_v59 }
 0xe9d   : > { %v18554_v12 = vpack.c.bf16 %v6982_v53, %v6982_v53  ;;  %v7686_v21 = vsel %vm1577_vm1, %v18548_v30, 0  ;;  %v6793_v48 = vadd.f32 %v14320_v60, %v18432_v62 }
 0xe9e   : > { %v7594_v23 = vsel %vm1577_vm1, %v18535_v50, 0  ;;  %v18541_v9 = vpack.c.bf16 %v6974_v15, %v6974_v15  ;;  %v18558_v51 = vpack.c.bf16 %v6788_v11, %v6788_v11  ;;  %v6796_v15 = vadd.f32 %v14321_v17, %v18432_v62 }
 0xe9f   : > { %14439 = vmatpush3.bf16.xpose.msra.mxu1 %v7594_v23  ;;  %v7732_v31 = vsel %vm1577_vm1, %v18554_v12, 0  ;;  %v18574_v59 = vpack.c.bf16 %v6793_v48, %v6793_v48 }
 0xea0   : > { %v7640_v37 = vsel %vm1577_vm1, %v18541_v9, 0  ;;  %14450 = vmatprep.subr.bf16.mxu1 %v20668_v19  ;;  %v18577_v25 = vpack.c.bf16 %v6796_v15, %v6796_v15 }
 0xea1   : > { %14445 = vmatpush3.bf16.xpose.msra.mxu0 %v7640_v37 }
 0xea2   : > { %14456 = vmatprep.subr.bf16.mxu0 %v20668_v19 }
 0xea6   : > { %14441 = vmatmul.mubr.msk.bf16.vlgmr.msra.gmra.mrb[232].mxu1 %vm1577_vm1, %v18552_v8 }
 0xea7   : > { %14451 = vmatpush3.bf16.xpose.msra.mxu1 %v7686_v21  ;;  %14452 = vmatprep.mubr.msk.bf16.mxu1 %vm15738_vm0, %v20668_v19 }
 0xea8   : > { %14447 = vmatmul.mubr.msk.bf16.vlgmr.msra.gmra.mrb[232].mxu0 %vm1577_vm1, %v18558_v51  ;;  %14462 = vmatprep.subr.bf16.mxu1 %v20668_v19 }
 0xea9   : > { %14457 = vmatpush3.bf16.xpose.msra.mxu0 %v7732_v31  ;;  %14458 = vmatprep.mubr.msk.bf16.mxu0 %vm15738_vm0, %v20668_v19 }
 0xeaa   : > { %14468 = vmatprep.subr.bf16.mxu0 %v20668_v19 }
 0xeab   : > { %v14324_v28 = vpop.f32.mrb[200].mxu1  ;;  %v14356_v23 = vpop.f32.mrb[208].mxu0 }
 0xeac   : > { %v6800_v60 = vpop.f32.mrb[201].mxu1  ;;  %v6986_v53 = vpop.f32.mrb[209].mxu0  ;;  %v6995_v48 = vadd.f32 %v14356_v23, %v18423_v39 }
 0xead   : > { %v6987_v37 = vadd.f32 %v18423_v39, %v6986_v53  ;;  %v14325_v11 = vpop.f32.mrb[202].mxu1  ;;  %v14357_v21 = vpop.f32.mrb[210].mxu0 }
 0xeae   : > { %14453 = vmatmul.mubr.msk.bf16.vlgmr.msra.gmra.mrb[236].mxu1 %vm1577_vm1, %v18574_v59  ;;  %v6803_v31 = vpop.f32.mrb[203].mxu1  ;;  %v6989_v42 = vpop.f32.mrb[211].mxu0  ;;  %v6998_v55 = vadd.f32 %v14357_v21, %v18423_v39  ;;  %v18608_v49 = vpack.c.bf16 %v6995_v48, %v6995_v48 }
 0xeaf   : > { %v18581_v17 = vpack.c.bf16 %v6987_v37, %v6987_v37  ;;  %v6990_v5 = vadd.f32 %v18423_v39, %v6989_v42  ;;  %14464 = vmatprep.mubr.msk.bf16.mxu1 %vm15738_vm0, %v20668_v19  ;;  %v18596_v37 = vld [vmem:[%s20492_s5 + $0x5] ss:$0 sm:$0xff]  ;;  %v6801_v42 = vadd.f32 %v18432_v62, %v6800_v60  ;;  %v6804_v18 = vadd.f32 %v18432_v62, %v6803_v31 }
 0xeb0   : > { %14459 = vmatmul.mubr.msk.bf16.vlgmr.msra.gmra.mrb[236].mxu0 %vm1577_vm1, %v18577_v25  ;;  %v18617_v16 = vpack.c.bf16 %v6998_v55, %v6998_v55  ;;  %v6809_v31 = vadd.f32 %v14324_v28, %v18432_v62  ;;  %v6812_v28 = vadd.f32 %v14325_v11, %v18432_v62 }
 0xeb1   : > { %v7778_v15 = vsel %vm1577_vm1, %v18581_v17, 0  ;;  %v18591_v53 = vpack.c.bf16 %v6990_v5, %v6990_v5  ;;  %14470 = vmatprep.mubr.msk.bf16.mxu0 %vm15738_vm0, %v20668_v19  ;;  %v18615_v21 = vpack.c.bf16 %v6801_v42, %v6801_v42  ;;  %v18621_v32 = vpack.c.bf16 %v6804_v18, %v6804_v18 }
 0xeb2   : > { %14463 = vmatpush3.bf16.xpose.msra.mxu1 %v7778_v15  ;;  %20727 = vst [vmem:[#allocation11_spill] sm:$0xff] %v18617_v16  ;;  %v7916_v55 = vsel %vm1577_vm1, %v18617_v16, 0  ;;  %v18650_v13 = vpack.c.bf16 %v6809_v31, %v6809_v31  ;;  %v18657_v62 = vpack.c.bf16 %v6812_v28, %v6812_v28 }
 0xeb3   : > { %v7824_v23 = vsel %vm1577_vm1, %v18591_v53, 0  ;;  %v14376_v63 = vpop.f32.mrb[204].mxu1  ;;  %14474 = vmatprep.subr.bf16.mxu1 %v20668_v19 }
 0xeb4   : > { %v18606_v5 = vadd.f32 %v14376_v63, %v18596_v37  ;;  %v7124_v14 = vpop.f32.mrb[205].mxu1  ;;  %14469 = vmatpush3.bf16.xpose.msra.mxu0 %v7824_v23  ;;  %v7870_v63 = vsel %vm1577_vm1, %v18608_v49, 0  ;;  %20731 = vst [vmem:[#allocation15_spill] sm:$0xff] %v18650_v13  ;;  %20733 = vst [vmem:[#allocation17_spill] sm:$0xff] %v18657_v62 }
 0xeb5   : > { %v14377_v15 = vpop.f32.mrb[206].mxu1  ;;  %14480 = vmatprep.subr.bf16.mxu0 %v20668_v19  ;;  %v7125_v48 = vadd.f32 %v18596_v37, %v7124_v14 }
 0xeb6   : > { %v18613_v39 = vadd.f32 %v14377_v15, %v18596_v37  ;;  %v7127_v60 = vpop.f32.mrb[207].mxu1 }
 0xeb7   : > { %v7128_v42 = vadd.f32 %v18596_v37, %v7127_v60  ;;  %v18641_v15 = vpack.c.bf16 %v7125_v48, %v7125_v48 }
 0xeb9   : > { %14465 = vmatmul.mubr.msk.bf16.vlgmr.msra.gmra.mrb[240].mxu1 %vm1577_vm1, %v18615_v21  ;;  %20729 = vst [vmem:[#allocation13_spill] sm:$0xff] %v18641_v15  ;;  %v8154_v11 = vsel %vm2510_vm2, %v18641_v15, 0 }
 0xeba   : > { %14475 = vmatpush3.bf16.xpose.msra.mxu1 %v7870_v63  ;;  %14476 = vmatprep.mubr.msk.bf16.mxu1 %vm15738_vm0, %v20668_v19 }
 0xebb   : > { %v14380_v23 = vpop.f32.mrb[208].mxu1  ;;  %14471 = vmatmul.mubr.msk.bf16.vlgmr.msra.gmra.mrb[240].mxu0 %vm1577_vm1, %v18621_v32  ;;  %14486 = vmatprep.subr.bf16.mxu1 %v20668_v19 }
 0xebc   : > { %v18636_v18 = vadd.f32 %v14380_v23, %v18596_v37  ;;  %v7140_v14 = vpop.f32.mrb[209].mxu1  ;;  %14481 = vmatpush3.bf16.xpose.msra.mxu0 %v7916_v55  ;;  %14482 = vmatprep.mubr.msk.bf16.mxu0 %vm15738_vm0, %v20668_v19  ;;  %v18652_v55 = vpack.c.bf16 %v7128_v42, %v7128_v42 }
 0xebd   : > { %v18644_v60 = vadd.f32 %v18596_v37, %v7140_v14  ;;  %v14381_v63 = vpop.f32.mrb[210].mxu1  ;;  %14492 = vmatprep.subr.bf16.mxu0 %v20668_v19 }
 0xebe   : > { %20728 = vst [vmem:[#allocation12_spill] sm:$0xff] %v18636_v18  ;;  %v18648_v43 = vadd.f32 %v14381_v63, %v18596_v37  ;;  %v7143_v23 = vpop.f32.mrb[211].mxu1  ;;  %20732 = vst [vmem:[#allocation16_spill] sm:$0xff] %v18652_v55  ;;  %v8200_v48 = vsel %vm2510_vm2, %v18652_v55, 0 }
 0xebf   : > { %v18655_v46 = vadd.f32 %v18596_v37, %v7143_v23 }
 0xec0   : > { %20730 = vst [vmem:[#allocation14_spill] sm:$0xff] %v18648_v43 }
 0xec1   : > { %14477 = vmatmul.mubr.msk.bf16.vlgmr.msra.gmra.mrb[244].mxu1 %vm1577_vm1, %v18650_v13  ;;  %v20746_v13 = vld [vmem:[#allocation54_spill] sm:$0xff] }
 0xec2   : > { %14487 = vmatpush3.bf16.msra.mxu1 %v8154_v11  ;;  %14488 = vmatprep.mubr.msk.bf16.mxu1 %vm15738_vm0, %v20668_v19 }
 0xec3   : > { %v14384_v31 = vpop.f32.mrb[212].mxu1  ;;  %14483 = vmatmul.mubr.msk.bf16.vlgmr.msra.gmra.mrb[244].mxu0 %vm1577_vm1, %v18657_v62  ;;  %14498 = vmatprep.subr.bf16.mxu1 %v20668_v19 }
 0xec4   : > { %v18671_v42 = vadd.f32 %v14384_v31, %v18596_v37  ;;  %v7156_v14 = vpop.f32.mrb[213].mxu1  ;;  %14493 = vmatpush3.bf16.msra.mxu0 %v8200_v48  ;;  %14494 = vmatprep.mubr.msk.bf16.mxu0 %vm15738_vm0, %v20668_v19 }
 0xec5   : > { %v18676_v28 = vadd.f32 %v18596_v37, %v7156_v14  ;;  %v14385_v63 = vpop.f32.mrb[214].mxu1  ;;  %14504 = vmatprep.subr.bf16.mxu0 %v20668_v19 }
 0xec6   : > { %20734 = vst [vmem:[#allocation18_spill] sm:$0xff] %v18671_v42  ;;  %v18680_v23 = vadd.f32 %v14385_v63, %v18596_v37  ;;  %v7159_v11 = vpop.f32.mrb[215].mxu1 }
 0xec7   : > { %20735 = vst [vmem:[#allocation19_spill] sm:$0xff] %v18676_v28  ;;  %v18683_v36 = vadd.f32 %v18596_v37, %v7159_v11 }
 0xec8   : > { %20736 = vst [vmem:[#allocation20_spill] sm:$0xff] %v18680_v23 }
 0xec9   : > { %20737 = vst [vmem:[#allocation21_spill] sm:$0xff] %v18683_v36 }
 0xecb   : > { %v14388_v31 = vpop.f32.mrb[216].mxu1 }
 0xecc   : > { %v18686_v38 = vadd.f32 %v14388_v31, %v18596_v37  ;;  %v7172_v48 = vpop.f32.mrb[217].mxu1 }
 0xecd   : > { %v18689_v58 = vadd.f32 %v18596_v37, %v7172_v48  ;;  %v14389_v14 = vpop.f32.mrb[218].mxu1 }
 0xece   : > { %20738 = vst [vmem:[#allocation22_spill] sm:$0xff] %v18686_v38  ;;  %v18692_v42 = vadd.f32 %v14389_v14, %v18596_v37  ;;  %v7175_v55 = vpop.f32.mrb[219].mxu1 }
 0xecf   : > { %20739 = vst [vmem:[#allocation23_spill] sm:$0xff] %v18689_v58  ;;  %v18695_v63 = vadd.f32 %v18596_v37, %v7175_v55 }
 0xed0   : > { %20740 = vst [vmem:[#allocation55_spill] sm:$0xff] %v18692_v42 }
 0xed1   : > { %20741 = vst [vmem:[#allocation56_spill] sm:$0xff] %v18695_v63 }
 0xeff   : > { %v7354_v23 = vpop.f32.mrb[220].mxu1 }
 0xf00   : > { %v7262_v28 = vpop.f32.mrb[212].mxu0  ;;  %v14406_v11 = vpop.f32.mrb[221].mxu1  ;;  %v18701_v48 = vadd.f32 %v7354_v23, %v20680_v56 }
 0xf01   : > { %v18698_v36 = vadd.f32 %v7262_v28, %v20678_v26  ;;  %v14394_v31 = vpop.f32.mrb[213].mxu0  ;;  %v7357_v38 = vpop.f32.mrb[222].mxu1 }
 0xf02   : > { %v7265_v62 = vpop.f32.mrb[214].mxu0  ;;  %v14407_v15 = vpop.f32.mrb[223].mxu1  ;;  %v7964_v37 = vsel %vm2314_vm3, %v18701_v48, -inf }
 0xf03   : > { %v14395_v58 = vpop.f32.mrb[215].mxu0  ;;  %v7958_v14 = vsel %vm2314_vm3, %v18698_v36, -inf }
 0xf04   : > { %7959 = vmax.xlane.f32.xlu0 %v7958_v14 }
 0xf08   : > { %v7308_v55 = vpop.f32.mrb[216].mxu0  ;;  %7965 = vmax.xlane.f32.xlu0 %v7964_v37 }
 0xf09   : > { %v18708_v28 = vadd.f32 %v7308_v55, %v20679_v54  ;;  %v14400_v11 = vpop.f32.mrb[217].mxu0 }
 0xf0a   : > { %v7311_v38 = vpop.f32.mrb[218].mxu0 }
 0xf0b   : > { %v14401_v62 = vpop.f32.mrb[219].mxu0  ;;  %v7961_v15 = vsel %vm2314_vm3, %v18708_v28, -inf }
 0xf0c   : > { %7962 = vmax.xlane.f32.xlu1 %v7961_v15 }
 0xf10   : > { %v7400_v58 = vpop.f32.mrb[220].mxu0 }
 0xf11   : > { %v18713_v23 = vadd.f32 %v7400_v58, %v20681_v6  ;;  %v14412_v31 = vpop.f32.mrb[221].mxu0 }
 0xf12   : > { %v7403_v14 = vpop.f32.mrb[222].mxu0 }
 0xf13   : > { %v14413_v56 = vpop.f32.mrb[223].mxu0  ;;  %v7967_v37 = vsel %vm2314_vm3, %v18713_v23, -inf }
 0xf14   : > { %7968 = vmax.xlane.f32.xlu1 %v7967_v37 }
 0xf47   : > { %v7446_v55 = vpop.f32.mrb[224].mxu1 }
 0xf48   : > { %v18718_v11 = vadd.f32 %v7446_v55, %v20682_v0  ;;  %v14418_v38 = vpop.f32.mrb[225].mxu1 }
 0xf49   : > { %v7449_v62 = vpop.f32.mrb[226].mxu1  ;;  %v7492_v54 = vpop.f32.mrb[224].mxu0 }
 0xf4a   : > { %v18721_v15 = vadd.f32 %v7492_v54, %v20688_v40  ;;  %v14419_v26 = vpop.f32.mrb[227].mxu1  ;;  %v14424_v58 = vpop.f32.mrb[225].mxu0  ;;  %v7970_v31 = vsel %vm2314_vm3, %v18718_v11, -inf }
 0xf4b   : > { %v7495_v56 = vpop.f32.mrb[226].mxu0  ;;  %7971 = vmax.xlane.f32.xlu0 %v7970_v31 }
 0xf4c   : > { %v14425_v14 = vpop.f32.mrb[227].mxu0  ;;  %v7973_v37 = vsel %vm2314_vm3, %v18721_v15, -inf }
 0xf4d   : > { %7974 = vmax.xlane.f32.xlu1 %v7973_v37 }
 0xf4f   : > { %v7538_v55 = vpop.f32.mrb[228].mxu1 }
 0xf50   : > { %v18728_v38 = vadd.f32 %v7538_v55, %v20683_v41  ;;  %v14430_v62 = vpop.f32.mrb[229].mxu1 }
 0xf51   : > { %v7541_v0 = vpop.f32.mrb[230].mxu1  ;;  %v7584_v54 = vpop.f32.mrb[228].mxu0 }
 0xf52   : > { %v18731_v26 = vadd.f32 %v7584_v54, %v20689_v4  ;;  %v14431_v58 = vpop.f32.mrb[231].mxu1  ;;  %v14436_v40 = vpop.f32.mrb[229].mxu0  ;;  %v7976_v31 = vsel %vm2314_vm3, %v18728_v38, -inf }
 0xf53   : > { %v7587_v56 = vpop.f32.mrb[230].mxu0  ;;  %7977 = vmax.xlane.f32.xlu0 %v7976_v31 }
 0xf54   : > { %v14437_v14 = vpop.f32.mrb[231].mxu0  ;;  %v7979_v37 = vsel %vm2314_vm3, %v18731_v26, -inf }
 0xf55   : > { %7980 = vmax.xlane.f32.xlu1 %v7979_v37 }
 0xf79   : > { %v7630_v55 = vpop.f32.mrb[232].mxu1 }
 0xf7a   : > { %v18738_v62 = vadd.f32 %v7630_v55, %v20684_v33  ;;  %v14442_v0 = vpop.f32.mrb[233].mxu1 }
 0xf7b   : > { %v7633_v41 = vpop.f32.mrb[234].mxu1  ;;  %v7676_v54 = vpop.f32.mrb[232].mxu0 }
 0xf7c   : > { %v18741_v58 = vadd.f32 %v7676_v54, %v20690_v29  ;;  %v14443_v40 = vpop.f32.mrb[235].mxu1  ;;  %v14448_v4 = vpop.f32.mrb[233].mxu0  ;;  %v7982_v31 = vsel %vm2314_vm3, %v18738_v62, -inf  ;;  %v20742_v29 = vld [vmem:[#allocation52_spill] sm:$0xff] }
 0xf7d   : > { %v7679_v56 = vpop.f32.mrb[234].mxu0  ;;  %7983 = vmax.xlane.f32.xlu0 %v7982_v31 }
 0xf7e   : > { %v14449_v14 = vpop.f32.mrb[235].mxu0  ;;  %v7985_v37 = vsel %vm2314_vm3, %v18741_v58, -inf }
 0xf7f   : > { %7986 = vmax.xlane.f32.xlu1 %v7985_v37 }
 0xf81   : > { %v7722_v55 = vpop.f32.mrb[236].mxu1 }
 0xf82   : > { %v18748_v0 = vadd.f32 %v7722_v55, %v20685_v7  ;;  %v14454_v41 = vpop.f32.mrb[237].mxu1  ;;  %v20743_v7 = vld [vmem:[#allocation49_spill] sm:$0xff] }
 0xf83   : > { %v7725_v33 = vpop.f32.mrb[238].mxu1  ;;  %v7768_v54 = vpop.f32.mrb[236].mxu0 }
 0xf84   : > { %v18751_v40 = vadd.f32 %v7768_v54, %v20742_v29  ;;  %v14455_v4 = vpop.f32.mrb[239].mxu1  ;;  %v14460_v6 = vpop.f32.mrb[237].mxu0  ;;  %v7988_v31 = vsel %vm2314_vm3, %v18748_v0, -inf  ;;  %v20744_v29 = vld [vmem:[#allocation53_spill] sm:$0xff] }
 0xf85   : > { %v7771_v56 = vpop.f32.mrb[238].mxu0  ;;  %7989 = vmax.xlane.f32.xlu0 %v7988_v31 }
 0xf86   : > { %v14461_v14 = vpop.f32.mrb[239].mxu0  ;;  %v7991_v37 = vsel %vm2314_vm3, %v18751_v40, -inf }
 0xf87   : > { %7992 = vmax.xlane.f32.xlu1 %v7991_v37 }
 0xf8c   : > { %v7814_v55 = vpop.f32.mrb[240].mxu1 }
 0xf8d   : > { %v18758_v41 = vadd.f32 %v7814_v55, %v20743_v7  ;;  %v14466_v33 = vpop.f32.mrb[241].mxu1  ;;  %v20745_v7 = vld [vmem:[#allocation51_spill] sm:$0xff] }
 0xf8e   : > { %v7817_v42 = vpop.f32.mrb[242].mxu1  ;;  %v7860_v54 = vpop.f32.mrb[240].mxu0 }
 0xf8f   : > { %v18761_v4 = vadd.f32 %v7860_v54, %v20744_v29  ;;  %v14467_v6 = vpop.f32.mrb[243].mxu1  ;;  %v14472_v63 = vpop.f32.mrb[241].mxu0  ;;  %v7994_v31 = vsel %vm2314_vm3, %v18758_v41, -inf }
 0xf90   : > { %v7863_v56 = vpop.f32.mrb[242].mxu0  ;;  %7995 = vmax.xlane.f32.xlu0 %v7994_v31 }
 0xf91   : > { %v7960_v14 = vpop.xlane.xlu0 %7959  ;;  %v14473_v16 = vpop.f32.mrb[243].mxu0  ;;  %v7997_v37 = vsel %vm2314_vm3, %v18761_v4, -inf }
 0xf92   : > { %v8006_v55 = vsub.f32 %v18698_v36, %v7960_v14  ;;  %7998 = vmax.xlane.f32.xlu1 %v7997_v37 }
 0xf94   : > { %v8022_v42 = vmul.f32 1.442695, %v8006_v55  ;;  %v7906_v33 = vpop.f32.mrb[244].mxu1 }
 0xf95   : > { %v18769_v54 = vadd.f32 %v7906_v33, %v20745_v7  ;;  %v7966_v6 = vpop.xlane.xlu0 %7965  ;;  %v14478_v63 = vpop.f32.mrb[245].mxu1 }
 0xf96   : > { %15413 = vpow2.f32 %v8022_v42  ;;  %v8008_v29 = vsub.f32 %v18701_v48, %v7966_v6  ;;  %v7909_v56 = vpop.f32.mrb[246].mxu1  ;;  %v7952_v31 = vpop.f32.mrb[244].mxu0 }
 0xf97   : > { %v18773_v16 = vadd.f32 %v7952_v31, %v20746_v13  ;;  %v14479_v43 = vpop.f32.mrb[247].mxu1  ;;  %v14484_v18 = vpop.f32.mrb[245].mxu0  ;;  %v8000_v36 = vsel %vm2314_vm3, %v18769_v54, -inf }
 0xf98   : > { %v8026_v14 = vmul.f32 1.442695, %v8008_v29  ;;  %v7955_v37 = vpop.f32.mrb[246].mxu0  ;;  %8001 = vmax.xlane.f32.xlu0 %v8000_v36 }
 0xf99   : > { %v7963_v55 = vpop.xlane.xlu1 %7962  ;;  %v14485_v33 = vpop.f32.mrb[247].mxu0  ;;  %v8003_v42 = vsel %vm2314_vm3, %v18773_v16, -inf }
 0xf9a   : > { %15415 = vpow2.f32 %v8026_v14  ;;  %v8007_v48 = vsub.f32 %v18708_v28, %v7963_v55  ;;  %8004 = vmax.xlane.f32.xlu1 %v8003_v42 }
 0xf9c   : > { %v8024_v6 = vmul.f32 1.442695, %v8007_v48 }
 0xf9e   : > { %15417 = vpow2.f32 %v8024_v6 }
 0xfa0   : > { %v18780_v63 = vpop.eup %15413 }
 0xfa1   : > { %v7969_v43 = vpop.xlane.xlu1 %7968  ;;  %v8054_v18 = vsel %vm2314_vm3, %v18780_v63, 0.0 }
 0xfa2   : > { %v8009_v29 = vsub.f32 %v18713_v23, %v7969_v43  ;;  %8055 = vadd.xlane.f32.xlu0 %v8054_v18 }
 0xfa4   : > { %v18785_v56 = vpop.eup %15415  ;;  %v8028_v31 = vmul.f32 1.442695, %v8009_v29 }
 0xfa5   : > { %v8060_v36 = vsel %vm2314_vm3, %v18785_v56, 0.0 }
 0xfa6   : > { %15419 = vpow2.f32 %v8028_v31  ;;  %8061 = vadd.xlane.f32.xlu0 %v8060_v36 }
 0xfa8   : > { %v18789_v28 = vpop.eup %15417 }
 0xfa9   : > { %v8057_v14 = vsel %vm2314_vm3, %v18789_v28, 0.0 }
 0xfaa   : > { %8058 = vadd.xlane.f32.xlu1 %v8057_v14 }
 0xfb0   : > { %v18793_v37 = vpop.eup %15419 }
 0xfb1   : > { %v8063_v23 = vsel %vm2314_vm3, %v18793_v37, 0.0 }
 0xfb2   : > { %8064 = vadd.xlane.f32.xlu1 %v8063_v23 }
 0xfd8   : > { %v7972_v55 = vpop.xlane.xlu0 %7971 }
 0xfd9   : > { %v8010_v33 = vsub.f32 %v18718_v11, %v7972_v55 }
 0xfda   : > { %v7975_v42 = vpop.xlane.xlu1 %7974 }
 0xfdb   : > { %v8030_v48 = vmul.f32 1.442695, %v8010_v33  ;;  %v8011_v6 = vsub.f32 %v18721_v15, %v7975_v42 }
 0xfdd   : > { %15421 = vpow2.f32 %v8030_v48  ;;  %v8032_v43 = vmul.f32 1.442695, %v8011_v6 }
 0xfdf   : > { %15423 = vpow2.f32 %v8032_v43 }
 0xfe0   : > { %v7978_v18 = vpop.xlane.xlu0 %7977 }
 0xfe1   : > { %v8012_v29 = vsub.f32 %v18728_v38, %v7978_v18 }
 0xfe2   : > { %v7981_v31 = vpop.xlane.xlu1 %7980 }
 0xfe3   : > { %v8034_v36 = vmul.f32 1.442695, %v8012_v29  ;;  %v8013_v14 = vsub.f32 %v18731_v26, %v7981_v31 }
 0xfe5   : > { %15425 = vpow2.f32 %v8034_v36  ;;  %v8036_v13 = vmul.f32 1.442695, %v8013_v14 }
 0xfe7   : > { %v18801_v23 = vpop.eup %15421  ;;  %15427 = vpow2.f32 %v8036_v13 }
 0xfe8   : > { %v8066_v11 = vsel %vm2314_vm3, %v18801_v23, 0.0 }
 0xfe9   : > { %v18805_v55 = vpop.eup %15423  ;;  %8067 = vadd.xlane.f32.xlu0 %v8066_v11 }
 0xfea   : > { %v8069_v15 = vsel %vm2314_vm3, %v18805_v55, 0.0 }
 0xfeb   : > { %8070 = vadd.xlane.f32.xlu1 %v8069_v15 }
 0xfef   : > { %v18809_v38 = vpop.eup %15425 }
 0xff0   : > { %v8072_v26 = vsel %vm2314_vm3, %v18809_v38, 0.0 }
 0xff1   : > { %v18813_v33 = vpop.eup %15427  ;;  %8073 = vadd.xlane.f32.xlu0 %v8072_v26 }
 0xff2   : > { %v8075_v13 = vsel %vm2314_vm3, %v18813_v33, 0.0 }
 0xff3   : > { %8076 = vadd.xlane.f32.xlu1 %v8075_v13 }
0x100a   : > { %v7984_v42 = vpop.xlane.xlu0 %7983 }
0x100b   : > { %v8014_v48 = vsub.f32 %v18738_v62, %v7984_v42 }
0x100c   : > { %v7987_v6 = vpop.xlane.xlu1 %7986 }
0x100d   : > { %v8038_v43 = vmul.f32 1.442695, %v8014_v48  ;;  %v8015_v18 = vsub.f32 %v18741_v58, %v7987_v6 }
0x100f   : > { %15429 = vpow2.f32 %v8038_v43  ;;  %v8040_v29 = vmul.f32 1.442695, %v8015_v18 }
0x1011   : > { %15431 = vpow2.f32 %v8040_v29 }
0x1012   : > { %v7990_v31 = vpop.xlane.xlu0 %7989 }
0x1013   : > { %v8016_v36 = vsub.f32 %v18748_v0, %v7990_v31 }
0x1014   : > { %v7993_v14 = vpop.xlane.xlu1 %7992 }
0x1015   : > { %v8042_v11 = vmul.f32 1.442695, %v8016_v36  ;;  %v8017_v15 = vsub.f32 %v18751_v40, %v7993_v14 }
0x1017   : > { %15433 = vpow2.f32 %v8042_v11  ;;  %v8044_v26 = vmul.f32 1.442695, %v8017_v15 }
0x1019   : > { %v18821_v13 = vpop.eup %15429  ;;  %15435 = vpow2.f32 %v8044_v26 }
0x101a   : > { %v8078_v62 = vsel %vm2314_vm3, %v18821_v13, 0.0 }
0x101b   : > { %v18825_v42 = vpop.eup %15431  ;;  %8079 = vadd.xlane.f32.xlu0 %v8078_v62 }
0x101c   : > { %v8081_v58 = vsel %vm2314_vm3, %v18825_v42, 0.0 }
0x101d   : > { %8082 = vadd.xlane.f32.xlu1 %v8081_v58  ;;  %v7996_v0 = vpop.xlane.xlu0 %7995 }
0x101e   : > { %v8018_v48 = vsub.f32 %v18758_v41, %v7996_v0 }
0x101f   : > { %v7999_v6 = vpop.xlane.xlu1 %7998 }
0x1020   : > { %v8046_v40 = vmul.f32 1.442695, %v8018_v48  ;;  %v8019_v43 = vsub.f32 %v18761_v4, %v7999_v6 }
0x1021   : > { %v18831_v18 = vpop.eup %15433 }
0x1022   : > { %15437 = vpow2.f32 %v8046_v40  ;;  %v8084_v29 = vsel %vm2314_vm3, %v18831_v18, 0.0  ;;  %v8048_v31 = vmul.f32 1.442695, %v8019_v43 }
0x1023   : > { %v18835_v36 = vpop.eup %15435  ;;  %8085 = vadd.xlane.f32.xlu0 %v8084_v29 }
0x1024   : > { %15439 = vpow2.f32 %v8048_v31  ;;  %v8087_v14 = vsel %vm2314_vm3, %v18835_v36, 0.0 }
0x1025   : > { %8088 = vadd.xlane.f32.xlu1 %v8087_v14  ;;  %v8002_v41 = vpop.xlane.xlu0 %8001 }
0x1026   : > { %v8020_v11 = vsub.f32 %v18769_v54, %v8002_v41 }
0x1027   : > { %v8005_v15 = vpop.xlane.xlu1 %8004 }
0x1028   : > { %v8050_v4 = vmul.f32 1.442695, %v8020_v11  ;;  %v8021_v26 = vsub.f32 %v18773_v16, %v8005_v15  ;;  %v18859_v11 = vpack.c.bf16 %v18606_v5, %v18606_v5 }
0x102a   : > { %15441 = vpow2.f32 %v8050_v4  ;;  %v8052_v62 = vmul.f32 1.442695, %v8021_v26 }
0x102c   : > { %v18841_v58 = vpop.eup %15437  ;;  %15443 = vpow2.f32 %v8052_v62  ;;  %v8246_v62 = vsel %vm2510_vm2, %v18859_v11, 0 }
0x102d   : > { %v8090_v0 = vsel %vm2314_vm3, %v18841_v58, 0.0 }
0x102e   : > { %v18845_v48 = vpop.eup %15439  ;;  %8091 = vadd.xlane.f32.xlu0 %v8090_v0 }
0x102f   : > { %v8056_v6 = vpop.xlane.xlu0 %8055  ;;  %v8093_v40 = vsel %vm2314_vm3, %v18845_v48, 0.0 }
0x1030   : > { %15445 = vrcp.f32 %v8056_v6  ;;  %8094 = vadd.xlane.f32.xlu1 %v8093_v40  ;;  %v18875_v40 = vpack.c.bf16 %v18644_v60, %v18644_v60  ;;  %v18893_v60 = vpack.c.bf16 %v18655_v46, %v18655_v46 }
0x1033   : > { %v8062_v54 = vpop.xlane.xlu0 %8061 }
0x1034   : > { %v18849_v43 = vpop.eup %15441  ;;  %15447 = vrcp.f32 %v8062_v54 }
0x1035   : > { %v8096_v16 = vsel %vm2314_vm3, %v18849_v43, 0.0 }
0x1036   : > { %v18853_v29 = vpop.eup %15443  ;;  %8097 = vadd.xlane.f32.xlu0 %v8096_v16 }
0x1037   : > { %v8059_v31 = vpop.xlane.xlu1 %8058  ;;  %v8099_v14 = vsel %vm2314_vm3, %v18853_v29, 0.0 }
0x1038   : > { %15449 = vrcp.f32 %v8059_v31  ;;  %8100 = vadd.xlane.f32.xlu1 %v8099_v14 }
0x103a   : > { %v15446_v41 = vpop.eup %15445 }
0x103b   : > { %v8118_v15 = vmul.f32 %v15446_v41, %v18780_v63  ;;  %v18871_v63 = vpack.c.bf16 %v18613_v39, %v18613_v39  ;;  %v8338_v41 = vsel %vm2510_vm2, %v18875_v40, 0 }
0x103d   : > { %v8134_v4 = vpack.c.bf16 %v8118_v15, %v8118_v15  ;;  %v8292_v14 = vsel %vm2510_vm2, %v18871_v63, 0 }
0x103e   : > { %v15448_v26 = vpop.eup %15447 }
0x103f   : > { %v8065_v0 = vpop.xlane.xlu1 %8064  ;;  %14489 = vmatmul.mubr.msk.bf16.vlgmr.msra.gmra.mrb[248].mxu1 %vm2314_vm3, %v8134_v4  ;;  %v8120_v5 = vmul.f32 %v15448_v26, %v18785_v56 }
0x1040   : > { %15451 = vrcp.f32 %v8065_v0  ;;  %14499 = vmatpush3.bf16.msra.mxu1 %v8246_v62  ;;  %14500 = vmatprep.mubr.msk.bf16.mxu1 %vm15738_vm0, %v20668_v19  ;;  %v20757_v62 = vld [vmem:[#allocation18_spill] sm:$0xff] }
0x1041   : > { %14510 = vmatprep.subr.bf16.mxu1 %v20668_v19  ;;  %v8136_v31 = vpack.c.bf16 %v8120_v5, %v8120_v5  ;;  %v19021_v0 = vpack.c.bf16 %v20757_v62, %v20757_v62 }
0x1042   : > { %v15450_v6 = vpop.eup %15449 }
0x1043   : > { %v8119_v54 = vmul.f32 %v15450_v6, %v18789_v28  ;;  %v8384_v28 = vsel %vm2510_vm2, %v18893_v60, 0 }
0x1045   : > { %v8135_v16 = vpack.c.bf16 %v8119_v54, %v8119_v54 }
0x1047   : > { %14495 = vmatmul.mubr.msk.bf16.vlgmr.msra.gmra.mrb[248].mxu0 %vm2314_vm3, %v8135_v16  ;;  %14501 = vmatmul.mubr.msk.bf16.vlgmr.msra.gmra.mrb[252].mxu1 %vm2314_vm3, %v8136_v31  ;;  %v8614_v31 = vsel %vm2510_vm2, %v19021_v0, 0 }
0x1048   : > { %14505 = vmatpush3.bf16.msra.mxu0 %v8292_v14  ;;  %14511 = vmatpush3.bf16.msra.mxu1 %v8338_v41 }
0x1049   : > { %9062 = vrot.lane.b32.xlu1 %v18449_v20, %s20747_s26  ;;  %14506 = vmatprep.mubr.msk.bf16.mxu0 %vm15738_vm0, %v20668_v19 }
0x104a   : > { %v15452_v39 = vpop.eup %15451  ;;  %14516 = vmatprep.subr.bf16.mxu0 %v20668_v19  ;;  %14512 = vmatprep.mubr.msk.bf16.mxu1 %vm15738_vm0, %v20668_v19 }
0x104b   : > { %v8121_v56 = vmul.f32 %v15452_v39, %v18793_v37  ;;  %14522 = vmatprep.subr.bf16.mxu1 %v20668_v19  ;;  %v20756_v37 = vld [vmem:[#allocation16_spill] sm:$0xff]  ;;  %v20759_v39 = vld [vmem:[#allocation23_spill] sm:$0xff] }
0x104c   : > { %9065 = vrot.lane.b32.xlu0 %v18434_v35, %s20747_s26 }
0x104d   : > { %9117 = vrot.lane.b32.xlu1 %v18445_v34, %s20747_s26  ;;  %v8137_v20 = vpack.c.bf16 %v8121_v56, %v8121_v56  ;;  %v19042_v56 = vpack.c.bf16 %v20759_v39, %v20759_v39 }
0x104f   : > { %14507 = vmatmul.mubr.msk.bf16.vlgmr.msra.gmra.mrb[252].mxu0 %vm2314_vm3, %v8137_v20 }
0x1050   : > { %14517 = vmatpush3.bf16.msra.mxu0 %v8384_v28  ;;  %9169 = vrot.lane.b32.xlu0 %v18427_v45, %s20747_s26 }
0x1051   : > { %9114 = vrot.lane.b32.xlu1 %v18466_v47, %s20747_s26  ;;  %14518 = vmatprep.mubr.msk.bf16.mxu0 %vm15738_vm0, %v20668_v19 }
0x1052   : > { %14528 = vmatprep.subr.bf16.mxu0 %v20668_v19 }
0x1054   : > { %9221 = vrot.lane.b32.xlu0 %v18464_v10, %s20747_s26  ;;  %v20748_v10 = vld [vmem:[#allocation12_spill] sm:$0xff] }
0x1055   : > { %9166 = vrot.lane.b32.xlu1 %v18447_v52, %s20747_s26 }
0x1058   : > { %9273 = vrot.lane.b32.xlu0 %v18483_v22, %s20747_s26  ;;  %v20749_v22 = vld [vmem:[#allocation14_spill] sm:$0xff] }
0x1059   : > { %9218 = vrot.lane.b32.xlu1 %v18476_v3, %s20747_s26 }
0x105c   : > { %9270 = vrot.lane.b32.xlu0 %v18500_v57, %s20747_s26 }
0x105d   : > { %9325 = vrot.lane.b32.xlu1 %v18489_v1, %s20747_s26  ;;  %v18966_v1 = vpack.c.bf16 %v20749_v22, %v20749_v22 }
0x1060   : > { %9377 = vrot.lane.b32.xlu0 %v18496_v24, %s20747_s26 }
0x1061   : > { %9322 = vrot.lane.b32.xlu1 %v18506_v44, %s20747_s26 }
0x1064   : > { %9374 = vrot.lane.b32.xlu0 %v18522_v61, %s20747_s26  ;;  %v8476_v61 = vsel %vm2510_vm2, %v18966_v1, 0 }
0x1065   : > { %9429 = vrot.lane.b32.xlu1 %v18502_v2, %s20747_s26  ;;  %v20751_v2 = vld [vmem:[#allocation11_spill] sm:$0xff] }
0x1068   : > { %9481 = vrot.lane.b32.xlu0 %v18535_v50, %s20747_s26 }
0x1069   : > { %9426 = vrot.lane.b32.xlu1 %v18524_v27, %s20747_s26  ;;  %v20752_v27 = vld [vmem:[#allocation13_spill] sm:$0xff] }
0x106c   : > { %9478 = vrot.lane.b32.xlu0 %v18552_v8, %s20747_s26 }
0x106d   : > { %9533 = vrot.lane.b32.xlu1 %v18541_v9, %s20747_s26  ;;  %v20753_v9 = vld [vmem:[#allocation17_spill] sm:$0xff] }
0x1070   : > { %9585 = vrot.lane.b32.xlu0 %v18548_v30, %s20747_s26  ;;  %v20754_v30 = vld [vmem:[#allocation19_spill] sm:$0xff] }
0x1071   : > { %9530 = vrot.lane.b32.xlu1 %v18558_v51, %s20747_s26  ;;  %v18987_v8 = vpack.c.bf16 %v20754_v30, %v20754_v30 }
0x1074   : > { %9582 = vrot.lane.b32.xlu0 %v18574_v59, %s20747_s26  ;;  %v20755_v59 = vld [vmem:[#allocation21_spill] sm:$0xff] }
0x1075   : > { %9637 = vrot.lane.b32.xlu1 %v18554_v12, %s20747_s26 }
0x1076   : > { %v8068_v46 = vpop.xlane.xlu0 %8067 }
0x1077   : > { %15453 = vrcp.f32 %v8068_v46 }
0x1078   : > { %v8071_v45 = vpop.xlane.xlu1 %8070  ;;  %9689 = vrot.lane.b32.xlu0 %v18581_v17, %s20747_s26  ;;  %v18996_v17 = vpack.c.bf16 %v20755_v59, %v20755_v59 }
0x1079   : > { %15455 = vrcp.f32 %v8071_v45  ;;  %9634 = vrot.lane.b32.xlu1 %v18577_v25, %s20747_s26  ;;  %v18961_v25 = vpack.c.bf16 %v20748_v10, %v20748_v10  ;;  %v20760_v45 = vld [vmem:[#allocation56_spill] sm:$0xff]  ;;  %v8706_v10 = vsel %vm2510_vm2, %v19042_v56, 0 }
0x107c   : > { %9686 = vrot.lane.b32.xlu0 %v18615_v21, %s20747_s26 }
0x107d   : > { %9741 = vrot.lane.b32.xlu1 %v18591_v53, %s20747_s26 }
0x107e   : > { %v8074_v35 = vpop.xlane.xlu0 %8073 }
0x107f   : > { %15457 = vrcp.f32 %v8074_v35  ;;  %v19048_v35 = vpack.c.bf16 %v20760_v45, %v20760_v45 }
0x1080   : > { %v8077_v34 = vpop.xlane.xlu1 %8076  ;;  %9793 = vrot.lane.b32.xlu0 %v18608_v49, %s20747_s26  ;;  %v20750_v49 = vld [vmem:[#allocation15_spill] sm:$0xff] }
0x1081   : > { %v15454_v52 = vpop.eup %15453  ;;  %15459 = vrcp.f32 %v8077_v34  ;;  %9738 = vrot.lane.b32.xlu1 %v18621_v32, %s20747_s26  ;;  %v8430_v32 = vsel %vm2510_vm2, %v18961_v25, 0 }
0x1082   : > { %v8122_v47 = vmul.f32 %v15454_v52, %v18801_v23  ;;  %v8522_v23 = vsel %vm2510_vm2, %v18987_v8, 0 }
0x1083   : > { %v15456_v3 = vpop.eup %15455 }
0x1084   : > { %v8138_v24 = vpack.c.bf16 %v8122_v47, %v8122_v47  ;;  %v8123_v57 = vmul.f32 %v15456_v3, %v18805_v55  ;;  %9790 = vrot.lane.b32.xlu0 %v20750_v49, %s20747_s26 }
0x1085   : > { %9845 = vrot.lane.b32.xlu1 %v20751_v2, %s20747_s26 }
0x1086   : > { %v8139_v44 = vpack.c.bf16 %v8123_v57, %v8123_v57  ;;  %14513 = vmatmul.mubr.msk.bf16.vlgmr.msra.gmra.mrb[0].mxu1 %vm2314_vm3, %v8138_v24  ;;  %v20761_v24 = vld [vmem:[#allocation22_spill] sm:$0xff] }
0x1087   : > { %14523 = vmatpush3.bf16.msra.mxu1 %v8430_v32  ;;  %14524 = vmatprep.mubr.msk.bf16.mxu1 %vm15738_vm0, %v20668_v19  ;;  %v19065_v57 = vpack.c.bf16 %v20761_v24, %v20761_v24 }
0x1088   : > { %14519 = vmatmul.mubr.msk.bf16.vlgmr.msra.gmra.mrb[0].mxu0 %vm2314_vm3, %v8139_v44  ;;  %10086 = vrot.lane.b32.xlu0 %v20752_v27, %s20747_s26  ;;  %v20762_v44 = vld [vmem:[#allocation55_spill] sm:$0xff] }
0x1089   : > { %v15458_v50 = vpop.eup %15457  ;;  %14529 = vmatpush3.bf16.msra.mxu0 %v8476_v61  ;;  %9842 = vrot.lane.b32.xlu1 %v20753_v9, %s20747_s26  ;;  %v19070_v61 = vpack.c.bf16 %v20762_v44, %v20762_v44  ;;  %v15069_v9 = vld [vmem:[%s20493_s6 + $0x40] sm:$0xff]   ;;  %v8798_v30 = vsel %vm2510_vm2, %v19065_v57, 0 }
0x108a   : > { %v8124_v12 = vmul.f32 %v15458_v50, %v18809_v38  ;;  %14534 = vmatprep.subr.bf16.mxu1 %v20668_v19  ;;  %14530 = vmatprep.mubr.msk.bf16.mxu0 %vm15738_vm0, %v20668_v19  ;;  %v8568_v38 = vsel %vm2510_vm2, %v18996_v17, 0 }
0x108b   : > { %v15460_v51 = vpop.eup %15459  ;;  %14540 = vmatprep.subr.bf16.mxu0 %v20668_v19 }
0x108c   : > { %v8140_v53 = vpack.c.bf16 %v8124_v12, %v8124_v12  ;;  %v8125_v21 = vmul.f32 %v15460_v51, %v18813_v33  ;;  %10184 = vrot.lane.b32.xlu0 %v18859_v11, %s20747_s26  ;;  %v8844_v51 = vsel %vm2510_vm2, %v19070_v61, 0 }
0x108d   : > { %10135 = vrot.lane.b32.xlu1 %v20756_v37, %s20747_s26 }
0x108e   : > { %v8141_v55 = vpack.c.bf16 %v8125_v21, %v8125_v21  ;;  %14525 = vmatmul.mubr.msk.bf16.vlgmr.msra.gmra.mrb[4].mxu1 %vm2314_vm3, %v8140_v53 }
0x108f   : > { %14535 = vmatpush3.bf16.msra.mxu1 %v8522_v23  ;;  %14536 = vmatprep.mubr.msk.bf16.mxu1 %vm15738_vm0, %v20668_v19 }
0x1090   : > { %14531 = vmatmul.mubr.msk.bf16.vlgmr.msra.gmra.mrb[4].mxu0 %vm2314_vm3, %v8141_v55  ;;  %10282 = vrot.lane.b32.xlu0 %v18875_v40, %s20747_s26  ;;  %v15070_v55 = vld [vmem:[%s20493_s6 + $0x48] sm:$0xff]  }
0x1091   : > { %14541 = vmatpush3.bf16.msra.mxu0 %v8568_v38  ;;  %10233 = vrot.lane.b32.xlu1 %v18871_v63, %s20747_s26  ;;  %v20758_v63 = vld [vmem:[#allocation20_spill] sm:$0xff] }
0x1092   : > { %14546 = vmatprep.subr.bf16.mxu1 %v20668_v19  ;;  %14542 = vmatprep.mubr.msk.bf16.mxu0 %vm15738_vm0, %v20668_v19  ;;  %v19026_v40 = vpack.c.bf16 %v20758_v63, %v20758_v63 }
0x1093   : > { %14552 = vmatprep.subr.bf16.mxu0 %v20668_v19 }
0x10a8   : > { %v8080_v33 = vpop.xlane.xlu0 %8079 }
0x10a9   : > { %15461 = vrcp.f32 %v8080_v33 }
0x10aa   : > { %v8083_v11 = vpop.xlane.xlu1 %8082 }
0x10ab   : > { %15463 = vrcp.f32 %v8083_v11 }
0x10b0   : > { %v8086_v15 = vpop.xlane.xlu0 %8085 }
0x10b1   : > { %15465 = vrcp.f32 %v8086_v15  ;;  %v15072_v15 = vld [vmem:[%s20493_s6 + $0x58] sm:$0xff]  }
0x10b2   : > { %v8089_v4 = vpop.xlane.xlu1 %8088 }
0x10b3   : > { %v15462_v26 = vpop.eup %15461  ;;  %15467 = vrcp.f32 %v8089_v4 }
0x10b4   : > { %v8126_v5 = vmul.f32 %v15462_v26, %v18821_v13  ;;  %v8660_v13 = vsel %vm2510_vm2, %v19026_v40, 0 }
0x10b5   : > { %v15464_v6 = vpop.eup %15463 }
0x10b6   : > { %v8142_v54 = vpack.c.bf16 %v8126_v5, %v8126_v5  ;;  %v8127_v16 = vmul.f32 %v15464_v6, %v18825_v42 }
0x10b8   : > { %v8143_v14 = vpack.c.bf16 %v8127_v16, %v8127_v16  ;;  %14537 = vmatmul.mubr.msk.bf16.vlgmr.msra.gmra.mrb[8].mxu1 %vm2314_vm3, %v8142_v54 }
0x10b9   : > { %14547 = vmatpush3.bf16.msra.mxu1 %v8614_v31  ;;  %14548 = vmatprep.mubr.msk.bf16.mxu1 %vm15738_vm0, %v20668_v19 }
0x10ba   : > { %14543 = vmatmul.mubr.msk.bf16.vlgmr.msra.gmra.mrb[8].mxu0 %vm2314_vm3, %v8143_v14  ;;  %14558 = vmatprep.subr.bf16.mxu1 %v20668_v19 }
0x10bb   : > { %v15466_v41 = vpop.eup %15465  ;;  %14553 = vmatpush3.bf16.msra.mxu0 %v8660_v13  ;;  %v8092_v42 = vpop.xlane.xlu0 %8091  ;;  %14554 = vmatprep.mubr.msk.bf16.mxu0 %vm15738_vm0, %v20668_v19 }
0x10bc   : > { %v8128_v20 = vmul.f32 %v15466_v41, %v18831_v18  ;;  %15469 = vrcp.f32 %v8092_v42  ;;  %14564 = vmatprep.subr.bf16.mxu0 %v20668_v19  ;;  %v8752_v18 = vsel %vm2510_vm2, %v19048_v35, 0 }
0x10bd   : > { %v15468_v28 = vpop.eup %15467  ;;  %v8095_v46 = vpop.xlane.xlu1 %8094 }
0x10be   : > { %v8144_v34 = vpack.c.bf16 %v8128_v20, %v8128_v20  ;;  %v8129_v52 = vmul.f32 %v15468_v28, %v18835_v36  ;;  %15471 = vrcp.f32 %v8095_v46 }
0x10c0   : > { %v8145_v47 = vpack.c.bf16 %v8129_v52, %v8129_v52  ;;  %14549 = vmatmul.mubr.msk.bf16.vlgmr.msra.gmra.mrb[12].mxu1 %vm2314_vm3, %v8144_v34 }
0x10c1   : > { %14559 = vmatpush3.bf16.msra.mxu1 %v8706_v10  ;;  %14560 = vmatprep.mubr.msk.bf16.mxu1 %vm15738_vm0, %v20668_v19 }
0x10c2   : > { %14555 = vmatmul.mubr.msk.bf16.vlgmr.msra.gmra.mrb[12].mxu0 %vm2314_vm3, %v8145_v47  ;;  %14570 = vmatprep.subr.bf16.mxu1 %v20668_v19 }
0x10c3   : > { %14565 = vmatpush3.bf16.msra.mxu0 %v8752_v18  ;;  %v8098_v36 = vpop.xlane.xlu0 %8097  ;;  %14566 = vmatprep.mubr.msk.bf16.mxu0 %vm15738_vm0, %v20668_v19 }
0x10c4   : > { %15473 = vrcp.f32 %v8098_v36  ;;  %14576 = vmatprep.subr.bf16.mxu0 %v20668_v19 }
0x10c5   : > { %v8101_v3 = vpop.xlane.xlu1 %8100 }
0x10c6   : > { %v15470_v22 = vpop.eup %15469  ;;  %15475 = vrcp.f32 %v8101_v3 }
0x10c7   : > { %v8130_v49 = vmul.f32 %v15470_v22, %v18841_v58  ;;  %v9066_v2 = vpop.permute.xlu0 %9065 }
0x10c8   : > { %v15472_v32 = vpop.eup %15471  ;;  %v9071_v11 = vsel %vm1577_vm1, %v9066_v2, 0 }
0x10c9   : > { %v8146_v27 = vpack.c.bf16 %v8130_v49, %v8130_v49  ;;  %v8131_v50 = vmul.f32 %v15472_v32, %v18845_v48  ;;  %v9063_v33 = vpop.permute.xlu1 %9062 }
0x10cb   : > { %v8147_v12 = vpack.c.bf16 %v8131_v50, %v8131_v50  ;;  %14561 = vmatmul.mubr.msk.bf16.vlgmr.msra.gmra.mrb[16].mxu1 %vm2314_vm3, %v8146_v27  ;;  %v9170_v58 = vpop.permute.xlu0 %9169 }
0x10cc   : > { %14571 = vmatpush3.bf16.msra.mxu1 %v8798_v30  ;;  %14572 = vmatprep.mubr.msk.bf16.mxu1 %vm15738_vm0, %v20668_v19  ;;  %v9175_v63 = vsel %vm1577_vm1, %v9170_v58, 0 }
0x10cd   : > { %14567 = vmatmul.mubr.msk.bf16.vlgmr.msra.gmra.mrb[16].mxu0 %vm2314_vm3, %v8147_v12  ;;  %14582 = vmatprep.subr.bf16.mxu1 %v15069_v9  ;;  %v9118_v4 = vpop.permute.xlu1 %9117 }
0x10ce   : > { %v15474_v48 = vpop.eup %15473  ;;  %14577 = vmatpush3.bf16.msra.mxu0 %v8844_v51  ;;  %14578 = vmatprep.mubr.msk.bf16.mxu0 %vm15738_vm0, %v20668_v19  ;;  %v9123_v62 = vsel %vm1577_vm1, %v9118_v4, 0 }
0x10cf   : > { %v8132_v59 = vmul.f32 %v15474_v48, %v18849_v43  ;;  %14606 = vmatprep.subr.bf16.mxu0 %v20668_v19  ;;  %v9222_v23 = vpop.permute.xlu0 %9221  ;;  %v15071_v43 = vld [vmem:[%s20493_s6 + $0x50] sm:$0xff]  }
0x10d0   : > { %v15476_v53 = vpop.eup %15475  ;;  %v9227_v31 = vsel %vm1577_vm1, %v9222_v23, 0 }
0x10d1   : > { %v8148_v21 = vpack.c.bf16 %v8132_v59, %v8132_v59  ;;  %v8133_v37 = vmul.f32 %v15476_v53, %v18853_v29  ;;  %v9115_v6 = vpop.permute.xlu1 %9114 }
0x10d3   : > { %v8149_v38 = vpack.c.bf16 %v8133_v37, %v8133_v37  ;;  %14573 = vmatmul.mubr.msk.bf16.vlgmr.msra.gmra.mrb[20].mxu1 %vm2314_vm3, %v8148_v21  ;;  %v9274_v29 = vpop.permute.xlu0 %9273 }
0x10d4   : > { %14583 = vmatpush3.bf16.msra.mxu1 %v15069_v9  ;;  %v9279_v42 = vsel %vm1577_vm1, %v9274_v29, 0 }
0x10d5   : > { %14579 = vmatmul.mubr.msk.bf16.vlgmr.msra.gmra.mrb[20].mxu0 %vm2314_vm3, %v8149_v38  ;;  %14584 = vmatprep.subr.bf16.mxu1 %v15070_v55  ;;  %v9167_v16 = vpop.permute.xlu1 %9166 }
0x10d6   : > { %14608 = vmatprep.mubr.msk.bf16.mxu0 %vm15738_vm0, %v20668_v19 }
0x10d7   : > { %14607 = vmatpush3.bf16.xpose.msra.mxu0 %v9071_v11  ;;  %v9271_v26 = vpop.permute.xlu0 %9270 }
0x10d8   : > { %14612 = vmatprep.subr.bf16.mxu0 %v20668_v19  ;;  %14585 = vmatpush3.bf16.msra.mxu1 %v15070_v55 }
0x10d9   : > { %14586 = vmatprep.subr.bf16.mxu1 %v15071_v43  ;;  %v9219_v13 = vpop.permute.xlu1 %9218 }
0x10db   : > { %v9378_v5 = vpop.permute.xlu0 %9377 }
0x10dc   : > { %14587 = vmatpush3.bf16.msra.mxu1 %v15071_v43  ;;  %v9383_v20 = vsel %vm1577_vm1, %v9378_v5, 0 }
0x10dd   : > { %14588 = vmatprep.subr.bf16.mxu1 %v15072_v15  ;;  %v9326_v51 = vpop.permute.xlu1 %9325 }
0x10de   : > { %14609 = vmatmul.mubr.msk.bf16.vlgmr.msra.gmra.mrb[24].mxu0 %vm1577_vm1, %v9063_v33  ;;  %v9331_v23 = vsel %vm1577_vm1, %v9326_v51, 0 }
0x10df   : > { %14613 = vmatpush3.bf16.xpose.msra.mxu0 %v9123_v62  ;;  %14614 = vmatprep.mubr.msk.bf16.mxu0 %vm15738_vm0, %v20668_v19  ;;  %v9375_v54 = vpop.permute.xlu0 %9374 }
0x10e0   : > { %14618 = vmatprep.subr.bf16.mxu0 %v20668_v19  ;;  %14589 = vmatpush3.bf16.msra.mxu1 %v15072_v15 }
0x10e1   : > { %14636 = vmatprep.subr.bf16.mxu1 %v20668_v19 }
0x10e3   : > { %v9482_v14 = vpop.permute.xlu0 %9481 }
0x10e4   : > { %v9487_v46 = vsel %vm1577_vm1, %v9482_v14, 0 }
0x10e6   : > { %14615 = vmatmul.mubr.msk.bf16.vlgmr.msra.gmra.mrb[28].mxu0 %vm1577_vm1, %v9115_v6 }
0x10e7   : > { %14619 = vmatpush3.bf16.xpose.msra.mxu0 %v9175_v63  ;;  %14620 = vmatprep.mubr.msk.bf16.mxu0 %vm15738_vm0, %v20668_v19  ;;  %v9479_v41 = vpop.permute.xlu0 %9478 }
0x10e8   : > { %14624 = vmatprep.subr.bf16.mxu0 %v20668_v19 }
0x10eb   : > { %v9586_v39 = vpop.permute.xlu0 %9585 }
0x10ec   : > { %v9591_v52 = vsel %vm1577_vm1, %v9586_v39, 0 }
0x10ee   : > { %14621 = vmatmul.mubr.msk.bf16.vlgmr.msra.gmra.mrb[32].mxu0 %vm1577_vm1, %v9167_v16 }
0x10ef   : > { %14625 = vmatpush3.bf16.xpose.msra.mxu0 %v9227_v31  ;;  %14626 = vmatprep.mubr.msk.bf16.mxu0 %vm15738_vm0, %v20668_v19  ;;  %v9583_v28 = vpop.permute.xlu0 %9582 }
0x10f0   : > { %14630 = vmatprep.subr.bf16.mxu0 %v20668_v19 }
0x10f3   : > { %v9690_v45 = vpop.permute.xlu0 %9689 }
0x10f4   : > { %v9695_v22 = vsel %vm1577_vm1, %v9690_v45, 0 }
0x10f6   : > { %14627 = vmatmul.mubr.msk.bf16.vlgmr.msra.gmra.mrb[36].mxu0 %vm1577_vm1, %v9219_v13 }
0x10f7   : > { %14631 = vmatpush3.bf16.xpose.msra.mxu0 %v9279_v42  ;;  %14632 = vmatprep.mubr.msk.bf16.mxu0 %vm15738_vm0, %v20668_v19  ;;  %v9687_v34 = vpop.permute.xlu0 %9686 }
0x10f8   : > { %14642 = vmatprep.subr.bf16.mxu0 %v20668_v19 }
0x10fb   : > { %v9794_v47 = vpop.permute.xlu0 %9793 }
0x10fc   : > { %v9799_v58 = vsel %vm1577_vm1, %v9794_v47, 0 }
0x10fe   : > { %14633 = vmatmul.mubr.msk.bf16.vlgmr.msra.gmra.mrb[40].mxu0 %vm1577_vm1, %v9271_v26 }
0x10ff   : > { %14643 = vmatpush3.bf16.xpose.msra.mxu0 %v9383_v20  ;;  %14644 = vmatprep.mubr.msk.bf16.mxu0 %vm15738_vm0, %v20668_v19  ;;  %v9791_v24 = vpop.permute.xlu0 %9790 }
0x1100   : > { %14654 = vmatprep.subr.bf16.mxu0 %v20668_v19 }
0x1103   : > { %v10087_v59 = vpop.permute.xlu0 %10086 }
0x1104   : > { %v10092_v38 = vsel %vm2510_vm2, %v10087_v59, 0 }
0x1106   : > { %14645 = vmatmul.mubr.msk.bf16.vlgmr.msra.gmra.mrb[44].mxu0 %vm1577_vm1, %v9375_v54 }
0x1107   : > { %14655 = vmatpush3.bf16.xpose.msra.mxu0 %v9487_v46  ;;  %14656 = vmatprep.mubr.msk.bf16.mxu0 %vm15738_vm0, %v20668_v19 }
0x1108   : > { %14666 = vmatprep.subr.bf16.mxu0 %v20668_v19 }
0x110e   : > { %14657 = vmatmul.mubr.msk.bf16.vlgmr.msra.gmra.mrb[48].mxu0 %vm1577_vm1, %v9479_v41 }
0x110f   : > { %14667 = vmatpush3.bf16.xpose.msra.mxu0 %v9591_v52  ;;  %14668 = vmatprep.mubr.msk.bf16.mxu0 %vm15738_vm0, %v20668_v19 }
0x1110   : > { %14678 = vmatprep.subr.bf16.mxu0 %v20668_v19 }
0x1112   : > { %v8190_v10 = vpop.f32.mrb[248].mxu1 }
0x1113   : > { %v14490_v18 = vpop.f32.mrb[249].mxu1 }
0x1114   : > { %v8193_v36 = vpop.f32.mrb[250].mxu1  ;;  %v9323_v18 = vpop.permute.xlu1 %9322 }
0x1115   : > { %v14491_v3 = vpop.f32.mrb[251].mxu1 }
0x1116   : > { %14669 = vmatmul.mubr.msk.bf16.vlgmr.msra.gmra.mrb[52].mxu0 %vm1577_vm1, %v9583_v28 }
0x1117   : > { %14679 = vmatpush3.bf16.xpose.msra.mxu0 %v9695_v22  ;;  %14680 = vmatprep.mubr.msk.bf16.mxu0 %vm15738_vm0, %v20668_v19 }
0x1118   : > { %14690 = vmatprep.subr.bf16.mxu0 %v20668_v19 }
0x111a   : > { %v8236_v49 = vpop.f32.mrb[248].mxu0  ;;  %v8282_v2 = vpop.f32.mrb[252].mxu1 }
0x111b   : > { %v8886_v32 = vpack.c.bf16 %v8236_v49, %v8190_v10  ;;  %v14496_v44 = vpop.f32.mrb[249].mxu0  ;;  %v14502_v27 = vpop.f32.mrb[253].mxu1 }
0x111c   : > { %v8239_v50 = vpop.f32.mrb[250].mxu0  ;;  %v8285_v9 = vpop.f32.mrb[254].mxu1 }
0x111d   : > { %v14497_v30 = vpop.f32.mrb[251].mxu0  ;;  %v14503_v12 = vpop.f32.mrb[255].mxu1  ;;  %14590 = vmatprep.mubr.msk.bf16.mxu1 %vm1577_vm1, %v8886_v32 }
0x111e   : > { %14681 = vmatmul.mubr.msk.bf16.vlgmr.msra.gmra.mrb[56].mxu0 %vm1577_vm1, %v9687_v34  ;;  %v9430_v50 = vpop.permute.xlu1 %9429 }
0x111f   : > { %14691 = vmatpush3.bf16.xpose.msra.mxu0 %v9799_v58  ;;  %14692 = vmatprep.mubr.msk.bf16.mxu0 %vm15738_vm0, %v20668_v19 }
0x1120   : > { %14702 = vmatprep.subr.bf16.mxu0 %v20668_v19 }
0x1122   : > { %v8328_v48 = vpop.f32.mrb[252].mxu0  ;;  %v9427_v30 = vpop.permute.xlu1 %9426 }
0x1123   : > { %v8887_v53 = vpack.c.bf16 %v8328_v48, %v8282_v2  ;;  %v14508_v21 = vpop.f32.mrb[253].mxu0 }
0x1124   : > { %v8331_v37 = vpop.f32.mrb[254].mxu0 }
0x1125   : > { %v14509_v55 = vpop.f32.mrb[255].mxu0  ;;  %14591 = vmatmul.mubr.msk.bf16.vlgmr.msra.gmra.mrb[24].mxu1 %vm1577_vm1, %v8887_v53 }
0x1126   : > { %14637 = vmatpush3.bf16.xpose.msra.mxu1 %v9331_v23  ;;  %14693 = vmatmul.mubr.msk.bf16.vlgmr.msra.gmra.mrb[60].mxu0 %vm1577_vm1, %v9791_v24  ;;  %v9534_v55 = vpop.permute.xlu1 %9533 }
0x1127   : > { %14703 = vmatpush3.bf16.msra.mxu0 %v10092_v38  ;;  %14648 = vmatprep.subr.bf16.mxu1 %v20668_v19 }
0x1128   : > { %14704 = vmatprep.mubr.msk.bf16.mxu0 %vm15738_vm0, %v20668_v19  ;;  %14714 = vmatprep.subr.bf16.mxu0 %v20668_v19 }
0x1159   : > { %v8374_v33 = vpop.f32.mrb[0].mxu1 }
0x115a   : > { %v14514_v43 = vpop.f32.mrb[1].mxu1 }
0x115b   : > { %v8377_v11 = vpop.f32.mrb[2].mxu1  ;;  %v8420_v29 = vpop.f32.mrb[0].mxu0 }
0x115c   : > { %v8888_v15 = vpack.c.bf16 %v8420_v29, %v8374_v33  ;;  %v14515_v4 = vpop.f32.mrb[3].mxu1  ;;  %v14520_v26 = vpop.f32.mrb[1].mxu0 }
0x115d   : > { %v8423_v62 = vpop.f32.mrb[2].mxu0 }
0x115e   : > { %v14521_v5 = vpop.f32.mrb[3].mxu0  ;;  %14594 = vmatprep.mubr.msk.bf16.mxu1 %vm1577_vm1, %v8888_v15  ;;  %v9531_v62 = vpop.permute.xlu1 %9530 }
0x1161   : > { %v8466_v6 = vpop.f32.mrb[4].mxu1 }
0x1162   : > { %v14526_v63 = vpop.f32.mrb[5].mxu1 }
0x1163   : > { %v8469_v54 = vpop.f32.mrb[6].mxu1  ;;  %v8512_v16 = vpop.f32.mrb[4].mxu0 }
0x1164   : > { %v8889_v31 = vpack.c.bf16 %v8512_v16, %v8466_v6  ;;  %v14527_v14 = vpop.f32.mrb[7].mxu1  ;;  %v14532_v13 = vpop.f32.mrb[5].mxu0  ;;  %v20763_v6 = vld [vmem:[#allocation39_spill] sm:$0xff]  ;;  %v9435_v16 = vsel %vm1577_vm1, %v9430_v50, 0  ;;  %v20766_v50 = vld [vmem:[#allocation44_spill] sm:$0xff] }
0x1165   : > { %v8515_v41 = vpop.f32.mrb[6].mxu0  ;;  %v9638_v14 = vpop.permute.xlu1 %9637 }
0x1166   : > { %v14533_v42 = vpop.f32.mrb[7].mxu0  ;;  %14595 = vmatmul.mubr.msk.bf16.gmra.mrb[28].mxu1 %vm1577_vm1, %v8889_v31 }
0x118b   : > { %v8558_v39 = vpop.f32.mrb[8].mxu1 }
0x118c   : > { %v14538_v20 = vpop.f32.mrb[9].mxu1 }
0x118d   : > { %v8561_v28 = vpop.f32.mrb[10].mxu1  ;;  %v8604_v46 = vpop.f32.mrb[8].mxu0  ;;  %v20764_v20 = vld [vmem:[#allocation40_spill] sm:$0xff] }
0x118e   : > { %v8890_v45 = vpack.c.bf16 %v8604_v46, %v8558_v39  ;;  %v14539_v34 = vpop.f32.mrb[11].mxu1  ;;  %v14544_v52 = vpop.f32.mrb[9].mxu0 }
0x118f   : > { %v8607_v10 = vpop.f32.mrb[10].mxu0  ;;  %v9635_v39 = vpop.permute.xlu1 %9634 }
0x1190   : > { %v14545_v47 = vpop.f32.mrb[11].mxu0  ;;  %14598 = vmatprep.mubr.msk.bf16.mxu1 %vm1577_vm1, %v8890_v45  ;;  %v9539_v45 = vsel %vm1577_vm1, %v9534_v55, 0 }
0x1193   : > { %v8650_v36 = vpop.f32.mrb[12].mxu1  ;;  %v9742_v47 = vpop.permute.xlu1 %9741 }
0x1194   : > { %v14550_v3 = vpop.f32.mrb[13].mxu1 }
0x1195   : > { %v8653_v22 = vpop.f32.mrb[14].mxu1  ;;  %v8696_v24 = vpop.f32.mrb[12].mxu0 }
0x1196   : > { %v8891_v49 = vpack.c.bf16 %v8696_v24, %v8650_v36  ;;  %v14551_v2 = vpop.f32.mrb[15].mxu1  ;;  %v14556_v32 = vpop.f32.mrb[13].mxu0  ;;  %v20765_v36 = vld [vmem:[#allocation41_spill] sm:$0xff]  ;;  %v9643_v24 = vsel %vm1577_vm1, %v9638_v14, 0 }
0x1197   : > { %v8699_v44 = vpop.f32.mrb[14].mxu0  ;;  %v20769_v14 = vld [vmem:[#allocation45_spill] sm:$0xff] }
0x1198   : > { %v14557_v27 = vpop.f32.mrb[15].mxu0  ;;  %14599 = vmatmul.mubr.msk.bf16.gmra.mrb[32].mxu1 %vm1577_vm1, %v8891_v49  ;;  %v9739_v44 = vpop.permute.xlu1 %9738 }
0x119e   : > { %v8742_v9 = vpop.f32.mrb[16].mxu1 }
0x119f   : > { %v14562_v12 = vpop.f32.mrb[17].mxu1 }
0x11a0   : > { %v8745_v58 = vpop.f32.mrb[18].mxu1  ;;  %v8788_v51 = vpop.f32.mrb[16].mxu0  ;;  %v9747_v12 = vsel %vm1577_vm1, %v9742_v47, 0 }
0x11a1   : > { %v8892_v48 = vpack.c.bf16 %v8788_v51, %v8742_v9  ;;  %v14563_v59 = vpop.f32.mrb[19].mxu1  ;;  %v14568_v53 = vpop.f32.mrb[17].mxu0 }
0x11a2   : > { %v8791_v21 = vpop.f32.mrb[18].mxu0  ;;  %v9846_v51 = vpop.permute.xlu1 %9845 }
0x11a3   : > { %v14569_v37 = vpop.f32.mrb[19].mxu0  ;;  %14602 = vmatprep.mubr.msk.bf16.mxu1 %vm1577_vm1, %v8892_v48 }
0x11a4   : > { %v20767_v37 = vld [vmem:[#allocation42_spill] sm:$0xff] }
0x11a6   : > { %v8834_v23 = vpop.f32.mrb[20].mxu1  ;;  %v9843_v21 = vpop.permute.xlu1 %9842 }
0x11a7   : > { %v14574_v38 = vpop.f32.mrb[21].mxu1 }
0x11a8   : > { %v8837_v33 = vpop.f32.mrb[22].mxu1  ;;  %v8880_v43 = vpop.f32.mrb[20].mxu0  ;;  %v9851_v38 = vsel %vm1577_vm1, %v9846_v51, 0 }
0x11a9   : > { %v8893_v11 = vpack.c.bf16 %v8880_v43, %v8834_v23  ;;  %v14575_v29 = vpop.f32.mrb[23].mxu1  ;;  %v14580_v15 = vpop.f32.mrb[21].mxu0 }
0x11aa   : > { %v8883_v4 = vpop.f32.mrb[22].mxu0  ;;  %v10136_v29 = vpop.permute.xlu1 %10135 }
0x11ab   : > { %v14581_v26 = vpop.f32.mrb[23].mxu0  ;;  %14603 = vmatmul.mubr.msk.bf16.gmra.mrb[36].mxu1 %vm1577_vm1, %v8893_v11  ;;  %v20768_v4 = vld [vmem:[#allocation43_spill] sm:$0xff] }
0x11ac   : > { %14638 = vmatprep.mubr.msk.bf16.mxu1 %vm15738_vm0, %v20668_v19 }
0x11b1   : > { %v9107_v5 = vpop.f32.mrb[24].mxu0 }
0x11b2   : > { %v19168_v63 = vadd.f32 %v9107_v5, %v20763_v6  ;;  %v14610_v54 = vpop.f32.mrb[25].mxu0  ;;  %v10141_v5 = vsel %vm2510_vm2, %v10136_v29, 0 }
0x11b3   : > { %v9110_v31 = vpop.f32.mrb[26].mxu0  ;;  %14639 = vmatmul.mubr.msk.bf16.vlgmr.msra.gmra.mrb[40].mxu1 %vm1577_vm1, %v9323_v18 }
0x11b4   : > { %v14611_v13 = vpop.f32.mrb[27].mxu0  ;;  %14649 = vmatpush3.bf16.xpose.msra.mxu1 %v9435_v16  ;;  %v9893_v41 = vsel %vm2314_vm3, %v19168_v63, -inf  ;;  %14650 = vmatprep.mubr.msk.bf16.mxu1 %vm15738_vm0, %v20668_v19 }
0x11b5   : > { %9894 = vmax.xlane.f32.xlu0 %v9893_v41  ;;  %14660 = vmatprep.subr.bf16.mxu1 %v20668_v19 }
0x11b9   : > { %v9159_v42 = vpop.f32.mrb[28].mxu0 }
0x11ba   : > { %v19178_v28 = vadd.f32 %v9159_v42, %v20764_v20  ;;  %v14616_v46 = vpop.f32.mrb[29].mxu0 }
0x11bb   : > { %v9162_v34 = vpop.f32.mrb[30].mxu0  ;;  %14651 = vmatmul.mubr.msk.bf16.vlgmr.msra.gmra.mrb[44].mxu1 %vm1577_vm1, %v9427_v30 }
0x11bc   : > { %v14617_v52 = vpop.f32.mrb[31].mxu0  ;;  %14661 = vmatpush3.bf16.xpose.msra.mxu1 %v9539_v45  ;;  %v9896_v10 = vsel %vm2314_vm3, %v19178_v28, -inf  ;;  %14662 = vmatprep.mubr.msk.bf16.mxu1 %vm15738_vm0, %v20668_v19  ;;  %v20770_v45 = vld [vmem:[#allocation47_spill] sm:$0xff] }
0x11bd   : > { %9897 = vmax.xlane.f32.xlu1 %v9896_v10  ;;  %14672 = vmatprep.subr.bf16.mxu1 %v20668_v19 }
0x11c1   : > { %v9211_v18 = vpop.f32.mrb[32].mxu0 }
0x11c2   : > { %v19188_v3 = vadd.f32 %v9211_v18, %v20765_v36  ;;  %v14622_v22 = vpop.f32.mrb[33].mxu0 }
0x11c3   : > { %v9214_v49 = vpop.f32.mrb[34].mxu0  ;;  %14663 = vmatmul.mubr.msk.bf16.vlgmr.msra.gmra.mrb[48].mxu1 %vm1577_vm1, %v9531_v62  ;;  %v20771_v22 = vld [vmem:[#allocation49_spill] sm:$0xff] }
0x11c4   : > { %v14623_v2 = vpop.f32.mrb[35].mxu0  ;;  %14673 = vmatpush3.bf16.xpose.msra.mxu1 %v9643_v24  ;;  %v9899_v32 = vsel %vm2314_vm3, %v19188_v3, -inf  ;;  %14674 = vmatprep.mubr.msk.bf16.mxu1 %vm15738_vm0, %v20668_v19 }
0x11c5   : > { %9900 = vmax.xlane.f32.xlu0 %v9899_v32  ;;  %14684 = vmatprep.subr.bf16.mxu1 %v20668_v19 }
0x11c9   : > { %v9263_v27 = vpop.f32.mrb[36].mxu0 }
0x11ca   : > { %v19198_v9 = vadd.f32 %v9263_v27, %v20766_v50  ;;  %v14628_v30 = vpop.f32.mrb[37].mxu0 }
0x11cb   : > { %v9266_v58 = vpop.f32.mrb[38].mxu0  ;;  %14675 = vmatmul.mubr.msk.bf16.vlgmr.msra.gmra.mrb[52].mxu1 %vm1577_vm1, %v9635_v39 }
0x11cc   : > { %v14629_v48 = vpop.f32.mrb[39].mxu0  ;;  %14685 = vmatpush3.bf16.xpose.msra.mxu1 %v9747_v12  ;;  %v9902_v59 = vsel %vm2314_vm3, %v19198_v9, -inf  ;;  %14686 = vmatprep.mubr.msk.bf16.mxu1 %vm15738_vm0, %v20668_v19 }
0x11cd   : > { %9903 = vmax.xlane.f32.xlu0 %v9902_v59  ;;  %14696 = vmatprep.subr.bf16.mxu1 %v20668_v19  ;;  %v19247_v48 = vpop.permute.xlu0 %10184 }
0x11d1   : > { %v9315_v53 = vpop.f32.mrb[40].mxu0  ;;  %v19249_v59 = vpop.permute.xlu0 %10282 }
0x11d2   : > { %v19208_v23 = vadd.f32 %v9315_v53, %v20767_v37  ;;  %v14634_v55 = vpop.f32.mrb[41].mxu0 }
0x11d3   : > { %v9318_v33 = vpop.f32.mrb[42].mxu0  ;;  %14687 = vmatmul.mubr.msk.bf16.vlgmr.msra.gmra.mrb[56].mxu1 %vm1577_vm1, %v9739_v44  ;;  %v19252_v55 = vpop.permute.xlu1 %10233 }
0x11d4   : > { %v14635_v43 = vpop.f32.mrb[43].mxu0  ;;  %14697 = vmatpush3.bf16.xpose.msra.mxu1 %v9851_v38  ;;  %v9905_v11 = vsel %vm2314_vm3, %v19208_v23, -inf  ;;  %14698 = vmatprep.mubr.msk.bf16.mxu1 %vm15738_vm0, %v20668_v19 }
0x11d5   : > { %9906 = vmax.xlane.f32.xlu0 %v9905_v11  ;;  %14708 = vmatprep.subr.bf16.mxu1 %v20668_v19 }
0x11d9   : > { %v9419_v15 = vpop.f32.mrb[44].mxu0 }
0x11da   : > { %v19218_v26 = vadd.f32 %v9419_v15, %v20768_v4  ;;  %v14646_v62 = vpop.f32.mrb[45].mxu0 }
0x11db   : > { %v9422_v6 = vpop.f32.mrb[46].mxu0  ;;  %14699 = vmatmul.mubr.msk.bf16.vlgmr.msra.gmra.mrb[60].mxu1 %vm1577_vm1, %v9843_v21 }
0x11dc   : > { %v14647_v54 = vpop.f32.mrb[47].mxu0  ;;  %14709 = vmatpush3.bf16.msra.mxu1 %v10141_v5  ;;  %v9911_v16 = vsel %vm2314_vm3, %v19218_v26, -inf  ;;  %14710 = vmatprep.mubr.msk.bf16.mxu1 %vm15738_vm0, %v20668_v19 }
0x11dd   : > { %9912 = vmax.xlane.f32.xlu0 %v9911_v16  ;;  %14720 = vmatprep.subr.bf16.mxu1 %v20668_v19 }
0x11e1   : > { %v9523_v31 = vpop.f32.mrb[48].mxu0 }
0x11e2   : > { %v19228_v13 = vadd.f32 %v9523_v31, %v20769_v14  ;;  %v14658_v41 = vpop.f32.mrb[49].mxu0 }
0x11e3   : > { %v9526_v42 = vpop.f32.mrb[50].mxu0 }
0x11e4   : > { %v14659_v39 = vpop.f32.mrb[51].mxu0  ;;  %v9917_v20 = vsel %vm2314_vm3, %v19228_v13, -inf }
0x11e5   : > { %9918 = vmax.xlane.f32.xlu0 %v9917_v20 }
0x11e9   : > { %v9627_v46 = vpop.f32.mrb[52].mxu0 }
0x11ea   : > { %v19233_v34 = vadd.f32 %v9627_v46, %v20770_v45  ;;  %v14670_v52 = vpop.f32.mrb[53].mxu0 }
0x11eb   : > { %v9630_v10 = vpop.f32.mrb[54].mxu0 }
0x11ec   : > { %v14671_v47 = vpop.f32.mrb[55].mxu0  ;;  %v9923_v18 = vsel %vm2314_vm3, %v19233_v34, -inf }
0x11ed   : > { %9924 = vmax.xlane.f32.xlu0 %v9923_v18 }
0x11f1   : > { %v9731_v36 = vpop.f32.mrb[56].mxu0 }
0x11f2   : > { %v19238_v24 = vadd.f32 %v9731_v36, %v20771_v22  ;;  %v14682_v49 = vpop.f32.mrb[57].mxu0 }
0x11f3   : > { %v9734_v2 = vpop.f32.mrb[58].mxu0 }
0x11f4   : > { %v14683_v32 = vpop.f32.mrb[59].mxu0  ;;  %v9929_v44 = vsel %vm2314_vm3, %v19238_v24, -inf }
0x11f5   : > { %9930 = vmax.xlane.f32.xlu0 %v9929_v44  ;;  %v20772_v32 = vld [vmem:[#allocation46_spill] sm:$0xff] }
0x11f9   : > { %v9835_v27 = vpop.f32.mrb[60].mxu0 }
0x11fa   : > { %v19243_v50 = vadd.f32 %v9835_v27, %v20745_v7  ;;  %v14694_v30 = vpop.f32.mrb[61].mxu0 }
0x11fb   : > { %v9838_v12 = vpop.f32.mrb[62].mxu0 }
0x11fc   : > { %v14695_v58 = vpop.f32.mrb[63].mxu0  ;;  %v9935_v51 = vsel %vm2314_vm3, %v19243_v50, -inf }
0x11fd   : > { %9936 = vmax.xlane.f32.xlu0 %v9935_v51 }
0x1242   : > { %v9895_v53 = vpop.xlane.xlu0 %9894 }
0x1243   : > { %v9941_v21 = vsub.f32 %v19168_v63, %v9895_v53 }
0x1245   : > { %v9957_v37 = vmul.f32 1.442695, %v9941_v21  ;;  %v20773_v21 = vld [vmem:[#allocation48_spill] sm:$0xff] }
0x1247   : > { %15477 = vpow2.f32 %v9957_v37 }
0x124a   : > { %v9898_v7 = vpop.xlane.xlu1 %9897 }
0x124b   : > { %v9942_v38 = vsub.f32 %v19178_v28, %v9898_v7 }
0x124d   : > { %v9959_v33 = vmul.f32 1.442695, %v9942_v38 }
0x124f   : > { %15479 = vpow2.f32 %v9959_v33 }
0x1251   : > { %v19255_v43 = vpop.eup %15477 }
0x1252   : > { %v9901_v11 = vpop.xlane.xlu0 %9900  ;;  %v9989_v29 = vsel %vm2314_vm3, %v19255_v43, 0.0 }
0x1253   : > { %v9943_v15 = vsub.f32 %v19188_v3, %v9901_v11  ;;  %9990 = vadd.xlane.f32.xlu0 %v9989_v29 }
0x1255   : > { %v9961_v4 = vmul.f32 1.442695, %v9943_v15 }
0x1257   : > { %15481 = vpow2.f32 %v9961_v4 }
0x1259   : > { %v19260_v63 = vpop.eup %15479 }
0x125a   : > { %v9904_v62 = vpop.xlane.xlu0 %9903  ;;  %v9992_v5 = vsel %vm2314_vm3, %v19260_v63, 0.0 }
0x125b   : > { %v9944_v28 = vsub.f32 %v19198_v9, %v9904_v62  ;;  %9993 = vadd.xlane.f32.xlu1 %v9992_v5 }
0x125d   : > { %v9963_v6 = vmul.f32 1.442695, %v9944_v28 }
0x125f   : > { %15483 = vpow2.f32 %v9963_v6 }
0x1261   : > { %v19265_v54 = vpop.eup %15481 }
0x1262   : > { %v9907_v16 = vpop.xlane.xlu0 %9906  ;;  %v9995_v3 = vsel %vm2314_vm3, %v19265_v54, 0.0 }
0x1263   : > { %v9945_v31 = vsub.f32 %v19208_v23, %v9907_v16  ;;  %9996 = vadd.xlane.f32.xlu0 %v9995_v3 }
0x1265   : > { %v9965_v14 = vmul.f32 1.442695, %v9945_v31 }
0x1267   : > { %15485 = vpow2.f32 %v9965_v14 }
0x1269   : > { %v19270_v41 = vpop.eup %15483 }
0x126a   : > { %v9913_v42 = vpop.xlane.xlu0 %9912  ;;  %v9998_v9 = vsel %vm2314_vm3, %v19270_v41, 0.0 }
0x126b   : > { %v9947_v39 = vsub.f32 %v19218_v26, %v9913_v42  ;;  %9999 = vadd.xlane.f32.xlu1 %v9998_v9 }
0x126d   : > { %v9969_v20 = vmul.f32 1.442695, %v9947_v39 }
0x126f   : > { %15487 = vpow2.f32 %v9969_v20 }
0x1271   : > { %v19275_v46 = vpop.eup %15485 }
0x1272   : > { %v9919_v45 = vpop.xlane.xlu0 %9918  ;;  %v10001_v23 = vsel %vm2314_vm3, %v19275_v46, 0.0 }
0x1273   : > { %v9949_v52 = vsub.f32 %v19228_v13, %v9919_v45  ;;  %10002 = vadd.xlane.f32.xlu0 %v10001_v23 }
0x1275   : > { %v9973_v10 = vmul.f32 1.442695, %v9949_v52  ;;  %v20774_v52 = vld [vmem:[#allocation50_spill] sm:$0xff] }
0x1277   : > { %15489 = vpow2.f32 %v9973_v10 }
0x1279   : > { %v19280_v47 = vpop.eup %15487 }
0x127a   : > { %v9925_v18 = vpop.xlane.xlu0 %9924  ;;  %v10007_v26 = vsel %vm2314_vm3, %v19280_v47, 0.0 }
0x127b   : > { %v9951_v36 = vsub.f32 %v19233_v34, %v9925_v18  ;;  %10008 = vadd.xlane.f32.xlu0 %v10007_v26  ;;  %v20775_v26 = vld [vmem:[#allocation52_spill] sm:$0xff] }
0x127d   : > { %v9977_v22 = vmul.f32 1.442695, %v9951_v36 }
0x127f   : > { %15491 = vpow2.f32 %v9977_v22 }
0x1281   : > { %v19285_v49 = vpop.eup %15489 }
0x1282   : > { %v10013_v2 = vsel %vm2314_vm3, %v19285_v49, 0.0 }
0x1283   : > { %10014 = vadd.xlane.f32.xlu1 %v10013_v2  ;;  %v20776_v2 = vld [vmem:[#allocation53_spill] sm:$0xff] }
0x1286   : > { %v9367_v13 = vpop.f32.mrb[40].mxu1 }
0x1287   : > { %v19290_v44 = vadd.f32 %v9367_v13, %v20772_v32  ;;  %v14640_v27 = vpop.f32.mrb[41].mxu1  ;;  %v20777_v32 = vld [vmem:[#allocation54_spill] sm:$0xff] }
0x1288   : > { %v9370_v30 = vpop.f32.mrb[42].mxu1 }
0x1289   : > { %v14641_v12 = vpop.f32.mrb[43].mxu1  ;;  %v9908_v58 = vsel %vm2314_vm3, %v19290_v44, -inf  ;;  %v19294_v34 = vpop.eup %15491 }
0x128a   : > { %9909 = vmax.xlane.f32.xlu1 %v9908_v58  ;;  %v10019_v51 = vsel %vm2314_vm3, %v19294_v34, 0.0 }
0x128e   : > { %10020 = vadd.xlane.f32.xlu1 %v10019_v51  ;;  %v9471_v53 = vpop.f32.mrb[44].mxu1 }
0x128f   : > { %v19299_v37 = vadd.f32 %v9471_v53, %v20773_v21  ;;  %v14652_v7 = vpop.f32.mrb[45].mxu1 }
0x1290   : > { %v9474_v38 = vpop.f32.mrb[46].mxu1 }
0x1291   : > { %10380 = vrot.lane.b32.xlu0 %v18961_v25, %s20747_s26  ;;  %v14653_v33 = vpop.f32.mrb[47].mxu1  ;;  %v9914_v11 = vsel %vm2314_vm3, %v19299_v37, -inf }
0x1292   : > { %9915 = vmax.xlane.f32.xlu1 %v9914_v11  ;;  %v10190_v33 = vsel %vm2510_vm2, %v19247_v48, 0 }
0x1295   : > { %10478 = vrot.lane.b32.xlu0 %v18987_v8, %s20747_s26  ;;  %v9931_v8 = vpop.xlane.xlu0 %9930 }
0x1296   : > { %v9575_v29 = vpop.f32.mrb[48].mxu1  ;;  %v9953_v45 = vsub.f32 %v19238_v24, %v9931_v8 }
0x1297   : > { %v14664_v15 = vpop.f32.mrb[49].mxu1  ;;  %v19311_v10 = vadd.f32 %v9575_v29, %v20774_v52 }
0x1298   : > { %v9578_v4 = vpop.f32.mrb[50].mxu1  ;;  %v9981_v23 = vmul.f32 1.442695, %v9953_v45 }
0x1299   : > { %v14665_v62 = vpop.f32.mrb[51].mxu1  ;;  %v9920_v18 = vsel %vm2314_vm3, %v19311_v10, -inf  ;;  %v19334_v58 = vpop.xlane.xlu0 %9936 }
0x129a   : > { %15493 = vpow2.f32 %v9981_v23 }
0x129e   : > { %v9679_v5 = vpop.f32.mrb[52].mxu1 }
0x129f   : > { %v14676_v28 = vpop.f32.mrb[53].mxu1  ;;  %v19318_v36 = vadd.f32 %v9679_v5, %v20775_v26 }
0x12a0   : > { %v9682_v6 = vpop.f32.mrb[54].mxu1 }
0x12a1   : > { %v14677_v16 = vpop.f32.mrb[55].mxu1  ;;  %v9926_v13 = vsel %vm2314_vm3, %v19318_v36, -inf }
0x12a3   : > { %10331 = vrot.lane.b32.xlu1 %v18893_v60, %s20747_s26 }
0x12a4   : > { %v19315_v60 = vpop.eup %15493 }
0x12a5   : > { %v10025_v22 = vsel %vm2314_vm3, %v19315_v60, 0.0 }
0x12a6   : > { %v9783_v25 = vpop.f32.mrb[56].mxu1 }
0x12a7   : > { %v14688_v3 = vpop.f32.mrb[57].mxu1  ;;  %v19323_v24 = vadd.f32 %v9783_v25, %v20776_v2 }
0x12a8   : > { %v9786_v31 = vpop.f32.mrb[58].mxu1 }
0x12a9   : > { %v14689_v14 = vpop.f32.mrb[59].mxu1  ;;  %v9932_v30 = vsel %vm2314_vm3, %v19323_v24, -inf }
0x12ae   : > { %v9887_v42 = vpop.f32.mrb[60].mxu1 }
0x12af   : > { %v14700_v9 = vpop.f32.mrb[61].mxu1  ;;  %v19328_v27 = vadd.f32 %v9887_v42, %v20777_v32 }
0x12b0   : > { %v9890_v39 = vpop.f32.mrb[62].mxu1 }
0x12b1   : > { %v14701_v20 = vpop.f32.mrb[63].mxu1  ;;  %v9938_v12 = vsel %vm2314_vm3, %v19328_v27, -inf }
0x12c7   : > { %9921 = vmax.xlane.f32.xlu1 %v9920_v18 }
0x12cb   : > { %10026 = vadd.xlane.f32.xlu1 %v10025_v22 }
0x12cf   : > { %9927 = vmax.xlane.f32.xlu1 %v9926_v13 }
0x12d3   : > { %9933 = vmax.xlane.f32.xlu1 %v9932_v30 }
0x12d7   : > { %9939 = vmax.xlane.f32.xlu1 %v9938_v12 }
0x12e0   : > { %v9991_v51 = vpop.xlane.xlu0 %9990 }
0x12e1   : > { %15495 = vrcp.f32 %v9991_v51 }
0x12e8   : > { %v9994_v53 = vpop.xlane.xlu1 %9993  ;;  %10429 = vrot.lane.b32.xlu1 %v18966_v1, %s20747_s26 }
0x12e9   : > { %15497 = vrcp.f32 %v9994_v53 }
0x12eb   : > { %v15496_v21 = vpop.eup %15495 }
0x12ec   : > { %v10053_v7 = vmul.f32 %v15496_v21, %v19255_v43  ;;  %v10239_v43 = vsel %vm2510_vm2, %v19252_v55, 0 }
0x12ee   : > { %v10069_v38 = vpack.c.bf16 %v10053_v7, %v10053_v7 }
0x12f0   : > { %14705 = vmatmul.mubr.msk.bf16.vlgmr.msra.gmra.mrb[64].mxu0 %vm2314_vm3, %v10069_v38  ;;  %v9997_v11 = vpop.xlane.xlu0 %9996 }
0x12f1   : > { %14715 = vmatpush3.bf16.msra.mxu0 %v10190_v33  ;;  %15499 = vrcp.f32 %v9997_v11  ;;  %14716 = vmatprep.mubr.msk.bf16.mxu0 %vm15738_vm0, %v20668_v19 }
0x12f2   : > { %14726 = vmatprep.subr.bf16.mxu0 %v20668_v19 }
0x12f3   : > { %v15498_v29 = vpop.eup %15497 }
0x12f4   : > { %v10054_v1 = vmul.f32 %v15498_v29, %v19260_v63  ;;  %v10288_v63 = vsel %vm2510_vm2, %v19249_v59, 0 }
0x12f6   : > { %v10070_v15 = vpack.c.bf16 %v10054_v1, %v10054_v1 }
0x12f8   : > { %v10000_v4 = vpop.xlane.xlu1 %9999  ;;  %14711 = vmatmul.mubr.msk.bf16.vlgmr.msra.gmra.mrb[64].mxu1 %vm2314_vm3, %v10070_v15 }
0x12f9   : > { %15501 = vrcp.f32 %v10000_v4  ;;  %14721 = vmatpush3.bf16.msra.mxu1 %v10239_v43  ;;  %14722 = vmatprep.mubr.msk.bf16.mxu1 %vm15738_vm0, %v20668_v19 }
0x12fa   : > { %14732 = vmatprep.subr.bf16.mxu1 %v20668_v19 }
0x12fb   : > { %v15500_v48 = vpop.eup %15499 }
0x12fc   : > { %v10055_v62 = vmul.f32 %v15500_v48, %v19265_v54 }
0x12fe   : > { %v10071_v5 = vpack.c.bf16 %v10055_v62, %v10055_v62 }
0x1300   : > { %14717 = vmatmul.mubr.msk.bf16.vlgmr.msra.gmra.mrb[68].mxu0 %vm2314_vm3, %v10071_v5  ;;  %v10003_v55 = vpop.xlane.xlu0 %10002 }
0x1301   : > { %14727 = vmatpush3.bf16.msra.mxu0 %v10288_v63  ;;  %15503 = vrcp.f32 %v10003_v55  ;;  %14728 = vmatprep.mubr.msk.bf16.mxu0 %vm15738_vm0, %v20668_v19 }
0x1302   : > { %14738 = vmatprep.subr.bf16.mxu0 %v20668_v19 }
0x1303   : > { %v15502_v28 = vpop.eup %15501 }
0x1304   : > { %v10056_v6 = vmul.f32 %v15502_v28, %v19270_v41 }
0x1306   : > { %v10072_v16 = vpack.c.bf16 %v10056_v6, %v10056_v6 }
0x1308   : > { %v10009_v25 = vpop.xlane.xlu0 %10008  ;;  %14723 = vmatmul.mubr.msk.bf16.vlgmr.msra.gmra.mrb[68].mxu1 %vm2314_vm3, %v10072_v16 }
0x1309   : > { %15505 = vrcp.f32 %v10009_v25  ;;  %14734 = vmatprep.mubr.msk.bf16.mxu1 %vm15738_vm0, %v20668_v19 }
0x130b   : > { %v15504_v59 = vpop.eup %15503 }
0x130c   : > { %v10057_v54 = vmul.f32 %v15504_v59, %v19275_v46  ;;  %v10381_v3 = vpop.permute.xlu0 %10380  ;;  %v9955_v46 = vsub.f32 %v19243_v50, %v19334_v58 }
0x130d   : > { %v10386_v14 = vsel %vm2510_vm2, %v10381_v3, 0 }
0x130e   : > { %v10073_v31 = vpack.c.bf16 %v10057_v54, %v10057_v54  ;;  %v9985_v52 = vmul.f32 1.442695, %v9955_v46 }
0x1310   : > { %v10015_v42 = vpop.xlane.xlu1 %10014  ;;  %14729 = vmatmul.mubr.msk.bf16.vlgmr.msra.gmra.mrb[72].mxu0 %vm2314_vm3, %v10073_v31  ;;  %v10479_v39 = vpop.permute.xlu0 %10478 }
0x1311   : > { %15507 = vrcp.f32 %v10015_v42  ;;  %14739 = vmatpush3.bf16.msra.mxu0 %v10386_v14  ;;  %14740 = vmatprep.mubr.msk.bf16.mxu0 %vm15738_vm0, %v20668_v19  ;;  %v10484_v45 = vsel %vm2510_vm2, %v10479_v39, 0 }
0x1312   : > { %14750 = vmatprep.subr.bf16.mxu0 %v20668_v19 }
0x1313   : > { %v15506_v41 = vpop.eup %15505 }
0x1314   : > { %v10059_v9 = vmul.f32 %v15506_v41, %v19280_v47 }
0x1316   : > { %v10075_v20 = vpack.c.bf16 %v10059_v9, %v10059_v9 }
0x1317   : > { %v9910_v8 = vpop.xlane.xlu1 %9909 }
0x1318   : > { %14741 = vmatmul.mubr.msk.bf16.vlgmr.msra.gmra.mrb[76].mxu0 %vm2314_vm3, %v10075_v20  ;;  %v9946_v23 = vsub.f32 %v19290_v44, %v9910_v8 }
0x1319   : > { %14751 = vmatpush3.bf16.msra.mxu0 %v10484_v45  ;;  %14752 = vmatprep.mubr.msk.bf16.mxu0 %vm15738_vm0, %v20668_v19 }
0x131a   : > { %v9967_v18 = vmul.f32 1.442695, %v9946_v23  ;;  %14762 = vmatprep.subr.bf16.mxu0 %v20668_v19 }
0x131b   : > { %v15508_v47 = vpop.eup %15507  ;;  %v10021_v26 = vpop.xlane.xlu1 %10020 }
0x131c   : > { %v10061_v50 = vmul.f32 %v15508_v47, %v19285_v49  ;;  %15509 = vpow2.f32 %v9967_v18 }
0x131d   : > { %15511 = vpow2.f32 %v9985_v52 }
0x131e   : > { %v10077_v22 = vpack.c.bf16 %v10061_v50, %v10061_v50 }
0x131f   : > { %v9916_v2 = vpop.xlane.xlu1 %9915 }
0x1320   : > { %14753 = vmatmul.mubr.msk.bf16.vlgmr.msra.gmra.mrb[80].mxu0 %vm2314_vm3, %v10077_v22  ;;  %v9948_v44 = vsub.f32 %v19299_v37, %v9916_v2 }
0x1321   : > { %14764 = vmatprep.mubr.msk.bf16.mxu0 %vm15738_vm0, %v20668_v19 }
0x1322   : > { %v9971_v13 = vmul.f32 1.442695, %v9948_v44 }
0x1323   : > { %v10332_v32 = vpop.permute.xlu1 %10331 }
0x1324   : > { %15513 = vpow2.f32 %v9971_v13  ;;  %v10337_v30 = vsel %vm2510_vm2, %v10332_v32, 0 }
0x1325   : > { %14733 = vmatpush3.bf16.msra.mxu1 %v10337_v30 }
0x1326   : > { %v15510_v12 = vpop.eup %15509  ;;  %14744 = vmatprep.subr.bf16.mxu1 %v20668_v19 }
0x1327   : > { %v10004_v49 = vsel %vm2314_vm3, %v15510_v12, 0.0  ;;  %v19386_v58 = vpop.eup %15511 }
0x1328   : > { %10005 = vadd.xlane.f32.xlu1 %v10004_v49  ;;  %v10031_v37 = vsel %vm2314_vm3, %v19386_v58, 0.0 }
0x132c   : > { %10032 = vadd.xlane.f32.xlu1 %v10031_v37 }
0x132e   : > { %v19390_v51 = vpop.eup %15513 }
0x132f   : > { %v10010_v53 = vsel %vm2314_vm3, %v19390_v51, 0.0 }
0x1330   : > { %10011 = vadd.xlane.f32.xlu1 %v10010_v53 }
0x1341   : > { %10527 = vrot.lane.b32.xlu1 %v18996_v17, %s20747_s26 }
0x1345   : > { %10576 = vrot.lane.b32.xlu1 %v19021_v0, %s20747_s26 }
0x1349   : > { %10625 = vrot.lane.b32.xlu1 %v19026_v40, %s20747_s26 }
0x134d   : > { %10723 = vrot.lane.b32.xlu1 %v19048_v35, %s20747_s26 }
0x1351   : > { %10821 = vrot.lane.b32.xlu1 %v19070_v61, %s20747_s26 }
0x1354   : > { %v9922_v21 = vpop.xlane.xlu1 %9921 }
0x1355   : > { %v9950_v7 = vsub.f32 %v19311_v10, %v9922_v21 }
0x1357   : > { %v9975_v38 = vmul.f32 1.442695, %v9950_v7 }
0x1358   : > { %v19405_v33 = vpop.xlane.xlu1 %10026 }
0x1359   : > { %15515 = vpow2.f32 %v9975_v38 }
0x135c   : > { %v9928_v17 = vpop.xlane.xlu1 %9927 }
0x135d   : > { %v9952_v11 = vsub.f32 %v19318_v36, %v9928_v17 }
0x135f   : > { %v9979_v0 = vmul.f32 1.442695, %v9952_v11 }
0x1360   : > { %v9934_v10 = vpop.xlane.xlu1 %9933 }
0x1361   : > { %15517 = vpow2.f32 %v9979_v0  ;;  %v9954_v36 = vsub.f32 %v19323_v24, %v9934_v10 }
0x1363   : > { %v19408_v29 = vpop.eup %15515  ;;  %v9983_v15 = vmul.f32 1.442695, %v9954_v36 }
0x1364   : > { %v10016_v40 = vsel %vm2314_vm3, %v19408_v29, 0.0  ;;  %v9940_v1 = vpop.xlane.xlu1 %9939 }
0x1365   : > { %10017 = vadd.xlane.f32.xlu0 %v10016_v40  ;;  %v9956_v43 = vsub.f32 %v19328_v27, %v9940_v1  ;;  %15519 = vpow2.f32 %v9983_v15 }
0x1367   : > { %v9987_v4 = vmul.f32 1.442695, %v9956_v43 }
0x1368   : > { %v10430_v24 = vpop.permute.xlu1 %10429 }
0x1369   : > { %15521 = vpow2.f32 %v9987_v4  ;;  %v10435_v14 = vsel %vm2510_vm2, %v10430_v24, 0 }
0x136b   : > { %v19412_v35 = vpop.eup %15517 }
0x136c   : > { %v10022_v61 = vsel %vm2314_vm3, %v19412_v35, 0.0 }
0x136d   : > { %10023 = vadd.xlane.f32.xlu0 %v10022_v61 }
0x136f   : > { %v19420_v48 = vpop.eup %15519 }
0x1370   : > { %v10028_v62 = vsel %vm2314_vm3, %v19420_v48, 0.0 }
0x1373   : > { %v19424_v5 = vpop.eup %15521 }
0x1383   : > { %10674 = vrot.lane.b32.xlu0 %v19042_v56, %s20747_s26  ;;  %v10034_v56 = vsel %vm2314_vm3, %v19424_v5, 0.0 }
0x13a2   : > { %10029 = vadd.xlane.f32.xlu0 %v10028_v62 }
0x13a6   : > { %10035 = vadd.xlane.f32.xlu0 %v10034_v56 }
0x13b5   : > { %v10006_v63 = vpop.xlane.xlu1 %10005 }
0x13b6   : > { %15523 = vrcp.f32 %v10006_v63 }
0x13b7   : > { %15525 = vrcp.f32 %v10021_v26 }
0x13b9   : > { %v19428_v27 = vpop.xlane.xlu1 %10032 }
0x13bc   : > { %10772 = vrot.lane.b32.xlu0 %v19065_v57, %s20747_s26  ;;  %s20437_s26 = scalar_lea.hbm %s20505_s18, %s13180_s1  ;;  %s15679_s1 = scalar_lea.vmem %s15678_s25, 512 }
0x13bd   : > { %v10012_v55 = vpop.xlane.xlu1 %10011  ;;  %p15681_p1 = scmp.lt.s32.totalorder %s15679_s1, %s15673_s19 }
0x13be   : > { %15527 = vrcp.f32 %v10012_v55 }
0x13bf   : > { %15529 = vrcp.f32 %v19405_v33  ;;  %p15682_p2 = por %p15681_p1, %p15680_p0 }
0x13c0   : > { %v15524_v28 = vpop.eup %15523 }
0x13c1   : > { %v15526_v6 = vpop.eup %15525  ;;  %v10058_v16 = vmul.f32 %v15524_v28, %v15510_v12  ;;  %v10528_v25 = vpop.permute.xlu1 %10527  ;;  %p15683_p3 = pnand %p15682_p2, %p15676_p13 }
0x13c2   : > { %v10063_v3 = vmul.f32 %v15526_v6, %v19294_v34  ;;  %v10533_v52 = vsel %vm2510_vm2, %v10528_v25, 0 }
0x13c3   : > { %v10074_v59 = vpack.c.bf16 %v10058_v16, %v10058_v16  ;;  %v19432_v54 = vpop.f32.mrb[64].mxu0 }
0x13c4   : > { %v14706_v31 = vpop.f32.mrb[65].mxu0  ;;  %v10079_v46 = vpack.c.bf16 %v10063_v3, %v10063_v3 }
0x13c5   : > { %v10131_v42 = vpop.f32.mrb[66].mxu0  ;;  %14735 = vmatmul.mubr.msk.bf16.vlgmr.msra.gmra.mrb[72].mxu1 %vm2314_vm3, %v10074_v59  ;;  %v10577_v41 = vpop.permute.xlu1 %10576 }
0x13c6   : > { %v14707_v9 = vpop.f32.mrb[67].mxu0  ;;  %14745 = vmatpush3.bf16.msra.mxu1 %v10435_v14  ;;  %v10582_v57 = vsel %vm2510_vm2, %v10577_v41, 0  ;;  %14746 = vmatprep.mubr.msk.bf16.mxu1 %vm15738_vm0, %v20668_v19 }
0x13c7   : > { %14763 = vmatpush3.bf16.msra.mxu0 %v10582_v57  ;;  %14756 = vmatprep.subr.bf16.mxu1 %v20668_v19 }
0x13c8   : > { %v15528_v39 = vpop.eup %15527  ;;  %14774 = vmatprep.subr.bf16.mxu0 %v20668_v19 }
0x13c9   : > { %v10060_v34 = vmul.f32 %v15528_v39, %v19390_v51  ;;  %v15530_v36 = vpop.eup %15529  ;;  %v10626_v56 = vpop.permute.xlu1 %10625 }
0x13ca   : > { %14765 = vmatmul.mubr.msk.bf16.vlgmr.msra.gmra.mrb[84].mxu0 %vm2314_vm3, %v10079_v46  ;;  %v10065_v43 = vmul.f32 %v15530_v36, %v19315_v60  ;;  %v10631_v55 = vsel %vm2510_vm2, %v10626_v56, 0  ;;  %v20778_v46 = vmov 0  }
0x13cb   : > { %v10076_v20 = vpack.c.bf16 %v10060_v34, %v10060_v34  ;;  %v19444_v8 = vpop.f32.mrb[64].mxu1  ;;  %14776 = vmatprep.mubr.msk.bf16.mxu0 %vm15738_vm0, %v20668_v19 }
0x13cc   : > { %v10869_v45 = vpack.c.bf16 %v19444_v8, %v19432_v54  ;;  %v14712_v23 = vpop.f32.mrb[65].mxu1  ;;  %v10081_v63 = vpack.c.bf16 %v10065_v43, %v10065_v43 }
0x13cd   : > { %v10180_v18 = vpop.f32.mrb[66].mxu1  ;;  %14747 = vmatmul.mubr.msk.bf16.vlgmr.msra.gmra.mrb[76].mxu1 %vm2314_vm3, %v10076_v20  ;;  %v10724_v28 = vpop.permute.xlu1 %10723  ;;  %v15074_v23 = vld [vmem:[%s20493_s6 + $0x68] sm:$0xff]  }
0x13ce   : > { %14757 = vmatpush3.bf16.msra.mxu1 %v10533_v52  ;;  %v14713_v47 = vpop.f32.mrb[67].mxu1  ;;  %14758 = vmatprep.mubr.msk.bf16.mxu1 %vm15738_vm0, %v20668_v19  ;;  %v10729_v16 = vsel %vm2510_vm2, %v10724_v28, 0  ;;  %v15075_v52 = vld [vmem:[%s20493_s6 + $0x70] sm:$0xff]  }
0x13cf   : > { %14768 = vmatprep.subr.bf16.mxu1 %v20668_v19 }
0x13d1   : > { %v10822_v57 = vpop.permute.xlu1 %10821 }
0x13d3   : > { %v19455_v26 = vpop.f32.mrb[68].mxu0 }
0x13d4   : > { %v14718_v50 = vpop.f32.mrb[69].mxu0 }
0x13d5   : > { %v10229_v22 = vpop.f32.mrb[70].mxu0 }
0x13d6   : > { %v14719_v2 = vpop.f32.mrb[71].mxu0 }
0x13db   : > { %v19457_v44 = vpop.f32.mrb[68].mxu1 }
0x13dc   : > { %v10870_v13 = vpack.c.bf16 %v19457_v44, %v19455_v26  ;;  %v14724_v32 = vpop.f32.mrb[69].mxu1 }
0x13dd   : > { %v10278_v30 = vpop.f32.mrb[70].mxu1 }
0x13de   : > { %v14725_v12 = vpop.f32.mrb[71].mxu1 }
0x13e3   : > { %v19461_v49 = vpop.f32.mrb[72].mxu0 }
0x13e4   : > { %v14730_v37 = vpop.f32.mrb[73].mxu0 }
0x13e5   : > { %v10327_v51 = vpop.f32.mrb[74].mxu0 }
0x13e6   : > { %v14731_v53 = vpop.f32.mrb[75].mxu0 }
0x13eb   : > { %v19463_v21 = vpop.f32.mrb[76].mxu0 }
0x13ec   : > { %v14742_v7 = vpop.f32.mrb[77].mxu0 }
0x13ed   : > { %v10425_v38 = vpop.f32.mrb[78].mxu0 }
0x13ee   : > { %v14743_v17 = vpop.f32.mrb[79].mxu0 }
0x13f2   : > { %v10018_v11 = vpop.xlane.xlu0 %10017 }
0x13f3   : > { %v19466_v0 = vpop.f32.mrb[80].mxu0  ;;  %15531 = vrcp.f32 %v10018_v11 }
0x13f4   : > { %v14754_v40 = vpop.f32.mrb[81].mxu0 }
0x13f5   : > { %v10523_v61 = vpop.f32.mrb[82].mxu0 }
0x13f6   : > { %v14755_v10 = vpop.f32.mrb[83].mxu0 }
0x13fa   : > { %v10024_v1 = vpop.xlane.xlu0 %10023 }
0x13fb   : > { %15533 = vrcp.f32 %v10024_v1 }
0x13fc   : > { %15535 = vrcp.f32 %v19428_v27  ;;  %v15073_v27 = vld [vmem:[%s20493_s6 + $0x60] sm:$0xff]  }
0x13fd   : > { %v15532_v15 = vpop.eup %15531 }
0x13fe   : > { %v10062_v4 = vmul.f32 %v15532_v15, %v19408_v29  ;;  %v10675_v62 = vpop.permute.xlu0 %10674 }
0x13ff   : > { %v10680_v24 = vsel %vm2510_vm2, %v10675_v62, 0 }
0x1400   : > { %v10078_v33 = vpack.c.bf16 %v10062_v4, %v10062_v4  ;;  %14775 = vmatpush3.bf16.msra.mxu0 %v10680_v24 }
0x1401   : > { %14786 = vmatprep.subr.bf16.mxu0 %v20668_v19 }
0x1402   : > { %14759 = vmatmul.mubr.msk.bf16.vlgmr.msra.gmra.mrb[80].mxu1 %vm2314_vm3, %v10078_v33 }
0x1403   : > { %14769 = vmatpush3.bf16.msra.mxu1 %v10631_v55  ;;  %14777 = vmatmul.mubr.msk.bf16.vlgmr.msra.gmra.mrb[88].mxu0 %vm2314_vm3, %v10081_v63 }
0x1404   : > { %14770 = vmatprep.mubr.msk.bf16.mxu1 %vm15738_vm0, %v20668_v19  ;;  %14780 = vmatprep.subr.bf16.mxu1 %v20668_v19 }
0x1405   : > { %v15534_v60 = vpop.eup %15533  ;;  %14788 = vmatprep.mubr.msk.bf16.mxu0 %vm15738_vm0, %v20668_v19 }
0x1406   : > { %v10064_v29 = vmul.f32 %v15534_v60, %v19412_v35  ;;  %v15536_v59 = vpop.eup %15535 }
0x1407   : > { %v10067_v35 = vmul.f32 %v15536_v59, %v19386_v58  ;;  %v10827_v58 = vsel %vm2510_vm2, %v10822_v57, 0  ;;  %v20780_v57 = vld [vmem:[#allocation35_spill] sm:$0xff] }
0x1408   : > { %v10080_v6 = vpack.c.bf16 %v10064_v29, %v10064_v29 }
0x1409   : > { %v10083_v41 = vpack.c.bf16 %v10067_v35, %v10067_v35 }
0x140a   : > { %14771 = vmatmul.mubr.msk.bf16.vlgmr.msra.gmra.mrb[84].mxu1 %vm2314_vm3, %v10080_v6 }
0x140b   : > { %14781 = vmatpush3.bf16.msra.mxu1 %v10729_v16  ;;  %14782 = vmatprep.mubr.msk.bf16.mxu1 %vm15738_vm0, %v20668_v19  ;;  %v13018_v16 = vld [vmem:[%s20494_s7 + $0x1] ss:$0 sm:$0xff] }
0x140c   : > { %14792 = vmatprep.subr.bf16.mxu1 %v20668_v19 }
0x142f   : > { %v10030_v25 = vpop.xlane.xlu0 %10029 }
0x1430   : > { %15537 = vrcp.f32 %v10030_v25 }
0x1433   : > { %v10036_v3 = vpop.xlane.xlu0 %10035 }
0x1434   : > { %15539 = vrcp.f32 %v10036_v3 }
0x1437   : > { %v10773_v31 = vpop.permute.xlu0 %10772 }
0x1438   : > { %v10778_v14 = vsel %vm2510_vm2, %v10773_v31, 0 }
0x1439   : > { %14787 = vmatpush3.bf16.msra.mxu0 %v10778_v14 }
0x143a   : > { %v15538_v42 = vpop.eup %15537 }
0x143b   : > { %v10066_v9 = vmul.f32 %v15538_v42, %v19420_v48  ;;  %v20779_v42 = vld [vmem:[#allocation36_spill] sm:$0xff] }
0x143c   : > { %14789 = vmatmul.mubr.msk.bf16.vlgmr.msra.gmra.mrb[108].mxu0 %vm2314_vm3, %v10083_v41 }
0x143d   : > { %v10082_v39 = vpack.c.bf16 %v10066_v9, %v10066_v9  ;;  %11428 = vmatprep.mubr.bf16.mxu0 %v20778_v46 }
0x143e   : > { %v15540_v34 = vpop.eup %15539 }
0x143f   : > { %14783 = vmatmul.mubr.msk.bf16.vlgmr.msra.gmra.mrb[88].mxu1 %vm2314_vm3, %v10082_v39  ;;  %v10068_v48 = vmul.f32 %v15540_v34, %v19424_v5  ;;  %v15076_v5 = vld [vmem:[%s20493_s6 + $0x78] sm:$0xff]  }
0x1440   : > { %14793 = vmatpush3.bf16.msra.mxu1 %v10827_v58  ;;  %14794 = vmatprep.mubr.msk.bf16.mxu1 %vm15738_vm0, %v20668_v19 }
0x1441   : > { %14798 = vmatprep.subr.bf16.mxu1 %v15073_v27  ;;  %v10084_v20 = vpack.c.bf16 %v10068_v48, %v10068_v48  ;;  %v20782_v48 = vld [vmem:[#allocation26_spill] sm:$0xff] }
0x1447   : > { %14795 = vmatmul.mubr.msk.bf16.vlgmr.msra.gmra.mrb[92].mxu1 %vm2314_vm3, %v10084_v20 }
0x1448   : > { %14799 = vmatpush3.bf16.msra.mxu1 %v15073_v27  ;;  %14806 = vmatprep.mubr.msk.bf16.mxu1 %vm1577_vm1, %v10869_v45  ;;  %v20781_v27 = vld [vmem:[#allocation24_spill] sm:$0xff] }
0x1449   : > { %14800 = vmatprep.subr.bf16.mxu1 %v15074_v23 }
0x144c   : > { %14801 = vmatpush3.bf16.msra.mxu1 %v15074_v23 }
0x144d   : > { %14802 = vmatprep.subr.bf16.mxu1 %v15075_v52 }
0x1450   : > { %14803 = vmatpush3.bf16.msra.mxu1 %v15075_v52 }
0x1451   : > { %14804 = vmatprep.subr.bf16.mxu1 %v15076_v5 }
0x1454   : > { %14805 = vmatpush3.bf16.msra.mxu1 %v15076_v5 }
0x1457   : > { %14807 = vmatmul.mubr.msk.bf16.vlgmr.msra.gmra.mrb[24].mxu1 %vm1577_vm1, %v10870_v13 }
0x1498   : > { %v10373_v54 = vpop.f32.mrb[72].mxu1 }
0x1499   : > { %v10871_v8 = vpack.c.bf16 %v10373_v54, %v19461_v49  ;;  %v14736_v45 = vpop.f32.mrb[73].mxu1 }
0x149a   : > { %v10376_v18 = vpop.f32.mrb[74].mxu1 }
0x149b   : > { %v14737_v47 = vpop.f32.mrb[75].mxu1  ;;  %14810 = vmatprep.mubr.msk.bf16.mxu1 %vm1577_vm1, %v10871_v8  ;;  %v20783_v18 = vld [vmem:[#allocation25_spill] sm:$0xff] }
0x149d   : > { %v10618_v50 = vpop.f32.mrb[84].mxu0 }
0x149e   : > { %v14766_v22 = vpop.f32.mrb[85].mxu0 }
0x149f   : > { %v10621_v2 = vpop.f32.mrb[86].mxu0 }
0x14a0   : > { %v10471_v32 = vpop.f32.mrb[76].mxu1  ;;  %v14767_v30 = vpop.f32.mrb[87].mxu0  ;;  %v20784_v2 = vld [vmem:[#allocation28_spill] sm:$0xff] }
0x14a1   : > { %v10872_v12 = vpack.c.bf16 %v10471_v32, %v19463_v21  ;;  %v14748_v37 = vpop.f32.mrb[77].mxu1  ;;  %v20785_v30 = vld [vmem:[#allocation27_spill] sm:$0xff] }
0x14a2   : > { %v10474_v51 = vpop.f32.mrb[78].mxu1  ;;  %v20786_v37 = vld [vmem:[#allocation30_spill] sm:$0xff] }
0x14a3   : > { %v14749_v26 = vpop.f32.mrb[79].mxu1  ;;  %14811 = vmatmul.mubr.msk.bf16.gmra.mrb[28].mxu1 %vm1577_vm1, %v10872_v12 }
0x14d5   : > { %v10569_v44 = vpop.f32.mrb[80].mxu1 }
0x14d6   : > { %v10873_v13 = vpack.c.bf16 %v10569_v44, %v19466_v0  ;;  %v14760_v49 = vpop.f32.mrb[81].mxu1  ;;  %v10716_v53 = vpop.f32.mrb[88].mxu0 }
0x14d7   : > { %v10572_v7 = vpop.f32.mrb[82].mxu1  ;;  %v14778_v38 = vpop.f32.mrb[89].mxu0 }
0x14d8   : > { %v14761_v17 = vpop.f32.mrb[83].mxu1  ;;  %v10719_v11 = vpop.f32.mrb[90].mxu0  ;;  %14814 = vmatprep.mubr.msk.bf16.mxu1 %vm1577_vm1, %v10873_v13  ;;  %v20787_v38 = vld [vmem:[#allocation29_spill] sm:$0xff] }
0x14d9   : > { %v14779_v40 = vpop.f32.mrb[91].mxu0 }
0x14dd   : > { %v10667_v61 = vpop.f32.mrb[84].mxu1 }
0x14de   : > { %v10874_v10 = vpack.c.bf16 %v10667_v61, %v10618_v50  ;;  %v14772_v21 = vpop.f32.mrb[85].mxu1  ;;  %v20788_v61 = vld [vmem:[#allocation32_spill] sm:$0xff] }
0x14df   : > { %v10670_v36 = vpop.f32.mrb[86].mxu1  ;;  %v20789_v21 = vld [vmem:[#allocation31_spill] sm:$0xff] }
0x14e0   : > { %v14773_v1 = vpop.f32.mrb[87].mxu1  ;;  %14815 = vmatmul.mubr.msk.bf16.gmra.mrb[32].mxu1 %vm1577_vm1, %v10874_v10 }
0x14e1   : > { %v20790_v1 = vld [vmem:[#allocation34_spill] sm:$0xff] }
0x150f   : > { %v10814_v15 = vpop.f32.mrb[108].mxu0 }
0x1510   : > { %v14790_v43 = vpop.f32.mrb[109].mxu0 }
0x1511   : > { %v10817_v4 = vpop.f32.mrb[110].mxu0 }
0x1512   : > { %v10765_v0 = vpop.f32.mrb[88].mxu1  ;;  %v14791_v62 = vpop.f32.mrb[111].mxu0 }
0x1513   : > { %v10875_v56 = vpack.c.bf16 %v10765_v0, %v10716_v53  ;;  %v14784_v24 = vpop.f32.mrb[89].mxu1 }
0x1514   : > { %v10768_v33 = vpop.f32.mrb[90].mxu1 }
0x1515   : > { %v14785_v63 = vpop.f32.mrb[91].mxu1  ;;  %14818 = vmatprep.mubr.msk.bf16.mxu1 %vm1577_vm1, %v10875_v56 }
0x151a   : > { %v10863_v55 = vpop.f32.mrb[92].mxu1 }
0x151b   : > { %v10876_v60 = vpack.c.bf16 %v10863_v55, %v10814_v15  ;;  %v14796_v29 = vpop.f32.mrb[93].mxu1 }
0x151c   : > { %v10866_v28 = vpop.f32.mrb[94].mxu1  ;;  %v20791_v29 = vld [vmem:[#allocation33_spill] sm:$0xff] }
0x151d   : > { %v14797_v6 = vpop.f32.mrb[95].mxu1  ;;  %14819 = vmatmul.mubr.msk.bf16.gmra.mrb[36].mxu1 %vm1577_vm1, %v10876_v60 }
0x152a   : > { %v14808_v25 = vpop.f32.mrb[24].mxu1 }
0x152b   : > { %v10959_v59 = vpop.f32.mrb[25].mxu1  ;;  %v14878_v14 = vadd.f32 %v14808_v25, %v13018_v16 }
0x152c   : > { %v14879_v3 = vadd.f32 %v13018_v16, %v10959_v59  ;;  %v14809_v35 = vpop.f32.mrb[26].mxu1 }
0x152d   : > { %v10962_v31 = vpop.f32.mrb[27].mxu1  ;;  %v19533_v34 = vadd.f32 %v14878_v14, %v20781_v27  ;;  %v14880_v58 = vadd.f32 %v14809_v35, %v13018_v16 }
0x152e   : > { %v11038_v41 = vadd.f32 %v14879_v3, %v20779_v42  ;;  %v14881_v9 = vadd.f32 %v13018_v16, %v10962_v31  ;;  %v20792_v3 = vld [vmem:[#allocation8_spill] sm:$0xff] }
0x152f   : > { %v11041_v20 = vadd.f32 %v14880_v58, %v20782_v48  ;;  %v20794_v48 = vld [vmem:[#allocation10_spill] sm:$0xff] }
0x1530   : > { %v11039_v39 = vadd.f32 %v14881_v9, %v20780_v57  ;;  %11058 = vadd.xlane.f32.xlu0 %v11038_v41  ;;  %v20793_v9 = vld [vmem:[#allocation9_spill] sm:$0xff] }
0x1532   : > { %11060 = vadd.xlane.f32.xlu1 %v11039_v39 }
0x1534   : > { %11062 = vadd.xlane.f32.xlu0 %v19533_v34 }
0x1538   : > { %11064 = vadd.xlane.f32.xlu0 %v11041_v20 }
0x1576   : > { %v14812_v23 = vpop.f32.mrb[28].mxu1 }
0x1577   : > { %v10975_v52 = vpop.f32.mrb[29].mxu1  ;;  %v14882_v45 = vadd.f32 %v14812_v23, %v13018_v16 }
0x1578   : > { %v14883_v5 = vadd.f32 %v13018_v16, %v10975_v52  ;;  %v14813_v54 = vpop.f32.mrb[30].mxu1 }
0x1579   : > { %v10978_v8 = vpop.f32.mrb[31].mxu1  ;;  %v14884_v22 = vadd.f32 %v14813_v54, %v13018_v16  ;;  %v19545_v12 = vadd.f32 %v14882_v45, %v20785_v30  ;;  %v15077_v54 = vld [vmem:[%s20497_s10 + $0x80] ss:$8 sps:$4 sm:$0xff]  }
0x157a   : > { %v19538_v47 = vadd.f32 %v14883_v5, %v20783_v18  ;;  %v14885_v50 = vadd.f32 %v13018_v16, %v10978_v8  ;;  %v15080_v18 = vld [vmem:[%s20497_s10 + $0x90] ss:$8 sps:$4 sm:$0xff]  }
0x157b   : > { %v19549_v51 = vadd.f32 %v14884_v22, %v20786_v37 }
0x157c   : > { %v19541_v32 = vadd.f32 %v14885_v50, %v20784_v2  ;;  %11066 = vadd.xlane.f32.xlu0 %v19538_v47  ;;  %v15082_v50 = vld [vmem:[%s20497_s10 + $0x94] ss:$8 sps:$4 sm:$0xff]  }
0x157e   : > { %11068 = vadd.xlane.f32.xlu1 %v19541_v32 }
0x1580   : > { %11070 = vadd.xlane.f32.xlu0 %v19545_v12 }
0x1582   : > { %11072 = vadd.xlane.f32.xlu1 %v19549_v51 }
0x15b3   : > { %v14816_v26 = vpop.f32.mrb[32].mxu1 }
0x15b4   : > { %v10991_v44 = vpop.f32.mrb[33].mxu1  ;;  %v14886_v7 = vadd.f32 %v14816_v26, %v13018_v16 }
0x15b5   : > { %v14887_v13 = vadd.f32 %v13018_v16, %v10991_v44  ;;  %v14817_v49 = vpop.f32.mrb[34].mxu1 }
0x15b6   : > { %v10994_v53 = vpop.f32.mrb[35].mxu1  ;;  %v14888_v40 = vadd.f32 %v14817_v49, %v13018_v16  ;;  %v19561_v36 = vadd.f32 %v14886_v7, %v20789_v21  ;;  %v15091_v21 = vld [vmem:[%s20497_s10 + $0xc4] ss:$8 sps:$4 sm:$0xff]  }
0x15b7   : > { %v19554_v17 = vadd.f32 %v14887_v13, %v20787_v38  ;;  %v14889_v11 = vadd.f32 %v13018_v16, %v10994_v53 }
0x15b8   : > { %v19565_v15 = vadd.f32 %v14888_v40, %v20790_v1  ;;  %v15083_v40 = vld [vmem:[%s20497_s10 + $0xa0] ss:$8 sps:$4 sm:$0xff]  }
0x15b9   : > { %v19557_v10 = vadd.f32 %v14889_v11, %v20788_v61  ;;  %11074 = vadd.xlane.f32.xlu0 %v19554_v17  ;;  %v15085_v11 = vld [vmem:[%s20497_s10 + $0xa4] ss:$8 sps:$4 sm:$0xff]   ;;  %v15086_v61 = vld [vmem:[%s20497_s10 + $0xb0] ss:$8 sps:$4 sm:$0xff]   ;;  %v15089_v1 = vld [vmem:[%s20497_s10 + $0xc0] ss:$8 sps:$4 sm:$0xff]  }
0x15bb   : > { %11076 = vadd.xlane.f32.xlu1 %v19557_v10 }
0x15bd   : > { %11078 = vadd.xlane.f32.xlu0 %v19561_v36  ;;  %v11059_v43 = vpop.xlane.xlu0 %11058 }
0x15be   : > { %v11090_v55 = vmul.f32 0.0078125, %v11059_v43  ;;  %v15094_v43 = vld [vmem:[%s20497_s10 + $0xd4] ss:$8 sps:$4 sm:$0xff]  }
0x15bf   : > { %11080 = vadd.xlane.f32.xlu1 %v19565_v15  ;;  %v11061_v33 = vpop.xlane.xlu1 %11060 }
0x15c0   : > { %v11091_v25 = vmul.f32 0.0078125, %v11061_v33  ;;  %v19576_v14 = vsub.f32 %v11038_v41, %v11090_v55 }
0x15c1   : > { %v11063_v0 = vpop.xlane.xlu0 %11062 }
0x15c2   : > { %v11092_v42 = vmul.f32 0.0078125, %v11063_v0  ;;  %v19582_v27 = vsub.f32 %v11039_v39, %v11091_v25  ;;  %v11122_v41 = vmul.f32 %v19576_v14, %v19576_v14  ;;  %v15097_v0 = vld [vmem:[%s20497_s10 + $0xe4] ss:$8 sps:$4 sm:$0xff]  }
0x15c4   : > { %v11123_v39 = vmul.f32 %v19582_v27, %v19582_v27 }
0x15c5   : > { %v11065_v31 = vpop.xlane.xlu0 %11064 }
0x15c6   : > { %v11093_v58 = vmul.f32 0.0078125, %v11065_v31 }
0x15c8   : > { %v19594_v52 = vsub.f32 %v11041_v20, %v11093_v58  ;;  %v15079_v20 = vld [vmem:[%s20497_s10 + $0x84] ss:$8 sps:$4 sm:$0xff]  }
0x15c9   : > { %11396 = vmatprep.subr.bf16.mxu0 %v15079_v20 }
0x15ca   : > { %11397 = vmatpush1.bf16.msra.mxu0 %v15077_v54 }
0x15cb   : > { %11398 = vmatprep.subr.bf16.mxu0 %v15082_v50 }
0x15ce   : > { %11399 = vmatpush1.bf16.msra.mxu0 %v15080_v18 }
0x15cf   : > { %11400 = vmatprep.subr.bf16.mxu0 %v15085_v11 }
0x15d2   : > { %11401 = vmatpush1.bf16.msra.mxu0 %v15083_v40 }
0x15f0   : > { %v14820_v4 = vpop.f32.mrb[36].mxu1 }
0x15f1   : > { %v11007_v62 = vpop.f32.mrb[37].mxu1  ;;  %v14890_v60 = vadd.f32 %v14820_v4, %v13018_v16  ;;  %v15092_v4 = vld [vmem:[%s20497_s10 + $0xd0] ss:$8 sps:$4 sm:$0xff]  }
0x15f2   : > { %v14891_v56 = vadd.f32 %v13018_v16, %v11007_v62  ;;  %v14821_v24 = vpop.f32.mrb[38].mxu1  ;;  %v15095_v62 = vld [vmem:[%s20497_s10 + $0xe0] ss:$8 sps:$4 sm:$0xff]  }
0x15f3   : > { %v11010_v63 = vpop.f32.mrb[39].mxu1  ;;  %v14892_v59 = vadd.f32 %v14821_v24, %v13018_v16  ;;  %v19579_v57 = vadd.f32 %v14890_v60, %v20793_v9  ;;  %v15098_v24 = vld [vmem:[%s20497_s10 + $0xf0] ss:$8 sps:$4 sm:$0xff]  }
0x15f4   : > { %v19570_v28 = vadd.f32 %v14891_v56, %v20791_v29  ;;  %v14893_v6 = vadd.f32 %v13018_v16, %v11010_v63  ;;  %v19589_v16 = vsub.f32 %v19533_v34, %v11092_v42  ;;  %v11125_v34 = vmul.f32 %v19594_v52, %v19594_v52  ;;  %v15100_v56 = vld [vmem:[%s20497_s10 + $0xf4] ss:$8 sps:$4 sm:$0xff]  }
0x15f5   : > { %v19585_v23 = vadd.f32 %v14892_v59, %v20794_v48 }
0x15f6   : > { %v19573_v35 = vadd.f32 %v14893_v6, %v20792_v3  ;;  %11082 = vadd.xlane.f32.xlu0 %v19570_v28  ;;  %v11124_v5 = vmul.f32 %v19589_v16, %v19589_v16 }
0x15f8   : > { %11084 = vadd.xlane.f32.xlu1 %v19573_v35 }
0x15fa   : > { %11086 = vadd.xlane.f32.xlu0 %v19579_v57 }
0x15fc   : > { %11088 = vadd.xlane.f32.xlu1 %v19585_v23 }
0x15fe   : > { %11138 = vadd.xlane.f32.xlu0 %v11122_v41 }
0x1600   : > { %11140 = vadd.xlane.f32.xlu1 %v11123_v39 }
0x1602   : > { %11142 = vadd.xlane.f32.xlu0 %v11124_v5 }
0x1604   : > { %11144 = vadd.xlane.f32.xlu1 %v11125_v34 }
0x1609   : > { %v11067_v8 = vpop.xlane.xlu0 %11066 }
0x160a   : > { %v11094_v45 = vmul.f32 0.0078125, %v11067_v8 }
0x160b   : > { %v11069_v22 = vpop.xlane.xlu1 %11068 }
0x160c   : > { %v19615_v2 = vsub.f32 %v19538_v47, %v11094_v45  ;;  %v11095_v30 = vmul.f32 0.0078125, %v11069_v22 }
0x160d   : > { %v11071_v37 = vpop.xlane.xlu0 %11070 }
0x160e   : > { %v19618_v26 = vsub.f32 %v19541_v32, %v11095_v30  ;;  %v11096_v44 = vmul.f32 0.0078125, %v11071_v37  ;;  %v11126_v13 = vmul.f32 %v19615_v2, %v19615_v2 }
0x160f   : > { %v11073_v49 = vpop.xlane.xlu1 %11072 }
0x1610   : > { %v19623_v53 = vsub.f32 %v19545_v12, %v11096_v44  ;;  %v11097_v7 = vmul.f32 0.0078125, %v11073_v49  ;;  %11146 = vadd.xlane.f32.xlu0 %v11126_v13  ;;  %v11127_v47 = vmul.f32 %v19618_v26, %v19618_v26 }
0x1612   : > { %v19628_v38 = vsub.f32 %v19549_v51, %v11097_v7  ;;  %11148 = vadd.xlane.f32.xlu1 %v11127_v47  ;;  %v11128_v32 = vmul.f32 %v19623_v53, %v19623_v53  ;;  %v15088_v51 = vld [vmem:[%s20497_s10 + $0xb4] ss:$8 sps:$4 sm:$0xff]  }
0x1613   : > { %11402 = vmatprep.subr.bf16.mxu0 %v15088_v51 }
0x1614   : > { %11150 = vadd.xlane.f32.xlu0 %v11128_v32  ;;  %v11129_v12 = vmul.f32 %v19628_v38, %v19628_v38  ;;  %11403 = vmatpush1.bf16.msra.mxu0 %v15086_v61  ;;  %v19714_v61 = vld [vmem:[%s20495_s8 + $0x1] ss:$0 sm:$0xff] }
0x1615   : > { %11404 = vmatprep.subr.bf16.mxu0 %v15091_v21 }
0x1616   : > { %11152 = vadd.xlane.f32.xlu1 %v11129_v12 }
0x1618   : > { %11405 = vmatpush1.bf16.msra.mxu0 %v15089_v1 }
0x1619   : > { %11406 = vmatprep.subr.bf16.mxu0 %v15094_v43 }
0x161c   : > { %11407 = vmatpush1.bf16.msra.mxu0 %v15092_v4 }
0x161d   : > { %11408 = vmatprep.subr.bf16.mxu0 %v15097_v0 }
0x1620   : > { %11409 = vmatpush1.bf16.msra.mxu0 %v15095_v62 }
0x1621   : > { %11410 = vmatprep.subr.bf16.mxu0 %v15100_v56  ;;  %v19722_v56 = vld [vmem:[%s20496_s9 + $0x1] ss:$0 sm:$0xff] }
0x1624   : > { %11411 = vmatpush1.bf16.msra.mxu0 %v15098_v24 }
0x1625   : > { %14822 = vmatprep.subr.bf16.mxu0 %v20668_v19 }
0x1646   : > { %v11075_v33 = vpop.xlane.xlu0 %11074 }
0x1647   : > { %v11098_v63 = vmul.f32 0.0078125, %v11075_v33 }
0x1648   : > { %v11077_v55 = vpop.xlane.xlu1 %11076 }
0x1649   : > { %v19672_v60 = vsub.f32 %v19554_v17, %v11098_v63  ;;  %v11099_v29 = vmul.f32 0.0078125, %v11077_v55 }
0x164a   : > { %v11079_v6 = vpop.xlane.xlu0 %11078 }
0x164b   : > { %v19675_v25 = vsub.f32 %v19557_v10, %v11099_v29  ;;  %v11100_v59 = vmul.f32 0.0078125, %v11079_v6  ;;  %v11130_v3 = vmul.f32 %v19672_v60, %v19672_v60 }
0x164c   : > { %v11081_v31 = vpop.xlane.xlu1 %11080 }
0x164d   : > { %v19680_v42 = vsub.f32 %v19561_v36, %v11100_v59  ;;  %v11101_v9 = vmul.f32 0.0078125, %v11081_v31  ;;  %11154 = vadd.xlane.f32.xlu0 %v11130_v3  ;;  %v11131_v58 = vmul.f32 %v19675_v25, %v19675_v25 }
0x164f   : > { %v19685_v17 = vsub.f32 %v19565_v15, %v11101_v9  ;;  %11156 = vadd.xlane.f32.xlu1 %v11131_v58  ;;  %v11132_v10 = vmul.f32 %v19680_v42, %v19680_v42 }
0x1651   : > { %11158 = vadd.xlane.f32.xlu0 %v11132_v10  ;;  %v11133_v48 = vmul.f32 %v19685_v17, %v19685_v17 }
0x1653   : > { %11160 = vadd.xlane.f32.xlu1 %v11133_v48 }
0x1683   : > { %v11083_v41 = vpop.xlane.xlu0 %11082 }
0x1684   : > { %v11102_v36 = vmul.f32 0.0078125, %v11083_v41 }
0x1685   : > { %v11085_v39 = vpop.xlane.xlu1 %11084 }
0x1686   : > { %v19692_v5 = vsub.f32 %v19570_v28, %v11102_v36  ;;  %v11103_v34 = vmul.f32 0.0078125, %v11085_v39 }
0x1687   : > { %v11087_v54 = vpop.xlane.xlu0 %11086 }
0x1688   : > { %v19695_v15 = vsub.f32 %v19573_v35, %v11103_v34  ;;  %v11104_v20 = vmul.f32 0.0078125, %v11087_v54  ;;  %v11134_v8 = vmul.f32 %v19692_v5, %v19692_v5 }
0x1689   : > { %v11089_v45 = vpop.xlane.xlu1 %11088 }
0x168a   : > { %v19700_v18 = vsub.f32 %v19579_v57, %v11104_v20  ;;  %v11105_v50 = vmul.f32 0.0078125, %v11089_v45  ;;  %11162 = vadd.xlane.f32.xlu0 %v11134_v8  ;;  %v11135_v22 = vmul.f32 %v19695_v15, %v19695_v15 }
0x168b   : > { %v11139_v28 = vpop.xlane.xlu0 %11138 }
0x168c   : > { %v19705_v30 = vsub.f32 %v19585_v23, %v11105_v50  ;;  %v11170_v37 = vmul.f32 0.0078125, %v11139_v28  ;;  %11164 = vadd.xlane.f32.xlu1 %v11135_v22  ;;  %v11136_v35 = vmul.f32 %v19700_v18, %v19700_v18 }
0x168d   : > { %v11141_v44 = vpop.xlane.xlu1 %11140 }
0x168e   : > { %v11186_v13 = vadd.f32 1e-12, %v11170_v37  ;;  %v11171_v49 = vmul.f32 0.0078125, %v11141_v44  ;;  %11166 = vadd.xlane.f32.xlu0 %v11136_v35  ;;  %v11137_v57 = vmul.f32 %v19705_v30, %v19705_v30 }
0x168f   : > { %v11143_v7 = vpop.xlane.xlu0 %11142 }
0x1690   : > { %15541 = vrsqrt.f32 %v11186_v13  ;;  %v11187_v47 = vadd.f32 1e-12, %v11171_v49  ;;  %v11172_v32 = vmul.f32 0.0078125, %v11143_v7  ;;  %11168 = vadd.xlane.f32.xlu1 %v11137_v57 }
0x1691   : > { %v11145_v11 = vpop.xlane.xlu1 %11144 }
0x1692   : > { %15543 = vrsqrt.f32 %v11187_v47  ;;  %v11188_v23 = vadd.f32 1e-12, %v11172_v32  ;;  %v11173_v12 = vmul.f32 0.0078125, %v11145_v11 }
0x1694   : > { %15545 = vrsqrt.f32 %v11188_v23  ;;  %v11189_v40 = vadd.f32 1e-12, %v11173_v12 }
0x1696   : > { %15547 = vrsqrt.f32 %v11189_v40 }
0x169a   : > { %v15542_v51 = vpop.eup %15541 }
0x169b   : > { %v11218_v21 = vmul.f32 %v15542_v51, %v19576_v14 }
0x169c   : > { %v15544_v1 = vpop.eup %15543 }
0x169d   : > { %v11240_v43 = vmul.f32 %v19714_v61, %v11218_v21  ;;  %v11219_v4 = vmul.f32 %v15544_v1, %v19582_v27  ;;  %v11147_v0 = vpop.xlane.xlu0 %11146 }
0x169e   : > { %v15546_v62 = vpop.eup %15545  ;;  %v11174_v24 = vmul.f32 0.0078125, %v11147_v0 }
0x169f   : > { %v11241_v33 = vmul.f32 %v19714_v61, %v11219_v4  ;;  %v11149_v63 = vpop.xlane.xlu1 %11148  ;;  %v19726_v14 = vadd.f32 %v19722_v56, %v11240_v43  ;;  %v11220_v27 = vmul.f32 %v15546_v62, %v19589_v16 }
0x16a0   : > { %v15548_v55 = vpop.eup %15547  ;;  %v11190_v29 = vadd.f32 1e-12, %v11174_v24  ;;  %v11175_v6 = vmul.f32 0.0078125, %v11149_v63 }
0x16a1   : > { %v19729_v59 = vadd.f32 %v19722_v56, %v11241_v33  ;;  %v11221_v3 = vmul.f32 %v15548_v55, %v19594_v52  ;;  %v11151_v31 = vpop.xlane.xlu0 %11150  ;;  %v11242_v34 = vmul.f32 %v19714_v61, %v11220_v27 }
0x16a2   : > { %15549 = vrsqrt.f32 %v11190_v29  ;;  %v11191_v9 = vadd.f32 1e-12, %v11175_v6  ;;  %v11176_v58 = vmul.f32 0.0078125, %v11151_v31 }
0x16a3   : > { %v11295_v10 = vpack.c.bf16 %v19729_v59, %v19726_v14  ;;  %v11243_v48 = vmul.f32 %v19714_v61, %v11221_v3  ;;  %v11153_v41 = vpop.xlane.xlu1 %11152  ;;  %v19742_v54 = vadd.f32 %v19722_v56, %v11242_v34  ;;  %v15102_v34 = vld [vmem:[%s20499_s12 + $0x80] sm:$0xff]  }
0x16a4   : > { %15551 = vrsqrt.f32 %v11191_v9  ;;  %v11192_v36 = vadd.f32 1e-12, %v11176_v58  ;;  %v11177_v39 = vmul.f32 0.0078125, %v11153_v41 }
0x16a5   : > { %11429 = vmatmul.mubr.bf16.vlgmr.msra.gmra.mrb[112].mxu0 %v11295_v10  ;;  %v19739_v52 = vadd.f32 %v19722_v56, %v11243_v48 }
0x16a6   : > { %15553 = vrsqrt.f32 %v11192_v36  ;;  %v11193_v16 = vadd.f32 1e-12, %v11177_v39  ;;  %11438 = vmatprep.mubr.bf16.mxu0 %v20778_v46 }
0x16a7   : > { %v11296_v20 = vpack.c.bf16 %v19739_v52, %v19742_v54 }
0x16a8   : > { %15555 = vrsqrt.f32 %v11193_v16  ;;  %v15103_v16 = vld [vmem:[%s20499_s12 + $0xc8] sm:$0xff]  }
0x16ac   : > { %v15550_v8 = vpop.eup %15549 }
0x16ad   : > { %v11222_v45 = vmul.f32 %v15550_v8, %v19615_v2  ;;  %11439 = vmatmul.mubr.bf16.gmra.mrb[116].mxu0 %v11296_v20  ;;  %v15104_v20 = vld [vmem:[%s20499_s12 + $0x88] sm:$0xff]   ;;  %v15105_v8 = vld [vmem:[%s20499_s12 + $0xd0] sm:$0xff]  }
0x16ae   : > { %v15552_v50 = vpop.eup %15551  ;;  %11448 = vmatprep.mubr.bf16.mxu0 %v20778_v46 }
0x16af   : > { %v11244_v22 = vmul.f32 %v19714_v61, %v11222_v45  ;;  %v11223_v28 = vmul.f32 %v15552_v50, %v19618_v26  ;;  %v15106_v45 = vld [vmem:[%s20499_s12 + $0x90] sm:$0xff]   ;;  %v15107_v50 = vld [vmem:[%s20499_s12 + $0xd8] sm:$0xff]  }
0x16b0   : > { %v15554_v37 = vpop.eup %15553 }
0x16b1   : > { %v11245_v35 = vmul.f32 %v19714_v61, %v11223_v28  ;;  %v19752_v13 = vadd.f32 %v19722_v56, %v11244_v22  ;;  %v11224_v2 = vmul.f32 %v15554_v37, %v19623_v53  ;;  %v15108_v22 = vld [vmem:[%s20499_s12 + $0x98] sm:$0xff]   ;;  %v15109_v28 = vld [vmem:[%s20499_s12 + $0xe0] sm:$0xff]  }
0x16b2   : > { %v15556_v44 = vpop.eup %15555  ;;  %v15110_v37 = vld [vmem:[%s20499_s12 + $0xa0] sm:$0xff]  }
0x16b3   : > { %v19755_v49 = vadd.f32 %v19722_v56, %v11245_v35  ;;  %v11225_v57 = vmul.f32 %v15556_v44, %v19628_v38  ;;  %v11246_v26 = vmul.f32 %v19714_v61, %v11224_v2  ;;  %v15111_v35 = vld [vmem:[%s20499_s12 + $0xe8] sm:$0xff]  }
0x16b4   : > { %v15112_v2 = vld [vmem:[%s20499_s12 + $0xa8] sm:$0xff]  }
0x16b5   : > { %v11297_v7 = vpack.c.bf16 %v19755_v49, %v19752_v13  ;;  %v11247_v47 = vmul.f32 %v19714_v61, %v11225_v57  ;;  %v19768_v11 = vadd.f32 %v19722_v56, %v11246_v26 }
0x16b7   : > { %11449 = vmatmul.mubr.bf16.gmra.mrb[120].mxu0 %v11297_v7  ;;  %v19765_v32 = vadd.f32 %v19722_v56, %v11247_v47 }
0x16b8   : > { %11458 = vmatprep.mubr.bf16.mxu0 %v20778_v46 }
0x16b9   : > { %v11298_v53 = vpack.c.bf16 %v19765_v32, %v19768_v11 }
0x16bf   : > { %11459 = vmatmul.mubr.bf16.gmra.mrb[124].mxu0 %v11298_v53  ;;  %v15113_v53 = vld [vmem:[%s20499_s12 + $0xf0] sm:$0xff]  }
0x16c0   : > { %11468 = vmatprep.mubr.bf16.mxu0 %v20778_v46 }
0x16da   : > { %v11155_v38 = vpop.xlane.xlu0 %11154 }
0x16db   : > { %v11178_v23 = vmul.f32 0.0078125, %v11155_v38 }
0x16dc   : > { %v11157_v12 = vpop.xlane.xlu1 %11156 }
0x16dd   : > { %v11194_v40 = vadd.f32 1e-12, %v11178_v23  ;;  %v11179_v51 = vmul.f32 0.0078125, %v11157_v12  ;;  %v15114_v23 = vld [vmem:[%s20499_s12 + $0xb0] sm:$0xff]  }
0x16de   : > { %v11159_v21 = vpop.xlane.xlu0 %11158 }
0x16df   : > { %15557 = vrsqrt.f32 %v11194_v40  ;;  %v11195_v1 = vadd.f32 1e-12, %v11179_v51  ;;  %v11180_v43 = vmul.f32 0.0078125, %v11159_v21 }
0x16e0   : > { %v11161_v4 = vpop.xlane.xlu1 %11160 }
0x16e1   : > { %15559 = vrsqrt.f32 %v11195_v1  ;;  %v11196_v0 = vadd.f32 1e-12, %v11180_v43  ;;  %v11181_v62 = vmul.f32 0.0078125, %v11161_v4  ;;  %v15115_v43 = vld [vmem:[%s20499_s12 + $0xf8] sm:$0xff]  }
0x16e2   : > { %v15116_v4 = vld [vmem:[%s20499_s12 + $0xb8] sm:$0xff]  }
0x16e3   : > { %15561 = vrsqrt.f32 %v11196_v0  ;;  %v11197_v24 = vadd.f32 1e-12, %v11181_v62 }
0x16e5   : > { %15563 = vrsqrt.f32 %v11197_v24 }
0x16e9   : > { %v15558_v33 = vpop.eup %15557 }
0x16ea   : > { %v11226_v63 = vmul.f32 %v15558_v33, %v19672_v60 }
0x16eb   : > { %v15560_v55 = vpop.eup %15559 }
0x16ec   : > { %v11248_v29 = vmul.f32 %v19714_v61, %v11226_v63  ;;  %v11227_v6 = vmul.f32 %v15560_v55, %v19675_v25 }
0x16ed   : > { %v15562_v27 = vpop.eup %15561 }
0x16ee   : > { %v11249_v3 = vmul.f32 %v19714_v61, %v11227_v6  ;;  %v19778_v9 = vadd.f32 %v19722_v56, %v11248_v29  ;;  %v11228_v10 = vmul.f32 %v15562_v27, %v19680_v42 }
0x16ef   : > { %v15564_v31 = vpop.eup %15563 }
0x16f0   : > { %v19781_v58 = vadd.f32 %v19722_v56, %v11249_v3  ;;  %v11229_v48 = vmul.f32 %v15564_v31, %v19685_v17  ;;  %v11250_v25 = vmul.f32 %v19714_v61, %v11228_v10  ;;  %v15101_v17 = vld [vmem:[%s20499_s12 + $0xc0] sm:$0xff]  }
0x16f1   : > { %13684 = vmatprep.subr.bf16.mxu1 %v15101_v17 }
0x16f2   : > { %v11299_v60 = vpack.c.bf16 %v19781_v58, %v19778_v9  ;;  %v11251_v41 = vmul.f32 %v19714_v61, %v11229_v48  ;;  %v19794_v39 = vadd.f32 %v19722_v56, %v11250_v25  ;;  %13685 = vmatpush3.bf16.msra.mxu1 %v15102_v34 }
0x16f3   : > { %13686 = vmatprep.subr.bf16.mxu1 %v15103_v16 }
0x16f4   : > { %11469 = vmatmul.mubr.bf16.gmra.mrb[128].mxu0 %v11299_v60  ;;  %v19791_v36 = vadd.f32 %v19722_v56, %v11251_v41 }
0x16f5   : > { %11478 = vmatprep.mubr.bf16.mxu0 %v20778_v46 }
0x16f6   : > { %v11300_v42 = vpack.c.bf16 %v19791_v36, %v19794_v39  ;;  %13687 = vmatpush3.bf16.msra.mxu1 %v15104_v20 }
0x16f7   : > { %13688 = vmatprep.subr.bf16.mxu1 %v15105_v8 }
0x16fa   : > { %13689 = vmatpush3.bf16.msra.mxu1 %v15106_v45 }
0x16fb   : > { %13690 = vmatprep.subr.bf16.mxu1 %v15107_v50 }
0x16fc   : > { %11479 = vmatmul.mubr.bf16.gmra.mrb[132].mxu0 %v11300_v42 }
0x16fd   : > { %11488 = vmatprep.mubr.bf16.mxu0 %v20778_v46 }
0x16fe   : > { %13691 = vmatpush3.bf16.msra.mxu1 %v15108_v22 }
0x16ff   : > { %13692 = vmatprep.subr.bf16.mxu1 %v15109_v28 }
0x1702   : > { %13693 = vmatpush3.bf16.msra.mxu1 %v15110_v37 }
0x1703   : > { %13694 = vmatprep.subr.bf16.mxu1 %v15111_v35 }
0x1706   : > { %13695 = vmatpush3.bf16.msra.mxu1 %v15112_v2 }
0x1707   : > { %13696 = vmatprep.subr.bf16.mxu1 %v15113_v53 }
0x170a   : > { %13697 = vmatpush3.bf16.msra.mxu1 %v15114_v23 }
0x170b   : > { %13698 = vmatprep.subr.bf16.mxu1 %v15115_v43 }
0x170e   : > { %13699 = vmatpush3.bf16.msra.mxu1 %v15116_v4 }
0x170f   : > { %14842 = vmatprep.subr.bf16.mxu1 %v20668_v19 }
0x1717   : > { %v11163_v44 = vpop.xlane.xlu0 %11162 }
0x1718   : > { %v11182_v57 = vmul.f32 0.0078125, %v11163_v44 }
0x1719   : > { %v11165_v7 = vpop.xlane.xlu1 %11164 }
0x171a   : > { %v11198_v47 = vadd.f32 1e-12, %v11182_v57  ;;  %v11183_v26 = vmul.f32 0.0078125, %v11165_v7 }
0x171b   : > { %v11167_v38 = vpop.xlane.xlu0 %11166 }
0x171c   : > { %15565 = vrsqrt.f32 %v11198_v47  ;;  %v11199_v12 = vadd.f32 1e-12, %v11183_v26  ;;  %v11184_v40 = vmul.f32 0.0078125, %v11167_v38 }
0x171d   : > { %v11169_v51 = vpop.xlane.xlu1 %11168 }
0x171e   : > { %15567 = vrsqrt.f32 %v11199_v12  ;;  %v11200_v21 = vadd.f32 1e-12, %v11184_v40  ;;  %v11185_v1 = vmul.f32 0.0078125, %v11169_v51 }
0x1720   : > { %15569 = vrsqrt.f32 %v11200_v21  ;;  %v11201_v0 = vadd.f32 1e-12, %v11185_v1 }
0x1722   : > { %15571 = vrsqrt.f32 %v11201_v0 }
0x1726   : > { %v15566_v62 = vpop.eup %15565 }
0x1727   : > { %v11230_v24 = vmul.f32 %v15566_v62, %v19692_v5 }
0x1728   : > { %v15568_v33 = vpop.eup %15567 }
0x1729   : > { %v11252_v63 = vmul.f32 %v19714_v61, %v11230_v24  ;;  %v11231_v55 = vmul.f32 %v15568_v33, %v19695_v15 }
0x172a   : > { %v15570_v29 = vpop.eup %15569 }
0x172b   : > { %v11253_v6 = vmul.f32 %v19714_v61, %v11231_v55  ;;  %v19853_v3 = vadd.f32 %v19722_v56, %v11252_v63  ;;  %v11232_v10 = vmul.f32 %v15570_v29, %v19700_v18 }
0x172c   : > { %v15572_v27 = vpop.eup %15571 }
0x172d   : > { %v19856_v31 = vadd.f32 %v19722_v56, %v11253_v6  ;;  %v11233_v48 = vmul.f32 %v15572_v27, %v19705_v30  ;;  %v11254_v15 = vmul.f32 %v19714_v61, %v11232_v10  ;;  %v13083_v30 = vld [vmem:[%s20498_s11 + $0x2] sm:$0x3] }
0x172f   : > { %v11301_v5 = vpack.c.bf16 %v19856_v31, %v19853_v3  ;;  %v11255_v60 = vmul.f32 %v19714_v61, %v11233_v48  ;;  %v19869_v25 = vadd.f32 %v19722_v56, %v11254_v15  ;;  %v20795_v61 = vld [vmem:[#allocation38_spill] sm:$0xff] }
0x1730   : > { %v19879_v42 = vrot.slane %v13083_v30, %v20795_v61 }
0x1731   : > { %11489 = vmatmul.mubr.bf16.gmra.mrb[136].mxu0 %v11301_v5  ;;  %v19866_v41 = vadd.f32 %v19722_v56, %v11255_v60 }
0x1732   : > { %11498 = vmatprep.mubr.bf16.mxu0 %v20778_v46  ;;  %v20796_v46 = vld [vmem:[#allocation37_spill] sm:$0xff] }
0x1733   : > { %v11302_v18 = vpack.c.bf16 %v19866_v41, %v19869_v25  ;;  %v20797_v17 = vsub.s32 1, %v20796_v46 }
0x1735   : > { %v19883_v34 = vrot.slane %v13083_v30, %v20797_v17 }
0x1739   : > { %11499 = vmatmul.mubr.bf16.gmra.mrb[140].mxu0 %v11302_v18 }
0x173a   : > { %14838 = vmatprep.mubr.msk.bf16.mxu0 %vm15738_vm0, %v20668_v19 }
0x1778   : > { %v11430_v56 = vpop.f32.mrb[112].mxu0 }
0x1779   : > { %v19886_v16 = vadd.f32 %v11430_v56, %v19879_v42  ;;  %v11432_v20 = vpop.f32.mrb[113].mxu0 }
0x177a   : > { %v19889_v8 = vadd.f32 %v11432_v20, %v19883_v34  ;;  %v11434_v45 = vpop.f32.mrb[114].mxu0 }
0x177b   : > { %v11509_v50 = vmul.f32 %v19886_v16, %v19886_v16  ;;  %v19894_v22 = vadd.f32 %v11434_v45, %v19879_v42  ;;  %v11436_v28 = vpop.f32.mrb[115].mxu0 }
0x177c   : > { %v11510_v37 = vmul.f32 %v19889_v8, %v19889_v8  ;;  %v19899_v35 = vadd.f32 %v11436_v28, %v19883_v34 }
0x177d   : > { %v11541_v44 = vmul.f32 %v11509_v50, %v19886_v16  ;;  %v11511_v2 = vmul.f32 %v19894_v22, %v19894_v22 }
0x177e   : > { %v11542_v57 = vmul.f32 %v11510_v37, %v19889_v8  ;;  %v11512_v7 = vmul.f32 %v19899_v35, %v19899_v35 }
0x177f   : > { %v11573_v47 = vmul.f32 0.044715, %v11541_v44  ;;  %v11543_v26 = vmul.f32 %v11511_v2, %v19894_v22 }
0x1780   : > { %v11574_v53 = vmul.f32 0.044715, %v11542_v57  ;;  %v11544_v38 = vmul.f32 %v11512_v7, %v19899_v35  ;;  %v11440_v23 = vpop.f32.mrb[116].mxu0 }
0x1781   : > { %v11605_v12 = vadd.f32 %v11573_v47, %v19886_v16  ;;  %v11575_v40 = vmul.f32 0.044715, %v11543_v26  ;;  %v19911_v51 = vadd.f32 %v11440_v23, %v19879_v42  ;;  %v11442_v21 = vpop.f32.mrb[117].mxu0 }
0x1782   : > { %v11606_v1 = vadd.f32 %v11574_v53, %v19889_v8  ;;  %v11576_v43 = vmul.f32 0.044715, %v11544_v38  ;;  %v19915_v4 = vadd.f32 %v11442_v21, %v19883_v34  ;;  %v11444_v0 = vpop.f32.mrb[118].mxu0 }
0x1783   : > { %v11637_v62 = vmul.f32 0.7978846, %v11605_v12  ;;  %v11607_v24 = vadd.f32 %v11575_v40, %v19894_v22  ;;  %v11513_v33 = vmul.f32 %v19911_v51, %v19911_v51  ;;  %v19921_v63 = vadd.f32 %v11444_v0, %v19879_v42  ;;  %v11446_v55 = vpop.f32.mrb[119].mxu0 }
0x1784   : > { %v11638_v29 = vmul.f32 0.7978846, %v11606_v1  ;;  %v11608_v6 = vadd.f32 %v11576_v43, %v19899_v35  ;;  %v11514_v27 = vmul.f32 %v19915_v4, %v19915_v4  ;;  %v19927_v10 = vadd.f32 %v11446_v55, %v19883_v34 }
0x1785   : > { %15573 = vtanh.f32 %v11637_v62  ;;  %v11639_v48 = vmul.f32 0.7978846, %v11607_v24  ;;  %v11545_v5 = vmul.f32 %v11513_v33, %v19911_v51  ;;  %v11515_v60 = vmul.f32 %v19921_v63, %v19921_v63 }
0x1786   : > { %15575 = vtanh.f32 %v11638_v29  ;;  %v11640_v15 = vmul.f32 0.7978846, %v11608_v6  ;;  %v11546_v18 = vmul.f32 %v11514_v27, %v19915_v4  ;;  %v11516_v30 = vmul.f32 %v19927_v10, %v19927_v10 }
0x1787   : > { %15577 = vtanh.f32 %v11639_v48  ;;  %v11577_v61 = vmul.f32 0.044715, %v11545_v5  ;;  %v11547_v17 = vmul.f32 %v11515_v60, %v19921_v63 }
0x1788   : > { %15579 = vtanh.f32 %v11640_v15  ;;  %v11578_v56 = vmul.f32 0.044715, %v11546_v18  ;;  %v11548_v20 = vmul.f32 %v11516_v30, %v19927_v10 }
0x1789   : > { %v11609_v45 = vadd.f32 %v11577_v61, %v19911_v51  ;;  %v11579_v50 = vmul.f32 0.044715, %v11547_v17 }
0x178a   : > { %v11610_v28 = vadd.f32 %v11578_v56, %v19915_v4  ;;  %v11580_v37 = vmul.f32 0.044715, %v11548_v20  ;;  %v11450_v44 = vpop.f32.mrb[120].mxu0 }
0x178b   : > { %v11641_v2 = vmul.f32 0.7978846, %v11609_v45  ;;  %v11611_v57 = vadd.f32 %v11579_v50, %v19921_v63  ;;  %v19941_v7 = vadd.f32 %v11450_v44, %v19879_v42  ;;  %v11452_v47 = vpop.f32.mrb[121].mxu0 }
0x178c   : > { %v11642_v26 = vmul.f32 0.7978846, %v11610_v28  ;;  %v11612_v53 = vadd.f32 %v11580_v37, %v19927_v10  ;;  %v19945_v38 = vadd.f32 %v11452_v47, %v19883_v34  ;;  %v11454_v23 = vpop.f32.mrb[122].mxu0 }
0x178d   : > { %15581 = vtanh.f32 %v11641_v2  ;;  %v11643_v12 = vmul.f32 0.7978846, %v11611_v57  ;;  %v11517_v40 = vmul.f32 %v19941_v7, %v19941_v7  ;;  %v19950_v21 = vadd.f32 %v11454_v23, %v19879_v42  ;;  %v11456_v1 = vpop.f32.mrb[123].mxu0 }
0x178e   : > { %v11644_v43 = vmul.f32 0.7978846, %v11612_v53  ;;  %v11518_v0 = vmul.f32 %v19945_v38, %v19945_v38  ;;  %v19955_v62 = vadd.f32 %v11456_v1, %v19883_v34 }
0x178f   : > { %v15574_v24 = vpop.eup %15573  ;;  %15583 = vtanh.f32 %v11643_v12  ;;  %v11549_v33 = vmul.f32 %v11517_v40, %v19941_v7  ;;  %v11519_v55 = vmul.f32 %v19950_v21, %v19950_v21 }
0x1790   : > { %v15576_v29 = vpop.eup %15575  ;;  %v11701_v6 = vadd.f32 1.0, %v15574_v24  ;;  %15585 = vtanh.f32 %v11642_v26  ;;  %v11550_v27 = vmul.f32 %v11518_v0, %v19945_v38  ;;  %v11520_v48 = vmul.f32 %v19955_v62, %v19955_v62 }
0x1791   : > { %v15578_v5 = vpop.eup %15577  ;;  %15587 = vtanh.f32 %v11644_v43  ;;  %v11581_v60 = vmul.f32 0.044715, %v11549_v33  ;;  %v11551_v15 = vmul.f32 %v11519_v55, %v19950_v21  ;;  %v11702_v18 = vadd.f32 1.0, %v15576_v29 }
0x1792   : > { %v15580_v30 = vpop.eup %15579  ;;  %v11733_v61 = vmul.f32 0.5, %v11701_v6  ;;  %v11703_v17 = vadd.f32 1.0, %v15578_v5  ;;  %v11582_v56 = vmul.f32 0.044715, %v11550_v27  ;;  %v11552_v20 = vmul.f32 %v11520_v48, %v19955_v62  ;;  %v11460_v45 = vpop.f32.mrb[124].mxu0 }
0x1793   : > { %v11613_v50 = vadd.f32 %v11581_v60, %v19941_v7  ;;  %v11583_v28 = vmul.f32 0.044715, %v11551_v15  ;;  %v19967_v37 = vadd.f32 %v11460_v45, %v19879_v42  ;;  %v11462_v44 = vpop.f32.mrb[125].mxu0  ;;  %v11704_v2 = vadd.f32 1.0, %v15580_v30 }
0x1794   : > { %v19970_v57 = vmul.f32 %v11733_v61, %v19886_v16  ;;  %v11735_v47 = vmul.f32 0.5, %v11703_v17  ;;  %v11614_v26 = vadd.f32 %v11582_v56, %v19945_v38  ;;  %v11584_v53 = vmul.f32 0.044715, %v11552_v20  ;;  %v11464_v23 = vpop.f32.mrb[126].mxu0 }
0x1795   : > { %v11645_v12 = vmul.f32 0.7978846, %v11613_v50  ;;  %v11615_v40 = vadd.f32 %v11583_v28, %v19950_v21  ;;  %v11521_v1 = vmul.f32 %v19967_v37, %v19967_v37  ;;  %v19977_v43 = vadd.f32 %v11462_v44, %v19883_v34  ;;  %v11466_v0 = vpop.f32.mrb[127].mxu0 }
0x1796   : > { %v11767_v24 = vmul.f32 %v11735_v47, %v19894_v22  ;;  %v11646_v33 = vmul.f32 0.7978846, %v11614_v26  ;;  %v11616_v16 = vadd.f32 %v11584_v53, %v19955_v62  ;;  %v19982_v55 = vadd.f32 %v11464_v23, %v19879_v42 }
0x1797   : > { %v15582_v29 = vpop.eup %15581  ;;  %15589 = vtanh.f32 %v11645_v12  ;;  %v11647_v6 = vmul.f32 0.7978846, %v11615_v40  ;;  %v11553_v27 = vmul.f32 %v11521_v1, %v19967_v37  ;;  %v11522_v48 = vmul.f32 %v19977_v43, %v19977_v43 }
0x1798   : > { %v11797_v5 = vpack.c.bf16 %v11767_v24, %v19970_v57  ;;  %v11705_v60 = vadd.f32 1.0, %v15582_v29  ;;  %15591 = vtanh.f32 %v11646_v33  ;;  %v11648_v15 = vmul.f32 0.7978846, %v11616_v16 }
0x1799   : > { %v15584_v22 = vpop.eup %15583  ;;  %15593 = vtanh.f32 %v11647_v6  ;;  %v11585_v30 = vmul.f32 0.044715, %v11553_v27  ;;  %v11554_v61 = vmul.f32 %v11522_v48, %v19977_v43  ;;  %v11523_v17 = vmul.f32 %v19982_v55, %v19982_v55 }
0x179a   : > { %v15586_v56 = vpop.eup %15585  ;;  %v11737_v20 = vmul.f32 0.5, %v11705_v60  ;;  %v11707_v45 = vadd.f32 1.0, %v15584_v22  ;;  %15595 = vtanh.f32 %v11648_v15  ;;  %v19992_v50 = vadd.f32 %v11466_v0, %v19883_v34 }
0x179b   : > { %v15588_v28 = vpop.eup %15587  ;;  %v11617_v44 = vadd.f32 %v11585_v30, %v19967_v37  ;;  %v11586_v57 = vmul.f32 0.044715, %v11554_v61  ;;  %v11555_v47 = vmul.f32 %v11523_v17, %v19982_v55  ;;  %v11734_v26 = vmul.f32 0.5, %v11702_v18 }
0x179c   : > { %v11769_v53 = vmul.f32 %v11737_v20, %v19911_v51  ;;  %v11739_v23 = vmul.f32 0.5, %v11707_v45  ;;  %v11524_v12 = vmul.f32 %v19992_v50, %v19992_v50  ;;  %v11736_v40 = vmul.f32 0.5, %v11704_v2 }
0x179d   : > { %v11649_v1 = vmul.f32 0.7978846, %v11617_v44  ;;  %v11618_v24 = vadd.f32 %v11586_v57, %v19977_v43  ;;  %v11587_v33 = vmul.f32 0.044715, %v11555_v47  ;;  %v11766_v0 = vmul.f32 %v11734_v26, %v19889_v8 }
0x179e   : > { %v11771_v16 = vmul.f32 %v11739_v23, %v19921_v63  ;;  %v11556_v29 = vmul.f32 %v11524_v12, %v19992_v50  ;;  %v11768_v6 = vmul.f32 %v11736_v40, %v19899_v35  ;;  %v11706_v18 = vadd.f32 1.0, %v15586_v56 }
0x179f   : > { %15597 = vtanh.f32 %v11649_v1  ;;  %v11650_v51 = vmul.f32 0.7978846, %v11618_v24  ;;  %v11619_v27 = vadd.f32 %v11587_v33, %v19982_v55  ;;  %v11708_v48 = vadd.f32 1.0, %v15588_v28 }
0x17a0   : > { %v11799_v60 = vpack.c.bf16 %v11771_v16, %v11769_v53  ;;  %v11588_v2 = vmul.f32 0.044715, %v11556_v29  ;;  %v11798_v15 = vpack.c.bf16 %v11768_v6, %v11766_v0  ;;  %v11738_v22 = vmul.f32 0.5, %v11706_v18 }
0x17a1   : > { %v15590_v30 = vpop.eup %15589  ;;  %15599 = vtanh.f32 %v11650_v51  ;;  %v11651_v61 = vmul.f32 0.7978846, %v11619_v27  ;;  %v11740_v8 = vmul.f32 0.5, %v11708_v48 }
0x17a2   : > { %v15592_v17 = vpop.eup %15591  ;;  %v11709_v63 = vadd.f32 1.0, %v15590_v30  ;;  %v11620_v20 = vadd.f32 %v11588_v2, %v19992_v50  ;;  %11982 = vmatprep.mubr.bf16.mxu1 %v11798_v15  ;;  %v11770_v56 = vmul.f32 %v11738_v22, %v19915_v4 }
0x17a3   : > { %v15594_v35 = vpop.eup %15593  ;;  %15601 = vtanh.f32 %v11651_v61  ;;  %11983 = vmatmul.mubr.bf16.vlgmr.msra.gmra.mrb[96].mxu1 %v11797_v5  ;;  %v11772_v45 = vmul.f32 %v11740_v8, %v19927_v10  ;;  %v11710_v28 = vadd.f32 1.0, %v15592_v17 }
0x17a4   : > { %v15596_v44 = vpop.eup %15595  ;;  %v11741_v57 = vmul.f32 0.5, %v11709_v63  ;;  %v11711_v47 = vadd.f32 1.0, %v15594_v35  ;;  %v11652_v26 = vmul.f32 0.7978846, %v11620_v20 }
0x17a5   : > { %v11800_v53 = vpack.c.bf16 %v11772_v45, %v11770_v56  ;;  %v11712_v23 = vadd.f32 1.0, %v15596_v44  ;;  %v11742_v12 = vmul.f32 0.5, %v11710_v28 }
0x17a6   : > { %v11743_v40 = vmul.f32 0.5, %v11711_v47  ;;  %15603 = vtanh.f32 %v11652_v26  ;;  %v11773_v24 = vmul.f32 %v11741_v57, %v19941_v7 }
0x17a7   : > { %11990 = vmatprep.mubr.bf16.mxu1 %v11800_v53  ;;  %v11744_v1 = vmul.f32 0.5, %v11712_v23  ;;  %v11774_v4 = vmul.f32 %v11742_v12, %v19945_v38 }
0x17a8   : > { %v11775_v5 = vmul.f32 %v11743_v40, %v19950_v21 }
0x17a9   : > { %v15598_v33 = vpop.eup %15597  ;;  %v11776_v10 = vmul.f32 %v11744_v1, %v19955_v62 }
0x17aa   : > { %v11801_v0 = vpack.c.bf16 %v11775_v5, %v11773_v24  ;;  %v11713_v16 = vadd.f32 1.0, %v15598_v33 }
0x17ab   : > { %v15600_v29 = vpop.eup %15599  ;;  %11991 = vmatmul.mubr.bf16.gmra.mrb[100].mxu1 %v11799_v60  ;;  %v11802_v6 = vpack.c.bf16 %v11776_v10, %v11774_v4 }
0x17ac   : > { %v11714_v51 = vadd.f32 1.0, %v15600_v29  ;;  %v11745_v27 = vmul.f32 0.5, %v11713_v16 }
0x17ad   : > { %v15602_v18 = vpop.eup %15601  ;;  %11998 = vmatprep.mubr.bf16.mxu1 %v11802_v6 }
0x17ae   : > { %v11715_v48 = vadd.f32 1.0, %v15602_v18  ;;  %v11746_v22 = vmul.f32 0.5, %v11714_v51  ;;  %v11777_v21 = vmul.f32 %v11745_v27, %v19967_v37 }
0x17b0   : > { %v15604_v2 = vpop.eup %15603  ;;  %v11747_v15 = vmul.f32 0.5, %v11715_v48  ;;  %v11778_v61 = vmul.f32 %v11746_v22, %v19977_v43 }
0x17b1   : > { %v11716_v7 = vadd.f32 1.0, %v15604_v2 }
0x17b2   : > { %v11779_v38 = vmul.f32 %v11747_v15, %v19982_v55 }
0x17b3   : > { %11999 = vmatmul.mubr.bf16.gmra.mrb[104].mxu1 %v11801_v0  ;;  %v11748_v62 = vmul.f32 0.5, %v11716_v7 }
0x17b4   : > { %v11803_v30 = vpack.c.bf16 %v11779_v38, %v11777_v21 }
0x17b5   : > { %v11780_v60 = vmul.f32 %v11748_v62, %v19992_v50 }
0x17b7   : > { %v11804_v8 = vpack.c.bf16 %v11780_v60, %v11778_v61 }
0x17b9   : > { %12006 = vmatprep.mubr.bf16.mxu1 %v11804_v8 }
0x17bb   : > { %12007 = vmatmul.mubr.bf16.gmra.mrb[108].mxu1 %v11803_v30 }
0x17c7   : > { %v11470_v17 = vpop.f32.mrb[128].mxu0 }
0x17c8   : > { %v20017_v63 = vadd.f32 %v11470_v17, %v19879_v42  ;;  %v11472_v20 = vpop.f32.mrb[129].mxu0 }
0x17c9   : > { %v20020_v35 = vadd.f32 %v11472_v20, %v19883_v34  ;;  %v11474_v37 = vpop.f32.mrb[130].mxu0 }
0x17ca   : > { %v11525_v55 = vmul.f32 %v20017_v63, %v20017_v63  ;;  %v20025_v56 = vadd.f32 %v11474_v37, %v19879_v42  ;;  %v11476_v43 = vpop.f32.mrb[131].mxu0 }
0x17cb   : > { %v11526_v50 = vmul.f32 %v20020_v35, %v20020_v35  ;;  %v20030_v45 = vadd.f32 %v11476_v43, %v19883_v34 }
0x17cc   : > { %v11557_v28 = vmul.f32 %v11525_v55, %v20017_v63  ;;  %v11527_v44 = vmul.f32 %v20025_v56, %v20025_v56 }
0x17cd   : > { %v11558_v57 = vmul.f32 %v11526_v50, %v20020_v35  ;;  %v11528_v47 = vmul.f32 %v20030_v45, %v20030_v45 }
0x17ce   : > { %v11589_v26 = vmul.f32 0.044715, %v11557_v28  ;;  %v11559_v53 = vmul.f32 %v11527_v44, %v20025_v56 }
0x17cf   : > { %v11590_v23 = vmul.f32 0.044715, %v11558_v57  ;;  %v11560_v12 = vmul.f32 %v11528_v47, %v20030_v45  ;;  %v11480_v40 = vpop.f32.mrb[132].mxu0 }
0x17d0   : > { %v11621_v1 = vadd.f32 %v11589_v26, %v20017_v63  ;;  %v11591_v24 = vmul.f32 0.044715, %v11559_v53  ;;  %v20042_v5 = vadd.f32 %v11480_v40, %v19879_v42  ;;  %v11482_v33 = vpop.f32.mrb[133].mxu0 }
0x17d1   : > { %v11622_v4 = vadd.f32 %v11590_v23, %v20020_v35  ;;  %v11592_v10 = vmul.f32 0.044715, %v11560_v12  ;;  %v20046_v0 = vadd.f32 %v11482_v33, %v19883_v34  ;;  %v11484_v16 = vpop.f32.mrb[134].mxu0 }
0x17d2   : > { %v11653_v29 = vmul.f32 0.7978846, %v11621_v1  ;;  %v11623_v6 = vadd.f32 %v11591_v24, %v20025_v56  ;;  %v11529_v18 = vmul.f32 %v20042_v5, %v20042_v5  ;;  %v20052_v51 = vadd.f32 %v11484_v16, %v19879_v42  ;;  %v11486_v27 = vpop.f32.mrb[135].mxu0 }
0x17d3   : > { %v11654_v48 = vmul.f32 0.7978846, %v11622_v4  ;;  %v11624_v2 = vadd.f32 %v11592_v10, %v20030_v45  ;;  %v11530_v15 = vmul.f32 %v20046_v0, %v20046_v0  ;;  %v20058_v7 = vadd.f32 %v11486_v27, %v19883_v34 }
0x17d4   : > { %15605 = vtanh.f32 %v11653_v29  ;;  %v11655_v22 = vmul.f32 0.7978846, %v11623_v6  ;;  %v11561_v21 = vmul.f32 %v11529_v18, %v20042_v5  ;;  %v11531_v38 = vmul.f32 %v20052_v51, %v20052_v51 }
0x17d5   : > { %15607 = vtanh.f32 %v11654_v48  ;;  %v11656_v62 = vmul.f32 0.7978846, %v11624_v2  ;;  %v11562_v30 = vmul.f32 %v11530_v15, %v20046_v0  ;;  %v11532_v61 = vmul.f32 %v20058_v7, %v20058_v7 }
0x17d6   : > { %15609 = vtanh.f32 %v11655_v22  ;;  %v11593_v60 = vmul.f32 0.044715, %v11561_v21  ;;  %v11563_v8 = vmul.f32 %v11531_v38, %v20052_v51 }
0x17d7   : > { %15611 = vtanh.f32 %v11656_v62  ;;  %v11594_v17 = vmul.f32 0.044715, %v11562_v30  ;;  %v11564_v20 = vmul.f32 %v11532_v61, %v20058_v7 }
0x17d8   : > { %v11625_v37 = vadd.f32 %v11593_v60, %v20042_v5  ;;  %v11595_v55 = vmul.f32 0.044715, %v11563_v8 }
0x17d9   : > { %v11626_v43 = vadd.f32 %v11594_v17, %v20046_v0  ;;  %v11596_v50 = vmul.f32 0.044715, %v11564_v20 }
0x17da   : > { %v11657_v28 = vmul.f32 0.7978846, %v11625_v37  ;;  %v11627_v44 = vadd.f32 %v11595_v55, %v20052_v51 }
0x17db   : > { %v11658_v57 = vmul.f32 0.7978846, %v11626_v43  ;;  %v11628_v47 = vadd.f32 %v11596_v50, %v20058_v7 }
0x17dc   : > { %15613 = vtanh.f32 %v11657_v28  ;;  %v11659_v26 = vmul.f32 0.7978846, %v11627_v44 }
0x17dd   : > { %15615 = vtanh.f32 %v11658_v57  ;;  %v11660_v53 = vmul.f32 0.7978846, %v11628_v47 }
0x17de   : > { %v15606_v23 = vpop.eup %15605  ;;  %15617 = vtanh.f32 %v11659_v26 }
0x17df   : > { %v15608_v12 = vpop.eup %15607  ;;  %v11717_v40 = vadd.f32 1.0, %v15606_v23  ;;  %15619 = vtanh.f32 %v11660_v53 }
0x17e0   : > { %v15610_v1 = vpop.eup %15609  ;;  %v11718_v24 = vadd.f32 1.0, %v15608_v12 }
0x17e1   : > { %v15612_v33 = vpop.eup %15611  ;;  %v11749_v4 = vmul.f32 0.5, %v11717_v40  ;;  %v11719_v10 = vadd.f32 1.0, %v15610_v1 }
0x17e2   : > { %v11720_v16 = vadd.f32 1.0, %v15612_v33  ;;  %v11750_v29 = vmul.f32 0.5, %v11718_v24 }
0x17e3   : > { %v11751_v6 = vmul.f32 0.5, %v11719_v10  ;;  %v11781_v27 = vmul.f32 %v11749_v4, %v20017_v63 }
0x17e4   : > { %v11752_v18 = vmul.f32 0.5, %v11720_v16  ;;  %v11782_v15 = vmul.f32 %v11750_v29, %v20020_v35 }
0x17e5   : > { %v11783_v48 = vmul.f32 %v11751_v6, %v20025_v56 }
0x17e6   : > { %v15614_v2 = vpop.eup %15613  ;;  %v11784_v22 = vmul.f32 %v11752_v18, %v20030_v45 }
0x17e7   : > { %v15616_v21 = vpop.eup %15615  ;;  %v11805_v38 = vpack.c.bf16 %v11783_v48, %v11781_v27  ;;  %v11721_v62 = vadd.f32 1.0, %v15614_v2 }
0x17e8   : > { %v15618_v30 = vpop.eup %15617  ;;  %v11806_v61 = vpack.c.bf16 %v11784_v22, %v11782_v15  ;;  %v11722_v60 = vadd.f32 1.0, %v15616_v21 }
0x17e9   : > { %v15620_v8 = vpop.eup %15619  ;;  %v11753_v17 = vmul.f32 0.5, %v11721_v62  ;;  %v11723_v20 = vadd.f32 1.0, %v15618_v30 }
0x17ea   : > { %12014 = vmatprep.mubr.bf16.mxu1 %v11806_v61  ;;  %v11724_v37 = vadd.f32 1.0, %v15620_v8  ;;  %v11754_v55 = vmul.f32 0.5, %v11722_v60 }
0x17eb   : > { %v11755_v63 = vmul.f32 0.5, %v11723_v20  ;;  %12015 = vmatmul.mubr.bf16.gmra.mrb[112].mxu1 %v11805_v38  ;;  %v11785_v43 = vmul.f32 %v11753_v17, %v20042_v5 }
0x17ec   : > { %v11756_v56 = vmul.f32 0.5, %v11724_v37  ;;  %v11786_v45 = vmul.f32 %v11754_v55, %v20046_v0 }
0x17ed   : > { %v11787_v35 = vmul.f32 %v11755_v63, %v20052_v51 }
0x17ee   : > { %v11788_v50 = vmul.f32 %v11756_v56, %v20058_v7 }
0x17ef   : > { %v11807_v28 = vpack.c.bf16 %v11787_v35, %v11785_v43 }
0x17f0   : > { %v11808_v44 = vpack.c.bf16 %v11788_v50, %v11786_v45 }
0x17f2   : > { %12022 = vmatprep.mubr.bf16.mxu1 %v11808_v44 }
0x17f3   : > { %12023 = vmatmul.mubr.bf16.gmra.mrb[116].mxu1 %v11807_v28 }
0x1804   : > { %v11490_v57 = vpop.f32.mrb[136].mxu0 }
0x1805   : > { %v20081_v47 = vadd.f32 %v11490_v57, %v19879_v42  ;;  %v11492_v26 = vpop.f32.mrb[137].mxu0 }
0x1806   : > { %v20084_v53 = vadd.f32 %v11492_v26, %v19883_v34  ;;  %v11494_v23 = vpop.f32.mrb[138].mxu0 }
0x1807   : > { %v11533_v5 = vmul.f32 %v20081_v47, %v20081_v47  ;;  %v20089_v0 = vadd.f32 %v11494_v23, %v19879_v42  ;;  %v11496_v51 = vpop.f32.mrb[139].mxu0 }
0x1808   : > { %v11534_v7 = vmul.f32 %v20084_v53, %v20084_v53  ;;  %v20094_v12 = vadd.f32 %v11496_v51, %v19883_v34 }
0x1809   : > { %v11565_v40 = vmul.f32 %v11533_v5, %v20081_v47  ;;  %v11535_v1 = vmul.f32 %v20089_v0, %v20089_v0 }
0x180a   : > { %v11566_v24 = vmul.f32 %v11534_v7, %v20084_v53  ;;  %v11536_v33 = vmul.f32 %v20094_v12, %v20094_v12 }
0x180b   : > { %v11597_v4 = vmul.f32 0.044715, %v11565_v40  ;;  %v11567_v10 = vmul.f32 %v11535_v1, %v20089_v0 }
0x180c   : > { %v11598_v16 = vmul.f32 0.044715, %v11566_v24  ;;  %v11568_v29 = vmul.f32 %v11536_v33, %v20094_v12  ;;  %v11500_v6 = vpop.f32.mrb[140].mxu0 }
0x180d   : > { %v11629_v18 = vadd.f32 %v11597_v4, %v20081_v47  ;;  %v11599_v27 = vmul.f32 0.044715, %v11567_v10  ;;  %v20106_v48 = vadd.f32 %v11500_v6, %v19879_v42  ;;  %v11502_v2 = vpop.f32.mrb[141].mxu0 }
0x180e   : > { %v11630_v15 = vadd.f32 %v11598_v16, %v20084_v53  ;;  %v11600_v22 = vmul.f32 0.044715, %v11568_v29  ;;  %v20110_v21 = vadd.f32 %v11502_v2, %v19883_v34  ;;  %v11504_v38 = vpop.f32.mrb[142].mxu0 }
0x180f   : > { %v11661_v62 = vmul.f32 0.7978846, %v11629_v18  ;;  %v11631_v30 = vadd.f32 %v11599_v27, %v20089_v0  ;;  %v11537_v61 = vmul.f32 %v20106_v48, %v20106_v48  ;;  %v20116_v60 = vadd.f32 %v11504_v38, %v19879_v42  ;;  %v11506_v8 = vpop.f32.mrb[143].mxu0 }
0x1810   : > { %v11662_v17 = vmul.f32 0.7978846, %v11630_v15  ;;  %v11632_v20 = vadd.f32 %v11600_v22, %v20094_v12  ;;  %v11538_v37 = vmul.f32 %v20110_v21, %v20110_v21  ;;  %v20122_v55 = vadd.f32 %v11506_v8, %v19883_v34 }
0x1811   : > { %15621 = vtanh.f32 %v11661_v62  ;;  %v11663_v63 = vmul.f32 0.7978846, %v11631_v30  ;;  %v11569_v56 = vmul.f32 %v11537_v61, %v20106_v48  ;;  %v11539_v43 = vmul.f32 %v20116_v60, %v20116_v60 }
0x1812   : > { %15623 = vtanh.f32 %v11662_v17  ;;  %v11664_v42 = vmul.f32 0.7978846, %v11632_v20  ;;  %v11570_v35 = vmul.f32 %v11538_v37, %v20110_v21  ;;  %v11540_v45 = vmul.f32 %v20122_v55, %v20122_v55 }
0x1813   : > { %15625 = vtanh.f32 %v11663_v63  ;;  %v11601_v50 = vmul.f32 0.044715, %v11569_v56  ;;  %v11571_v28 = vmul.f32 %v11539_v43, %v20116_v60 }
0x1814   : > { %15627 = vtanh.f32 %v11664_v42  ;;  %v11602_v34 = vmul.f32 0.044715, %v11570_v35  ;;  %v11572_v44 = vmul.f32 %v11540_v45, %v20122_v55 }
0x1815   : > { %v11633_v57 = vadd.f32 %v11601_v50, %v20106_v48  ;;  %v11603_v26 = vmul.f32 0.044715, %v11571_v28 }
0x1816   : > { %v11634_v23 = vadd.f32 %v11602_v34, %v20110_v21  ;;  %v11604_v5 = vmul.f32 0.044715, %v11572_v44 }
0x1817   : > { %v11665_v51 = vmul.f32 0.7978846, %v11633_v57  ;;  %v11635_v7 = vadd.f32 %v11603_v26, %v20116_v60 }
0x1818   : > { %v11666_v40 = vmul.f32 0.7978846, %v11634_v23  ;;  %v11636_v1 = vadd.f32 %v11604_v5, %v20122_v55 }
0x1819   : > { %15629 = vtanh.f32 %v11665_v51  ;;  %v11667_v24 = vmul.f32 0.7978846, %v11635_v7  ;;  %v20149_v7 = vld [vmem:[%s20500_s13 + $0x1] ss:$0 sm:$0xff] }
0x181a   : > { %15631 = vtanh.f32 %v11666_v40  ;;  %v11668_v33 = vmul.f32 0.7978846, %v11636_v1 }
0x181b   : > { %v15622_v4 = vpop.eup %15621  ;;  %15633 = vtanh.f32 %v11667_v24 }
0x181c   : > { %v15624_v10 = vpop.eup %15623  ;;  %v11725_v16 = vadd.f32 1.0, %v15622_v4  ;;  %15635 = vtanh.f32 %v11668_v33 }
0x181d   : > { %v15626_v29 = vpop.eup %15625  ;;  %v11726_v6 = vadd.f32 1.0, %v15624_v10 }
0x181e   : > { %v15628_v18 = vpop.eup %15627  ;;  %v11757_v27 = vmul.f32 0.5, %v11725_v16  ;;  %v11727_v2 = vadd.f32 1.0, %v15626_v29 }
0x181f   : > { %v11728_v15 = vadd.f32 1.0, %v15628_v18  ;;  %v11758_v22 = vmul.f32 0.5, %v11726_v6 }
0x1820   : > { %v11759_v38 = vmul.f32 0.5, %v11727_v2  ;;  %v11789_v30 = vmul.f32 %v11757_v27, %v20081_v47 }
0x1821   : > { %v11760_v62 = vmul.f32 0.5, %v11728_v15  ;;  %v11790_v17 = vmul.f32 %v11758_v22, %v20084_v53 }
0x1822   : > { %v11791_v61 = vmul.f32 %v11759_v38, %v20089_v0 }
0x1823   : > { %v15630_v8 = vpop.eup %15629  ;;  %v11792_v20 = vmul.f32 %v11760_v62, %v20094_v12 }
0x1824   : > { %v15632_v37 = vpop.eup %15631  ;;  %v11809_v63 = vpack.c.bf16 %v11791_v61, %v11789_v30  ;;  %v11729_v56 = vadd.f32 1.0, %v15630_v8 }
0x1825   : > { %v15634_v43 = vpop.eup %15633  ;;  %v11810_v42 = vpack.c.bf16 %v11792_v20, %v11790_v17  ;;  %v11730_v35 = vadd.f32 1.0, %v15632_v37 }
0x1826   : > { %v15636_v45 = vpop.eup %15635  ;;  %v11761_v50 = vmul.f32 0.5, %v11729_v56  ;;  %v11731_v28 = vadd.f32 1.0, %v15634_v43 }
0x1827   : > { %12030 = vmatprep.mubr.bf16.mxu1 %v11810_v42  ;;  %v11732_v34 = vadd.f32 1.0, %v15636_v45  ;;  %v11762_v44 = vmul.f32 0.5, %v11730_v35 }
0x1828   : > { %v11763_v47 = vmul.f32 0.5, %v11731_v28  ;;  %12031 = vmatmul.mubr.bf16.gmra.mrb[120].mxu1 %v11809_v63  ;;  %v11793_v57 = vmul.f32 %v11761_v50, %v20106_v48 }
0x1829   : > { %v11764_v0 = vmul.f32 0.5, %v11732_v34  ;;  %v11794_v12 = vmul.f32 %v11762_v44, %v20110_v21 }
0x182a   : > { %v11795_v53 = vmul.f32 %v11763_v47, %v20116_v60 }
0x182b   : > { %v11796_v26 = vmul.f32 %v11764_v0, %v20122_v55 }
0x182c   : > { %v11811_v23 = vpack.c.bf16 %v11795_v53, %v11793_v57 }
0x182d   : > { %v11812_v5 = vpack.c.bf16 %v11796_v26, %v11794_v12 }
0x182f   : > { %12038 = vmatprep.mubr.bf16.mxu1 %v11812_v5 }
0x1830   : > { %12039 = vmatmul.mubr.bf16.gmra.mrb[124].mxu1 %v11811_v23 }
0x1831   : > { %14858 = vmatprep.mubr.msk.bf16.mxu1 %vm15738_vm0, %v20668_v19 }
0x1876   : > { %v13700_v51 = vpop.f32.mrb[96].mxu1 }
0x1877   : > { %v13701_v48 = vpop.f32.mrb[97].mxu1 }
0x1878   : > { %v13702_v40 = vadd.f32 %v13701_v48, %v13700_v51  ;;  %v13703_v60 = vpop.f32.mrb[98].mxu1 }
0x1879   : > { %v13704_v1 = vpop.f32.mrb[99].mxu1 }
0x187a   : > { %v11985_v21 = vadd.f32 %v13702_v40, %v20149_v7  ;;  %v13705_v55 = vadd.f32 %v13704_v1, %v13703_v60 }
0x187c   : > { %v11988_v24 = vadd.f32 %v13705_v55, %v20149_v7  ;;  %v20154_v33 = vadd.f32 %v11985_v21, %v19726_v14 }
0x187e   : > { %12067 = vadd.xlane.f32.xlu0 %v20154_v33  ;;  %v13706_v4 = vpop.f32.mrb[100].mxu1  ;;  %v20158_v10 = vadd.f32 %v11988_v24, %v19729_v59 }
0x187f   : > { %v13707_v16 = vpop.f32.mrb[101].mxu1 }
0x1880   : > { %v13708_v29 = vadd.f32 %v13707_v16, %v13706_v4  ;;  %12069 = vadd.xlane.f32.xlu1 %v20158_v10  ;;  %v13709_v6 = vpop.f32.mrb[102].mxu1 }
0x1881   : > { %v13710_v18 = vpop.f32.mrb[103].mxu1 }
0x1882   : > { %v11993_v27 = vadd.f32 %v13708_v29, %v20149_v7  ;;  %v13711_v2 = vadd.f32 %v13710_v18, %v13709_v6 }
0x1884   : > { %v11996_v15 = vadd.f32 %v13711_v2, %v20149_v7  ;;  %v20164_v14 = vadd.f32 %v11993_v27, %v19742_v54 }
0x1886   : > { %12071 = vadd.xlane.f32.xlu0 %v20164_v14  ;;  %v20168_v22 = vadd.f32 %v11996_v15, %v19739_v52  ;;  %v13712_v59 = vpop.f32.mrb[104].mxu1 }
0x1887   : > { %v13713_v38 = vpop.f32.mrb[105].mxu1 }
0x1888   : > { %12073 = vadd.xlane.f32.xlu1 %v20168_v22  ;;  %v13714_v62 = vadd.f32 %v13713_v38, %v13712_v59  ;;  %v13715_v30 = vpop.f32.mrb[106].mxu1 }
0x1889   : > { %v13716_v61 = vpop.f32.mrb[107].mxu1 }
0x188a   : > { %v12001_v8 = vadd.f32 %v13714_v62, %v20149_v7  ;;  %v13717_v17 = vadd.f32 %v13716_v61, %v13715_v30 }
0x188c   : > { %v12004_v20 = vadd.f32 %v13717_v17, %v20149_v7  ;;  %v20174_v54 = vadd.f32 %v12001_v8, %v19752_v13 }
0x188e   : > { %12075 = vadd.xlane.f32.xlu0 %v20174_v54  ;;  %v13718_v37 = vpop.f32.mrb[108].mxu1  ;;  %v20178_v52 = vadd.f32 %v12004_v20, %v19755_v49 }
0x188f   : > { %v13719_v63 = vpop.f32.mrb[109].mxu1 }
0x1890   : > { %v13720_v56 = vadd.f32 %v13719_v63, %v13718_v37  ;;  %12077 = vadd.xlane.f32.xlu1 %v20178_v52  ;;  %v13721_v43 = vpop.f32.mrb[110].mxu1 }
0x1891   : > { %v13722_v42 = vpop.f32.mrb[111].mxu1 }
0x1892   : > { %v12009_v35 = vadd.f32 %v13720_v56, %v20149_v7  ;;  %v13723_v45 = vadd.f32 %v13722_v42, %v13721_v43 }
0x1894   : > { %v12012_v50 = vadd.f32 %v13723_v45, %v20149_v7  ;;  %v20184_v13 = vadd.f32 %v12009_v35, %v19768_v11 }
0x1896   : > { %12079 = vadd.xlane.f32.xlu0 %v20184_v13  ;;  %v20188_v28 = vadd.f32 %v12012_v50, %v19765_v32 }
0x1898   : > { %12081 = vadd.xlane.f32.xlu1 %v20188_v28 }
0x18be   : > { %v13724_v49 = vpop.f32.mrb[112].mxu1 }
0x18bf   : > { %v13725_v34 = vpop.f32.mrb[113].mxu1 }
0x18c0   : > { %v13726_v44 = vadd.f32 %v13725_v34, %v13724_v49  ;;  %v13727_v47 = vpop.f32.mrb[114].mxu1 }
0x18c1   : > { %v13728_v0 = vpop.f32.mrb[115].mxu1 }
0x18c2   : > { %v12017_v57 = vadd.f32 %v13726_v44, %v20149_v7  ;;  %v13729_v53 = vadd.f32 %v13728_v0, %v13727_v47 }
0x18c4   : > { %v12020_v12 = vadd.f32 %v13729_v53, %v20149_v7  ;;  %v20194_v11 = vadd.f32 %v12017_v57, %v19778_v9 }
0x18c6   : > { %12083 = vadd.xlane.f32.xlu0 %v20194_v11  ;;  %v13730_v26 = vpop.f32.mrb[116].mxu1  ;;  %v20198_v32 = vadd.f32 %v12020_v12, %v19781_v58 }
0x18c7   : > { %v13731_v23 = vpop.f32.mrb[117].mxu1 }
0x18c8   : > { %v13732_v5 = vadd.f32 %v13731_v23, %v13730_v26  ;;  %12085 = vadd.xlane.f32.xlu1 %v20198_v32  ;;  %v13733_v51 = vpop.f32.mrb[118].mxu1 }
0x18c9   : > { %v13734_v48 = vpop.f32.mrb[119].mxu1 }
0x18ca   : > { %v12025_v40 = vadd.f32 %v13732_v5, %v20149_v7  ;;  %v13735_v60 = vadd.f32 %v13734_v48, %v13733_v51 }
0x18cc   : > { %v12028_v1 = vadd.f32 %v13735_v60, %v20149_v7  ;;  %v20204_v9 = vadd.f32 %v12025_v40, %v19794_v39 }
0x18ce   : > { %12087 = vadd.xlane.f32.xlu0 %v20204_v9  ;;  %v20208_v21 = vadd.f32 %v12028_v1, %v19791_v36 }
0x18d0   : > { %12089 = vadd.xlane.f32.xlu1 %v20208_v21 }
0x18fb   : > { %v13736_v58 = vpop.f32.mrb[120].mxu1 }
0x18fc   : > { %v13737_v55 = vpop.f32.mrb[121].mxu1 }
0x18fd   : > { %v13738_v24 = vadd.f32 %v13737_v55, %v13736_v58  ;;  %v13739_v4 = vpop.f32.mrb[122].mxu1 }
0x18fe   : > { %v13740_v16 = vpop.f32.mrb[123].mxu1 }
0x18ff   : > { %v12033_v29 = vadd.f32 %v13738_v24, %v20149_v7  ;;  %v13741_v6 = vadd.f32 %v13740_v16, %v13739_v4 }
0x1901   : > { %v12036_v18 = vadd.f32 %v13741_v6, %v20149_v7  ;;  %v20214_v39 = vadd.f32 %v12033_v29, %v19853_v3 }
0x1903   : > { %12091 = vadd.xlane.f32.xlu0 %v20214_v39  ;;  %v13742_v27 = vpop.f32.mrb[124].mxu1  ;;  %v20218_v36 = vadd.f32 %v12036_v18, %v19856_v31 }
0x1904   : > { %v13743_v2 = vpop.f32.mrb[125].mxu1 }
0x1905   : > { %v13744_v15 = vadd.f32 %v13743_v2, %v13742_v27  ;;  %12093 = vadd.xlane.f32.xlu1 %v20218_v36  ;;  %v13745_v59 = vpop.f32.mrb[126].mxu1 }
0x1906   : > { %v13746_v38 = vpop.f32.mrb[127].mxu1 }
0x1907   : > { %v12041_v62 = vadd.f32 %v13744_v15, %v20149_v7  ;;  %v13747_v30 = vadd.f32 %v13746_v38, %v13745_v59 }
0x1909   : > { %v12044_v61 = vadd.f32 %v13747_v30, %v20149_v7  ;;  %v20224_v3 = vadd.f32 %v12041_v62, %v19869_v25 }
0x190b   : > { %v12068_v8 = vpop.xlane.xlu0 %12067  ;;  %12095 = vadd.xlane.f32.xlu0 %v20224_v3  ;;  %v20228_v31 = vadd.f32 %v12044_v61, %v19866_v41 }
0x190c   : > { %v12099_v17 = vmul.f32 0.0078125, %v12068_v8 }
0x190d   : > { %v12070_v20 = vpop.xlane.xlu1 %12069  ;;  %12097 = vadd.xlane.f32.xlu1 %v20228_v31 }
0x190e   : > { %v20232_v37 = vsub.f32 %v20154_v33, %v12099_v17  ;;  %v12100_v63 = vmul.f32 0.0078125, %v12070_v20 }
0x1910   : > { %v20235_v56 = vsub.f32 %v20158_v10, %v12100_v63  ;;  %v12131_v25 = vmul.f32 %v20232_v37, %v20232_v37 }
0x1912   : > { %12147 = vadd.xlane.f32.xlu0 %v12131_v25  ;;  %v12132_v7 = vmul.f32 %v20235_v56, %v20235_v56 }
0x1913   : > { %v12072_v41 = vpop.xlane.xlu0 %12071 }
0x1914   : > { %v12101_v43 = vmul.f32 0.0078125, %v12072_v41  ;;  %12149 = vadd.xlane.f32.xlu1 %v12132_v7 }
0x1915   : > { %v12074_v42 = vpop.xlane.xlu1 %12073 }
0x1916   : > { %v20242_v35 = vsub.f32 %v20164_v14, %v12101_v43  ;;  %v12102_v33 = vmul.f32 0.0078125, %v12074_v42 }
0x1918   : > { %v20245_v45 = vsub.f32 %v20168_v22, %v12102_v33  ;;  %v12133_v10 = vmul.f32 %v20242_v35, %v20242_v35 }
0x191a   : > { %12151 = vadd.xlane.f32.xlu0 %v12133_v10  ;;  %v12134_v50 = vmul.f32 %v20245_v45, %v20245_v45 }
0x191b   : > { %v12076_v49 = vpop.xlane.xlu0 %12075 }
0x191c   : > { %12153 = vadd.xlane.f32.xlu1 %v12134_v50  ;;  %v12103_v34 = vmul.f32 0.0078125, %v12076_v49 }
0x191d   : > { %v12078_v44 = vpop.xlane.xlu1 %12077 }
0x191e   : > { %v20252_v47 = vsub.f32 %v20174_v54, %v12103_v34  ;;  %v12104_v14 = vmul.f32 0.0078125, %v12078_v44 }
0x1920   : > { %v20255_v0 = vsub.f32 %v20178_v52, %v12104_v14  ;;  %v12135_v22 = vmul.f32 %v20252_v47, %v20252_v47  ;;  %v20314_v14 = vld [vmem:[%s20501_s14 + $0x1] ss:$0 sm:$0xff] }
0x1922   : > { %12155 = vadd.xlane.f32.xlu0 %v12135_v22  ;;  %v12136_v57 = vmul.f32 %v20255_v0, %v20255_v0 }
0x1923   : > { %v12080_v53 = vpop.xlane.xlu0 %12079 }
0x1924   : > { %v12105_v12 = vmul.f32 0.0078125, %v12080_v53  ;;  %12157 = vadd.xlane.f32.xlu1 %v12136_v57 }
0x1925   : > { %v12082_v26 = vpop.xlane.xlu1 %12081 }
0x1926   : > { %v20262_v23 = vsub.f32 %v20184_v13, %v12105_v12  ;;  %v12106_v54 = vmul.f32 0.0078125, %v12082_v26 }
0x1928   : > { %v20265_v5 = vsub.f32 %v20188_v28, %v12106_v54  ;;  %v12137_v52 = vmul.f32 %v20262_v23, %v20262_v23 }
0x192a   : > { %12159 = vadd.xlane.f32.xlu0 %v12137_v52  ;;  %v12138_v51 = vmul.f32 %v20265_v5, %v20265_v5 }
0x192c   : > { %12161 = vadd.xlane.f32.xlu1 %v12138_v51 }
0x1953   : > { %v12084_v48 = vpop.xlane.xlu0 %12083 }
0x1954   : > { %v12107_v40 = vmul.f32 0.0078125, %v12084_v48 }
0x1955   : > { %v12086_v60 = vpop.xlane.xlu1 %12085 }
0x1956   : > { %v20272_v1 = vsub.f32 %v20194_v11, %v12107_v40  ;;  %v12108_v13 = vmul.f32 0.0078125, %v12086_v60  ;;  %v20322_v40 = vld [vmem:[%s20502_s15 + $0x1] ss:$0 sm:$0xff] }
0x1958   : > { %v20275_v58 = vsub.f32 %v20198_v32, %v12108_v13  ;;  %v12139_v28 = vmul.f32 %v20272_v1, %v20272_v1 }
0x195a   : > { %12163 = vadd.xlane.f32.xlu0 %v12139_v28  ;;  %v12140_v55 = vmul.f32 %v20275_v58, %v20275_v58 }
0x195b   : > { %v12088_v24 = vpop.xlane.xlu0 %12087 }
0x195c   : > { %v12109_v4 = vmul.f32 0.0078125, %v12088_v24  ;;  %12165 = vadd.xlane.f32.xlu1 %v12140_v55 }
0x195d   : > { %v12090_v16 = vpop.xlane.xlu1 %12089 }
0x195e   : > { %v20282_v29 = vsub.f32 %v20204_v9, %v12109_v4  ;;  %v12110_v11 = vmul.f32 0.0078125, %v12090_v16 }
0x1960   : > { %v20285_v6 = vsub.f32 %v20208_v21, %v12110_v11  ;;  %v12141_v32 = vmul.f32 %v20282_v29, %v20282_v29 }
0x1962   : > { %12167 = vadd.xlane.f32.xlu0 %v12141_v32  ;;  %v12142_v18 = vmul.f32 %v20285_v6, %v20285_v6 }
0x1964   : > { %12169 = vadd.xlane.f32.xlu1 %v12142_v18 }
0x1990   : > { %v12092_v27 = vpop.xlane.xlu0 %12091 }
0x1991   : > { %v12111_v2 = vmul.f32 0.0078125, %v12092_v27 }
0x1992   : > { %v12094_v15 = vpop.xlane.xlu1 %12093 }
0x1993   : > { %v20292_v59 = vsub.f32 %v20214_v39, %v12111_v2  ;;  %v12112_v9 = vmul.f32 0.0078125, %v12094_v15 }
0x1995   : > { %v20295_v38 = vsub.f32 %v20218_v36, %v12112_v9  ;;  %v12143_v21 = vmul.f32 %v20292_v59, %v20292_v59 }
0x1997   : > { %12171 = vadd.xlane.f32.xlu0 %v12143_v21  ;;  %v12144_v62 = vmul.f32 %v20295_v38, %v20295_v38 }
0x1998   : > { %v12096_v30 = vpop.xlane.xlu0 %12095 }
0x1999   : > { %v12113_v61 = vmul.f32 0.0078125, %v12096_v30  ;;  %12173 = vadd.xlane.f32.xlu1 %v12144_v62 }
0x199a   : > { %v12098_v8 = vpop.xlane.xlu1 %12097 }
0x199b   : > { %v20302_v17 = vsub.f32 %v20224_v3, %v12113_v61  ;;  %v12114_v39 = vmul.f32 0.0078125, %v12098_v8 }
0x199d   : > { %v20305_v20 = vsub.f32 %v20228_v31, %v12114_v39  ;;  %v12145_v36 = vmul.f32 %v20302_v17, %v20302_v17 }
0x199f   : > { %v12148_v63 = vpop.xlane.xlu0 %12147  ;;  %12175 = vadd.xlane.f32.xlu0 %v12145_v36  ;;  %v12146_v25 = vmul.f32 %v20305_v20, %v20305_v20 }
0x19a0   : > { %v12179_v7 = vmul.f32 0.0078125, %v12148_v63 }
0x19a1   : > { %v12150_v41 = vpop.xlane.xlu1 %12149  ;;  %12177 = vadd.xlane.f32.xlu1 %v12146_v25 }
0x19a2   : > { %v12195_v43 = vadd.f32 1e-12, %v12179_v7  ;;  %v12180_v42 = vmul.f32 0.0078125, %v12150_v41 }
0x19a4   : > { %15637 = vrsqrt.f32 %v12195_v43  ;;  %v12196_v3 = vadd.f32 1e-12, %v12180_v42 }
0x19a6   : > { %15639 = vrsqrt.f32 %v12196_v3 }
0x19a7   : > { %v12152_v33 = vpop.xlane.xlu0 %12151 }
0x19a8   : > { %v12181_v10 = vmul.f32 0.0078125, %v12152_v33  ;;  %v15117_v33 = vld [vmem:[%s20503_s16] sm:$0xff]  }
0x19a9   : > { %v12154_v31 = vpop.xlane.xlu1 %12153  ;;  %14843 = vmatpush3.bf16.msra.mxu1 %v15117_v33 }
0x19aa   : > { %v12197_v50 = vadd.f32 1e-12, %v12181_v10  ;;  %v12182_v49 = vmul.f32 0.0078125, %v12154_v31  ;;  %14844 = vmatprep.subr.bf16.mxu1 %v20668_v19 }
0x19ac   : > { %15641 = vrsqrt.f32 %v12197_v50  ;;  %v12198_v34 = vadd.f32 1e-12, %v12182_v49  ;;  %v15119_v49 = vld [vmem:[%s20503_s16 + $0x10] sm:$0xff]  }
0x19ae   : > { %v15638_v44 = vpop.eup %15637  ;;  %15643 = vrsqrt.f32 %v12198_v34  ;;  %v15120_v34 = vld [vmem:[%s20503_s16 + $0x18] sm:$0xff]  }
0x19af   : > { %v12227_v22 = vmul.f32 %v15638_v44, %v20232_v37  ;;  %v12156_v57 = vpop.xlane.xlu0 %12155  ;;  %v15121_v44 = vld [vmem:[%s20503_s16 + $0x20] sm:$0xff]  }
0x19b0   : > { %v15640_v53 = vpop.eup %15639  ;;  %v12183_v12 = vmul.f32 0.0078125, %v12156_v57  ;;  %v15123_v57 = vld [vmem:[%s20503_s16 + $0x30] sm:$0xff]  }
0x19b1   : > { %v12228_v26 = vmul.f32 %v15640_v53, %v20235_v56  ;;  %v12158_v54 = vpop.xlane.xlu1 %12157  ;;  %v12249_v52 = vmul.f32 %v20314_v14, %v12227_v22  ;;  %v15122_v22 = vld [vmem:[%s20503_s16 + $0x28] sm:$0xff]  }
0x19b2   : > { %v12199_v51 = vadd.f32 1e-12, %v12183_v12  ;;  %v12184_v48 = vmul.f32 0.0078125, %v12158_v54 }
0x19b3   : > { %v12250_v60 = vmul.f32 %v20314_v14, %v12228_v26  ;;  %v12271_v37 = vadd.f32 %v20322_v40, %v12249_v52 }
0x19b4   : > { %15645 = vrsqrt.f32 %v12199_v51  ;;  %v12200_v13 = vadd.f32 1e-12, %v12184_v48 }
0x19b5   : > { %v12272_v28 = vadd.f32 %v20322_v40, %v12250_v60 }
0x19b6   : > { %v15642_v55 = vpop.eup %15641  ;;  %15647 = vrsqrt.f32 %v12200_v13 }
0x19b7   : > { %v12229_v56 = vmul.f32 %v15642_v55, %v20242_v35  ;;  %v12160_v24 = vpop.xlane.xlu0 %12159  ;;  %v12301_v4 = vpack.c.bf16 %v12272_v28, %v12271_v37 }
0x19b8   : > { %v15644_v16 = vpop.eup %15643  ;;  %v12185_v11 = vmul.f32 0.0078125, %v12160_v24 }
0x19b9   : > { %v12230_v32 = vmul.f32 %v15644_v16, %v20245_v45  ;;  %v12162_v18 = vpop.xlane.xlu1 %12161  ;;  %14823 = vmatpush3.bf16.msra.mxu0 %v12301_v4  ;;  %v12251_v27 = vmul.f32 %v20314_v14, %v12229_v56 }
0x19ba   : > { %v12201_v2 = vadd.f32 1e-12, %v12185_v11  ;;  %v12186_v15 = vmul.f32 0.0078125, %v12162_v18  ;;  %14824 = vmatprep.subr.bf16.mxu0 %v20668_v19 }
0x19bb   : > { %v12252_v9 = vmul.f32 %v20314_v14, %v12230_v32  ;;  %v12273_v35 = vadd.f32 %v20322_v40, %v12251_v27 }
0x19bc   : > { %15649 = vrsqrt.f32 %v12201_v2  ;;  %v12202_v21 = vadd.f32 1e-12, %v12186_v15 }
0x19bd   : > { %v12274_v62 = vadd.f32 %v20322_v40, %v12252_v9 }
0x19be   : > { %v15646_v30 = vpop.eup %15645  ;;  %15651 = vrsqrt.f32 %v12202_v21 }
0x19bf   : > { %v12231_v45 = vmul.f32 %v15646_v30, %v20252_v47  ;;  %v12302_v61 = vpack.c.bf16 %v12274_v62, %v12273_v35 }
0x19c0   : > { %v15648_v8 = vpop.eup %15647 }
0x19c1   : > { %v12232_v39 = vmul.f32 %v15648_v8, %v20255_v0  ;;  %14825 = vmatpush3.bf16.msra.mxu0 %v12302_v61  ;;  %v12253_v36 = vmul.f32 %v20314_v14, %v12231_v45 }
0x19c2   : > { %14826 = vmatprep.subr.bf16.mxu0 %v20668_v19 }
0x19c3   : > { %v12254_v63 = vmul.f32 %v20314_v14, %v12232_v39  ;;  %v12275_v25 = vadd.f32 %v20322_v40, %v12253_v36 }
0x19c5   : > { %v12276_v7 = vadd.f32 %v20322_v40, %v12254_v63 }
0x19c6   : > { %v15650_v41 = vpop.eup %15649 }
0x19c7   : > { %v12233_v43 = vmul.f32 %v15650_v41, %v20262_v23  ;;  %v12303_v42 = vpack.c.bf16 %v12276_v7, %v12275_v25  ;;  %v15118_v23 = vld [vmem:[%s20503_s16 + $0x8] sm:$0xff]  }
0x19c8   : > { %v15652_v47 = vpop.eup %15651  ;;  %14845 = vmatpush3.bf16.msra.mxu1 %v15118_v23 }
0x19c9   : > { %v12234_v3 = vmul.f32 %v15652_v47, %v20265_v5  ;;  %14827 = vmatpush3.bf16.msra.mxu0 %v12303_v42  ;;  %v12255_v0 = vmul.f32 %v20314_v14, %v12233_v43  ;;  %14846 = vmatprep.subr.bf16.mxu1 %v20668_v19 }
0x19ca   : > { %14828 = vmatprep.subr.bf16.mxu0 %v20668_v19 }
0x19cb   : > { %v12256_v10 = vmul.f32 %v20314_v14, %v12234_v3  ;;  %v12277_v5 = vadd.f32 %v20322_v40, %v12255_v0 }
0x19cc   : > { %14847 = vmatpush3.bf16.msra.mxu1 %v15119_v49  ;;  %v12291_v49 = vadd.s32 8, %v20796_v46 }
0x19cd   : > { %v12278_v31 = vadd.f32 %v20322_v40, %v12256_v10  ;;  %14848 = vmatprep.subr.bf16.mxu1 %v20668_v19 }
0x19cf   : > { %v12304_v50 = vpack.c.bf16 %v12278_v31, %v12277_v5 }
0x19d0   : > { %14849 = vmatpush3.bf16.msra.mxu1 %v15120_v34 }
0x19d1   : > { %14829 = vmatpush3.bf16.msra.mxu0 %v12304_v50  ;;  %14850 = vmatprep.subr.bf16.mxu1 %v20668_v19 }
0x19d2   : > { %14830 = vmatprep.subr.bf16.mxu0 %v20668_v19 }
0x19d4   : > { %14851 = vmatpush3.bf16.msra.mxu1 %v15121_v44 }
0x19d5   : > { %14852 = vmatprep.subr.bf16.mxu1 %v20668_v19 }
0x19d8   : > { %14853 = vmatpush3.bf16.msra.mxu1 %v15122_v22 }
0x19d9   : > { %14854 = vmatprep.subr.bf16.mxu1 %v20668_v19 }
0x19dc   : > { %14855 = vmatpush3.bf16.msra.mxu1 %v15123_v57  ;;  %v20798_v57 = vlaneseq }
0x19dd   : > { %14856 = vmatprep.subr.bf16.mxu1 %v20668_v19 }
0x19e7   : > { %v12164_v53 = vpop.xlane.xlu0 %12163 }
0x19e8   : > { %v12187_v12 = vmul.f32 0.0078125, %v12164_v53  ;;  %v12288_v53 = vand.u32 127, %v20798_v57 }
0x19e9   : > { %v12166_v26 = vpop.xlane.xlu1 %12165 }
0x19ea   : > { %v12203_v54 = vadd.f32 1e-12, %v12187_v12  ;;  %v12188_v52 = vmul.f32 0.0078125, %v12166_v26  ;;  %v12292_v12 = vmul.u32 8, %v20796_v46  ;;  %v12293_v26 = vmul.u32 8, %v12291_v49 }
0x19ec   : > { %15653 = vrsqrt.f32 %v12203_v54  ;;  %v12204_v51 = vadd.f32 1e-12, %v12188_v52  ;;  %vm12294_vm4 = vcmp.eq.s32.totalorder %v12288_v53, %v12292_v12  ;;  %vm12295_vm5 = vcmp.eq.s32.totalorder %v12288_v53, %v12293_v26 }
0x19ed   : > { %vm13156_vm6 = vmpackc.low %vm12295_vm5, %vm12294_vm4 }
0x19ee   : > { %15655 = vrsqrt.f32 %v12204_v51 }
0x19ef   : > { %v12168_v48 = vpop.xlane.xlu0 %12167 }
0x19f0   : > { %v12189_v60 = vmul.f32 0.0078125, %v12168_v48 }
0x19f1   : > { %v12170_v13 = vpop.xlane.xlu1 %12169 }
0x19f2   : > { %v12205_v37 = vadd.f32 1e-12, %v12189_v60  ;;  %v12190_v28 = vmul.f32 0.0078125, %v12170_v13 }
0x19f4   : > { %15657 = vrsqrt.f32 %v12205_v37  ;;  %v12206_v55 = vadd.f32 1e-12, %v12190_v28 }
0x19f6   : > { %v15654_v56 = vpop.eup %15653  ;;  %15659 = vrsqrt.f32 %v12206_v55 }
0x19f7   : > { %v12235_v24 = vmul.f32 %v15654_v56, %v20272_v1 }
0x19f8   : > { %v15656_v4 = vpop.eup %15655 }
0x19f9   : > { %v12236_v16 = vmul.f32 %v15656_v4, %v20275_v58  ;;  %v12257_v11 = vmul.f32 %v20314_v14, %v12235_v24  ;;  %v15742_v24 = vmov 1966171168  }
0x19fa   : > { %v12469_v4 = vunpack.c.l.s4 %v15742_v24 }
0x19fb   : > { %v12258_v32 = vmul.f32 %v20314_v14, %v12236_v16  ;;  %v12279_v18 = vadd.f32 %v20322_v40, %v12257_v11 }
0x19fd   : > { %v12280_v27 = vadd.f32 %v20322_v40, %v12258_v32 }
0x19fe   : > { %v15658_v2 = vpop.eup %15657 }
0x19ff   : > { %v12237_v15 = vmul.f32 %v15658_v2, %v20282_v29  ;;  %v12305_v9 = vpack.c.bf16 %v12280_v27, %v12279_v18  ;;  %v12470_v18 = vunpack.c.0.s8 %v12469_v4 }
0x1a00   : > { %v15660_v21 = vpop.eup %15659 }
0x1a01   : > { %v12238_v35 = vmul.f32 %v15660_v21, %v20285_v6  ;;  %14831 = vmatpush3.bf16.msra.mxu0 %v12305_v9  ;;  %v12259_v1 = vmul.f32 %v20314_v14, %v12237_v15  ;;  %v12473_v27 = vsub.s32 %v12470_v18, %v20796_v46 }
0x1a02   : > { %14832 = vmatprep.subr.bf16.mxu0 %v20668_v19 }
0x1a03   : > { %v12260_v58 = vmul.f32 %v20314_v14, %v12238_v35  ;;  %v12281_v62 = vadd.f32 %v20322_v40, %v12259_v1 }
0x1a05   : > { %v12282_v30 = vadd.f32 %v20322_v40, %v12260_v58 }
0x1a07   : > { %v12306_v45 = vpack.c.bf16 %v12282_v30, %v12281_v62 }
0x1a09   : > { %14833 = vmatpush3.bf16.msra.mxu0 %v12306_v45 }
0x1a0a   : > { %14834 = vmatprep.subr.bf16.mxu0 %v20668_v19 }
0x1a24   : > { %v12172_v29 = vpop.xlane.xlu0 %12171 }
0x1a25   : > { %v12191_v61 = vmul.f32 0.0078125, %v12172_v29 }
0x1a26   : > { %v12174_v8 = vpop.xlane.xlu1 %12173 }
0x1a27   : > { %v12207_v39 = vadd.f32 1e-12, %v12191_v61  ;;  %v12192_v6 = vmul.f32 0.0078125, %v12174_v8 }
0x1a29   : > { %15661 = vrsqrt.f32 %v12207_v39  ;;  %v12208_v36 = vadd.f32 1e-12, %v12192_v6 }
0x1a2b   : > { %15663 = vrsqrt.f32 %v12208_v36 }
0x1a2c   : > { %v12176_v63 = vpop.xlane.xlu0 %12175 }
0x1a2d   : > { %v12193_v25 = vmul.f32 0.0078125, %v12176_v63 }
0x1a2e   : > { %v12178_v7 = vpop.xlane.xlu1 %12177 }
0x1a2f   : > { %v12209_v41 = vadd.f32 1e-12, %v12193_v25  ;;  %v12194_v43 = vmul.f32 0.0078125, %v12178_v7 }
0x1a31   : > { %15665 = vrsqrt.f32 %v12209_v41  ;;  %v12210_v42 = vadd.f32 1e-12, %v12194_v43 }
0x1a33   : > { %v15662_v47 = vpop.eup %15661  ;;  %15667 = vrsqrt.f32 %v12210_v42 }
0x1a34   : > { %v12239_v3 = vmul.f32 %v15662_v47, %v20292_v59 }
0x1a35   : > { %v15664_v0 = vpop.eup %15663 }
0x1a36   : > { %v12240_v33 = vmul.f32 %v15664_v0, %v20295_v38  ;;  %v12261_v10 = vmul.f32 %v20314_v14, %v12239_v3 }
0x1a38   : > { %v12262_v23 = vmul.f32 %v20314_v14, %v12240_v33  ;;  %v12283_v5 = vadd.f32 %v20322_v40, %v12261_v10 }
0x1a3a   : > { %v12284_v31 = vadd.f32 %v20322_v40, %v12262_v23 }
0x1a3b   : > { %v15666_v50 = vpop.eup %15665 }
0x1a3c   : > { %v12241_v34 = vmul.f32 %v15666_v50, %v20302_v17  ;;  %v12307_v44 = vpack.c.bf16 %v12284_v31, %v12283_v5 }
0x1a3d   : > { %v15668_v22 = vpop.eup %15667 }
0x1a3e   : > { %v12242_v59 = vmul.f32 %v15668_v22, %v20305_v20  ;;  %14835 = vmatpush3.bf16.msra.mxu0 %v12307_v44  ;;  %v12263_v38 = vmul.f32 %v20314_v14, %v12241_v34  ;;  %v15741_v20 = vmov 1.0|1.0  }
0x1a3f   : > { %14836 = vmatprep.subr.bf16.mxu0 %v20668_v19  ;;  %v15124_v19 = vld [vmem:[%s20503_s16 + $0x38] sm:$0xff]  }
0x1a40   : > { %v12264_v54 = vmul.f32 %v20314_v14, %v12242_v59  ;;  %v12285_v52 = vadd.f32 %v20322_v40, %v12263_v38  ;;  %14857 = vmatpush3.bf16.msra.mxu1 %v15124_v19 }
0x1a42   : > { %v12286_v17 = vadd.f32 %v20322_v40, %v12264_v54  ;;  %v13158_v40 = vld [vmem:[%s20504_s17] ss:$0 sm:$0xff] }
0x1a44   : > { %v12308_v51 = vpack.c.bf16 %v12286_v17, %v12285_v52 }
0x1a46   : > { %14837 = vmatpush3.bf16.msra.mxu0 %v12308_v51 }
0x1a49   : > { %14839 = vmatmul.mubr.msk.bf16.vlgmr.msra.gmra.mrb[144].mxu0 %vm13156_vm6, %v15741_v20 }
0x1b1c   : > { %v12343_v48 = vpop.f32.mrb[144].mxu0 }
0x1b1d   : > { %v14840_v60 = vpop.f32.mrb[145].mxu0 }
0x1b1e   : > { %v12346_v13 = vpop.f32.mrb[146].mxu0 }
0x1b1f   : > { %v12366_v14 = vpack.c.bf16 %v12346_v13, %v12343_v48  ;;  %v14841_v37 = vpop.f32.mrb[147].mxu0 }
0x1b21   : > { %14859 = vmatmul.mubr.bf16.vlgmr.msra.gmra.mrb[128].mxu1 %v12366_v14 }
0x1bf4   : > { %v12456_v28 = vpop.f32.mrb[128].mxu1 }
0x1bf5   : > { %v12457_v55 = vadd.f32 %v13158_v40, %v12456_v28  ;;  %v14860_v56 = vpop.f32.mrb[129].mxu1 }
0x1bf6   : > { %v12459_v16 = vpop.f32.mrb[130].mxu1 }
0x1bf7   : > { %15669 = vtanh.f32 %v12457_v55  ;;  %v12460_v11 = vadd.f32 %v13158_v40, %v12459_v16  ;;  %v14861_v32 = vpop.f32.mrb[131].mxu1 }
0x1bf9   : > { %15671 = vtanh.f32 %v12460_v11 }
0x1c01   : > { %v15670_v2 = vpop.eup %15669 }
0x1c02   : > { %v12467_v15 = vcombine.high %v15670_v2, %v15670_v2  ;;  %v12474_v9 = vrot.slane %v15670_v2, %v12473_v27 }
0x1c03   : > { %v15672_v21 = vpop.eup %15671 }
0x1c04   : > { %v12481_v35 = vrot.slane %v12467_v15, %v12473_v27  ;;  %v12482_v1 = vcombine.high %v12474_v9, %v12474_v9  ;;  %v12490_v58 = vrot.slane %v12474_v9, %v12473_v27  ;;  %13167 = vst.sshfl [vmem:[%s20417_s29] sm:$0x1 pattern:$0x73625140] %v12474_v9  ;;  %v12516_v62 = vcombine.high %v15672_v21, %v15672_v21 }
0x1c05   : > { %v12523_v30 = vrot.slane %v15672_v21, %v12473_v27 }
0x1c06   : > { %v12483_v45 = vcombine.high %v12481_v35, %v12481_v35  ;;  %v12497_v46 = vrot.slane %v12481_v35, %v12473_v27  ;;  %v12504_v29 = vrot.slane %v12482_v1, %v12473_v27  ;;  %v12512_v61 = vcombine.high %v12490_v58, %v12490_v58  ;;  %13168 = vst.sshfl [vmem:[%s20417_s29 + $0x1] sm:$0x1 pattern:$0x73625140] %v12482_v1 }
0x1c07   : > { %13169 = vst.sshfl [vmem:[%s20417_s29 + $0x4] sm:$0x1 pattern:$0x73625140] %v12481_v35  ;;  %v12530_v8 = vrot.slane %v12516_v62, %v12473_v27  ;;  %v12531_v39 = vcombine.high %v12523_v30, %v12523_v30  ;;  %v12539_v6 = vrot.slane %v12523_v30, %v12473_v27 }
0x1c08   : > { %13171 = vst.sshfl [vmem:[%s20417_s29 + $0x8] sm:$0x1 pattern:$0x73625140] %v12523_v30  ;;  %v12511_v36 = vrot.slane %v12483_v45, %v12473_v27  ;;  %v12513_v63 = vcombine.high %v12497_v46, %v12497_v46  ;;  %v12514_v25 = vcombine.high %v12504_v29, %v12504_v29  ;;  %12583 = vst [vmem:[%s20417_s29 + $0x2] sm:$0x1] %v12512_v61 }
0x1c09   : > { %13170 = vst.sshfl [vmem:[%s20417_s29 + $0x5] sm:$0x1 pattern:$0x73625140] %v12483_v45  ;;  %v12532_v7 = vcombine.high %v12530_v8, %v12530_v8  ;;  %v12546_v41 = vrot.slane %v12530_v8, %v12473_v27  ;;  %v12553_v43 = vrot.slane %v12531_v39, %v12473_v27  ;;  %v12561_v42 = vcombine.high %v12539_v6, %v12539_v6 }
0x1c0a   : > { %13172 = vst.sshfl [vmem:[%s20417_s29 + $0x9] sm:$0x1 pattern:$0x73625140] %v12531_v39  ;;  %v12515_v47 = vcombine.high %v12511_v36, %v12511_v36  ;;  %12584 = vst [vmem:[%s20417_s29 + $0x3] sm:$0x1] %v12514_v25 }
0x1c0b   : > { %13173 = vst.sshfl [vmem:[%s20417_s29 + $0xc] sm:$0x1 pattern:$0x73625140] %v12530_v8  ;;  %12587 = vst [vmem:[%s20417_s29 + $0x6] sm:$0x1] %v12513_v63  ;;  %v12560_v3 = vrot.slane %v12532_v7, %v12473_v27  ;;  %v12562_v0 = vcombine.high %v12546_v41, %v12546_v41  ;;  %v12563_v33 = vcombine.high %v12553_v43, %v12553_v43 }
0x1c0c   : > { %12591 = vst [vmem:[%s20417_s29 + $0xa] sm:$0x1] %v12561_v42  ;;  %13174 = vst.sshfl [vmem:[%s20417_s29 + $0xd] sm:$0x1 pattern:$0x73625140] %v12532_v7 }
0x1c0d   : > { %12588 = vst [vmem:[%s20417_s29 + $0x7] sm:$0x1] %v12515_v47  ;;  %v12564_v10 = vcombine.high %v12560_v3, %v12560_v3  ;;  %12592 = vst [vmem:[%s20417_s29 + $0xb] sm:$0x1] %v12563_v33 }
0x1c0e   : > { %12595 = vst [vmem:[%s20417_s29 + $0xe] sm:$0x1] %v12562_v0 }
0x1c0f   : > { %12596 = vst [vmem:[%s20417_s29 + $0xf] sm:$0x1] %v12564_v10 }
0x1c10   : > { %15686 = shalt.err (!%p15683_p3)
}
0x1c11   : > { %s15687_s21 = scalar_lea.hbm %s20437_s26, 256  ;;  %s15691_s24 = scalar_lea.hbm %s20505_s18, 512 }
0x1c12   : > { %p15688_p4 = scmp.ne.s32.totalorder %s20437_s26, %s15687_s21  ;;  %p15692_p9 = scmp.lt.u32.totalorder %s20437_s26, %s20505_s18 }
0x1c13   : > { %p15693_p10 = scmp.lt.u32.totalorder %s15691_s24, %s15687_s21  ;;  %p15695_p12 = scmp.lt.u32.totalorder %s15687_s21, %s20437_s26 }
0x1c14   : > { %p15689_p7 = pnand %p15688_p4, %p15879_p5 }
0x1c15   : > { %p15694_p11 = por %p15693_p10, %p15692_p9 }
0x1c16   : > { %p15690_p8 = pneg %p15689_p7 }
0x1c17   : > { %p15696_p13 = por %p15695_p12, %p15694_p11 }
0x1c19   : > { %p15697_p0 = pnand %p15696_p13, %p15690_p8 }
0x1c1b   : > { %15700 = shalt.err (!%p15697_p0)
}
0x1c1c   : > { %s15744_s19 = smov 16   ;;  %s15745_s1 = smov 1  }
0x1c1d   : > { %14926 = dma.vmem_to_hbm [thread:$0]  (%p15879_p5), %s20439_s22, 256, %s20437_s26, %s20446_s0, %s15744_s19, %s15744_s19, %s15745_s1  }
0x1c1e PF: > { %p14932_p1 = scmp.ge.s32.totalorder %s15735_s30, 2  ;;  %s12626_s29 = sand.u32 1, %s15723_s27  }
0x1c1f   : > { %s12627_s21 = scalar_lea.sflag [#allocation3], %s12626_s29 }
0x1c20   : > { %p14929_p2 = pnand %p14932_p1, %p15883_p6 }
0x1c22   : > { %15718 = dma.done.wait (!%p14929_p2), %s12627_s21, 256  }
0x1c23   : > { %15720 = vsyncadd (!%p14929_p2), %s12627_s21, 4294967040  ;;  %s20799_s30 = sld [smem:[#allocation6_spill]]  ;;  %s20800_s3 = sld [smem:[#allocation5_spill]] }
0x1c24   : > { %s20801_s29 = sld [smem:[#allocation7_spill]]  ;;  %s20802_s27 = smov %s15727_s28 }
0x1c29   : > { %p28_p3 = scmp.ge.s32.totalorder %s20799_s30, 4   ;;  %s20803_s28 = smov %s20800_s3 }
0x1c2b   :  { %30 = sbr.rel (!%p28_p3) target bundleno = 8 (0x8), region = 150 }
0x1c32   :  { %12632 = vsyncpa [#allocation3], 1 }
0x1c33   :  { %12634 = vsyncpa [#allocation3 + $0x1], 1 }

</bundles_post_ra>
